<compile_context>
chip_gen: v7x
topology: tpu7x:2x2x1
jax: 0.10.0
libtpu: 0.0.40
codegen_flags: <defaults>
</compile_context>

<pallas_src>
import functools

import jax
import jax.numpy as jnp
from jax.experimental import pallas as pl
from jax.experimental.pallas import tpu as pltpu

D_MODEL = 32
BN_EPS = 1e-5


def _round_up(x, m):
    return ((x + m - 1) // m) * m


# --------------------------------------------------------------------------
# Fused matmul kernel:  out = epilogue( A @ B )  with
#   epilogue(y) = relu?( y * scale + shift  (+ residual) )
# --------------------------------------------------------------------------
def _fused_matmul_kernel(*refs, relu, has_res):
    if has_res:
        a_ref, b_ref, s_ref, t_ref, r_ref, o_ref, acc_ref = refs
    else:
        a_ref, b_ref, s_ref, t_ref, o_ref, acc_ref = refs

    @pl.when(pl.program_id(2) == 0)
    def _():
        acc_ref[...] = jnp.zeros_like(acc_ref)

    acc_ref[...] += jnp.dot(a_ref[...], b_ref[...],
                            preferred_element_type=jnp.float32)

    @pl.when(pl.program_id(2) == pl.num_programs(2) - 1)
    def _():
        y = acc_ref[...] * s_ref[...] + t_ref[...]
        if has_res:
            y = y + r_ref[...].astype(jnp.float32)
        if relu:
            y = jnp.maximum(y, 0.0)
        o_ref[...] = y.astype(o_ref.dtype)


def fused_matmul(a, b, scale, shift, *, relu, residual=None,
                 out_dtype=jnp.bfloat16):
    """(M, K) @ (K, N) with fused per-column scale/shift (+residual, +ReLU)."""
    M, K = a.shape
    K2, N = b.shape
    assert K == K2

    # ---- adaptive tile selection (no activation padding for this network) ----
    if M >= 128:
        tm = 128
        Mp = _round_up(M, 128)
    else:
        Mp = _round_up(M, 8)
        tm = Mp

    if N % 256 == 0:
        tn = 256
    elif N % 128 == 0:
        tn = 128
    else:
        tn = N                      # full-dim lane block (allowed for any size)

    if K <= 512:
        tk = K
    else:
        tk = next((c for c in (512, 384, 256, 128) if K % c == 0), K)

    # Prefer >=2 tiles on a parallel grid axis (v7x megacore) when cheap.
    while (Mp // tm) * (N // tn) < 2:
        if tn >= 256 and N % (tn // 2) == 0:
            tn //= 2
        elif tm >= 16 and Mp % (tm // 2) == 0:
            tm //= 2
        else:
            break

    a = a.astype(jnp.bfloat16)
    b = b.astype(jnp.bfloat16)
    if residual is not None:
        residual = residual.astype(jnp.bfloat16)
    if Mp != M:                      # only the tiny (N*W)-row tail hits this
        a = jnp.pad(a, ((0, Mp - M), (0, 0)))
        if residual is not None:
            residual = jnp.pad(residual, ((0, Mp - M), (0, 0)))

    in_specs = [pl.BlockSpec((tm, tk), lambda i, j, k: (i, k)),
                pl.BlockSpec((tk, tn), lambda i, j, k: (k, j)),
                pl.BlockSpec((1, tn), lambda i, j, k: (0, j)),
                pl.BlockSpec((1, tn), lambda i, j, k: (0, j))]
    args = [a, b,
            scale.reshape(1, N).astype(jnp.float32),
            shift.reshape(1, N).astype(jnp.float32)]
    if residual is not None:
        in_specs.append(pl.BlockSpec((tm, tn), lambda i, j, k: (i, j)))
        args.append(residual)

    out = pl.pallas_call(
        functools.partial(_fused_matmul_kernel, relu=relu,
                          has_res=residual is not None),
        out_shape=jax.ShapeDtypeStruct((Mp, N), out_dtype),
        grid_spec=pltpu.PrefetchScalarGridSpec(
            num_scalar_prefetch=0,
            grid=(Mp // tm, N // tn, K // tk),
            in_specs=in_specs,
            out_specs=pl.BlockSpec((tm, tn), lambda i, j, k: (i, j)),
            scratch_shapes=[pltpu.VMEM((tm, tn), jnp.float32)]),
        compiler_params=pltpu.CompilerParams(
            dimension_semantics=("parallel", "parallel", "arbitrary"),
            vmem_limit_bytes=32 * 1024 * 1024),
    )(*args)
    return out[:M] if Mp != M else out


# --------------------------------------------------------------------------
# Gridded 3-way elementwise max (used by the separable max-pool)
# --------------------------------------------------------------------------
def _max3_kernel(a_ref, b_ref, c_ref, o_ref):
    o_ref[...] = jnp.maximum(jnp.maximum(a_ref[...], b_ref[...]), c_ref[...])


def pallas_max3(a, b, c):
    M, C = a.shape
    bm = next((t for t in (512, 256, 128, 64, 32, 16, 8)
               if M % t == 0 and M // t >= 2), M)
    spec = pl.BlockSpec((bm, C), lambda i: (i, 0))
    return pl.pallas_call(
        _max3_kernel,
        out_shape=jax.ShapeDtypeStruct((M, C), a.dtype),
        grid_spec=pltpu.PrefetchScalarGridSpec(
            num_scalar_prefetch=0,
            grid=(M // bm,),
            in_specs=[spec, spec, spec],
            out_specs=spec),
        compiler_params=pltpu.CompilerParams(
            dimension_semantics=("parallel",)),
    )(a, b, c)


# --------------------------------------------------------------------------
# Plain-JAX glue around the kernels
# --------------------------------------------------------------------------
def conv_bn(x, w2d, scale, shift, *, ksize, stride, padding, relu,
            residual=None):
    """Conv2d(no bias) + folded BN (+residual +ReLU) via im2col + fused matmul.

    x: (N, H, W, Cin) bf16;  w2d: (ksize*ksize*Cin, Cout) bf16.
    """
    # TODO(synk): im2col still materializes kh*kw shifted activation copies in
    # HBM (XLA slicing+concat); a direct-conv kernel reading strided windows
    # via index_map / manual DMA would remove this expansion.
    N, H, W, Cin = x.shape
    kh = kw = ksize
    Cout = w2d.shape[1]
    Ho = (H + 2 * padding - kh) // stride + 1
    Wo = (W + 2 * padding - kw) // stride + 1
    if padding > 0:
        x = jnp.pad(x, ((0, 0), (padding, padding), (padding, padding), (0, 0)))
    pieces = []
    for ki in range(kh):
        for kj in range(kw):
            pieces.append(x[:, ki:ki + stride * (Ho - 1) + 1:stride,
                            kj:kj + stride * (Wo - 1) + 1:stride, :])
    patches = pieces[0] if len(pieces) == 1 else jnp.concatenate(pieces, axis=-1)
    a = patches.reshape(N * Ho * Wo, kh * kw * Cin)
    r2d = None if residual is None else residual.reshape(N * Ho * Wo, Cout)
    y = fused_matmul(a, w2d, scale, shift, relu=relu, residual=r2d)
    return y.reshape(N, Ho, Wo, Cout)


def maxpool3x3s2(x):
    """3x3 / stride-2 / pad-1 max pool, separable (row pass then column pass)."""
    N, H, W, C = x.shape
    Ho = (H - 1) // 2 + 1
    Wo = (W - 1) // 2 + 1
    # horizontal pass: pad W (1 left, enough right), 3 strided slices -> max
    xw = jnp.pad(x, ((0, 0), (0, 0), (1, 2 * Wo - W), (0, 0)),
                 constant_values=-jnp.inf)
    cols = [xw[:, :, k:k + 2 * (Wo - 1) + 1:2, :].reshape(N * H * Wo, C)
            for k in range(3)]
    rmax = pallas_max3(*cols).reshape(N, H, Wo, C)
    # vertical pass
    xh = jnp.pad(rmax, ((0, 0), (1, 2 * Ho - H), (0, 0), (0, 0)),
                 constant_values=-jnp.inf)
    rows = [xh[:, k:k + 2 * (Ho - 1) + 1:2, :, :].reshape(N * Ho * Wo, C)
            for k in range(3)]
    return pallas_max3(*rows).reshape(N, Ho, Wo, C)


def basic_block(x, blk):
    s = blk["stride"]
    if "down_w" in blk:
        identity = conv_bn(x, blk["down_w"], blk["down_scale"], blk["down_shift"],
                           ksize=1, stride=s, padding=0, relu=False)
    else:
        identity = x
    out = conv_bn(x, blk["conv1_w"], blk["bn1_scale"], blk["bn1_shift"],
                  ksize=3, stride=s, padding=1, relu=True)
    # conv2 + bn2 + residual add + ReLU fused into one matmul epilogue
    out = conv_bn(out, blk["conv2_w"], blk["bn2_scale"], blk["bn2_shift"],
                  ksize=3, stride=1, padding=1, relu=True, residual=identity)
    return out


def encoder_cnn_forward(params, x_nchw):
    # input NCHW -> internal NHWC (bf16) -> output (N, W_out, d_model) f32
    x = jnp.transpose(x_nchw, (0, 2, 3, 1)).astype(jnp.bfloat16)
    # ResNet-18 stem: conv7x7/s2 + BN + ReLU (fused), then 3x3/s2 max pool
    x = conv_bn(x, params["conv1_w"], params["bn1_scale"], params["bn1_shift"],
                ksize=7, stride=2, padding=3, relu=True)
    x = maxpool3x3s2(x)
    # layer1 .. layer4
    for blocks in params["layers"]:
        for blk in blocks:
            x = basic_block(x, blk)
    # Fused tail: AdaptiveAvgPool2d((1, None)) over H + permute + Linear + bias.
    # mean_h(x) @ P^T + b  ==  (x as (N*W, H*C)) @ tile(P^T, (H,1)) * (1/H) + b
    N, H, W, C = x.shape
    d_model = params["proj_wT"].shape[1]
    a = jnp.transpose(x, (0, 2, 1, 3)).reshape(N * W, H * C)
    b = jnp.tile(params["proj_wT"], (H, 1))          # (H*C, d_model), bf16
    scale = jnp.full((d_model,), 1.0 / H, jnp.float32)
    y = fused_matmul(a, b, scale, params["proj_b"], relu=False,
                     out_dtype=jnp.float32)
    return y.reshape(N, W, d_model)


# --------------------------------------------------------------------------
# Deterministic synthetic parameters (ResNet-18 shapes, 1-channel first conv)
# --------------------------------------------------------------------------
def init_encoder_params(key, d_model=D_MODEL):
    keys = iter(jax.random.split(key, 256))

    def nk():
        return next(keys)

    def conv_w(cout, cin, k):
        std = (2.0 / (cin * k * k)) ** 0.5
        return jax.random.normal(nk(), (cout, cin, k, k), jnp.float32) * std

    def bn(c):
        return dict(
            gamma=1.0 + 0.1 * jax.random.normal(nk(), (c,), jnp.float32),
            beta=0.1 * jax.random.normal(nk(), (c,), jnp.float32),
            mean=0.1 * jax.random.normal(nk(), (c,), jnp.float32),
            var=1.0 + 0.1 * jnp.abs(jax.random.normal(nk(), (c,), jnp.float32)),
        )

    params = dict(conv1_w=conv_w(64, 1, 7), bn1=bn(64))
    layer_specs = [(64, 64, 1), (64, 128, 2), (128, 256, 2), (256, 512, 2)]
    layers = []
    for cin, cout, stride in layer_specs:
        blocks = []
        for bidx in range(2):
            b_cin = cin if bidx == 0 else cout
            b_stride = stride if bidx == 0 else 1
            blk = dict(conv1_w=conv_w(cout, b_cin, 3), bn1=bn(cout),
                       conv2_w=conv_w(cout, cout, 3), bn2=bn(cout),
                       stride=b_stride)
            if bidx == 0 and (stride != 1 or cin != cout):
                blk["down_w"] = conv_w(cout, b_cin, 1)
                blk["down_bn"] = bn(cout)
            blocks.append(blk)
        layers.append(blocks)
    params["layers"] = layers
    params["proj_w"] = (jax.random.normal(nk(), (d_model, 512), jnp.float32)
                        * (1.0 / 512 ** 0.5))
    params["proj_b"] = 0.1 * jax.random.normal(nk(), (d_model,), jnp.float32)
    return params


def prepare_params(raw, eps=BN_EPS):
    """One-time weight prep: OIHW -> (K, Cout) bf16 matmul weights; BN folded."""
    # TODO(synk): eval-mode BN only (running stats folded); train-mode per-batch
    # statistics are not implemented.
    def fold_bn(bnp):
        scale = bnp["gamma"] / jnp.sqrt(bnp["var"] + eps)
        shift = bnp["beta"] - bnp["mean"] * scale
        return scale.astype(jnp.float32), shift.astype(jnp.float32)

    def conv_mat(w):  # (Cout, Cin, kh, kw) -> (kh*kw*Cin, Cout), bf16
        cout, cin, kh, kw = w.shape
        return (jnp.transpose(w, (2, 3, 1, 0))
                .reshape(kh * kw * cin, cout).astype(jnp.bfloat16))

    p = dict(conv1_w=conv_mat(raw["conv1_w"]))
    p["bn1_scale"], p["bn1_shift"] = fold_bn(raw["bn1"])
    layers = []
    for blocks in raw["layers"]:
        pb = []
        for blk in blocks:
            nb = dict(stride=blk["stride"],
                      conv1_w=conv_mat(blk["conv1_w"]),
                      conv2_w=conv_mat(blk["conv2_w"]))
            nb["bn1_scale"], nb["bn1_shift"] = fold_bn(blk["bn1"])
            nb["bn2_scale"], nb["bn2_shift"] = fold_bn(blk["bn2"])
            if "down_w" in blk:
                nb["down_w"] = conv_mat(blk["down_w"])
                nb["down_scale"], nb["down_shift"] = fold_bn(blk["down_bn"])
            pb.append(nb)
        layers.append(pb)
    p["layers"] = layers
    p["proj_wT"] = raw["proj_w"].T.astype(jnp.bfloat16)    # (512, d_model)
    p["proj_b"] = raw["proj_b"].astype(jnp.float32)
    return p


if __name__ == "__main__":
    key = jax.random.PRNGKey(0)
    pkey, xkey = jax.random.split(key)
    raw_params = init_encoder_params(pkey, d_model=D_MODEL)
    params = prepare_params(raw_params)

    # 1-channel NCHW input (the module replaces resnet.conv1 with in_channels=1).
    # 64x64 keeps things small while surviving ResNet-18's /32 downsampling.
    x = jax.random.normal(xkey, (2, 1, 64, 64), jnp.float32)

    fwd = jax.jit(lambda inp: encoder_cnn_forward(params, inp))
    out = jax.block_until_ready(fwd(x))

    assert out.shape == (2, 2, D_MODEL), out.shape   # (N, W_out, d_model)
    assert bool(jnp.all(jnp.isfinite(out)))
    print("KERNEL_OK")
</pallas_src>

<mosaic_0001>
module attributes {stable_mosaic.version = 11 : i64} {
  func.func @_fused_matmul_kernel(%arg0: i32, %arg1: i32, %arg2: i32, %arg3: memref<128x49xbf16, #tpu.memory_space<vmem>>, %arg4: memref<49x64xbf16, #tpu.memory_space<vmem>>, %arg5: memref<1x64xf32, #tpu.memory_space<vmem>>, %arg6: memref<1x64xf32, #tpu.memory_space<vmem>>, %arg7: memref<128x64xbf16, #tpu.memory_space<vmem>>, %arg8: memref<128x64xf32, #tpu.memory_space<vmem>>) attributes {dimension_semantics = [#tpu.dimension_semantics<parallel>, #tpu.dimension_semantics<parallel>, #tpu.dimension_semantics<arbitrary>], iteration_bounds = array<i64: 16, 1, 1>, scalar_prefetch = 0 : i64, scratch_operands = 1 : i64, tpu.core_type = #tpu.core_type<tc>, window_params = [{transform_indices = @transform_0, window_bounds = array<i64: 128, 49>}, {transform_indices = @transform_1, window_bounds = array<i64: 49, 64>}, {transform_indices = @transform_2, window_bounds = array<i64: 1, 64>}, {transform_indices = @transform_3, window_bounds = array<i64: 1, 64>}, {transform_indices = @transform_4, window_bounds = array<i64: 128, 64>}]} {
    %c0_i32 = arith.constant 0 : i32
    %0 = arith.cmpi eq, %arg2, %c0_i32 : i32
    %1 = arith.extui %0 : i1 to i32
    %c0_i32_0 = arith.constant 0 : i32
    %2 = arith.cmpi ne, %1, %c0_i32_0 : i32
    scf.if %2 {
      %cst_10 = arith.constant 0.000000e+00 : f32
      %12 = vector.broadcast %cst_10 : f32 to vector<128x64xf32>
      %c0_11 = arith.constant 0 : index
      %c0_12 = arith.constant 0 : index
      %13 = vector.load %arg8[%c0_11, %c0_12] : memref<128x64xf32, #tpu.memory_space<vmem>>, vector<128x64xf32>
      tpu.vector_store %arg8[%c0_11, %c0_12], %12 {strides = array<i32>} : memref<128x64xf32, #tpu.memory_space<vmem>>, vector<128x64xf32>,
    } else {
    }
    %c0 = arith.constant 0 : index
    %c0_1 = arith.constant 0 : index
    %3 = vector.load %arg8[%c0, %c0_1] : memref<128x64xf32, #tpu.memory_space<vmem>>, vector<128x64xf32>
    %c0_2 = arith.constant 0 : index
    %c0_3 = arith.constant 0 : index
    %4 = vector.load %arg3[%c0_2, %c0_3] : memref<128x49xbf16, #tpu.memory_space<vmem>>, vector<128x49xbf16>
    %c0_4 = arith.constant 0 : index
    %c0_5 = arith.constant 0 : index
    %5 = vector.load %arg4[%c0_4, %c0_5] : memref<49x64xbf16, #tpu.memory_space<vmem>>, vector<49x64xbf16>
    %cst = arith.constant dense<0.000000e+00> : vector<128x64xf32>
    %6 = tpu.matmul %4, %5, %cst {dimension_numbers = #tpu.dot_dimension_numbers<[1], [0], [0], [1], [0, 0, 1, 1], [], []>} : vector<128x49xbf16>, vector<49x64xbf16>, vector<128x64xf32> -> vector<128x64xf32>
    %7 = arith.addf %3, %6 : vector<128x64xf32>
    %c0_6 = arith.constant 0 : index
    %c0_7 = arith.constant 0 : index
    %8 = vector.load %arg8[%c0_6, %c0_7] : memref<128x64xf32, #tpu.memory_space<vmem>>, vector<128x64xf32>
    tpu.vector_store %arg8[%c0_6, %c0_7], %7 {strides = array<i32>} : memref<128x64xf32, #tpu.memory_space<vmem>>, vector<128x64xf32>,
    %c0_i32_8 = arith.constant 0 : i32
    %9 = arith.cmpi eq, %arg2, %c0_i32_8 : i32
    %10 = arith.extui %9 : i1 to i32
    %c0_i32_9 = arith.constant 0 : i32
    %11 = arith.cmpi ne, %10, %c0_i32_9 : i32
    scf.if %11 {
      %c0_10 = arith.constant 0 : index
      %c0_11 = arith.constant 0 : index
      %12 = vector.load %arg8[%c0_10, %c0_11] : memref<128x64xf32, #tpu.memory_space<vmem>>, vector<128x64xf32>
      %c0_12 = arith.constant 0 : index
      %c0_13 = arith.constant 0 : index
      %13 = vector.load %arg5[%c0_12, %c0_13] : memref<1x64xf32, #tpu.memory_space<vmem>>, vector<1x64xf32>
      %14 = vector.broadcast %13 : vector<1x64xf32> to vector<128x64xf32>
      %15 = arith.mulf %12, %14 : vector<128x64xf32>
      %c0_14 = arith.constant 0 : index
      %c0_15 = arith.constant 0 : index
      %16 = vector.load %arg6[%c0_14, %c0_15] : memref<1x64xf32, #tpu.memory_space<vmem>>, vector<1x64xf32>
      %17 = vector.broadcast %16 : vector<1x64xf32> to vector<128x64xf32>
      %18 = arith.addf %15, %17 : vector<128x64xf32>
      %cst_16 = arith.constant 0.000000e+00 : f32
      %19 = vector.broadcast %cst_16 : f32 to vector<128x64xf32>
      %20 = arith.maximumf %18, %19 : vector<128x64xf32>
      %21 = arith.truncf %20 : vector<128x64xf32> to vector<128x64xbf16>
      %c0_17 = arith.constant 0 : index
      %c0_18 = arith.constant 0 : index
      %22 = vector.load %arg7[%c0_17, %c0_18] : memref<128x64xbf16, #tpu.memory_space<vmem>>, vector<128x64xbf16>
      tpu.vector_store %arg7[%c0_17, %c0_18], %21 {strides = array<i32>} : memref<128x64xbf16, #tpu.memory_space<vmem>>, vector<128x64xbf16>,
    } else {
    }
    return
  }
  func.func @transform_0(%arg0: i32, %arg1: i32, %arg2: i32) -> (i32, i32) {
    %c0_i32 = arith.constant 0 : i32
    return %arg0, %arg2 : i32, i32
  }
  func.func @transform_1(%arg0: i32, %arg1: i32, %arg2: i32) -> (i32, i32) {
    %c0_i32 = arith.constant 0 : i32
    return %arg2, %arg1 : i32, i32
  }
  func.func @transform_2(%arg0: i32, %arg1: i32, %arg2: i32) -> (i32, i32) {
    %c0_i32 = arith.constant 0 : i32
    %c0_i32_0 = arith.constant 0 : i32
    return %c0_i32, %arg1 : i32, i32
  }
  func.func @transform_3(%arg0: i32, %arg1: i32, %arg2: i32) -> (i32, i32) {
    %c0_i32 = arith.constant 0 : i32
    %c0_i32_0 = arith.constant 0 : i32
    return %c0_i32, %arg1 : i32, i32
  }
  func.func @transform_4(%arg0: i32, %arg1: i32, %arg2: i32) -> (i32, i32) {
    %c0_i32 = arith.constant 0 : i32
    return %arg0, %arg1 : i32, i32
  }
}

module attributes {stable_mosaic.version = 11 : i64} {
  func.func @_max3_kernel(%arg0: i32, %arg1: memref<512x64xbf16, #tpu.memory_space<vmem>>, %arg2: memref<512x64xbf16, #tpu.memory_space<vmem>>, %arg3: memref<512x64xbf16, #tpu.memory_space<vmem>>, %arg4: memref<512x64xbf16, #tpu.memory_space<vmem>>) attributes {dimension_semantics = [#tpu.dimension_semantics<parallel>], iteration_bounds = array<i64: 2>, scalar_prefetch = 0 : i64, scratch_operands = 0 : i64, tpu.core_type = #tpu.core_type<tc>, window_params = [{transform_indices = @transform_0, window_bounds = array<i64: 512, 64>}, {transform_indices = @transform_1, window_bounds = array<i64: 512, 64>}, {transform_indices = @transform_2, window_bounds = array<i64: 512, 64>}, {transform_indices = @transform_3, window_bounds = array<i64: 512, 64>}]} {
    %c0 = arith.constant 0 : index
    %c0_0 = arith.constant 0 : index
    %0 = vector.load %arg1[%c0, %c0_0] : memref<512x64xbf16, #tpu.memory_space<vmem>>, vector<512x64xbf16>
    %c0_1 = arith.constant 0 : index
    %c0_2 = arith.constant 0 : index
    %1 = vector.load %arg2[%c0_1, %c0_2] : memref<512x64xbf16, #tpu.memory_space<vmem>>, vector<512x64xbf16>
    %2 = arith.maximumf %0, %1 : vector<512x64xbf16>
    %c0_3 = arith.constant 0 : index
    %c0_4 = arith.constant 0 : index
    %3 = vector.load %arg3[%c0_3, %c0_4] : memref<512x64xbf16, #tpu.memory_space<vmem>>, vector<512x64xbf16>
    %4 = arith.maximumf %2, %3 : vector<512x64xbf16>
    %c0_5 = arith.constant 0 : index
    %c0_6 = arith.constant 0 : index
    %5 = vector.load %arg4[%c0_5, %c0_6] : memref<512x64xbf16, #tpu.memory_space<vmem>>, vector<512x64xbf16>
    tpu.vector_store %arg4[%c0_5, %c0_6], %4 {strides = array<i32>} : memref<512x64xbf16, #tpu.memory_space<vmem>>, vector<512x64xbf16>,
    return
  }
  func.func @transform_0(%arg0: i32) -> (i32, i32) {
    %c0_i32 = arith.constant 0 : i32
    %c0_i32_0 = arith.constant 0 : i32
    return %arg0, %c0_i32 : i32, i32
  }
  func.func @transform_1(%arg0: i32) -> (i32, i32) {
    %c0_i32 = arith.constant 0 : i32
    %c0_i32_0 = arith.constant 0 : i32
    return %arg0, %c0_i32 : i32, i32
  }
  func.func @transform_2(%arg0: i32) -> (i32, i32) {
    %c0_i32 = arith.constant 0 : i32
    %c0_i32_0 = arith.constant 0 : i32
    return %arg0, %c0_i32 : i32, i32
  }
  func.func @transform_3(%arg0: i32) -> (i32, i32) {
    %c0_i32 = arith.constant 0 : i32
    %c0_i32_0 = arith.constant 0 : i32
    return %arg0, %c0_i32 : i32, i32
  }
}

module attributes {stable_mosaic.version = 11 : i64} {
  func.func @_max3_kernel(%arg0: i32, %arg1: memref<256x64xbf16, #tpu.memory_space<vmem>>, %arg2: memref<256x64xbf16, #tpu.memory_space<vmem>>, %arg3: memref<256x64xbf16, #tpu.memory_space<vmem>>, %arg4: memref<256x64xbf16, #tpu.memory_space<vmem>>) attributes {dimension_semantics = [#tpu.dimension_semantics<parallel>], iteration_bounds = array<i64: 2>, scalar_prefetch = 0 : i64, scratch_operands = 0 : i64, tpu.core_type = #tpu.core_type<tc>, window_params = [{transform_indices = @transform_0, window_bounds = array<i64: 256, 64>}, {transform_indices = @transform_1, window_bounds = array<i64: 256, 64>}, {transform_indices = @transform_2, window_bounds = array<i64: 256, 64>}, {transform_indices = @transform_3, window_bounds = array<i64: 256, 64>}]} {
    %c0 = arith.constant 0 : index
    %c0_0 = arith.constant 0 : index
    %0 = vector.load %arg1[%c0, %c0_0] : memref<256x64xbf16, #tpu.memory_space<vmem>>, vector<256x64xbf16>
    %c0_1 = arith.constant 0 : index
    %c0_2 = arith.constant 0 : index
    %1 = vector.load %arg2[%c0_1, %c0_2] : memref<256x64xbf16, #tpu.memory_space<vmem>>, vector<256x64xbf16>
    %2 = arith.maximumf %0, %1 : vector<256x64xbf16>
    %c0_3 = arith.constant 0 : index
    %c0_4 = arith.constant 0 : index
    %3 = vector.load %arg3[%c0_3, %c0_4] : memref<256x64xbf16, #tpu.memory_space<vmem>>, vector<256x64xbf16>
    %4 = arith.maximumf %2, %3 : vector<256x64xbf16>
    %c0_5 = arith.constant 0 : index
    %c0_6 = arith.constant 0 : index
    %5 = vector.load %arg4[%c0_5, %c0_6] : memref<256x64xbf16, #tpu.memory_space<vmem>>, vector<256x64xbf16>
    tpu.vector_store %arg4[%c0_5, %c0_6], %4 {strides = array<i32>} : memref<256x64xbf16, #tpu.memory_space<vmem>>, vector<256x64xbf16>,
    return
  }
  func.func @transform_0(%arg0: i32) -> (i32, i32) {
    %c0_i32 = arith.constant 0 : i32
    %c0_i32_0 = arith.constant 0 : i32
    return %arg0, %c0_i32 : i32, i32
  }
  func.func @transform_1(%arg0: i32) -> (i32, i32) {
    %c0_i32 = arith.constant 0 : i32
    %c0_i32_0 = arith.constant 0 : i32
    return %arg0, %c0_i32 : i32, i32
  }
  func.func @transform_2(%arg0: i32) -> (i32, i32) {
    %c0_i32 = arith.constant 0 : i32
    %c0_i32_0 = arith.constant 0 : i32
    return %arg0, %c0_i32 : i32, i32
  }
  func.func @transform_3(%arg0: i32) -> (i32, i32) {
    %c0_i32 = arith.constant 0 : i32
    %c0_i32_0 = arith.constant 0 : i32
    return %arg0, %c0_i32 : i32, i32
  }
}

module attributes {stable_mosaic.version = 11 : i64} {
  func.func @_fused_matmul_kernel(%arg0: i32, %arg1: i32, %arg2: i32, %arg3: memref<128x576xbf16, #tpu.memory_space<vmem>>, %arg4: memref<576x64xbf16, #tpu.memory_space<vmem>>, %arg5: memref<1x64xf32, #tpu.memory_space<vmem>>, %arg6: memref<1x64xf32, #tpu.memory_space<vmem>>, %arg7: memref<128x64xbf16, #tpu.memory_space<vmem>>, %arg8: memref<128x64xf32, #tpu.memory_space<vmem>>) attributes {dimension_semantics = [#tpu.dimension_semantics<parallel>, #tpu.dimension_semantics<parallel>, #tpu.dimension_semantics<arbitrary>], iteration_bounds = array<i64: 4, 1, 1>, scalar_prefetch = 0 : i64, scratch_operands = 1 : i64, tpu.core_type = #tpu.core_type<tc>, window_params = [{transform_indices = @transform_0, window_bounds = array<i64: 128, 576>}, {transform_indices = @transform_1, window_bounds = array<i64: 576, 64>}, {transform_indices = @transform_2, window_bounds = array<i64: 1, 64>}, {transform_indices = @transform_3, window_bounds = array<i64: 1, 64>}, {transform_indices = @transform_4, window_bounds = array<i64: 128, 64>}]} {
    %c0_i32 = arith.constant 0 : i32
    %0 = arith.cmpi eq, %arg2, %c0_i32 : i32
    %1 = arith.extui %0 : i1 to i32
    %c0_i32_0 = arith.constant 0 : i32
    %2 = arith.cmpi ne, %1, %c0_i32_0 : i32
    scf.if %2 {
      %cst_10 = arith.constant 0.000000e+00 : f32
      %12 = vector.broadcast %cst_10 : f32 to vector<128x64xf32>
      %c0_11 = arith.constant 0 : index
      %c0_12 = arith.constant 0 : index
      %13 = vector.load %arg8[%c0_11, %c0_12] : memref<128x64xf32, #tpu.memory_space<vmem>>, vector<128x64xf32>
      tpu.vector_store %arg8[%c0_11, %c0_12], %12 {strides = array<i32>} : memref<128x64xf32, #tpu.memory_space<vmem>>, vector<128x64xf32>,
    } else {
    }
    %c0 = arith.constant 0 : index
    %c0_1 = arith.constant 0 : index
    %3 = vector.load %arg8[%c0, %c0_1] : memref<128x64xf32, #tpu.memory_space<vmem>>, vector<128x64xf32>
    %c0_2 = arith.constant 0 : index
    %c0_3 = arith.constant 0 : index
    %4 = vector.load %arg3[%c0_2, %c0_3] : memref<128x576xbf16, #tpu.memory_space<vmem>>, vector<128x576xbf16>
    %c0_4 = arith.constant 0 : index
    %c0_5 = arith.constant 0 : index
    %5 = vector.load %arg4[%c0_4, %c0_5] : memref<576x64xbf16, #tpu.memory_space<vmem>>, vector<576x64xbf16>
    %cst = arith.constant dense<0.000000e+00> : vector<128x64xf32>
    %6 = tpu.matmul %4, %5, %cst {dimension_numbers = #tpu.dot_dimension_numbers<[1], [0], [0], [1], [0, 0, 1, 1], [], []>} : vector<128x576xbf16>, vector<576x64xbf16>, vector<128x64xf32> -> vector<128x64xf32>
    %7 = arith.addf %3, %6 : vector<128x64xf32>
    %c0_6 = arith.constant 0 : index
    %c0_7 = arith.constant 0 : index
    %8 = vector.load %arg8[%c0_6, %c0_7] : memref<128x64xf32, #tpu.memory_space<vmem>>, vector<128x64xf32>
    tpu.vector_store %arg8[%c0_6, %c0_7], %7 {strides = array<i32>} : memref<128x64xf32, #tpu.memory_space<vmem>>, vector<128x64xf32>,
    %c0_i32_8 = arith.constant 0 : i32
    %9 = arith.cmpi eq, %arg2, %c0_i32_8 : i32
    %10 = arith.extui %9 : i1 to i32
    %c0_i32_9 = arith.constant 0 : i32
    %11 = arith.cmpi ne, %10, %c0_i32_9 : i32
    scf.if %11 {
      %c0_10 = arith.constant 0 : index
      %c0_11 = arith.constant 0 : index
      %12 = vector.load %arg8[%c0_10, %c0_11] : memref<128x64xf32, #tpu.memory_space<vmem>>, vector<128x64xf32>
      %c0_12 = arith.constant 0 : index
      %c0_13 = arith.constant 0 : index
      %13 = vector.load %arg5[%c0_12, %c0_13] : memref<1x64xf32, #tpu.memory_space<vmem>>, vector<1x64xf32>
      %14 = vector.broadcast %13 : vector<1x64xf32> to vector<128x64xf32>
      %15 = arith.mulf %12, %14 : vector<128x64xf32>
      %c0_14 = arith.constant 0 : index
      %c0_15 = arith.constant 0 : index
      %16 = vector.load %arg6[%c0_14, %c0_15] : memref<1x64xf32, #tpu.memory_space<vmem>>, vector<1x64xf32>
      %17 = vector.broadcast %16 : vector<1x64xf32> to vector<128x64xf32>
      %18 = arith.addf %15, %17 : vector<128x64xf32>
      %cst_16 = arith.constant 0.000000e+00 : f32
      %19 = vector.broadcast %cst_16 : f32 to vector<128x64xf32>
      %20 = arith.maximumf %18, %19 : vector<128x64xf32>
      %21 = arith.truncf %20 : vector<128x64xf32> to vector<128x64xbf16>
      %c0_17 = arith.constant 0 : index
      %c0_18 = arith.constant 0 : index
      %22 = vector.load %arg7[%c0_17, %c0_18] : memref<128x64xbf16, #tpu.memory_space<vmem>>, vector<128x64xbf16>
      tpu.vector_store %arg7[%c0_17, %c0_18], %21 {strides = array<i32>} : memref<128x64xbf16, #tpu.memory_space<vmem>>, vector<128x64xbf16>,
    } else {
    }
    return
  }
  func.func @transform_0(%arg0: i32, %arg1: i32, %arg2: i32) -> (i32, i32) {
    %c0_i32 = arith.constant 0 : i32
    return %arg0, %arg2 : i32, i32
  }
  func.func @transform_1(%arg0: i32, %arg1: i32, %arg2: i32) -> (i32, i32) {
    %c0_i32 = arith.constant 0 : i32
    return %arg2, %arg1 : i32, i32
  }
  func.func @transform_2(%arg0: i32, %arg1: i32, %arg2: i32) -> (i32, i32) {
    %c0_i32 = arith.constant 0 : i32
    %c0_i32_0 = arith.constant 0 : i32
    return %c0_i32, %arg1 : i32, i32
  }
  func.func @transform_3(%arg0: i32, %arg1: i32, %arg2: i32) -> (i32, i32) {
    %c0_i32 = arith.constant 0 : i32
    %c0_i32_0 = arith.constant 0 : i32
    return %c0_i32, %arg1 : i32, i32
  }
  func.func @transform_4(%arg0: i32, %arg1: i32, %arg2: i32) -> (i32, i32) {
    %c0_i32 = arith.constant 0 : i32
    return %arg0, %arg1 : i32, i32
  }
}

module attributes {stable_mosaic.version = 11 : i64} {
  func.func @_fused_matmul_kernel(%arg0: i32, %arg1: i32, %arg2: i32, %arg3: memref<128x576xbf16, #tpu.memory_space<vmem>>, %arg4: memref<576x64xbf16, #tpu.memory_space<vmem>>, %arg5: memref<1x64xf32, #tpu.memory_space<vmem>>, %arg6: memref<1x64xf32, #tpu.memory_space<vmem>>, %arg7: memref<128x64xbf16, #tpu.memory_space<vmem>>, %arg8: memref<128x64xbf16, #tpu.memory_space<vmem>>, %arg9: memref<128x64xf32, #tpu.memory_space<vmem>>) attributes {dimension_semantics = [#tpu.dimension_semantics<parallel>, #tpu.dimension_semantics<parallel>, #tpu.dimension_semantics<arbitrary>], iteration_bounds = array<i64: 4, 1, 1>, scalar_prefetch = 0 : i64, scratch_operands = 1 : i64, tpu.core_type = #tpu.core_type<tc>, window_params = [{transform_indices = @transform_0, window_bounds = array<i64: 128, 576>}, {transform_indices = @transform_1, window_bounds = array<i64: 576, 64>}, {transform_indices = @transform_2, window_bounds = array<i64: 1, 64>}, {transform_indices = @transform_3, window_bounds = array<i64: 1, 64>}, {transform_indices = @transform_4, window_bounds = array<i64: 128, 64>}, {transform_indices = @transform_5, window_bounds = array<i64: 128, 64>}]} {
    %c0_i32 = arith.constant 0 : i32
    %0 = arith.cmpi eq, %arg2, %c0_i32 : i32
    %1 = arith.extui %0 : i1 to i32
    %c0_i32_0 = arith.constant 0 : i32
    %2 = arith.cmpi ne, %1, %c0_i32_0 : i32
    scf.if %2 {
      %cst_10 = arith.constant 0.000000e+00 : f32
      %12 = vector.broadcast %cst_10 : f32 to vector<128x64xf32>
      %c0_11 = arith.constant 0 : index
      %c0_12 = arith.constant 0 : index
      %13 = vector.load %arg9[%c0_11, %c0_12] : memref<128x64xf32, #tpu.memory_space<vmem>>, vector<128x64xf32>
      tpu.vector_store %arg9[%c0_11, %c0_12], %12 {strides = array<i32>} : memref<128x64xf32, #tpu.memory_space<vmem>>, vector<128x64xf32>,
    } else {
    }
    %c0 = arith.constant 0 : index
    %c0_1 = arith.constant 0 : index
    %3 = vector.load %arg9[%c0, %c0_1] : memref<128x64xf32, #tpu.memory_space<vmem>>, vector<128x64xf32>
    %c0_2 = arith.constant 0 : index
    %c0_3 = arith.constant 0 : index
    %4 = vector.load %arg3[%c0_2, %c0_3] : memref<128x576xbf16, #tpu.memory_space<vmem>>, vector<128x576xbf16>
    %c0_4 = arith.constant 0 : index
    %c0_5 = arith.constant 0 : index
    %5 = vector.load %arg4[%c0_4, %c0_5] : memref<576x64xbf16, #tpu.memory_space<vmem>>, vector<576x64xbf16>
    %cst = arith.constant dense<0.000000e+00> : vector<128x64xf32>
    %6 = tpu.matmul %4, %5, %cst {dimension_numbers = #tpu.dot_dimension_numbers<[1], [0], [0], [1], [0, 0, 1, 1], [], []>} : vector<128x576xbf16>, vector<576x64xbf16>, vector<128x64xf32> -> vector<128x64xf32>
    %7 = arith.addf %3, %6 : vector<128x64xf32>
    %c0_6 = arith.constant 0 : index
    %c0_7 = arith.constant 0 : index
    %8 = vector.load %arg9[%c0_6, %c0_7] : memref<128x64xf32, #tpu.memory_space<vmem>>, vector<128x64xf32>
    tpu.vector_store %arg9[%c0_6, %c0_7], %7 {strides = array<i32>} : memref<128x64xf32, #tpu.memory_space<vmem>>, vector<128x64xf32>,
    %c0_i32_8 = arith.constant 0 : i32
    %9 = arith.cmpi eq, %arg2, %c0_i32_8 : i32
    %10 = arith.extui %9 : i1 to i32
    %c0_i32_9 = arith.constant 0 : i32
    %11 = arith.cmpi ne, %10, %c0_i32_9 : i32
    scf.if %11 {
      %c0_10 = arith.constant 0 : index
      %c0_11 = arith.constant 0 : index
      %12 = vector.load %arg9[%c0_10, %c0_11] : memref<128x64xf32, #tpu.memory_space<vmem>>, vector<128x64xf32>
      %c0_12 = arith.constant 0 : index
      %c0_13 = arith.constant 0 : index
      %13 = vector.load %arg5[%c0_12, %c0_13] : memref<1x64xf32, #tpu.memory_space<vmem>>, vector<1x64xf32>
      %14 = vector.broadcast %13 : vector<1x64xf32> to vector<128x64xf32>
      %15 = arith.mulf %12, %14 : vector<128x64xf32>
      %c0_14 = arith.constant 0 : index
      %c0_15 = arith.constant 0 : index
      %16 = vector.load %arg6[%c0_14, %c0_15] : memref<1x64xf32, #tpu.memory_space<vmem>>, vector<1x64xf32>
      %17 = vector.broadcast %16 : vector<1x64xf32> to vector<128x64xf32>
      %18 = arith.addf %15, %17 : vector<128x64xf32>
      %c0_16 = arith.constant 0 : index
      %c0_17 = arith.constant 0 : index
      %19 = vector.load %arg7[%c0_16, %c0_17] : memref<128x64xbf16, #tpu.memory_space<vmem>>, vector<128x64xbf16>
      %20 = arith.extf %19 : vector<128x64xbf16> to vector<128x64xf32>
      %21 = arith.addf %18, %20 : vector<128x64xf32>
      %cst_18 = arith.constant 0.000000e+00 : f32
      %22 = vector.broadcast %cst_18 : f32 to vector<128x64xf32>
      %23 = arith.maximumf %21, %22 : vector<128x64xf32>
      %24 = arith.truncf %23 : vector<128x64xf32> to vector<128x64xbf16>
      %c0_19 = arith.constant 0 : index
      %c0_20 = arith.constant 0 : index
      %25 = vector.load %arg8[%c0_19, %c0_20] : memref<128x64xbf16, #tpu.memory_space<vmem>>, vector<128x64xbf16>
      tpu.vector_store %arg8[%c0_19, %c0_20], %24 {strides = array<i32>} : memref<128x64xbf16, #tpu.memory_space<vmem>>, vector<128x64xbf16>,
    } else {
    }
    return
  }
  func.func @transform_0(%arg0: i32, %arg1: i32, %arg2: i32) -> (i32, i32) {
    %c0_i32 = arith.constant 0 : i32
    return %arg0, %arg2 : i32, i32
  }
  func.func @transform_1(%arg0: i32, %arg1: i32, %arg2: i32) -> (i32, i32) {
    %c0_i32 = arith.constant 0 : i32
    return %arg2, %arg1 : i32, i32
  }
  func.func @transform_2(%arg0: i32, %arg1: i32, %arg2: i32) -> (i32, i32) {
    %c0_i32 = arith.constant 0 : i32
    %c0_i32_0 = arith.constant 0 : i32
    return %c0_i32, %arg1 : i32, i32
  }
  func.func @transform_3(%arg0: i32, %arg1: i32, %arg2: i32) -> (i32, i32) {
    %c0_i32 = arith.constant 0 : i32
    %c0_i32_0 = arith.constant 0 : i32
    return %c0_i32, %arg1 : i32, i32
  }
  func.func @transform_4(%arg0: i32, %arg1: i32, %arg2: i32) -> (i32, i32) {
    %c0_i32 = arith.constant 0 : i32
    return %arg0, %arg1 : i32, i32
  }
  func.func @transform_5(%arg0: i32, %arg1: i32, %arg2: i32) -> (i32, i32) {
    %c0_i32 = arith.constant 0 : i32
    return %arg0, %arg1 : i32, i32
  }
}

module attributes {stable_mosaic.version = 11 : i64} {
  func.func @_fused_matmul_kernel(%arg0: i32, %arg1: i32, %arg2: i32, %arg3: memref<64x576xbf16, #tpu.memory_space<vmem>>, %arg4: memref<576x128xbf16, #tpu.memory_space<vmem>>, %arg5: memref<1x128xf32, #tpu.memory_space<vmem>>, %arg6: memref<1x128xf32, #tpu.memory_space<vmem>>, %arg7: memref<64x128xbf16, #tpu.memory_space<vmem>>, %arg8: memref<64x128xf32, #tpu.memory_space<vmem>>) attributes {dimension_semantics = [#tpu.dimension_semantics<parallel>, #tpu.dimension_semantics<parallel>, #tpu.dimension_semantics<arbitrary>], iteration_bounds = array<i64: 2, 1, 1>, scalar_prefetch = 0 : i64, scratch_operands = 1 : i64, tpu.core_type = #tpu.core_type<tc>, window_params = [{transform_indices = @transform_0, window_bounds = array<i64: 64, 576>}, {transform_indices = @transform_1, window_bounds = array<i64: 576, 128>}, {transform_indices = @transform_2, window_bounds = array<i64: 1, 128>}, {transform_indices = @transform_3, window_bounds = array<i64: 1, 128>}, {transform_indices = @transform_4, window_bounds = array<i64: 64, 128>}]} {
    %c0_i32 = arith.constant 0 : i32
    %0 = arith.cmpi eq, %arg2, %c0_i32 : i32
    %1 = arith.extui %0 : i1 to i32
    %c0_i32_0 = arith.constant 0 : i32
    %2 = arith.cmpi ne, %1, %c0_i32_0 : i32
    scf.if %2 {
      %cst_10 = arith.constant 0.000000e+00 : f32
      %12 = vector.broadcast %cst_10 : f32 to vector<64x128xf32>
      %c0_11 = arith.constant 0 : index
      %c0_12 = arith.constant 0 : index
      %13 = vector.load %arg8[%c0_11, %c0_12] : memref<64x128xf32, #tpu.memory_space<vmem>>, vector<64x128xf32>
      tpu.vector_store %arg8[%c0_11, %c0_12], %12 {strides = array<i32>} : memref<64x128xf32, #tpu.memory_space<vmem>>, vector<64x128xf32>,
    } else {
    }
    %c0 = arith.constant 0 : index
    %c0_1 = arith.constant 0 : index
    %3 = vector.load %arg8[%c0, %c0_1] : memref<64x128xf32, #tpu.memory_space<vmem>>, vector<64x128xf32>
    %c0_2 = arith.constant 0 : index
    %c0_3 = arith.constant 0 : index
    %4 = vector.load %arg3[%c0_2, %c0_3] : memref<64x576xbf16, #tpu.memory_space<vmem>>, vector<64x576xbf16>
    %c0_4 = arith.constant 0 : index
    %c0_5 = arith.constant 0 : index
    %5 = vector.load %arg4[%c0_4, %c0_5] : memref<576x128xbf16, #tpu.memory_space<vmem>>, vector<576x128xbf16>
    %cst = arith.constant dense<0.000000e+00> : vector<64x128xf32>
    %6 = tpu.matmul %4, %5, %cst {dimension_numbers = #tpu.dot_dimension_numbers<[1], [0], [0], [1], [0, 0, 1, 1], [], []>} : vector<64x576xbf16>, vector<576x128xbf16>, vector<64x128xf32> -> vector<64x128xf32>
    %7 = arith.addf %3, %6 : vector<64x128xf32>
    %c0_6 = arith.constant 0 : index
    %c0_7 = arith.constant 0 : index
    %8 = vector.load %arg8[%c0_6, %c0_7] : memref<64x128xf32, #tpu.memory_space<vmem>>, vector<64x128xf32>
    tpu.vector_store %arg8[%c0_6, %c0_7], %7 {strides = array<i32>} : memref<64x128xf32, #tpu.memory_space<vmem>>, vector<64x128xf32>,
    %c0_i32_8 = arith.constant 0 : i32
    %9 = arith.cmpi eq, %arg2, %c0_i32_8 : i32
    %10 = arith.extui %9 : i1 to i32
    %c0_i32_9 = arith.constant 0 : i32
    %11 = arith.cmpi ne, %10, %c0_i32_9 : i32
    scf.if %11 {
      %c0_10 = arith.constant 0 : index
      %c0_11 = arith.constant 0 : index
      %12 = vector.load %arg8[%c0_10, %c0_11] : memref<64x128xf32, #tpu.memory_space<vmem>>, vector<64x128xf32>
      %c0_12 = arith.constant 0 : index
      %c0_13 = arith.constant 0 : index
      %13 = vector.load %arg5[%c0_12, %c0_13] : memref<1x128xf32, #tpu.memory_space<vmem>>, vector<1x128xf32>
      %14 = vector.broadcast %13 : vector<1x128xf32> to vector<64x128xf32>
      %15 = arith.mulf %12, %14 : vector<64x128xf32>
      %c0_14 = arith.constant 0 : index
      %c0_15 = arith.constant 0 : index
      %16 = vector.load %arg6[%c0_14, %c0_15] : memref<1x128xf32, #tpu.memory_space<vmem>>, vector<1x128xf32>
      %17 = vector.broadcast %16 : vector<1x128xf32> to vector<64x128xf32>
      %18 = arith.addf %15, %17 : vector<64x128xf32>
      %cst_16 = arith.constant 0.000000e+00 : f32
      %19 = vector.broadcast %cst_16 : f32 to vector<64x128xf32>
      %20 = arith.maximumf %18, %19 : vector<64x128xf32>
      %21 = arith.truncf %20 : vector<64x128xf32> to vector<64x128xbf16>
      %c0_17 = arith.constant 0 : index
      %c0_18 = arith.constant 0 : index
      %22 = vector.load %arg7[%c0_17, %c0_18] : memref<64x128xbf16, #tpu.memory_space<vmem>>, vector<64x128xbf16>
      tpu.vector_store %arg7[%c0_17, %c0_18], %21 {strides = array<i32>} : memref<64x128xbf16, #tpu.memory_space<vmem>>, vector<64x128xbf16>,
    } else {
    }
    return
  }
  func.func @transform_0(%arg0: i32, %arg1: i32, %arg2: i32) -> (i32, i32) {
    %c0_i32 = arith.constant 0 : i32
    return %arg0, %arg2 : i32, i32
  }
  func.func @transform_1(%arg0: i32, %arg1: i32, %arg2: i32) -> (i32, i32) {
    %c0_i32 = arith.constant 0 : i32
    return %arg2, %arg1 : i32, i32
  }
  func.func @transform_2(%arg0: i32, %arg1: i32, %arg2: i32) -> (i32, i32) {
    %c0_i32 = arith.constant 0 : i32
    %c0_i32_0 = arith.constant 0 : i32
    return %c0_i32, %arg1 : i32, i32
  }
  func.func @transform_3(%arg0: i32, %arg1: i32, %arg2: i32) -> (i32, i32) {
    %c0_i32 = arith.constant 0 : i32
    %c0_i32_0 = arith.constant 0 : i32
    return %c0_i32, %arg1 : i32, i32
  }
  func.func @transform_4(%arg0: i32, %arg1: i32, %arg2: i32) -> (i32, i32) {
    %c0_i32 = arith.constant 0 : i32
    return %arg0, %arg1 : i32, i32
  }
}

module attributes {stable_mosaic.version = 11 : i64} {
  func.func @_fused_matmul_kernel(%arg0: i32, %arg1: i32, %arg2: i32, %arg3: memref<64x64xbf16, #tpu.memory_space<vmem>>, %arg4: memref<64x128xbf16, #tpu.memory_space<vmem>>, %arg5: memref<1x128xf32, #tpu.memory_space<vmem>>, %arg6: memref<1x128xf32, #tpu.memory_space<vmem>>, %arg7: memref<64x128xbf16, #tpu.memory_space<vmem>>, %arg8: memref<64x128xf32, #tpu.memory_space<vmem>>) attributes {dimension_semantics = [#tpu.dimension_semantics<parallel>, #tpu.dimension_semantics<parallel>, #tpu.dimension_semantics<arbitrary>], iteration_bounds = array<i64: 2, 1, 1>, scalar_prefetch = 0 : i64, scratch_operands = 1 : i64, tpu.core_type = #tpu.core_type<tc>, window_params = [{transform_indices = @transform_0, window_bounds = array<i64: 64, 64>}, {transform_indices = @transform_1, window_bounds = array<i64: 64, 128>}, {transform_indices = @transform_2, window_bounds = array<i64: 1, 128>}, {transform_indices = @transform_3, window_bounds = array<i64: 1, 128>}, {transform_indices = @transform_4, window_bounds = array<i64: 64, 128>}]} {
    %c0_i32 = arith.constant 0 : i32
    %0 = arith.cmpi eq, %arg2, %c0_i32 : i32
    %1 = arith.extui %0 : i1 to i32
    %c0_i32_0 = arith.constant 0 : i32
    %2 = arith.cmpi ne, %1, %c0_i32_0 : i32
    scf.if %2 {
      %cst_10 = arith.constant 0.000000e+00 : f32
      %12 = vector.broadcast %cst_10 : f32 to vector<64x128xf32>
      %c0_11 = arith.constant 0 : index
      %c0_12 = arith.constant 0 : index
      %13 = vector.load %arg8[%c0_11, %c0_12] : memref<64x128xf32, #tpu.memory_space<vmem>>, vector<64x128xf32>
      tpu.vector_store %arg8[%c0_11, %c0_12], %12 {strides = array<i32>} : memref<64x128xf32, #tpu.memory_space<vmem>>, vector<64x128xf32>,
    } else {
    }
    %c0 = arith.constant 0 : index
    %c0_1 = arith.constant 0 : index
    %3 = vector.load %arg8[%c0, %c0_1] : memref<64x128xf32, #tpu.memory_space<vmem>>, vector<64x128xf32>
    %c0_2 = arith.constant 0 : index
    %c0_3 = arith.constant 0 : index
    %4 = vector.load %arg3[%c0_2, %c0_3] : memref<64x64xbf16, #tpu.memory_space<vmem>>, vector<64x64xbf16>
    %c0_4 = arith.constant 0 : index
    %c0_5 = arith.constant 0 : index
    %5 = vector.load %arg4[%c0_4, %c0_5] : memref<64x128xbf16, #tpu.memory_space<vmem>>, vector<64x128xbf16>
    %cst = arith.constant dense<0.000000e+00> : vector<64x128xf32>
    %6 = tpu.matmul %4, %5, %cst {dimension_numbers = #tpu.dot_dimension_numbers<[1], [0], [0], [1], [0, 0, 1, 1], [], []>} : vector<64x64xbf16>, vector<64x128xbf16>, vector<64x128xf32> -> vector<64x128xf32>
    %7 = arith.addf %3, %6 : vector<64x128xf32>
    %c0_6 = arith.constant 0 : index
    %c0_7 = arith.constant 0 : index
    %8 = vector.load %arg8[%c0_6, %c0_7] : memref<64x128xf32, #tpu.memory_space<vmem>>, vector<64x128xf32>
    tpu.vector_store %arg8[%c0_6, %c0_7], %7 {strides = array<i32>} : memref<64x128xf32, #tpu.memory_space<vmem>>, vector<64x128xf32>,
    %c0_i32_8 = arith.constant 0 : i32
    %9 = arith.cmpi eq, %arg2, %c0_i32_8 : i32
    %10 = arith.extui %9 : i1 to i32
    %c0_i32_9 = arith.constant 0 : i32
    %11 = arith.cmpi ne, %10, %c0_i32_9 : i32
    scf.if %11 {
      %c0_10 = arith.constant 0 : index
      %c0_11 = arith.constant 0 : index
      %12 = vector.load %arg8[%c0_10, %c0_11] : memref<64x128xf32, #tpu.memory_space<vmem>>, vector<64x128xf32>
      %c0_12 = arith.constant 0 : index
      %c0_13 = arith.constant 0 : index
      %13 = vector.load %arg5[%c0_12, %c0_13] : memref<1x128xf32, #tpu.memory_space<vmem>>, vector<1x128xf32>
      %14 = vector.broadcast %13 : vector<1x128xf32> to vector<64x128xf32>
      %15 = arith.mulf %12, %14 : vector<64x128xf32>
      %c0_14 = arith.constant 0 : index
      %c0_15 = arith.constant 0 : index
      %16 = vector.load %arg6[%c0_14, %c0_15] : memref<1x128xf32, #tpu.memory_space<vmem>>, vector<1x128xf32>
      %17 = vector.broadcast %16 : vector<1x128xf32> to vector<64x128xf32>
      %18 = arith.addf %15, %17 : vector<64x128xf32>
      %19 = arith.truncf %18 : vector<64x128xf32> to vector<64x128xbf16>
      %c0_16 = arith.constant 0 : index
      %c0_17 = arith.constant 0 : index
      %20 = vector.load %arg7[%c0_16, %c0_17] : memref<64x128xbf16, #tpu.memory_space<vmem>>, vector<64x128xbf16>
      tpu.vector_store %arg7[%c0_16, %c0_17], %19 {strides = array<i32>} : memref<64x128xbf16, #tpu.memory_space<vmem>>, vector<64x128xbf16>,
    } else {
    }
    return
  }
  func.func @transform_0(%arg0: i32, %arg1: i32, %arg2: i32) -> (i32, i32) {
    %c0_i32 = arith.constant 0 : i32
    return %arg0, %arg2 : i32, i32
  }
  func.func @transform_1(%arg0: i32, %arg1: i32, %arg2: i32) -> (i32, i32) {
    %c0_i32 = arith.constant 0 : i32
    return %arg2, %arg1 : i32, i32
  }
  func.func @transform_2(%arg0: i32, %arg1: i32, %arg2: i32) -> (i32, i32) {
    %c0_i32 = arith.constant 0 : i32
    %c0_i32_0 = arith.constant 0 : i32
    return %c0_i32, %arg1 : i32, i32
  }
  func.func @transform_3(%arg0: i32, %arg1: i32, %arg2: i32) -> (i32, i32) {
    %c0_i32 = arith.constant 0 : i32
    %c0_i32_0 = arith.constant 0 : i32
    return %c0_i32, %arg1 : i32, i32
  }
  func.func @transform_4(%arg0: i32, %arg1: i32, %arg2: i32) -> (i32, i32) {
    %c0_i32 = arith.constant 0 : i32
    return %arg0, %arg1 : i32, i32
  }
}

module attributes {stable_mosaic.version = 11 : i64} {
  func.func @_fused_matmul_kernel(%arg0: i32, %arg1: i32, %arg2: i32, %arg3: memref<64x384xbf16, #tpu.memory_space<vmem>>, %arg4: memref<384x128xbf16, #tpu.memory_space<vmem>>, %arg5: memref<1x128xf32, #tpu.memory_space<vmem>>, %arg6: memref<1x128xf32, #tpu.memory_space<vmem>>, %arg7: memref<64x128xbf16, #tpu.memory_space<vmem>>, %arg8: memref<64x128xf32, #tpu.memory_space<vmem>>) attributes {dimension_semantics = [#tpu.dimension_semantics<parallel>, #tpu.dimension_semantics<parallel>, #tpu.dimension_semantics<arbitrary>], iteration_bounds = array<i64: 2, 1, 3>, scalar_prefetch = 0 : i64, scratch_operands = 1 : i64, tpu.core_type = #tpu.core_type<tc>, window_params = [{transform_indices = @transform_0, window_bounds = array<i64: 64, 384>}, {transform_indices = @transform_1, window_bounds = array<i64: 384, 128>}, {transform_indices = @transform_2, window_bounds = array<i64: 1, 128>}, {transform_indices = @transform_3, window_bounds = array<i64: 1, 128>}, {transform_indices = @transform_4, window_bounds = array<i64: 64, 128>}]} {
    %c0_i32 = arith.constant 0 : i32
    %0 = arith.cmpi eq, %arg2, %c0_i32 : i32
    %1 = arith.extui %0 : i1 to i32
    %c0_i32_0 = arith.constant 0 : i32
    %2 = arith.cmpi ne, %1, %c0_i32_0 : i32
    scf.if %2 {
      %cst_9 = arith.constant 0.000000e+00 : f32
      %12 = vector.broadcast %cst_9 : f32 to vector<64x128xf32>
      %c0_10 = arith.constant 0 : index
      %c0_11 = arith.constant 0 : index
      %13 = vector.load %arg8[%c0_10, %c0_11] : memref<64x128xf32, #tpu.memory_space<vmem>>, vector<64x128xf32>
      tpu.vector_store %arg8[%c0_10, %c0_11], %12 {strides = array<i32>} : memref<64x128xf32, #tpu.memory_space<vmem>>, vector<64x128xf32>,
    } else {
    }
    %c0 = arith.constant 0 : index
    %c0_1 = arith.constant 0 : index
    %3 = vector.load %arg8[%c0, %c0_1] : memref<64x128xf32, #tpu.memory_space<vmem>>, vector<64x128xf32>
    %c0_2 = arith.constant 0 : index
    %c0_3 = arith.constant 0 : index
    %4 = vector.load %arg3[%c0_2, %c0_3] : memref<64x384xbf16, #tpu.memory_space<vmem>>, vector<64x384xbf16>
    %c0_4 = arith.constant 0 : index
    %c0_5 = arith.constant 0 : index
    %5 = vector.load %arg4[%c0_4, %c0_5] : memref<384x128xbf16, #tpu.memory_space<vmem>>, vector<384x128xbf16>
    %cst = arith.constant dense<0.000000e+00> : vector<64x128xf32>
    %6 = tpu.matmul %4, %5, %cst {dimension_numbers = #tpu.dot_dimension_numbers<[1], [0], [0], [1], [0, 0, 1, 1], [], []>} : vector<64x384xbf16>, vector<384x128xbf16>, vector<64x128xf32> -> vector<64x128xf32>
    %7 = arith.addf %3, %6 : vector<64x128xf32>
    %c0_6 = arith.constant 0 : index
    %c0_7 = arith.constant 0 : index
    %8 = vector.load %arg8[%c0_6, %c0_7] : memref<64x128xf32, #tpu.memory_space<vmem>>, vector<64x128xf32>
    tpu.vector_store %arg8[%c0_6, %c0_7], %7 {strides = array<i32>} : memref<64x128xf32, #tpu.memory_space<vmem>>, vector<64x128xf32>,
    %c2_i32 = arith.constant 2 : i32
    %9 = arith.cmpi eq, %arg2, %c2_i32 : i32
    %10 = arith.extui %9 : i1 to i32
    %c0_i32_8 = arith.constant 0 : i32
    %11 = arith.cmpi ne, %10, %c0_i32_8 : i32
    scf.if %11 {
      %c0_9 = arith.constant 0 : index
      %c0_10 = arith.constant 0 : index
      %12 = vector.load %arg8[%c0_9, %c0_10] : memref<64x128xf32, #tpu.memory_space<vmem>>, vector<64x128xf32>
      %c0_11 = arith.constant 0 : index
      %c0_12 = arith.constant 0 : index
      %13 = vector.load %arg5[%c0_11, %c0_12] : memref<1x128xf32, #tpu.memory_space<vmem>>, vector<1x128xf32>
      %14 = vector.broadcast %13 : vector<1x128xf32> to vector<64x128xf32>
      %15 = arith.mulf %12, %14 : vector<64x128xf32>
      %c0_13 = arith.constant 0 : index
      %c0_14 = arith.constant 0 : index
      %16 = vector.load %arg6[%c0_13, %c0_14] : memref<1x128xf32, #tpu.memory_space<vmem>>, vector<1x128xf32>
      %17 = vector.broadcast %16 : vector<1x128xf32> to vector<64x128xf32>
      %18 = arith.addf %15, %17 : vector<64x128xf32>
      %cst_15 = arith.constant 0.000000e+00 : f32
      %19 = vector.broadcast %cst_15 : f32 to vector<64x128xf32>
      %20 = arith.maximumf %18, %19 : vector<64x128xf32>
      %21 = arith.truncf %20 : vector<64x128xf32> to vector<64x128xbf16>
      %c0_16 = arith.constant 0 : index
      %c0_17 = arith.constant 0 : index
      %22 = vector.load %arg7[%c0_16, %c0_17] : memref<64x128xbf16, #tpu.memory_space<vmem>>, vector<64x128xbf16>
      tpu.vector_store %arg7[%c0_16, %c0_17], %21 {strides = array<i32>} : memref<64x128xbf16, #tpu.memory_space<vmem>>, vector<64x128xbf16>,
    } else {
    }
    return
  }
  func.func @transform_0(%arg0: i32, %arg1: i32, %arg2: i32) -> (i32, i32) {
    %c0_i32 = arith.constant 0 : i32
    return %arg0, %arg2 : i32, i32
  }
  func.func @transform_1(%arg0: i32, %arg1: i32, %arg2: i32) -> (i32, i32) {
    %c0_i32 = arith.constant 0 : i32
    return %arg2, %arg1 : i32, i32
  }
  func.func @transform_2(%arg0: i32, %arg1: i32, %arg2: i32) -> (i32, i32) {
    %c0_i32 = arith.constant 0 : i32
    %c0_i32_0 = arith.constant 0 : i32
    return %c0_i32, %arg1 : i32, i32
  }
  func.func @transform_3(%arg0: i32, %arg1: i32, %arg2: i32) -> (i32, i32) {
    %c0_i32 = arith.constant 0 : i32
    %c0_i32_0 = arith.constant 0 : i32
    return %c0_i32, %arg1 : i32, i32
  }
  func.func @transform_4(%arg0: i32, %arg1: i32, %arg2: i32) -> (i32, i32) {
    %c0_i32 = arith.constant 0 : i32
    return %arg0, %arg1 : i32, i32
  }
}

module attributes {stable_mosaic.version = 11 : i64} {
  func.func @_fused_matmul_kernel(%arg0: i32, %arg1: i32, %arg2: i32, %arg3: memref<64x384xbf16, #tpu.memory_space<vmem>>, %arg4: memref<384x128xbf16, #tpu.memory_space<vmem>>, %arg5: memref<1x128xf32, #tpu.memory_space<vmem>>, %arg6: memref<1x128xf32, #tpu.memory_space<vmem>>, %arg7: memref<64x128xbf16, #tpu.memory_space<vmem>>, %arg8: memref<64x128xbf16, #tpu.memory_space<vmem>>, %arg9: memref<64x128xf32, #tpu.memory_space<vmem>>) attributes {dimension_semantics = [#tpu.dimension_semantics<parallel>, #tpu.dimension_semantics<parallel>, #tpu.dimension_semantics<arbitrary>], iteration_bounds = array<i64: 2, 1, 3>, scalar_prefetch = 0 : i64, scratch_operands = 1 : i64, tpu.core_type = #tpu.core_type<tc>, window_params = [{transform_indices = @transform_0, window_bounds = array<i64: 64, 384>}, {transform_indices = @transform_1, window_bounds = array<i64: 384, 128>}, {transform_indices = @transform_2, window_bounds = array<i64: 1, 128>}, {transform_indices = @transform_3, window_bounds = array<i64: 1, 128>}, {transform_indices = @transform_4, window_bounds = array<i64: 64, 128>}, {transform_indices = @transform_5, window_bounds = array<i64: 64, 128>}]} {
    %c0_i32 = arith.constant 0 : i32
    %0 = arith.cmpi eq, %arg2, %c0_i32 : i32
    %1 = arith.extui %0 : i1 to i32
    %c0_i32_0 = arith.constant 0 : i32
    %2 = arith.cmpi ne, %1, %c0_i32_0 : i32
    scf.if %2 {
      %cst_9 = arith.constant 0.000000e+00 : f32
      %12 = vector.broadcast %cst_9 : f32 to vector<64x128xf32>
      %c0_10 = arith.constant 0 : index
      %c0_11 = arith.constant 0 : index
      %13 = vector.load %arg9[%c0_10, %c0_11] : memref<64x128xf32, #tpu.memory_space<vmem>>, vector<64x128xf32>
      tpu.vector_store %arg9[%c0_10, %c0_11], %12 {strides = array<i32>} : memref<64x128xf32, #tpu.memory_space<vmem>>, vector<64x128xf32>,
    } else {
    }
    %c0 = arith.constant 0 : index
    %c0_1 = arith.constant 0 : index
    %3 = vector.load %arg9[%c0, %c0_1] : memref<64x128xf32, #tpu.memory_space<vmem>>, vector<64x128xf32>
    %c0_2 = arith.constant 0 : index
    %c0_3 = arith.constant 0 : index
    %4 = vector.load %arg3[%c0_2, %c0_3] : memref<64x384xbf16, #tpu.memory_space<vmem>>, vector<64x384xbf16>
    %c0_4 = arith.constant 0 : index
    %c0_5 = arith.constant 0 : index
    %5 = vector.load %arg4[%c0_4, %c0_5] : memref<384x128xbf16, #tpu.memory_space<vmem>>, vector<384x128xbf16>
    %cst = arith.constant dense<0.000000e+00> : vector<64x128xf32>
    %6 = tpu.matmul %4, %5, %cst {dimension_numbers = #tpu.dot_dimension_numbers<[1], [0], [0], [1], [0, 0, 1, 1], [], []>} : vector<64x384xbf16>, vector<384x128xbf16>, vector<64x128xf32> -> vector<64x128xf32>
    %7 = arith.addf %3, %6 : vector<64x128xf32>
    %c0_6 = arith.constant 0 : index
    %c0_7 = arith.constant 0 : index
    %8 = vector.load %arg9[%c0_6, %c0_7] : memref<64x128xf32, #tpu.memory_space<vmem>>, vector<64x128xf32>
    tpu.vector_store %arg9[%c0_6, %c0_7], %7 {strides = array<i32>} : memref<64x128xf32, #tpu.memory_space<vmem>>, vector<64x128xf32>,
    %c2_i32 = arith.constant 2 : i32
    %9 = arith.cmpi eq, %arg2, %c2_i32 : i32
    %10 = arith.extui %9 : i1 to i32
    %c0_i32_8 = arith.constant 0 : i32
    %11 = arith.cmpi ne, %10, %c0_i32_8 : i32
    scf.if %11 {
      %c0_9 = arith.constant 0 : index
      %c0_10 = arith.constant 0 : index
      %12 = vector.load %arg9[%c0_9, %c0_10] : memref<64x128xf32, #tpu.memory_space<vmem>>, vector<64x128xf32>
      %c0_11 = arith.constant 0 : index
      %c0_12 = arith.constant 0 : index
      %13 = vector.load %arg5[%c0_11, %c0_12] : memref<1x128xf32, #tpu.memory_space<vmem>>, vector<1x128xf32>
      %14 = vector.broadcast %13 : vector<1x128xf32> to vector<64x128xf32>
      %15 = arith.mulf %12, %14 : vector<64x128xf32>
      %c0_13 = arith.constant 0 : index
      %c0_14 = arith.constant 0 : index
      %16 = vector.load %arg6[%c0_13, %c0_14] : memref<1x128xf32, #tpu.memory_space<vmem>>, vector<1x128xf32>
      %17 = vector.broadcast %16 : vector<1x128xf32> to vector<64x128xf32>
      %18 = arith.addf %15, %17 : vector<64x128xf32>
      %c0_15 = arith.constant 0 : index
      %c0_16 = arith.constant 0 : index
      %19 = vector.load %arg7[%c0_15, %c0_16] : memref<64x128xbf16, #tpu.memory_space<vmem>>, vector<64x128xbf16>
      %20 = arith.extf %19 : vector<64x128xbf16> to vector<64x128xf32>
      %21 = arith.addf %18, %20 : vector<64x128xf32>
      %cst_17 = arith.constant 0.000000e+00 : f32
      %22 = vector.broadcast %cst_17 : f32 to vector<64x128xf32>
      %23 = arith.maximumf %21, %22 : vector<64x128xf32>
      %24 = arith.truncf %23 : vector<64x128xf32> to vector<64x128xbf16>
      %c0_18 = arith.constant 0 : index
      %c0_19 = arith.constant 0 : index
      %25 = vector.load %arg8[%c0_18, %c0_19] : memref<64x128xbf16, #tpu.memory_space<vmem>>, vector<64x128xbf16>
      tpu.vector_store %arg8[%c0_18, %c0_19], %24 {strides = array<i32>} : memref<64x128xbf16, #tpu.memory_space<vmem>>, vector<64x128xbf16>,
    } else {
    }
    return
  }
  func.func @transform_0(%arg0: i32, %arg1: i32, %arg2: i32) -> (i32, i32) {
    %c0_i32 = arith.constant 0 : i32
    return %arg0, %arg2 : i32, i32
  }
  func.func @transform_1(%arg0: i32, %arg1: i32, %arg2: i32) -> (i32, i32) {
    %c0_i32 = arith.constant 0 : i32
    return %arg2, %arg1 : i32, i32
  }
  func.func @transform_2(%arg0: i32, %arg1: i32, %arg2: i32) -> (i32, i32) {
    %c0_i32 = arith.constant 0 : i32
    %c0_i32_0 = arith.constant 0 : i32
    return %c0_i32, %arg1 : i32, i32
  }
  func.func @transform_3(%arg0: i32, %arg1: i32, %arg2: i32) -> (i32, i32) {
    %c0_i32 = arith.constant 0 : i32
    %c0_i32_0 = arith.constant 0 : i32
    return %c0_i32, %arg1 : i32, i32
  }
  func.func @transform_4(%arg0: i32, %arg1: i32, %arg2: i32) -> (i32, i32) {
    %c0_i32 = arith.constant 0 : i32
    return %arg0, %arg1 : i32, i32
  }
  func.func @transform_5(%arg0: i32, %arg1: i32, %arg2: i32) -> (i32, i32) {
    %c0_i32 = arith.constant 0 : i32
    return %arg0, %arg1 : i32, i32
  }
}

module attributes {stable_mosaic.version = 11 : i64} {
  func.func @_fused_matmul_kernel(%arg0: i32, %arg1: i32, %arg2: i32, %arg3: memref<32x384xbf16, #tpu.memory_space<vmem>>, %arg4: memref<384x128xbf16, #tpu.memory_space<vmem>>, %arg5: memref<1x128xf32, #tpu.memory_space<vmem>>, %arg6: memref<1x128xf32, #tpu.memory_space<vmem>>, %arg7: memref<32x128xbf16, #tpu.memory_space<vmem>>, %arg8: memref<32x128xf32, #tpu.memory_space<vmem>>) attributes {dimension_semantics = [#tpu.dimension_semantics<parallel>, #tpu.dimension_semantics<parallel>, #tpu.dimension_semantics<arbitrary>], iteration_bounds = array<i64: 1, 2, 3>, scalar_prefetch = 0 : i64, scratch_operands = 1 : i64, tpu.core_type = #tpu.core_type<tc>, window_params = [{transform_indices = @transform_0, window_bounds = array<i64: 32, 384>}, {transform_indices = @transform_1, window_bounds = array<i64: 384, 128>}, {transform_indices = @transform_2, window_bounds = array<i64: 1, 128>}, {transform_indices = @transform_3, window_bounds = array<i64: 1, 128>}, {transform_indices = @transform_4, window_bounds = array<i64: 32, 128>}]} {
    %c0_i32 = arith.constant 0 : i32
    %0 = arith.cmpi eq, %arg2, %c0_i32 : i32
    %1 = arith.extui %0 : i1 to i32
    %c0_i32_0 = arith.constant 0 : i32
    %2 = arith.cmpi ne, %1, %c0_i32_0 : i32
    scf.if %2 {
      %cst_9 = arith.constant 0.000000e+00 : f32
      %12 = vector.broadcast %cst_9 : f32 to vector<32x128xf32>
      %c0_10 = arith.constant 0 : index
      %c0_11 = arith.constant 0 : index
      %13 = vector.load %arg8[%c0_10, %c0_11] : memref<32x128xf32, #tpu.memory_space<vmem>>, vector<32x128xf32>
      tpu.vector_store %arg8[%c0_10, %c0_11], %12 {strides = array<i32>} : memref<32x128xf32, #tpu.memory_space<vmem>>, vector<32x128xf32>,
    } else {
    }
    %c0 = arith.constant 0 : index
    %c0_1 = arith.constant 0 : index
    %3 = vector.load %arg8[%c0, %c0_1] : memref<32x128xf32, #tpu.memory_space<vmem>>, vector<32x128xf32>
    %c0_2 = arith.constant 0 : index
    %c0_3 = arith.constant 0 : index
    %4 = vector.load %arg3[%c0_2, %c0_3] : memref<32x384xbf16, #tpu.memory_space<vmem>>, vector<32x384xbf16>
    %c0_4 = arith.constant 0 : index
    %c0_5 = arith.constant 0 : index
    %5 = vector.load %arg4[%c0_4, %c0_5] : memref<384x128xbf16, #tpu.memory_space<vmem>>, vector<384x128xbf16>
    %cst = arith.constant dense<0.000000e+00> : vector<32x128xf32>
    %6 = tpu.matmul %4, %5, %cst {dimension_numbers = #tpu.dot_dimension_numbers<[1], [0], [0], [1], [0, 0, 1, 1], [], []>} : vector<32x384xbf16>, vector<384x128xbf16>, vector<32x128xf32> -> vector<32x128xf32>
    %7 = arith.addf %3, %6 : vector<32x128xf32>
    %c0_6 = arith.constant 0 : index
    %c0_7 = arith.constant 0 : index
    %8 = vector.load %arg8[%c0_6, %c0_7] : memref<32x128xf32, #tpu.memory_space<vmem>>, vector<32x128xf32>
    tpu.vector_store %arg8[%c0_6, %c0_7], %7 {strides = array<i32>} : memref<32x128xf32, #tpu.memory_space<vmem>>, vector<32x128xf32>,
    %c2_i32 = arith.constant 2 : i32
    %9 = arith.cmpi eq, %arg2, %c2_i32 : i32
    %10 = arith.extui %9 : i1 to i32
    %c0_i32_8 = arith.constant 0 : i32
    %11 = arith.cmpi ne, %10, %c0_i32_8 : i32
    scf.if %11 {
      %c0_9 = arith.constant 0 : index
      %c0_10 = arith.constant 0 : index
      %12 = vector.load %arg8[%c0_9, %c0_10] : memref<32x128xf32, #tpu.memory_space<vmem>>, vector<32x128xf32>
      %c0_11 = arith.constant 0 : index
      %c0_12 = arith.constant 0 : index
      %13 = vector.load %arg5[%c0_11, %c0_12] : memref<1x128xf32, #tpu.memory_space<vmem>>, vector<1x128xf32>
      %14 = vector.broadcast %13 : vector<1x128xf32> to vector<32x128xf32>
      %15 = arith.mulf %12, %14 : vector<32x128xf32>
      %c0_13 = arith.constant 0 : index
      %c0_14 = arith.constant 0 : index
      %16 = vector.load %arg6[%c0_13, %c0_14] : memref<1x128xf32, #tpu.memory_space<vmem>>, vector<1x128xf32>
      %17 = vector.broadcast %16 : vector<1x128xf32> to vector<32x128xf32>
      %18 = arith.addf %15, %17 : vector<32x128xf32>
      %cst_15 = arith.constant 0.000000e+00 : f32
      %19 = vector.broadcast %cst_15 : f32 to vector<32x128xf32>
      %20 = arith.maximumf %18, %19 : vector<32x128xf32>
      %21 = arith.truncf %20 : vector<32x128xf32> to vector<32x128xbf16>
      %c0_16 = arith.constant 0 : index
      %c0_17 = arith.constant 0 : index
      %22 = vector.load %arg7[%c0_16, %c0_17] : memref<32x128xbf16, #tpu.memory_space<vmem>>, vector<32x128xbf16>
      tpu.vector_store %arg7[%c0_16, %c0_17], %21 {strides = array<i32>} : memref<32x128xbf16, #tpu.memory_space<vmem>>, vector<32x128xbf16>,
    } else {
    }
    return
  }
  func.func @transform_0(%arg0: i32, %arg1: i32, %arg2: i32) -> (i32, i32) {
    %c0_i32 = arith.constant 0 : i32
    return %arg0, %arg2 : i32, i32
  }
  func.func @transform_1(%arg0: i32, %arg1: i32, %arg2: i32) -> (i32, i32) {
    %c0_i32 = arith.constant 0 : i32
    return %arg2, %arg1 : i32, i32
  }
  func.func @transform_2(%arg0: i32, %arg1: i32, %arg2: i32) -> (i32, i32) {
    %c0_i32 = arith.constant 0 : i32
    %c0_i32_0 = arith.constant 0 : i32
    return %c0_i32, %arg1 : i32, i32
  }
  func.func @transform_3(%arg0: i32, %arg1: i32, %arg2: i32) -> (i32, i32) {
    %c0_i32 = arith.constant 0 : i32
    %c0_i32_0 = arith.constant 0 : i32
    return %c0_i32, %arg1 : i32, i32
  }
  func.func @transform_4(%arg0: i32, %arg1: i32, %arg2: i32) -> (i32, i32) {
    %c0_i32 = arith.constant 0 : i32
    return %arg0, %arg1 : i32, i32
  }
}

module attributes {stable_mosaic.version = 11 : i64} {
  func.func @_fused_matmul_kernel(%arg0: i32, %arg1: i32, %arg2: i32, %arg3: memref<32x128xbf16, #tpu.memory_space<vmem>>, %arg4: memref<128x128xbf16, #tpu.memory_space<vmem>>, %arg5: memref<1x128xf32, #tpu.memory_space<vmem>>, %arg6: memref<1x128xf32, #tpu.memory_space<vmem>>, %arg7: memref<32x128xbf16, #tpu.memory_space<vmem>>, %arg8: memref<32x128xf32, #tpu.memory_space<vmem>>) attributes {dimension_semantics = [#tpu.dimension_semantics<parallel>, #tpu.dimension_semantics<parallel>, #tpu.dimension_semantics<arbitrary>], iteration_bounds = array<i64: 1, 2, 1>, scalar_prefetch = 0 : i64, scratch_operands = 1 : i64, tpu.core_type = #tpu.core_type<tc>, window_params = [{transform_indices = @transform_0, window_bounds = array<i64: 32, 128>}, {transform_indices = @transform_1, window_bounds = array<i64: 128, 128>}, {transform_indices = @transform_2, window_bounds = array<i64: 1, 128>}, {transform_indices = @transform_3, window_bounds = array<i64: 1, 128>}, {transform_indices = @transform_4, window_bounds = array<i64: 32, 128>}]} {
    %c0_i32 = arith.constant 0 : i32
    %0 = arith.cmpi eq, %arg2, %c0_i32 : i32
    %1 = arith.extui %0 : i1 to i32
    %c0_i32_0 = arith.constant 0 : i32
    %2 = arith.cmpi ne, %1, %c0_i32_0 : i32
    scf.if %2 {
      %cst_10 = arith.constant 0.000000e+00 : f32
      %12 = vector.broadcast %cst_10 : f32 to vector<32x128xf32>
      %c0_11 = arith.constant 0 : index
      %c0_12 = arith.constant 0 : index
      %13 = vector.load %arg8[%c0_11, %c0_12] : memref<32x128xf32, #tpu.memory_space<vmem>>, vector<32x128xf32>
      tpu.vector_store %arg8[%c0_11, %c0_12], %12 {strides = array<i32>} : memref<32x128xf32, #tpu.memory_space<vmem>>, vector<32x128xf32>,
    } else {
    }
    %c0 = arith.constant 0 : index
    %c0_1 = arith.constant 0 : index
    %3 = vector.load %arg8[%c0, %c0_1] : memref<32x128xf32, #tpu.memory_space<vmem>>, vector<32x128xf32>
    %c0_2 = arith.constant 0 : index
    %c0_3 = arith.constant 0 : index
    %4 = vector.load %arg3[%c0_2, %c0_3] : memref<32x128xbf16, #tpu.memory_space<vmem>>, vector<32x128xbf16>
    %c0_4 = arith.constant 0 : index
    %c0_5 = arith.constant 0 : index
    %5 = vector.load %arg4[%c0_4, %c0_5] : memref<128x128xbf16, #tpu.memory_space<vmem>>, vector<128x128xbf16>
    %cst = arith.constant dense<0.000000e+00> : vector<32x128xf32>
    %6 = tpu.matmul %4, %5, %cst {dimension_numbers = #tpu.dot_dimension_numbers<[1], [0], [0], [1], [0, 0, 1, 1], [], []>} : vector<32x128xbf16>, vector<128x128xbf16>, vector<32x128xf32> -> vector<32x128xf32>
    %7 = arith.addf %3, %6 : vector<32x128xf32>
    %c0_6 = arith.constant 0 : index
    %c0_7 = arith.constant 0 : index
    %8 = vector.load %arg8[%c0_6, %c0_7] : memref<32x128xf32, #tpu.memory_space<vmem>>, vector<32x128xf32>
    tpu.vector_store %arg8[%c0_6, %c0_7], %7 {strides = array<i32>} : memref<32x128xf32, #tpu.memory_space<vmem>>, vector<32x128xf32>,
    %c0_i32_8 = arith.constant 0 : i32
    %9 = arith.cmpi eq, %arg2, %c0_i32_8 : i32
    %10 = arith.extui %9 : i1 to i32
    %c0_i32_9 = arith.constant 0 : i32
    %11 = arith.cmpi ne, %10, %c0_i32_9 : i32
    scf.if %11 {
      %c0_10 = arith.constant 0 : index
      %c0_11 = arith.constant 0 : index
      %12 = vector.load %arg8[%c0_10, %c0_11] : memref<32x128xf32, #tpu.memory_space<vmem>>, vector<32x128xf32>
      %c0_12 = arith.constant 0 : index
      %c0_13 = arith.constant 0 : index
      %13 = vector.load %arg5[%c0_12, %c0_13] : memref<1x128xf32, #tpu.memory_space<vmem>>, vector<1x128xf32>
      %14 = vector.broadcast %13 : vector<1x128xf32> to vector<32x128xf32>
      %15 = arith.mulf %12, %14 : vector<32x128xf32>
      %c0_14 = arith.constant 0 : index
      %c0_15 = arith.constant 0 : index
      %16 = vector.load %arg6[%c0_14, %c0_15] : memref<1x128xf32, #tpu.memory_space<vmem>>, vector<1x128xf32>
      %17 = vector.broadcast %16 : vector<1x128xf32> to vector<32x128xf32>
      %18 = arith.addf %15, %17 : vector<32x128xf32>
      %19 = arith.truncf %18 : vector<32x128xf32> to vector<32x128xbf16>
      %c0_16 = arith.constant 0 : index
      %c0_17 = arith.constant 0 : index
      %20 = vector.load %arg7[%c0_16, %c0_17] : memref<32x128xbf16, #tpu.memory_space<vmem>>, vector<32x128xbf16>
      tpu.vector_store %arg7[%c0_16, %c0_17], %19 {strides = array<i32>} : memref<32x128xbf16, #tpu.memory_space<vmem>>, vector<32x128xbf16>,
    } else {
    }
    return
  }
  func.func @transform_0(%arg0: i32, %arg1: i32, %arg2: i32) -> (i32, i32) {
    %c0_i32 = arith.constant 0 : i32
    return %arg0, %arg2 : i32, i32
  }
  func.func @transform_1(%arg0: i32, %arg1: i32, %arg2: i32) -> (i32, i32) {
    %c0_i32 = arith.constant 0 : i32
    return %arg2, %arg1 : i32, i32
  }
  func.func @transform_2(%arg0: i32, %arg1: i32, %arg2: i32) -> (i32, i32) {
    %c0_i32 = arith.constant 0 : i32
    %c0_i32_0 = arith.constant 0 : i32
    return %c0_i32, %arg1 : i32, i32
  }
  func.func @transform_3(%arg0: i32, %arg1: i32, %arg2: i32) -> (i32, i32) {
    %c0_i32 = arith.constant 0 : i32
    %c0_i32_0 = arith.constant 0 : i32
    return %c0_i32, %arg1 : i32, i32
  }
  func.func @transform_4(%arg0: i32, %arg1: i32, %arg2: i32) -> (i32, i32) {
    %c0_i32 = arith.constant 0 : i32
    return %arg0, %arg1 : i32, i32
  }
}

module attributes {stable_mosaic.version = 11 : i64} {
  func.func @_fused_matmul_kernel(%arg0: i32, %arg1: i32, %arg2: i32, %arg3: memref<32x384xbf16, #tpu.memory_space<vmem>>, %arg4: memref<384x128xbf16, #tpu.memory_space<vmem>>, %arg5: memref<1x128xf32, #tpu.memory_space<vmem>>, %arg6: memref<1x128xf32, #tpu.memory_space<vmem>>, %arg7: memref<32x128xbf16, #tpu.memory_space<vmem>>, %arg8: memref<32x128xbf16, #tpu.memory_space<vmem>>, %arg9: memref<32x128xf32, #tpu.memory_space<vmem>>) attributes {dimension_semantics = [#tpu.dimension_semantics<parallel>, #tpu.dimension_semantics<parallel>, #tpu.dimension_semantics<arbitrary>], iteration_bounds = array<i64: 1, 2, 6>, scalar_prefetch = 0 : i64, scratch_operands = 1 : i64, tpu.core_type = #tpu.core_type<tc>, window_params = [{transform_indices = @transform_0, window_bounds = array<i64: 32, 384>}, {transform_indices = @transform_1, window_bounds = array<i64: 384, 128>}, {transform_indices = @transform_2, window_bounds = array<i64: 1, 128>}, {transform_indices = @transform_3, window_bounds = array<i64: 1, 128>}, {transform_indices = @transform_4, window_bounds = array<i64: 32, 128>}, {transform_indices = @transform_5, window_bounds = array<i64: 32, 128>}]} {
    %c0_i32 = arith.constant 0 : i32
    %0 = arith.cmpi eq, %arg2, %c0_i32 : i32
    %1 = arith.extui %0 : i1 to i32
    %c0_i32_0 = arith.constant 0 : i32
    %2 = arith.cmpi ne, %1, %c0_i32_0 : i32
    scf.if %2 {
      %cst_9 = arith.constant 0.000000e+00 : f32
      %12 = vector.broadcast %cst_9 : f32 to vector<32x128xf32>
      %c0_10 = arith.constant 0 : index
      %c0_11 = arith.constant 0 : index
      %13 = vector.load %arg9[%c0_10, %c0_11] : memref<32x128xf32, #tpu.memory_space<vmem>>, vector<32x128xf32>
      tpu.vector_store %arg9[%c0_10, %c0_11], %12 {strides = array<i32>} : memref<32x128xf32, #tpu.memory_space<vmem>>, vector<32x128xf32>,
    } else {
    }
    %c0 = arith.constant 0 : index
    %c0_1 = arith.constant 0 : index
    %3 = vector.load %arg9[%c0, %c0_1] : memref<32x128xf32, #tpu.memory_space<vmem>>, vector<32x128xf32>
    %c0_2 = arith.constant 0 : index
    %c0_3 = arith.constant 0 : index
    %4 = vector.load %arg3[%c0_2, %c0_3] : memref<32x384xbf16, #tpu.memory_space<vmem>>, vector<32x384xbf16>
    %c0_4 = arith.constant 0 : index
    %c0_5 = arith.constant 0 : index
    %5 = vector.load %arg4[%c0_4, %c0_5] : memref<384x128xbf16, #tpu.memory_space<vmem>>, vector<384x128xbf16>
    %cst = arith.constant dense<0.000000e+00> : vector<32x128xf32>
    %6 = tpu.matmul %4, %5, %cst {dimension_numbers = #tpu.dot_dimension_numbers<[1], [0], [0], [1], [0, 0, 1, 1], [], []>} : vector<32x384xbf16>, vector<384x128xbf16>, vector<32x128xf32> -> vector<32x128xf32>
    %7 = arith.addf %3, %6 : vector<32x128xf32>
    %c0_6 = arith.constant 0 : index
    %c0_7 = arith.constant 0 : index
    %8 = vector.load %arg9[%c0_6, %c0_7] : memref<32x128xf32, #tpu.memory_space<vmem>>, vector<32x128xf32>
    tpu.vector_store %arg9[%c0_6, %c0_7], %7 {strides = array<i32>} : memref<32x128xf32, #tpu.memory_space<vmem>>, vector<32x128xf32>,
    %c5_i32 = arith.constant 5 : i32
    %9 = arith.cmpi eq, %arg2, %c5_i32 : i32
    %10 = arith.extui %9 : i1 to i32
    %c0_i32_8 = arith.constant 0 : i32
    %11 = arith.cmpi ne, %10, %c0_i32_8 : i32
    scf.if %11 {
      %c0_9 = arith.constant 0 : index
      %c0_10 = arith.constant 0 : index
      %12 = vector.load %arg9[%c0_9, %c0_10] : memref<32x128xf32, #tpu.memory_space<vmem>>, vector<32x128xf32>
      %c0_11 = arith.constant 0 : index
      %c0_12 = arith.constant 0 : index
      %13 = vector.load %arg5[%c0_11, %c0_12] : memref<1x128xf32, #tpu.memory_space<vmem>>, vector<1x128xf32>
      %14 = vector.broadcast %13 : vector<1x128xf32> to vector<32x128xf32>
      %15 = arith.mulf %12, %14 : vector<32x128xf32>
      %c0_13 = arith.constant 0 : index
      %c0_14 = arith.constant 0 : index
      %16 = vector.load %arg6[%c0_13, %c0_14] : memref<1x128xf32, #tpu.memory_space<vmem>>, vector<1x128xf32>
      %17 = vector.broadcast %16 : vector<1x128xf32> to vector<32x128xf32>
      %18 = arith.addf %15, %17 : vector<32x128xf32>
      %c0_15 = arith.constant 0 : index
      %c0_16 = arith.constant 0 : index
      %19 = vector.load %arg7[%c0_15, %c0_16] : memref<32x128xbf16, #tpu.memory_space<vmem>>, vector<32x128xbf16>
      %20 = arith.extf %19 : vector<32x128xbf16> to vector<32x128xf32>
      %21 = arith.addf %18, %20 : vector<32x128xf32>
      %cst_17 = arith.constant 0.000000e+00 : f32
      %22 = vector.broadcast %cst_17 : f32 to vector<32x128xf32>
      %23 = arith.maximumf %21, %22 : vector<32x128xf32>
      %24 = arith.truncf %23 : vector<32x128xf32> to vector<32x128xbf16>
      %c0_18 = arith.constant 0 : index
      %c0_19 = arith.constant 0 : index
      %25 = vector.load %arg8[%c0_18, %c0_19] : memref<32x128xbf16, #tpu.memory_space<vmem>>, vector<32x128xbf16>
      tpu.vector_store %arg8[%c0_18, %c0_19], %24 {strides = array<i32>} : memref<32x128xbf16, #tpu.memory_space<vmem>>, vector<32x128xbf16>,
    } else {
    }
    return
  }
  func.func @transform_0(%arg0: i32, %arg1: i32, %arg2: i32) -> (i32, i32) {
    %c0_i32 = arith.constant 0 : i32
    return %arg0, %arg2 : i32, i32
  }
  func.func @transform_1(%arg0: i32, %arg1: i32, %arg2: i32) -> (i32, i32) {
    %c0_i32 = arith.constant 0 : i32
    return %arg2, %arg1 : i32, i32
  }
  func.func @transform_2(%arg0: i32, %arg1: i32, %arg2: i32) -> (i32, i32) {
    %c0_i32 = arith.constant 0 : i32
    %c0_i32_0 = arith.constant 0 : i32
    return %c0_i32, %arg1 : i32, i32
  }
  func.func @transform_3(%arg0: i32, %arg1: i32, %arg2: i32) -> (i32, i32) {
    %c0_i32 = arith.constant 0 : i32
    %c0_i32_0 = arith.constant 0 : i32
    return %c0_i32, %arg1 : i32, i32
  }
  func.func @transform_4(%arg0: i32, %arg1: i32, %arg2: i32) -> (i32, i32) {
    %c0_i32 = arith.constant 0 : i32
    return %arg0, %arg1 : i32, i32
  }
  func.func @transform_5(%arg0: i32, %arg1: i32, %arg2: i32) -> (i32, i32) {
    %c0_i32 = arith.constant 0 : i32
    return %arg0, %arg1 : i32, i32
  }
}

module attributes {stable_mosaic.version = 11 : i64} {
  func.func @_fused_matmul_kernel(%arg0: i32, %arg1: i32, %arg2: i32, %arg3: memref<32x384xbf16, #tpu.memory_space<vmem>>, %arg4: memref<384x128xbf16, #tpu.memory_space<vmem>>, %arg5: memref<1x128xf32, #tpu.memory_space<vmem>>, %arg6: memref<1x128xf32, #tpu.memory_space<vmem>>, %arg7: memref<32x128xbf16, #tpu.memory_space<vmem>>, %arg8: memref<32x128xf32, #tpu.memory_space<vmem>>) attributes {dimension_semantics = [#tpu.dimension_semantics<parallel>, #tpu.dimension_semantics<parallel>, #tpu.dimension_semantics<arbitrary>], iteration_bounds = array<i64: 1, 2, 6>, scalar_prefetch = 0 : i64, scratch_operands = 1 : i64, tpu.core_type = #tpu.core_type<tc>, window_params = [{transform_indices = @transform_0, window_bounds = array<i64: 32, 384>}, {transform_indices = @transform_1, window_bounds = array<i64: 384, 128>}, {transform_indices = @transform_2, window_bounds = array<i64: 1, 128>}, {transform_indices = @transform_3, window_bounds = array<i64: 1, 128>}, {transform_indices = @transform_4, window_bounds = array<i64: 32, 128>}]} {
    %c0_i32 = arith.constant 0 : i32
    %0 = arith.cmpi eq, %arg2, %c0_i32 : i32
    %1 = arith.extui %0 : i1 to i32
    %c0_i32_0 = arith.constant 0 : i32
    %2 = arith.cmpi ne, %1, %c0_i32_0 : i32
    scf.if %2 {
      %cst_9 = arith.constant 0.000000e+00 : f32
      %12 = vector.broadcast %cst_9 : f32 to vector<32x128xf32>
      %c0_10 = arith.constant 0 : index
      %c0_11 = arith.constant 0 : index
      %13 = vector.load %arg8[%c0_10, %c0_11] : memref<32x128xf32, #tpu.memory_space<vmem>>, vector<32x128xf32>
      tpu.vector_store %arg8[%c0_10, %c0_11], %12 {strides = array<i32>} : memref<32x128xf32, #tpu.memory_space<vmem>>, vector<32x128xf32>,
    } else {
    }
    %c0 = arith.constant 0 : index
    %c0_1 = arith.constant 0 : index
    %3 = vector.load %arg8[%c0, %c0_1] : memref<32x128xf32, #tpu.memory_space<vmem>>, vector<32x128xf32>
    %c0_2 = arith.constant 0 : index
    %c0_3 = arith.constant 0 : index
    %4 = vector.load %arg3[%c0_2, %c0_3] : memref<32x384xbf16, #tpu.memory_space<vmem>>, vector<32x384xbf16>
    %c0_4 = arith.constant 0 : index
    %c0_5 = arith.constant 0 : index
    %5 = vector.load %arg4[%c0_4, %c0_5] : memref<384x128xbf16, #tpu.memory_space<vmem>>, vector<384x128xbf16>
    %cst = arith.constant dense<0.000000e+00> : vector<32x128xf32>
    %6 = tpu.matmul %4, %5, %cst {dimension_numbers = #tpu.dot_dimension_numbers<[1], [0], [0], [1], [0, 0, 1, 1], [], []>} : vector<32x384xbf16>, vector<384x128xbf16>, vector<32x128xf32> -> vector<32x128xf32>
    %7 = arith.addf %3, %6 : vector<32x128xf32>
    %c0_6 = arith.constant 0 : index
    %c0_7 = arith.constant 0 : index
    %8 = vector.load %arg8[%c0_6, %c0_7] : memref<32x128xf32, #tpu.memory_space<vmem>>, vector<32x128xf32>
    tpu.vector_store %arg8[%c0_6, %c0_7], %7 {strides = array<i32>} : memref<32x128xf32, #tpu.memory_space<vmem>>, vector<32x128xf32>,
    %c5_i32 = arith.constant 5 : i32
    %9 = arith.cmpi eq, %arg2, %c5_i32 : i32
    %10 = arith.extui %9 : i1 to i32
    %c0_i32_8 = arith.constant 0 : i32
    %11 = arith.cmpi ne, %10, %c0_i32_8 : i32
    scf.if %11 {
      %c0_9 = arith.constant 0 : index
      %c0_10 = arith.constant 0 : index
      %12 = vector.load %arg8[%c0_9, %c0_10] : memref<32x128xf32, #tpu.memory_space<vmem>>, vector<32x128xf32>
      %c0_11 = arith.constant 0 : index
      %c0_12 = arith.constant 0 : index
      %13 = vector.load %arg5[%c0_11, %c0_12] : memref<1x128xf32, #tpu.memory_space<vmem>>, vector<1x128xf32>
      %14 = vector.broadcast %13 : vector<1x128xf32> to vector<32x128xf32>
      %15 = arith.mulf %12, %14 : vector<32x128xf32>
      %c0_13 = arith.constant 0 : index
      %c0_14 = arith.constant 0 : index
      %16 = vector.load %arg6[%c0_13, %c0_14] : memref<1x128xf32, #tpu.memory_space<vmem>>, vector<1x128xf32>
      %17 = vector.broadcast %16 : vector<1x128xf32> to vector<32x128xf32>
      %18 = arith.addf %15, %17 : vector<32x128xf32>
      %cst_15 = arith.constant 0.000000e+00 : f32
      %19 = vector.broadcast %cst_15 : f32 to vector<32x128xf32>
      %20 = arith.maximumf %18, %19 : vector<32x128xf32>
      %21 = arith.truncf %20 : vector<32x128xf32> to vector<32x128xbf16>
      %c0_16 = arith.constant 0 : index
      %c0_17 = arith.constant 0 : index
      %22 = vector.load %arg7[%c0_16, %c0_17] : memref<32x128xbf16, #tpu.memory_space<vmem>>, vector<32x128xbf16>
      tpu.vector_store %arg7[%c0_16, %c0_17], %21 {strides = array<i32>} : memref<32x128xbf16, #tpu.memory_space<vmem>>, vector<32x128xbf16>,
    } else {
    }
    return
  }
  func.func @transform_0(%arg0: i32, %arg1: i32, %arg2: i32) -> (i32, i32) {
    %c0_i32 = arith.constant 0 : i32
    return %arg0, %arg2 : i32, i32
  }
  func.func @transform_1(%arg0: i32, %arg1: i32, %arg2: i32) -> (i32, i32) {
    %c0_i32 = arith.constant 0 : i32
    return %arg2, %arg1 : i32, i32
  }
  func.func @transform_2(%arg0: i32, %arg1: i32, %arg2: i32) -> (i32, i32) {
    %c0_i32 = arith.constant 0 : i32
    %c0_i32_0 = arith.constant 0 : i32
    return %c0_i32, %arg1 : i32, i32
  }
  func.func @transform_3(%arg0: i32, %arg1: i32, %arg2: i32) -> (i32, i32) {
    %c0_i32 = arith.constant 0 : i32
    %c0_i32_0 = arith.constant 0 : i32
    return %c0_i32, %arg1 : i32, i32
  }
  func.func @transform_4(%arg0: i32, %arg1: i32, %arg2: i32) -> (i32, i32) {
    %c0_i32 = arith.constant 0 : i32
    return %arg0, %arg1 : i32, i32
  }
}

module attributes {stable_mosaic.version = 11 : i64} {
  func.func @_fused_matmul_kernel(%arg0: i32, %arg1: i32, %arg2: i32, %arg3: memref<8x384xbf16, #tpu.memory_space<vmem>>, %arg4: memref<384x256xbf16, #tpu.memory_space<vmem>>, %arg5: memref<1x256xf32, #tpu.memory_space<vmem>>, %arg6: memref<1x256xf32, #tpu.memory_space<vmem>>, %arg7: memref<8x256xbf16, #tpu.memory_space<vmem>>, %arg8: memref<8x256xf32, #tpu.memory_space<vmem>>) attributes {dimension_semantics = [#tpu.dimension_semantics<parallel>, #tpu.dimension_semantics<parallel>, #tpu.dimension_semantics<arbitrary>], iteration_bounds = array<i64: 1, 2, 6>, scalar_prefetch = 0 : i64, scratch_operands = 1 : i64, tpu.core_type = #tpu.core_type<tc>, window_params = [{transform_indices = @transform_0, window_bounds = array<i64: 8, 384>}, {transform_indices = @transform_1, window_bounds = array<i64: 384, 256>}, {transform_indices = @transform_2, window_bounds = array<i64: 1, 256>}, {transform_indices = @transform_3, window_bounds = array<i64: 1, 256>}, {transform_indices = @transform_4, window_bounds = array<i64: 8, 256>}]} {
    %c0_i32 = arith.constant 0 : i32
    %0 = arith.cmpi eq, %arg2, %c0_i32 : i32
    %1 = arith.extui %0 : i1 to i32
    %c0_i32_0 = arith.constant 0 : i32
    %2 = arith.cmpi ne, %1, %c0_i32_0 : i32
    scf.if %2 {
      %cst_9 = arith.constant 0.000000e+00 : f32
      %12 = vector.broadcast %cst_9 : f32 to vector<8x256xf32>
      %c0_10 = arith.constant 0 : index
      %c0_11 = arith.constant 0 : index
      %13 = vector.load %arg8[%c0_10, %c0_11] : memref<8x256xf32, #tpu.memory_space<vmem>>, vector<8x256xf32>
      tpu.vector_store %arg8[%c0_10, %c0_11], %12 {strides = array<i32>} : memref<8x256xf32, #tpu.memory_space<vmem>>, vector<8x256xf32>,
    } else {
    }
    %c0 = arith.constant 0 : index
    %c0_1 = arith.constant 0 : index
    %3 = vector.load %arg8[%c0, %c0_1] : memref<8x256xf32, #tpu.memory_space<vmem>>, vector<8x256xf32>
    %c0_2 = arith.constant 0 : index
    %c0_3 = arith.constant 0 : index
    %4 = vector.load %arg3[%c0_2, %c0_3] : memref<8x384xbf16, #tpu.memory_space<vmem>>, vector<8x384xbf16>
    %c0_4 = arith.constant 0 : index
    %c0_5 = arith.constant 0 : index
    %5 = vector.load %arg4[%c0_4, %c0_5] : memref<384x256xbf16, #tpu.memory_space<vmem>>, vector<384x256xbf16>
    %cst = arith.constant dense<0.000000e+00> : vector<8x256xf32>
    %6 = tpu.matmul %4, %5, %cst {dimension_numbers = #tpu.dot_dimension_numbers<[1], [0], [0], [1], [0, 0, 1, 1], [], []>} : vector<8x384xbf16>, vector<384x256xbf16>, vector<8x256xf32> -> vector<8x256xf32>
    %7 = arith.addf %3, %6 : vector<8x256xf32>
    %c0_6 = arith.constant 0 : index
    %c0_7 = arith.constant 0 : index
    %8 = vector.load %arg8[%c0_6, %c0_7] : memref<8x256xf32, #tpu.memory_space<vmem>>, vector<8x256xf32>
    tpu.vector_store %arg8[%c0_6, %c0_7], %7 {strides = array<i32>} : memref<8x256xf32, #tpu.memory_space<vmem>>, vector<8x256xf32>,
    %c5_i32 = arith.constant 5 : i32
    %9 = arith.cmpi eq, %arg2, %c5_i32 : i32
    %10 = arith.extui %9 : i1 to i32
    %c0_i32_8 = arith.constant 0 : i32
    %11 = arith.cmpi ne, %10, %c0_i32_8 : i32
    scf.if %11 {
      %c0_9 = arith.constant 0 : index
      %c0_10 = arith.constant 0 : index
      %12 = vector.load %arg8[%c0_9, %c0_10] : memref<8x256xf32, #tpu.memory_space<vmem>>, vector<8x256xf32>
      %c0_11 = arith.constant 0 : index
      %c0_12 = arith.constant 0 : index
      %13 = vector.load %arg5[%c0_11, %c0_12] : memref<1x256xf32, #tpu.memory_space<vmem>>, vector<1x256xf32>
      %14 = vector.broadcast %13 : vector<1x256xf32> to vector<8x256xf32>
      %15 = arith.mulf %12, %14 : vector<8x256xf32>
      %c0_13 = arith.constant 0 : index
      %c0_14 = arith.constant 0 : index
      %16 = vector.load %arg6[%c0_13, %c0_14] : memref<1x256xf32, #tpu.memory_space<vmem>>, vector<1x256xf32>
      %17 = vector.broadcast %16 : vector<1x256xf32> to vector<8x256xf32>
      %18 = arith.addf %15, %17 : vector<8x256xf32>
      %cst_15 = arith.constant 0.000000e+00 : f32
      %19 = vector.broadcast %cst_15 : f32 to vector<8x256xf32>
      %20 = arith.maximumf %18, %19 : vector<8x256xf32>
      %21 = arith.truncf %20 : vector<8x256xf32> to vector<8x256xbf16>
      %c0_16 = arith.constant 0 : index
      %c0_17 = arith.constant 0 : index
      %22 = vector.load %arg7[%c0_16, %c0_17] : memref<8x256xbf16, #tpu.memory_space<vmem>>, vector<8x256xbf16>
      tpu.vector_store %arg7[%c0_16, %c0_17], %21 {strides = array<i32>} : memref<8x256xbf16, #tpu.memory_space<vmem>>, vector<8x256xbf16>,
    } else {
    }
    return
  }
  func.func @transform_0(%arg0: i32, %arg1: i32, %arg2: i32) -> (i32, i32) {
    %c0_i32 = arith.constant 0 : i32
    return %arg0, %arg2 : i32, i32
  }
  func.func @transform_1(%arg0: i32, %arg1: i32, %arg2: i32) -> (i32, i32) {
    %c0_i32 = arith.constant 0 : i32
    return %arg2, %arg1 : i32, i32
  }
  func.func @transform_2(%arg0: i32, %arg1: i32, %arg2: i32) -> (i32, i32) {
    %c0_i32 = arith.constant 0 : i32
    %c0_i32_0 = arith.constant 0 : i32
    return %c0_i32, %arg1 : i32, i32
  }
  func.func @transform_3(%arg0: i32, %arg1: i32, %arg2: i32) -> (i32, i32) {
    %c0_i32 = arith.constant 0 : i32
    %c0_i32_0 = arith.constant 0 : i32
    return %c0_i32, %arg1 : i32, i32
  }
  func.func @transform_4(%arg0: i32, %arg1: i32, %arg2: i32) -> (i32, i32) {
    %c0_i32 = arith.constant 0 : i32
    return %arg0, %arg1 : i32, i32
  }
}

module attributes {stable_mosaic.version = 11 : i64} {
  func.func @_fused_matmul_kernel(%arg0: i32, %arg1: i32, %arg2: i32, %arg3: memref<8x256xbf16, #tpu.memory_space<vmem>>, %arg4: memref<256x256xbf16, #tpu.memory_space<vmem>>, %arg5: memref<1x256xf32, #tpu.memory_space<vmem>>, %arg6: memref<1x256xf32, #tpu.memory_space<vmem>>, %arg7: memref<8x256xbf16, #tpu.memory_space<vmem>>, %arg8: memref<8x256xf32, #tpu.memory_space<vmem>>) attributes {dimension_semantics = [#tpu.dimension_semantics<parallel>, #tpu.dimension_semantics<parallel>, #tpu.dimension_semantics<arbitrary>], iteration_bounds = array<i64: 1, 2, 1>, scalar_prefetch = 0 : i64, scratch_operands = 1 : i64, tpu.core_type = #tpu.core_type<tc>, window_params = [{transform_indices = @transform_0, window_bounds = array<i64: 8, 256>}, {transform_indices = @transform_1, window_bounds = array<i64: 256, 256>}, {transform_indices = @transform_2, window_bounds = array<i64: 1, 256>}, {transform_indices = @transform_3, window_bounds = array<i64: 1, 256>}, {transform_indices = @transform_4, window_bounds = array<i64: 8, 256>}]} {
    %c0_i32 = arith.constant 0 : i32
    %0 = arith.cmpi eq, %arg2, %c0_i32 : i32
    %1 = arith.extui %0 : i1 to i32
    %c0_i32_0 = arith.constant 0 : i32
    %2 = arith.cmpi ne, %1, %c0_i32_0 : i32
    scf.if %2 {
      %cst_10 = arith.constant 0.000000e+00 : f32
      %12 = vector.broadcast %cst_10 : f32 to vector<8x256xf32>
      %c0_11 = arith.constant 0 : index
      %c0_12 = arith.constant 0 : index
      %13 = vector.load %arg8[%c0_11, %c0_12] : memref<8x256xf32, #tpu.memory_space<vmem>>, vector<8x256xf32>
      tpu.vector_store %arg8[%c0_11, %c0_12], %12 {strides = array<i32>} : memref<8x256xf32, #tpu.memory_space<vmem>>, vector<8x256xf32>,
    } else {
    }
    %c0 = arith.constant 0 : index
    %c0_1 = arith.constant 0 : index
    %3 = vector.load %arg8[%c0, %c0_1] : memref<8x256xf32, #tpu.memory_space<vmem>>, vector<8x256xf32>
    %c0_2 = arith.constant 0 : index
    %c0_3 = arith.constant 0 : index
    %4 = vector.load %arg3[%c0_2, %c0_3] : memref<8x256xbf16, #tpu.memory_space<vmem>>, vector<8x256xbf16>
    %c0_4 = arith.constant 0 : index
    %c0_5 = arith.constant 0 : index
    %5 = vector.load %arg4[%c0_4, %c0_5] : memref<256x256xbf16, #tpu.memory_space<vmem>>, vector<256x256xbf16>
    %cst = arith.constant dense<0.000000e+00> : vector<8x256xf32>
    %6 = tpu.matmul %4, %5, %cst {dimension_numbers = #tpu.dot_dimension_numbers<[1], [0], [0], [1], [0, 0, 1, 1], [], []>} : vector<8x256xbf16>, vector<256x256xbf16>, vector<8x256xf32> -> vector<8x256xf32>
    %7 = arith.addf %3, %6 : vector<8x256xf32>
    %c0_6 = arith.constant 0 : index
    %c0_7 = arith.constant 0 : index
    %8 = vector.load %arg8[%c0_6, %c0_7] : memref<8x256xf32, #tpu.memory_space<vmem>>, vector<8x256xf32>
    tpu.vector_store %arg8[%c0_6, %c0_7], %7 {strides = array<i32>} : memref<8x256xf32, #tpu.memory_space<vmem>>, vector<8x256xf32>,
    %c0_i32_8 = arith.constant 0 : i32
    %9 = arith.cmpi eq, %arg2, %c0_i32_8 : i32
    %10 = arith.extui %9 : i1 to i32
    %c0_i32_9 = arith.constant 0 : i32
    %11 = arith.cmpi ne, %10, %c0_i32_9 : i32
    scf.if %11 {
      %c0_10 = arith.constant 0 : index
      %c0_11 = arith.constant 0 : index
      %12 = vector.load %arg8[%c0_10, %c0_11] : memref<8x256xf32, #tpu.memory_space<vmem>>, vector<8x256xf32>
      %c0_12 = arith.constant 0 : index
      %c0_13 = arith.constant 0 : index
      %13 = vector.load %arg5[%c0_12, %c0_13] : memref<1x256xf32, #tpu.memory_space<vmem>>, vector<1x256xf32>
      %14 = vector.broadcast %13 : vector<1x256xf32> to vector<8x256xf32>
      %15 = arith.mulf %12, %14 : vector<8x256xf32>
      %c0_14 = arith.constant 0 : index
      %c0_15 = arith.constant 0 : index
      %16 = vector.load %arg6[%c0_14, %c0_15] : memref<1x256xf32, #tpu.memory_space<vmem>>, vector<1x256xf32>
      %17 = vector.broadcast %16 : vector<1x256xf32> to vector<8x256xf32>
      %18 = arith.addf %15, %17 : vector<8x256xf32>
      %19 = arith.truncf %18 : vector<8x256xf32> to vector<8x256xbf16>
      %c0_16 = arith.constant 0 : index
      %c0_17 = arith.constant 0 : index
      %20 = vector.load %arg7[%c0_16, %c0_17] : memref<8x256xbf16, #tpu.memory_space<vmem>>, vector<8x256xbf16>
      tpu.vector_store %arg7[%c0_16, %c0_17], %19 {strides = array<i32>} : memref<8x256xbf16, #tpu.memory_space<vmem>>, vector<8x256xbf16>,
    } else {
    }
    return
  }
  func.func @transform_0(%arg0: i32, %arg1: i32, %arg2: i32) -> (i32, i32) {
    %c0_i32 = arith.constant 0 : i32
    return %arg0, %arg2 : i32, i32
  }
  func.func @transform_1(%arg0: i32, %arg1: i32, %arg2: i32) -> (i32, i32) {
    %c0_i32 = arith.constant 0 : i32
    return %arg2, %arg1 : i32, i32
  }
  func.func @transform_2(%arg0: i32, %arg1: i32, %arg2: i32) -> (i32, i32) {
    %c0_i32 = arith.constant 0 : i32
    %c0_i32_0 = arith.constant 0 : i32
    return %c0_i32, %arg1 : i32, i32
  }
  func.func @transform_3(%arg0: i32, %arg1: i32, %arg2: i32) -> (i32, i32) {
    %c0_i32 = arith.constant 0 : i32
    %c0_i32_0 = arith.constant 0 : i32
    return %c0_i32, %arg1 : i32, i32
  }
  func.func @transform_4(%arg0: i32, %arg1: i32, %arg2: i32) -> (i32, i32) {
    %c0_i32 = arith.constant 0 : i32
    return %arg0, %arg1 : i32, i32
  }
}

module attributes {stable_mosaic.version = 11 : i64} {
  func.func @_fused_matmul_kernel(%arg0: i32, %arg1: i32, %arg2: i32, %arg3: memref<8x512xbf16, #tpu.memory_space<vmem>>, %arg4: memref<512x256xbf16, #tpu.memory_space<vmem>>, %arg5: memref<1x256xf32, #tpu.memory_space<vmem>>, %arg6: memref<1x256xf32, #tpu.memory_space<vmem>>, %arg7: memref<8x256xbf16, #tpu.memory_space<vmem>>, %arg8: memref<8x256xbf16, #tpu.memory_space<vmem>>, %arg9: memref<8x256xf32, #tpu.memory_space<vmem>>) attributes {dimension_semantics = [#tpu.dimension_semantics<parallel>, #tpu.dimension_semantics<parallel>, #tpu.dimension_semantics<arbitrary>], iteration_bounds = array<i64: 1, 2, 9>, scalar_prefetch = 0 : i64, scratch_operands = 1 : i64, tpu.core_type = #tpu.core_type<tc>, window_params = [{transform_indices = @transform_0, window_bounds = array<i64: 8, 512>}, {transform_indices = @transform_1, window_bounds = array<i64: 512, 256>}, {transform_indices = @transform_2, window_bounds = array<i64: 1, 256>}, {transform_indices = @transform_3, window_bounds = array<i64: 1, 256>}, {transform_indices = @transform_4, window_bounds = array<i64: 8, 256>}, {transform_indices = @transform_5, window_bounds = array<i64: 8, 256>}]} {
    %c0_i32 = arith.constant 0 : i32
    %0 = arith.cmpi eq, %arg2, %c0_i32 : i32
    %1 = arith.extui %0 : i1 to i32
    %c0_i32_0 = arith.constant 0 : i32
    %2 = arith.cmpi ne, %1, %c0_i32_0 : i32
    scf.if %2 {
      %cst_9 = arith.constant 0.000000e+00 : f32
      %12 = vector.broadcast %cst_9 : f32 to vector<8x256xf32>
      %c0_10 = arith.constant 0 : index
      %c0_11 = arith.constant 0 : index
      %13 = vector.load %arg9[%c0_10, %c0_11] : memref<8x256xf32, #tpu.memory_space<vmem>>, vector<8x256xf32>
      tpu.vector_store %arg9[%c0_10, %c0_11], %12 {strides = array<i32>} : memref<8x256xf32, #tpu.memory_space<vmem>>, vector<8x256xf32>,
    } else {
    }
    %c0 = arith.constant 0 : index
    %c0_1 = arith.constant 0 : index
    %3 = vector.load %arg9[%c0, %c0_1] : memref<8x256xf32, #tpu.memory_space<vmem>>, vector<8x256xf32>
    %c0_2 = arith.constant 0 : index
    %c0_3 = arith.constant 0 : index
    %4 = vector.load %arg3[%c0_2, %c0_3] : memref<8x512xbf16, #tpu.memory_space<vmem>>, vector<8x512xbf16>
    %c0_4 = arith.constant 0 : index
    %c0_5 = arith.constant 0 : index
    %5 = vector.load %arg4[%c0_4, %c0_5] : memref<512x256xbf16, #tpu.memory_space<vmem>>, vector<512x256xbf16>
    %cst = arith.constant dense<0.000000e+00> : vector<8x256xf32>
    %6 = tpu.matmul %4, %5, %cst {dimension_numbers = #tpu.dot_dimension_numbers<[1], [0], [0], [1], [0, 0, 1, 1], [], []>} : vector<8x512xbf16>, vector<512x256xbf16>, vector<8x256xf32> -> vector<8x256xf32>
    %7 = arith.addf %3, %6 : vector<8x256xf32>
    %c0_6 = arith.constant 0 : index
    %c0_7 = arith.constant 0 : index
    %8 = vector.load %arg9[%c0_6, %c0_7] : memref<8x256xf32, #tpu.memory_space<vmem>>, vector<8x256xf32>
    tpu.vector_store %arg9[%c0_6, %c0_7], %7 {strides = array<i32>} : memref<8x256xf32, #tpu.memory_space<vmem>>, vector<8x256xf32>,
    %c8_i32 = arith.constant 8 : i32
    %9 = arith.cmpi eq, %arg2, %c8_i32 : i32
    %10 = arith.extui %9 : i1 to i32
    %c0_i32_8 = arith.constant 0 : i32
    %11 = arith.cmpi ne, %10, %c0_i32_8 : i32
    scf.if %11 {
      %c0_9 = arith.constant 0 : index
      %c0_10 = arith.constant 0 : index
      %12 = vector.load %arg9[%c0_9, %c0_10] : memref<8x256xf32, #tpu.memory_space<vmem>>, vector<8x256xf32>
      %c0_11 = arith.constant 0 : index
      %c0_12 = arith.constant 0 : index
      %13 = vector.load %arg5[%c0_11, %c0_12] : memref<1x256xf32, #tpu.memory_space<vmem>>, vector<1x256xf32>
      %14 = vector.broadcast %13 : vector<1x256xf32> to vector<8x256xf32>
      %15 = arith.mulf %12, %14 : vector<8x256xf32>
      %c0_13 = arith.constant 0 : index
      %c0_14 = arith.constant 0 : index
      %16 = vector.load %arg6[%c0_13, %c0_14] : memref<1x256xf32, #tpu.memory_space<vmem>>, vector<1x256xf32>
      %17 = vector.broadcast %16 : vector<1x256xf32> to vector<8x256xf32>
      %18 = arith.addf %15, %17 : vector<8x256xf32>
      %c0_15 = arith.constant 0 : index
      %c0_16 = arith.constant 0 : index
      %19 = vector.load %arg7[%c0_15, %c0_16] : memref<8x256xbf16, #tpu.memory_space<vmem>>, vector<8x256xbf16>
      %20 = arith.extf %19 : vector<8x256xbf16> to vector<8x256xf32>
      %21 = arith.addf %18, %20 : vector<8x256xf32>
      %cst_17 = arith.constant 0.000000e+00 : f32
      %22 = vector.broadcast %cst_17 : f32 to vector<8x256xf32>
      %23 = arith.maximumf %21, %22 : vector<8x256xf32>
      %24 = arith.truncf %23 : vector<8x256xf32> to vector<8x256xbf16>
      %c0_18 = arith.constant 0 : index
      %c0_19 = arith.constant 0 : index
      %25 = vector.load %arg8[%c0_18, %c0_19] : memref<8x256xbf16, #tpu.memory_space<vmem>>, vector<8x256xbf16>
      tpu.vector_store %arg8[%c0_18, %c0_19], %24 {strides = array<i32>} : memref<8x256xbf16, #tpu.memory_space<vmem>>, vector<8x256xbf16>,
    } else {
    }
    return
  }
  func.func @transform_0(%arg0: i32, %arg1: i32, %arg2: i32) -> (i32, i32) {
    %c0_i32 = arith.constant 0 : i32
    return %arg0, %arg2 : i32, i32
  }
  func.func @transform_1(%arg0: i32, %arg1: i32, %arg2: i32) -> (i32, i32) {
    %c0_i32 = arith.constant 0 : i32
    return %arg2, %arg1 : i32, i32
  }
  func.func @transform_2(%arg0: i32, %arg1: i32, %arg2: i32) -> (i32, i32) {
    %c0_i32 = arith.constant 0 : i32
    %c0_i32_0 = arith.constant 0 : i32
    return %c0_i32, %arg1 : i32, i32
  }
  func.func @transform_3(%arg0: i32, %arg1: i32, %arg2: i32) -> (i32, i32) {
    %c0_i32 = arith.constant 0 : i32
    %c0_i32_0 = arith.constant 0 : i32
    return %c0_i32, %arg1 : i32, i32
  }
  func.func @transform_4(%arg0: i32, %arg1: i32, %arg2: i32) -> (i32, i32) {
    %c0_i32 = arith.constant 0 : i32
    return %arg0, %arg1 : i32, i32
  }
  func.func @transform_5(%arg0: i32, %arg1: i32, %arg2: i32) -> (i32, i32) {
    %c0_i32 = arith.constant 0 : i32
    return %arg0, %arg1 : i32, i32
  }
}

module attributes {stable_mosaic.version = 11 : i64} {
  func.func @_fused_matmul_kernel(%arg0: i32, %arg1: i32, %arg2: i32, %arg3: memref<8x512xbf16, #tpu.memory_space<vmem>>, %arg4: memref<512x256xbf16, #tpu.memory_space<vmem>>, %arg5: memref<1x256xf32, #tpu.memory_space<vmem>>, %arg6: memref<1x256xf32, #tpu.memory_space<vmem>>, %arg7: memref<8x256xbf16, #tpu.memory_space<vmem>>, %arg8: memref<8x256xf32, #tpu.memory_space<vmem>>) attributes {dimension_semantics = [#tpu.dimension_semantics<parallel>, #tpu.dimension_semantics<parallel>, #tpu.dimension_semantics<arbitrary>], iteration_bounds = array<i64: 1, 2, 9>, scalar_prefetch = 0 : i64, scratch_operands = 1 : i64, tpu.core_type = #tpu.core_type<tc>, window_params = [{transform_indices = @transform_0, window_bounds = array<i64: 8, 512>}, {transform_indices = @transform_1, window_bounds = array<i64: 512, 256>}, {transform_indices = @transform_2, window_bounds = array<i64: 1, 256>}, {transform_indices = @transform_3, window_bounds = array<i64: 1, 256>}, {transform_indices = @transform_4, window_bounds = array<i64: 8, 256>}]} {
    %c0_i32 = arith.constant 0 : i32
    %0 = arith.cmpi eq, %arg2, %c0_i32 : i32
    %1 = arith.extui %0 : i1 to i32
    %c0_i32_0 = arith.constant 0 : i32
    %2 = arith.cmpi ne, %1, %c0_i32_0 : i32
    scf.if %2 {
      %cst_9 = arith.constant 0.000000e+00 : f32
      %12 = vector.broadcast %cst_9 : f32 to vector<8x256xf32>
      %c0_10 = arith.constant 0 : index
      %c0_11 = arith.constant 0 : index
      %13 = vector.load %arg8[%c0_10, %c0_11] : memref<8x256xf32, #tpu.memory_space<vmem>>, vector<8x256xf32>
      tpu.vector_store %arg8[%c0_10, %c0_11], %12 {strides = array<i32>} : memref<8x256xf32, #tpu.memory_space<vmem>>, vector<8x256xf32>,
    } else {
    }
    %c0 = arith.constant 0 : index
    %c0_1 = arith.constant 0 : index
    %3 = vector.load %arg8[%c0, %c0_1] : memref<8x256xf32, #tpu.memory_space<vmem>>, vector<8x256xf32>
    %c0_2 = arith.constant 0 : index
    %c0_3 = arith.constant 0 : index
    %4 = vector.load %arg3[%c0_2, %c0_3] : memref<8x512xbf16, #tpu.memory_space<vmem>>, vector<8x512xbf16>
    %c0_4 = arith.constant 0 : index
    %c0_5 = arith.constant 0 : index
    %5 = vector.load %arg4[%c0_4, %c0_5] : memref<512x256xbf16, #tpu.memory_space<vmem>>, vector<512x256xbf16>
    %cst = arith.constant dense<0.000000e+00> : vector<8x256xf32>
    %6 = tpu.matmul %4, %5, %cst {dimension_numbers = #tpu.dot_dimension_numbers<[1], [0], [0], [1], [0, 0, 1, 1], [], []>} : vector<8x512xbf16>, vector<512x256xbf16>, vector<8x256xf32> -> vector<8x256xf32>
    %7 = arith.addf %3, %6 : vector<8x256xf32>
    %c0_6 = arith.constant 0 : index
    %c0_7 = arith.constant 0 : index
    %8 = vector.load %arg8[%c0_6, %c0_7] : memref<8x256xf32, #tpu.memory_space<vmem>>, vector<8x256xf32>
    tpu.vector_store %arg8[%c0_6, %c0_7], %7 {strides = array<i32>} : memref<8x256xf32, #tpu.memory_space<vmem>>, vector<8x256xf32>,
    %c8_i32 = arith.constant 8 : i32
    %9 = arith.cmpi eq, %arg2, %c8_i32 : i32
    %10 = arith.extui %9 : i1 to i32
    %c0_i32_8 = arith.constant 0 : i32
    %11 = arith.cmpi ne, %10, %c0_i32_8 : i32
    scf.if %11 {
      %c0_9 = arith.constant 0 : index
      %c0_10 = arith.constant 0 : index
      %12 = vector.load %arg8[%c0_9, %c0_10] : memref<8x256xf32, #tpu.memory_space<vmem>>, vector<8x256xf32>
      %c0_11 = arith.constant 0 : index
      %c0_12 = arith.constant 0 : index
      %13 = vector.load %arg5[%c0_11, %c0_12] : memref<1x256xf32, #tpu.memory_space<vmem>>, vector<1x256xf32>
      %14 = vector.broadcast %13 : vector<1x256xf32> to vector<8x256xf32>
      %15 = arith.mulf %12, %14 : vector<8x256xf32>
      %c0_13 = arith.constant 0 : index
      %c0_14 = arith.constant 0 : index
      %16 = vector.load %arg6[%c0_13, %c0_14] : memref<1x256xf32, #tpu.memory_space<vmem>>, vector<1x256xf32>
      %17 = vector.broadcast %16 : vector<1x256xf32> to vector<8x256xf32>
      %18 = arith.addf %15, %17 : vector<8x256xf32>
      %cst_15 = arith.constant 0.000000e+00 : f32
      %19 = vector.broadcast %cst_15 : f32 to vector<8x256xf32>
      %20 = arith.maximumf %18, %19 : vector<8x256xf32>
      %21 = arith.truncf %20 : vector<8x256xf32> to vector<8x256xbf16>
      %c0_16 = arith.constant 0 : index
      %c0_17 = arith.constant 0 : index
      %22 = vector.load %arg7[%c0_16, %c0_17] : memref<8x256xbf16, #tpu.memory_space<vmem>>, vector<8x256xbf16>
      tpu.vector_store %arg7[%c0_16, %c0_17], %21 {strides = array<i32>} : memref<8x256xbf16, #tpu.memory_space<vmem>>, vector<8x256xbf16>,
    } else {
    }
    return
  }
  func.func @transform_0(%arg0: i32, %arg1: i32, %arg2: i32) -> (i32, i32) {
    %c0_i32 = arith.constant 0 : i32
    return %arg0, %arg2 : i32, i32
  }
  func.func @transform_1(%arg0: i32, %arg1: i32, %arg2: i32) -> (i32, i32) {
    %c0_i32 = arith.constant 0 : i32
    return %arg2, %arg1 : i32, i32
  }
  func.func @transform_2(%arg0: i32, %arg1: i32, %arg2: i32) -> (i32, i32) {
    %c0_i32 = arith.constant 0 : i32
    %c0_i32_0 = arith.constant 0 : i32
    return %c0_i32, %arg1 : i32, i32
  }
  func.func @transform_3(%arg0: i32, %arg1: i32, %arg2: i32) -> (i32, i32) {
    %c0_i32 = arith.constant 0 : i32
    %c0_i32_0 = arith.constant 0 : i32
    return %c0_i32, %arg1 : i32, i32
  }
  func.func @transform_4(%arg0: i32, %arg1: i32, %arg2: i32) -> (i32, i32) {
    %c0_i32 = arith.constant 0 : i32
    return %arg0, %arg1 : i32, i32
  }
}

module attributes {stable_mosaic.version = 11 : i64} {
  func.func @_fused_matmul_kernel(%arg0: i32, %arg1: i32, %arg2: i32, %arg3: memref<8x512xbf16, #tpu.memory_space<vmem>>, %arg4: memref<512x32xbf16, #tpu.memory_space<vmem>>, %arg5: memref<1x32xf32, #tpu.memory_space<vmem>>, %arg6: memref<1x32xf32, #tpu.memory_space<vmem>>, %arg7: memref<8x32xf32, #tpu.memory_space<vmem>>, %arg8: memref<8x32xf32, #tpu.memory_space<vmem>>) attributes {dimension_semantics = [#tpu.dimension_semantics<parallel>, #tpu.dimension_semantics<parallel>, #tpu.dimension_semantics<arbitrary>], iteration_bounds = array<i64: 1, 1, 2>, scalar_prefetch = 0 : i64, scratch_operands = 1 : i64, tpu.core_type = #tpu.core_type<tc>, window_params = [{transform_indices = @transform_0, window_bounds = array<i64: 8, 512>}, {transform_indices = @transform_1, window_bounds = array<i64: 512, 32>}, {transform_indices = @transform_2, window_bounds = array<i64: 1, 32>}, {transform_indices = @transform_3, window_bounds = array<i64: 1, 32>}, {transform_indices = @transform_4, window_bounds = array<i64: 8, 32>}]} {
    %c0_i32 = arith.constant 0 : i32
    %0 = arith.cmpi eq, %arg2, %c0_i32 : i32
    %1 = arith.extui %0 : i1 to i32
    %c0_i32_0 = arith.constant 0 : i32
    %2 = arith.cmpi ne, %1, %c0_i32_0 : i32
    scf.if %2 {
      %cst_9 = arith.constant 0.000000e+00 : f32
      %12 = vector.broadcast %cst_9 : f32 to vector<8x32xf32>
      %c0_10 = arith.constant 0 : index
      %c0_11 = arith.constant 0 : index
      %13 = vector.load %arg8[%c0_10, %c0_11] : memref<8x32xf32, #tpu.memory_space<vmem>>, vector<8x32xf32>
      tpu.vector_store %arg8[%c0_10, %c0_11], %12 {strides = array<i32>} : memref<8x32xf32, #tpu.memory_space<vmem>>, vector<8x32xf32>,
    } else {
    }
    %c0 = arith.constant 0 : index
    %c0_1 = arith.constant 0 : index
    %3 = vector.load %arg8[%c0, %c0_1] : memref<8x32xf32, #tpu.memory_space<vmem>>, vector<8x32xf32>
    %c0_2 = arith.constant 0 : index
    %c0_3 = arith.constant 0 : index
    %4 = vector.load %arg3[%c0_2, %c0_3] : memref<8x512xbf16, #tpu.memory_space<vmem>>, vector<8x512xbf16>
    %c0_4 = arith.constant 0 : index
    %c0_5 = arith.constant 0 : index
    %5 = vector.load %arg4[%c0_4, %c0_5] : memref<512x32xbf16, #tpu.memory_space<vmem>>, vector<512x32xbf16>
    %cst = arith.constant dense<0.000000e+00> : vector<8x32xf32>
    %6 = tpu.matmul %4, %5, %cst {dimension_numbers = #tpu.dot_dimension_numbers<[1], [0], [0], [1], [0, 0, 1, 1], [], []>} : vector<8x512xbf16>, vector<512x32xbf16>, vector<8x32xf32> -> vector<8x32xf32>
    %7 = arith.addf %3, %6 : vector<8x32xf32>
    %c0_6 = arith.constant 0 : index
    %c0_7 = arith.constant 0 : index
    %8 = vector.load %arg8[%c0_6, %c0_7] : memref<8x32xf32, #tpu.memory_space<vmem>>, vector<8x32xf32>
    tpu.vector_store %arg8[%c0_6, %c0_7], %7 {strides = array<i32>} : memref<8x32xf32, #tpu.memory_space<vmem>>, vector<8x32xf32>,
    %c1_i32 = arith.constant 1 : i32
    %9 = arith.cmpi eq, %arg2, %c1_i32 : i32
    %10 = arith.extui %9 : i1 to i32
    %c0_i32_8 = arith.constant 0 : i32
    %11 = arith.cmpi ne, %10, %c0_i32_8 : i32
    scf.if %11 {
      %c0_9 = arith.constant 0 : index
      %c0_10 = arith.constant 0 : index
      %12 = vector.load %arg8[%c0_9, %c0_10] : memref<8x32xf32, #tpu.memory_space<vmem>>, vector<8x32xf32>
      %c0_11 = arith.constant 0 : index
      %c0_12 = arith.constant 0 : index
      %13 = vector.load %arg5[%c0_11, %c0_12] : memref<1x32xf32, #tpu.memory_space<vmem>>, vector<1x32xf32>
      %14 = vector.broadcast %13 : vector<1x32xf32> to vector<8x32xf32>
      %15 = arith.mulf %12, %14 : vector<8x32xf32>
      %c0_13 = arith.constant 0 : index
      %c0_14 = arith.constant 0 : index
      %16 = vector.load %arg6[%c0_13, %c0_14] : memref<1x32xf32, #tpu.memory_space<vmem>>, vector<1x32xf32>
      %17 = vector.broadcast %16 : vector<1x32xf32> to vector<8x32xf32>
      %18 = arith.addf %15, %17 : vector<8x32xf32>
      %c0_15 = arith.constant 0 : index
      %c0_16 = arith.constant 0 : index
      %19 = vector.load %arg7[%c0_15, %c0_16] : memref<8x32xf32, #tpu.memory_space<vmem>>, vector<8x32xf32>
      tpu.vector_store %arg7[%c0_15, %c0_16], %18 {strides = array<i32>} : memref<8x32xf32, #tpu.memory_space<vmem>>, vector<8x32xf32>,
    } else {
    }
    return
  }
  func.func @transform_0(%arg0: i32, %arg1: i32, %arg2: i32) -> (i32, i32) {
    %c0_i32 = arith.constant 0 : i32
    return %arg0, %arg2 : i32, i32
  }
  func.func @transform_1(%arg0: i32, %arg1: i32, %arg2: i32) -> (i32, i32) {
    %c0_i32 = arith.constant 0 : i32
    return %arg2, %arg1 : i32, i32
  }
  func.func @transform_2(%arg0: i32, %arg1: i32, %arg2: i32) -> (i32, i32) {
    %c0_i32 = arith.constant 0 : i32
    %c0_i32_0 = arith.constant 0 : i32
    return %c0_i32, %arg1 : i32, i32
  }
  func.func @transform_3(%arg0: i32, %arg1: i32, %arg2: i32) -> (i32, i32) {
    %c0_i32 = arith.constant 0 : i32
    %c0_i32_0 = arith.constant 0 : i32
    return %c0_i32, %arg1 : i32, i32
  }
  func.func @transform_4(%arg0: i32, %arg1: i32, %arg2: i32) -> (i32, i32) {
    %c0_i32 = arith.constant 0 : i32
    return %arg0, %arg1 : i32, i32
  }
}

</mosaic_0001>

<bundles_post_ra>
// kernel: _lambda_.23
= control target key start
LH: loop header
LB: loop body
LE: loop exit
PB: predicated region body
PF: predicated region fallthrough
CT: control target
= control target key end

     0   :  { %s1069_s15 = smov 0   ;;  %s1071_s16 = smov 0   ;;  %s1246_s0 = inlined_call_operand.vmem [shape: bf16[2048,49], index: 0, kind: input, shape index: {}]   ;;  %s1247_s1 = inlined_call_operand.vmem [shape: bf16[49,64], index: 1, kind: input, shape index: {}]   ;;  %s1248_s2 = inlined_call_operand.vmem [shape: f32[1,64], index: 2, kind: input, shape index: {}]   ;;  %s1249_s3 = inlined_call_operand.vmem [shape: f32[1,64], index: 3, kind: input, shape index: {}]   ;;  %s1250_s4 = inlined_call_operand.vmem [shape: bf16[2048,64], index: 4, kind: output, shape index: {}]  }
   0x1   :  { %s1073_s17 = smov 0  }
   0x2 LB: > { %s33_s18 = sadd.s32 1, %s1036_s16  ;;  %p875_p0 = scmp.ge.s32.totalorder %s1040_s17, 1  ;;  %s1040_s17 = sphi %s1073_s17, %s14_s17   ;;  %s1036_s16 = sphi %s1071_s16, %s1253_s16   ;;  %s1032_s15 = sphi %s1069_s15, %s1252_s15  }
   0x3   : > { %p35_p1 = scmp.ge.s32.totalorder %s33_s18, 16  ;;  %p221_p2 = scmp.lt.s32.totalorder %s1040_s17, 17 }
   0x5   : > { %s1255_s18 = smov (%p35_p1, %s33_s18), 0  ;;  %p222_p3 = pnand %p875_p0, %p221_p2 }
   0x6   : > { %v1006_v0 = vld [vmem:[%s1247_s1] sm:$0xff] (!%p222_p3)   ;;  %v1007_v1 = vld [vmem:[%s1247_s1 + $0x8] sm:$0xff] (!%p222_p3)   ;;  %vm447_vm0 = vcmask (!%p222_p3), 1040384   ;;  %v1008_v2 = vld [vmem:[%s1247_s1 + $0x10] sm:$0xff] (!%p222_p3)   ;;  %s876_s25 = sshll.u32 (!%p222_p3), %s1032_s15, 4  ;;  %vm305_vm1 = vcmask (!%p222_p3), 523264  }
   0x7   : > { %225 = sbr.rel (%p222_p3) target bundleno = 267 (0x10b), region = 36  ;;  %948 = vmatprep.subr.bf16.mxu0 (!%p222_p3), %v1006_v0  ;;  %972 = vmatprep.subr.bf16.mxu1 (!%p222_p3), %v1006_v0  ;;  %v1009_v3 = vld [vmem:[%s1247_s1 + $0x18] ss:$0 sps:$4 sm:$0x11] (!%p222_p3)   ;;  %p1102_p4 = scmp.lt.s32.totalorder (!%p222_p3), %s876_s25, 255  ;;  %v1042_v4 = vmov (!%p222_p3), 0  }
   0x8   : > { %949 = vmatpush3.bf16.msra.mxu0 (!%p222_p3), %v1006_v0  ;;  %976 = vmatpush3.bf16.msra.mxu1 (!%p222_p3), %v1006_v0  ;;  %v449_v5 = vsel (!%p222_p3), %vm447_vm0, 65535, %v1042_v4  ;;  %v1043_v6 = vmov (!%p222_p3), 0.0   ;;  %vm422_vm2 = vcmask (!%p222_p3), 400384   ;;  %v1151_v44 = vld [vmem:[%s1248_s2] ss:$0 sm:$0xff] (!%p222_p3)  ;;  %vm728_vm3 = vcmask (!%p222_p3), 519168  }
   0x9   : > { %950 = vmatprep.subr.bf16.mxu0 (!%p222_p3), %v1007_v1  ;;  %973 = vmatprep.subr.bf16.mxu1 (!%p222_p3), %v1007_v1  ;;  %308 = vst.msk [vmem:[#allocation2 + $0x10] sm:$0xff] (!%p222_p3), %vm305_vm1, %v1043_v6  ;;  %306 = vst.msk [vmem:[#allocation2] sm:$0xff] (!%p222_p3), %vm305_vm1, %v1043_v6  ;;  %v451_v7 = vand.u32 (!%p222_p3), %v1009_v3, %v449_v5  ;;  %v1156_v49 = vld [vmem:[%s1249_s3] ss:$0 sm:$0xff] (!%p222_p3) }
   0xa   : > { %307 = vst.msk [vmem:[#allocation2 + $0x8] sm:$0xff] (!%p222_p3), %vm305_vm1, %v1043_v6  ;;  %309 = vst.msk [vmem:[#allocation2 + $0x18] sm:$0xff] (!%p222_p3), %vm305_vm1, %v1043_v6 }
   0xb   : > { %310 = vst.msk [vmem:[#allocation2 + $0x20] sm:$0xff] (!%p222_p3), %vm305_vm1, %v1043_v6  ;;  %311 = vst.msk [vmem:[#allocation2 + $0x28] sm:$0xff] (!%p222_p3), %vm305_vm1, %v1043_v6 }
   0xc   : > { %312 = vst.msk [vmem:[#allocation2 + $0x30] sm:$0xff] (!%p222_p3), %vm305_vm1, %v1043_v6  ;;  %313 = vst.msk [vmem:[#allocation2 + $0x38] sm:$0xff] (!%p222_p3), %vm305_vm1, %v1043_v6  ;;  %951 = vmatpush3.bf16.msra.mxu0 (!%p222_p3), %v1007_v1  ;;  %977 = vmatpush3.bf16.msra.mxu1 (!%p222_p3), %v1007_v1 }
   0xd   : > { %314 = vst.msk [vmem:[#allocation2 + $0x40] sm:$0xff] (!%p222_p3), %vm305_vm1, %v1043_v6  ;;  %315 = vst.msk [vmem:[#allocation2 + $0x48] sm:$0xff] (!%p222_p3), %vm305_vm1, %v1043_v6  ;;  %952 = vmatprep.subr.bf16.mxu0 (!%p222_p3), %v1008_v2  ;;  %974 = vmatprep.subr.bf16.mxu1 (!%p222_p3), %v1008_v2 }
   0xe   : > { %316 = vst.msk [vmem:[#allocation2 + $0x50] sm:$0xff] %vm305_vm1, %v1043_v6  ;;  %317 = vst.msk [vmem:[#allocation2 + $0x58] sm:$0xff] %vm305_vm1, %v1043_v6  ;;  %s1257_s25 = smov (!%p1102_p4, %s876_s25), 255 }
   0xf   : > { %318 = vst.msk [vmem:[#allocation2 + $0x60] sm:$0xff] %vm305_vm1, %v1043_v6  ;;  %319 = vst.msk [vmem:[#allocation2 + $0x68] sm:$0xff] %vm305_vm1, %v1043_v6  ;;  %s877_s29 = sshll.u32 %s1257_s25, 2 }
  0x10   : > { %320 = vst.msk [vmem:[#allocation2 + $0x70] sm:$0xff] %vm305_vm1, %v1043_v6  ;;  %321 = vst.msk [vmem:[#allocation2 + $0x78] sm:$0xff] %vm305_vm1, %v1043_v6  ;;  %s274_s6 = scalar_lea.vmem %s1246_s0, %s877_s29  ;;  %953 = vmatpush3.bf16.msra.mxu0 %v1008_v2  ;;  %978 = vmatpush3.bf16.msra.mxu1 %v1008_v2  ;;  %v324_v16 = vld [vmem:[#allocation2 + $0x10] sm:$0xff]  ;;  %v322_v18 = vld [vmem:[#allocation2] sm:$0xff]  ;;  %s1185_s13 = scalar_lea.vmem %s1250_s4, %s877_s29 }
  0x11   : > { %v1010_v8 = vld [vmem:[%s274_s6] sm:$0xff]   ;;  %954 = vmatprep.subr.bf16.mxu0 %v451_v7  ;;  %975 = vmatprep.subr.bf16.mxu1 %v451_v7  ;;  %v1012_v10 = vld [vmem:[%s274_s6 + $0x8] sm:$0xff]   ;;  %v1014_v12 = vld [vmem:[%s274_s6 + $0x10] sm:$0xff]  }
  0x12   : > { %v1011_v9 = vld [vmem:[%s274_s6 + $0x20] sm:$0xff]   ;;  %956 = vmatprep.mubr.msk.bf16.mxu0 %vm422_vm2, %v1010_v8  ;;  %v1013_v11 = vld [vmem:[%s274_s6 + $0x28] sm:$0xff]   ;;  %v1015_v13 = vld [vmem:[%s274_s6 + $0x30] sm:$0xff]  }
  0x13   : > { %964 = vmatprep.mubr.msk.bf16.mxu1 %vm422_vm2, %v1011_v9  ;;  %v1016_v14 = vld [vmem:[%s274_s6 + $0x18] sm:$0xff]   ;;  %v323_v28 = vld [vmem:[#allocation2 + $0x8] sm:$0xff]  ;;  %v328_v40 = vld [vmem:[#allocation2 + $0x30] sm:$0xff] }
  0x14   : > { %955 = vmatpush3.bf16.msra.mxu0 %v451_v7  ;;  %979 = vmatpush3.bf16.msra.mxu1 %v451_v7  ;;  %v1017_v15 = vld [vmem:[%s274_s6 + $0x38] sm:$0xff]   ;;  %v330_v19 = vld [vmem:[#allocation2 + $0x40] sm:$0xff]  ;;  %v331_v29 = vld [vmem:[#allocation2 + $0x48] sm:$0xff] }
  0x15   : > { %v332_v17 = vld [vmem:[#allocation2 + $0x50] sm:$0xff]  ;;  %v325_v22 = vld [vmem:[#allocation2 + $0x18] sm:$0xff]  ;;  %v326_v42 = vld [vmem:[#allocation2 + $0x20] sm:$0xff] }
  0x16   : > { %v333_v23 = vld [vmem:[#allocation2 + $0x58] sm:$0xff]  ;;  %v334_v43 = vld [vmem:[#allocation2 + $0x60] sm:$0xff]  ;;  %v327_v54 = vld [vmem:[#allocation2 + $0x28] sm:$0xff] }
  0x17   : > { %957 = vmatmul.mubr.msk.bf16.vlgmr.msra.gmra.mrb[0].mxu0 %vm422_vm2, %v1012_v10  ;;  %965 = vmatmul.mubr.msk.bf16.vlgmr.msra.gmra.mrb[0].mxu1 %vm422_vm2, %v1013_v11  ;;  %v336_v41 = vld [vmem:[#allocation2 + $0x70] sm:$0xff]  ;;  %v329_v47 = vld [vmem:[#allocation2 + $0x38] sm:$0xff]  ;;  %v335_v55 = vld [vmem:[#allocation2 + $0x68] sm:$0xff] }
  0x18   : > { %960 = vmatprep.mubr.msk.bf16.mxu0 %vm422_vm2, %v1014_v12  ;;  %968 = vmatprep.mubr.msk.bf16.mxu1 %vm422_vm2, %v1015_v13  ;;  %v337_v48 = vld [vmem:[#allocation2 + $0x78] sm:$0xff] }
  0x1f   : > { %961 = vmatmul.mubr.msk.bf16.gmra.mrb[4].mxu0 %vm422_vm2, %v1016_v14  ;;  %969 = vmatmul.mubr.msk.bf16.gmra.mrb[4].mxu1 %vm422_vm2, %v1017_v15 }
  0xea   : > { %v958_v20 = vpop.f32.mrb[0].mxu0  ;;  %v966_v21 = vpop.f32.mrb[0].mxu1 }
  0xeb   : > { %v552_v24 = vadd.f32 %v958_v20, %v324_v16  ;;  %v560_v25 = vadd.f32 %v966_v21, %v332_v17  ;;  %v487_v26 = vpop.f32.mrb[1].mxu0  ;;  %v519_v27 = vpop.f32.mrb[1].mxu1 }
  0xec   : > { %v550_v30 = vadd.f32 %v487_v26, %v322_v18  ;;  %v558_v31 = vadd.f32 %v519_v27, %v330_v19  ;;  %v959_v32 = vpop.f32.mrb[2].mxu0  ;;  %v967_v33 = vpop.f32.mrb[2].mxu1 }
  0xed   : > { %569 = vst.msk [vmem:[#allocation2 + $0x10] sm:$0xff] %vm305_vm1, %v552_v24  ;;  %577 = vst.msk [vmem:[#allocation2 + $0x50] sm:$0xff] %vm305_vm1, %v560_v25  ;;  %v553_v34 = vadd.f32 %v959_v32, %v325_v22  ;;  %v561_v35 = vadd.f32 %v967_v33, %v333_v23  ;;  %v490_v36 = vpop.f32.mrb[3].mxu0  ;;  %v522_v37 = vpop.f32.mrb[3].mxu1 }
  0xee   : > { %567 = vst.msk [vmem:[#allocation2] sm:$0xff] %vm305_vm1, %v550_v30  ;;  %575 = vst.msk [vmem:[#allocation2 + $0x40] sm:$0xff] %vm305_vm1, %v558_v31  ;;  %v551_v38 = vadd.f32 %v490_v36, %v323_v28  ;;  %v559_v39 = vadd.f32 %v522_v37, %v331_v29 }
  0xef   : > { %570 = vst.msk [vmem:[#allocation2 + $0x18] sm:$0xff] %vm305_vm1, %v553_v34  ;;  %578 = vst.msk [vmem:[#allocation2 + $0x58] sm:$0xff] %vm305_vm1, %v561_v35 }
  0xf0   : > { %568 = vst.msk [vmem:[#allocation2 + $0x8] sm:$0xff] %vm305_vm1, %v551_v38  ;;  %576 = vst.msk [vmem:[#allocation2 + $0x48] sm:$0xff] %vm305_vm1, %v559_v39 }
  0xf2   : > { %v962_v45 = vpop.f32.mrb[4].mxu0  ;;  %v970_v46 = vpop.f32.mrb[4].mxu1 }
  0xf3   : > { %v556_v50 = vadd.f32 %v962_v45, %v328_v40  ;;  %v564_v51 = vadd.f32 %v970_v46, %v336_v41  ;;  %v503_v52 = vpop.f32.mrb[5].mxu0  ;;  %v535_v53 = vpop.f32.mrb[5].mxu1 }
  0xf4   : > { %v588_v56 = vld [vmem:[#allocation2 + $0x10] sm:$0xff]  ;;  %v554_v58 = vadd.f32 %v503_v52, %v326_v42  ;;  %v562_v59 = vadd.f32 %v535_v53, %v334_v43  ;;  %v963_v60 = vpop.f32.mrb[6].mxu0  ;;  %v971_v61 = vpop.f32.mrb[6].mxu1 }
  0xf5   : > { %v596_v57 = vld [vmem:[#allocation2 + $0x50] sm:$0xff]  ;;  %v611_v62 = vmul.f32 %v1151_v44, %v588_v56  ;;  %v586_v0 = vld [vmem:[#allocation2] sm:$0xff]  ;;  %573 = vst.msk [vmem:[#allocation2 + $0x30] sm:$0xff] %vm305_vm1, %v556_v50  ;;  %581 = vst.msk [vmem:[#allocation2 + $0x70] sm:$0xff] %vm305_vm1, %v564_v51  ;;  %v557_v2 = vadd.f32 %v963_v60, %v329_v47  ;;  %v565_v3 = vadd.f32 %v971_v61, %v337_v48  ;;  %v506_v4 = vpop.f32.mrb[7].mxu0  ;;  %v538_v5 = vpop.f32.mrb[7].mxu1 }
  0xf6   : > { %v619_v63 = vmul.f32 %v1151_v44, %v596_v57  ;;  %v594_v1 = vld [vmem:[#allocation2 + $0x40] sm:$0xff]  ;;  %v609_v6 = vmul.f32 %v1151_v44, %v586_v0  ;;  %v589_v8 = vld [vmem:[#allocation2 + $0x18] sm:$0xff]  ;;  %571 = vst.msk [vmem:[#allocation2 + $0x20] sm:$0xff] %vm305_vm1, %v554_v58  ;;  %579 = vst.msk [vmem:[#allocation2 + $0x60] sm:$0xff] %vm305_vm1, %v562_v59  ;;  %v555_v10 = vadd.f32 %v506_v4, %v327_v54 }
  0xf7   : > { %v617_v7 = vmul.f32 %v1151_v44, %v594_v1  ;;  %v597_v9 = vld [vmem:[#allocation2 + $0x58] sm:$0xff]  ;;  %v563_v11 = vadd.f32 %v538_v5, %v335_v55  ;;  %v634_v12 = vadd.f32 %v1156_v49, %v611_v62  ;;  %v612_v14 = vmul.f32 %v1151_v44, %v589_v8  ;;  %v587_v16 = vld [vmem:[#allocation2 + $0x8] sm:$0xff]  ;;  %574 = vst.msk [vmem:[#allocation2 + $0x38] sm:$0xff] %vm305_vm1, %v557_v2 }
  0xf8   : > { %v642_v13 = vadd.f32 %v1156_v49, %v619_v63  ;;  %v620_v15 = vmul.f32 %v1151_v44, %v597_v9  ;;  %v595_v17 = vld [vmem:[#allocation2 + $0x48] sm:$0xff]  ;;  %582 = vst.msk [vmem:[#allocation2 + $0x78] sm:$0xff] %vm305_vm1, %v565_v3  ;;  %v632_v18 = vadd.f32 %v1156_v49, %v609_v6  ;;  %v610_v20 = vmul.f32 %v1151_v44, %v587_v16 }
  0xf9   : > { %v640_v19 = vadd.f32 %v1156_v49, %v617_v7  ;;  %v618_v21 = vmul.f32 %v1151_v44, %v595_v17  ;;  %572 = vst.msk [vmem:[#allocation2 + $0x28] sm:$0xff] %vm305_vm1, %v555_v10  ;;  %580 = vst.msk [vmem:[#allocation2 + $0x68] sm:$0xff] %vm305_vm1, %v563_v11  ;;  %v650_v22 = vmax.f32 %v634_v12, 0.0  ;;  %v635_v24 = vadd.f32 %v1156_v49, %v612_v14 }
  0xfa   : > { %v658_v23 = vmax.f32 %v642_v13, 0.0  ;;  %v643_v25 = vadd.f32 %v1156_v49, %v620_v15  ;;  %v648_v26 = vmax.f32 %v632_v18, 0.0  ;;  %v633_v28 = vadd.f32 %v1156_v49, %v610_v20 }
  0xfb   : > { %v656_v27 = vmax.f32 %v640_v19, 0.0  ;;  %v641_v29 = vadd.f32 %v1156_v49, %v618_v21  ;;  %v922_v30 = vpack.c.bf16 %v650_v22, %v650_v22  ;;  %v651_v32 = vmax.f32 %v635_v24, 0.0 }
  0xfc   : > { %v930_v31 = vpack.c.bf16 %v658_v23, %v658_v23  ;;  %v659_v33 = vmax.f32 %v643_v25, 0.0  ;;  %v920_v34 = vpack.c.bf16 %v648_v26, %v648_v26  ;;  %v649_v36 = vmax.f32 %v633_v28, 0.0  ;;  %v592_v38 = vld [vmem:[#allocation2 + $0x30] sm:$0xff] }
  0xfd   : > { %v928_v35 = vpack.c.bf16 %v656_v27, %v656_v27  ;;  %v657_v37 = vmax.f32 %v641_v29, 0.0  ;;  %v600_v39 = vld [vmem:[#allocation2 + $0x70] sm:$0xff]  ;;  %731 = vst.msk [vmem:[%s1185_s13 + $0x8] sm:$0xf] %vm728_vm3, %v922_v30  ;;  %v923_v40 = vpack.c.bf16 %v651_v32, %v651_v32  ;;  %v615_v42 = vmul.f32 %v1151_v44, %v592_v38  ;;  %v590_v45 = vld [vmem:[#allocation2 + $0x20] sm:$0xff] }
  0xfe   : > { %739 = vst.msk [vmem:[%s1185_s13 + $0x28] sm:$0xf] %vm728_vm3, %v930_v31  ;;  %v931_v41 = vpack.c.bf16 %v659_v33, %v659_v33  ;;  %v623_v43 = vmul.f32 %v1151_v44, %v600_v39  ;;  %v598_v46 = vld [vmem:[#allocation2 + $0x60] sm:$0xff]  ;;  %729 = vst.msk [vmem:[%s1185_s13] sm:$0xf] %vm728_vm3, %v920_v34  ;;  %v921_v47 = vpack.c.bf16 %v649_v36, %v649_v36  ;;  %v593_v52 = vld [vmem:[#allocation2 + $0x38] sm:$0xff] }
  0xff   : > { %737 = vst.msk [vmem:[%s1185_s13 + $0x20] sm:$0xf] %vm728_vm3, %v928_v35  ;;  %v929_v48 = vpack.c.bf16 %v657_v37, %v657_v37  ;;  %v613_v50 = vmul.f32 %v1151_v44, %v590_v45  ;;  %v621_v51 = vmul.f32 %v1151_v44, %v598_v46  ;;  %v601_v53 = vld [vmem:[#allocation2 + $0x78] sm:$0xff]  ;;  %732 = vst.msk [vmem:[%s1185_s13 + $0xc] sm:$0xf] %vm728_vm3, %v923_v40 }
 0x100   : > { %740 = vst.msk [vmem:[%s1185_s13 + $0x2c] sm:$0xf] %vm728_vm3, %v931_v41  ;;  %v638_v54 = vadd.f32 %v1156_v49, %v615_v42  ;;  %v646_v55 = vadd.f32 %v1156_v49, %v623_v43  ;;  %v616_v56 = vmul.f32 %v1151_v44, %v593_v52  ;;  %v624_v57 = vmul.f32 %v1151_v44, %v601_v53  ;;  %v591_v58 = vld [vmem:[#allocation2 + $0x28] sm:$0xff] }
 0x101   : > { %v599_v59 = vld [vmem:[#allocation2 + $0x68] sm:$0xff]  ;;  %730 = vst.msk [vmem:[%s1185_s13 + $0x4] sm:$0xf] %vm728_vm3, %v921_v47  ;;  %738 = vst.msk [vmem:[%s1185_s13 + $0x24] sm:$0xf] %vm728_vm3, %v929_v48  ;;  %v636_v60 = vadd.f32 %v1156_v49, %v613_v50  ;;  %v644_v61 = vadd.f32 %v1156_v49, %v621_v51  ;;  %v614_v62 = vmul.f32 %v1151_v44, %v591_v58 }
 0x102   : > { %v622_v63 = vmul.f32 %v1151_v44, %v599_v59  ;;  %v654_v0 = vmax.f32 %v638_v54, 0.0  ;;  %v662_v1 = vmax.f32 %v646_v55, 0.0  ;;  %v639_v2 = vadd.f32 %v1156_v49, %v616_v56 }
 0x103   : > { %v647_v3 = vadd.f32 %v1156_v49, %v624_v57  ;;  %v652_v4 = vmax.f32 %v636_v60, 0.0  ;;  %v660_v5 = vmax.f32 %v644_v61, 0.0  ;;  %v637_v6 = vadd.f32 %v1156_v49, %v614_v62 }
 0x104   : > { %v645_v7 = vadd.f32 %v1156_v49, %v622_v63  ;;  %v926_v8 = vpack.c.bf16 %v654_v0, %v654_v0  ;;  %v934_v9 = vpack.c.bf16 %v662_v1, %v662_v1  ;;  %v655_v44 = vmax.f32 %v639_v2, 0.0 }
 0x105   : > { %v663_v10 = vmax.f32 %v647_v3, 0.0  ;;  %v924_v11 = vpack.c.bf16 %v652_v4, %v652_v4  ;;  %v932_v12 = vpack.c.bf16 %v660_v5, %v660_v5  ;;  %v653_v13 = vmax.f32 %v637_v6, 0.0 }
 0x106   : > { %v661_v14 = vmax.f32 %v645_v7, 0.0  ;;  %735 = vst.msk [vmem:[%s1185_s13 + $0x18] sm:$0xf] %vm728_vm3, %v926_v8  ;;  %743 = vst.msk [vmem:[%s1185_s13 + $0x38] sm:$0xf] %vm728_vm3, %v934_v9  ;;  %v927_v15 = vpack.c.bf16 %v655_v44, %v655_v44 }
 0x107   : > { %v935_v16 = vpack.c.bf16 %v663_v10, %v663_v10  ;;  %733 = vst.msk [vmem:[%s1185_s13 + $0x10] sm:$0xf] %vm728_vm3, %v924_v11  ;;  %741 = vst.msk [vmem:[%s1185_s13 + $0x30] sm:$0xf] %vm728_vm3, %v932_v12  ;;  %v925_v49 = vpack.c.bf16 %v653_v13, %v653_v13 }
 0x108   : > { %v933_v17 = vpack.c.bf16 %v661_v14, %v661_v14  ;;  %736 = vst.msk [vmem:[%s1185_s13 + $0x1c] sm:$0xf] %vm728_vm3, %v927_v15 }
 0x109   : > { %744 = vst.msk [vmem:[%s1185_s13 + $0x3c] sm:$0xf] %vm728_vm3, %v935_v16  ;;  %734 = vst.msk [vmem:[%s1185_s13 + $0x14] sm:$0xf] %vm728_vm3, %v925_v49 }
 0x10a   : > { %742 = vst.msk [vmem:[%s1185_s13 + $0x34] sm:$0xf] %vm728_vm3, %v933_v17 }
 0x10b PF: > { %s14_s17 = sadd.s32 1, %s1040_s17   ;;  %s1252_s15 = smov %s1036_s16 }
 0x10c   : > { %p11_p5 = scmp.ge.s32.totalorder %s14_s17, 18   ;;  %s1253_s16 = smov %s1255_s18 }
 0x10e   :  { %13 = sbr.rel (!%p11_p5) target bundleno = 2 (0x2), region = 83 }

// kernel: _lambda_.25
= control target key start
LH: loop header
LB: loop body
LE: loop exit
PB: predicated region body
PF: predicated region fallthrough
CT: control target
= control target key end

     0   :  { %s542_s12 = smov 0   ;;  %s733_s0 = inlined_call_operand.vmem [shape: bf16[512,64], index: 0, kind: input, shape index: {}]   ;;  %s734_s1 = inlined_call_operand.vmem [shape: bf16[512,64], index: 1, kind: input, shape index: {}]   ;;  %s735_s2 = inlined_call_operand.vmem [shape: bf16[512,64], index: 2, kind: input, shape index: {}]   ;;  %s736_s3 = inlined_call_operand.vmem [shape: bf16[512,64], index: 3, kind: output, shape index: {}]  }
   0x1 LB: > { %s491_s13 = sadd.s32 4294967295, %s520_s12   ;;  %p495_p0 = scmp.ge.s32.totalorder %s520_s12, 1  ;;  %s520_s12 = sphi %s542_s12, %s13_s12  }
   0x2   : > { %p160_p1 = scmp.lt.s32.totalorder %s520_s12, 3 }
   0x4   : > { %p161_p2 = pnand %p495_p0, %p160_p1 }
   0x5   : > { %s496_s14 = sshll.u32 (!%p161_p2), %s491_s13, 5  ;;  %vm378_vm0 = vcmask (!%p161_p2), 519168  }
   0x6   : > { %164 = sbr.rel (%p161_p2) target bundleno = 62 (0x3e), region = 32  ;;  %p195_p3 = scmp.lt.s32.totalorder (!%p161_p2), %s496_s14, 63 }
   0xd   : > { %s738_s14 = smov (!%p195_p3, %s496_s14), 63 }
   0xe   : > { %s497_s15 = sshll.u32 %s738_s14, 2 }
   0xf   : > { %s553_s18 = scalar_lea.vmem %s733_s0, %s497_s15  ;;  %s558_s21 = scalar_lea.vmem %s734_s1, %s497_s15 }
  0x10   : > { %s563_s24 = scalar_lea.vmem %s735_s2, %s497_s15  ;;  %v218_v0 = vld [vmem:[%s553_s18] sm:$0xf]  ;;  %v219_v2 = vld [vmem:[%s553_s18 + $0x4] sm:$0xf]  ;;  %s574_s27 = scalar_lea.vmem %s736_s3, %s497_s15  ;;  %v220_v8 = vld [vmem:[%s553_s18 + $0x8] sm:$0xf] }
  0x11   : > { %v250_v1 = vld [vmem:[%s558_s21] sm:$0xf]  ;;  %v251_v5 = vld [vmem:[%s558_s21 + $0x4] sm:$0xf]  ;;  %v252_v9 = vld [vmem:[%s558_s21 + $0x8] sm:$0xf] }
  0x12   : > { %v282_v3 = vmax.bf16 %v250_v1, %v218_v0  ;;  %v314_v4 = vld [vmem:[%s563_s24] sm:$0xf]  ;;  %v315_v6 = vld [vmem:[%s563_s24 + $0x4] sm:$0xf]  ;;  %v283_v7 = vmax.bf16 %v251_v5, %v219_v2  ;;  %v316_v10 = vld [vmem:[%s563_s24 + $0x8] sm:$0xf]  ;;  %v284_v12 = vmax.bf16 %v252_v9, %v220_v8 }
  0x13   : > { %v221_v13 = vld [vmem:[%s553_s18 + $0xc] sm:$0xf]  ;;  %v222_v18 = vld [vmem:[%s553_s18 + $0x10] sm:$0xf]  ;;  %v223_v23 = vld [vmem:[%s553_s18 + $0x14] sm:$0xf] }
  0x14   : > { %v346_v11 = vmax.bf16 %v314_v4, %v282_v3  ;;  %v253_v14 = vld [vmem:[%s558_s21 + $0xc] sm:$0xf]  ;;  %v347_v16 = vmax.bf16 %v315_v6, %v283_v7  ;;  %v254_v19 = vld [vmem:[%s558_s21 + $0x10] sm:$0xf]  ;;  %v348_v21 = vmax.bf16 %v316_v10, %v284_v12  ;;  %v255_v24 = vld [vmem:[%s558_s21 + $0x14] sm:$0xf] }
  0x15   : > { %v317_v15 = vld [vmem:[%s563_s24 + $0xc] sm:$0xf]  ;;  %v285_v17 = vmax.bf16 %v253_v14, %v221_v13  ;;  %v318_v20 = vld [vmem:[%s563_s24 + $0x10] sm:$0xf]  ;;  %v286_v22 = vmax.bf16 %v254_v19, %v222_v18  ;;  %v319_v25 = vld [vmem:[%s563_s24 + $0x14] sm:$0xf]  ;;  %v287_v27 = vmax.bf16 %v255_v24, %v223_v23 }
  0x16   : > { %379 = vst.msk [vmem:[%s574_s27] sm:$0xf] %vm378_vm0, %v346_v11  ;;  %380 = vst.msk [vmem:[%s574_s27 + $0x4] sm:$0xf] %vm378_vm0, %v347_v16  ;;  %v224_v28 = vld [vmem:[%s553_s18 + $0x18] sm:$0xf] }
  0x17   : > { %v349_v26 = vmax.bf16 %v317_v15, %v285_v17  ;;  %v256_v29 = vld [vmem:[%s558_s21 + $0x18] sm:$0xf]  ;;  %381 = vst.msk [vmem:[%s574_s27 + $0x8] sm:$0xf] %vm378_vm0, %v348_v21  ;;  %v350_v31 = vmax.bf16 %v318_v20, %v286_v22  ;;  %v225_v33 = vld [vmem:[%s553_s18 + $0x1c] sm:$0xf]  ;;  %v351_v36 = vmax.bf16 %v319_v25, %v287_v27 }
  0x18   : > { %v320_v30 = vld [vmem:[%s563_s24 + $0x18] sm:$0xf]  ;;  %v288_v32 = vmax.bf16 %v256_v29, %v224_v28  ;;  %v257_v34 = vld [vmem:[%s558_s21 + $0x1c] sm:$0xf]  ;;  %v226_v38 = vld [vmem:[%s553_s18 + $0x20] sm:$0xf] }
  0x19   : > { %v321_v35 = vld [vmem:[%s563_s24 + $0x1c] sm:$0xf]  ;;  %382 = vst.msk [vmem:[%s574_s27 + $0xc] sm:$0xf] %vm378_vm0, %v349_v26  ;;  %v289_v37 = vmax.bf16 %v257_v34, %v225_v33  ;;  %v258_v39 = vld [vmem:[%s558_s21 + $0x20] sm:$0xf] }
  0x1a   : > { %v322_v40 = vld [vmem:[%s563_s24 + $0x20] sm:$0xf]  ;;  %383 = vst.msk [vmem:[%s574_s27 + $0x10] sm:$0xf] %vm378_vm0, %v350_v31  ;;  %v352_v41 = vmax.bf16 %v320_v30, %v288_v32  ;;  %v290_v42 = vmax.bf16 %v258_v39, %v226_v38  ;;  %v227_v43 = vld [vmem:[%s553_s18 + $0x24] sm:$0xf] }
  0x1b   : > { %v259_v44 = vld [vmem:[%s558_s21 + $0x24] sm:$0xf]  ;;  %384 = vst.msk [vmem:[%s574_s27 + $0x14] sm:$0xf] %vm378_vm0, %v351_v36  ;;  %v353_v46 = vmax.bf16 %v321_v35, %v289_v37  ;;  %v228_v48 = vld [vmem:[%s553_s18 + $0x28] sm:$0xf] }
  0x1c   : > { %v323_v45 = vld [vmem:[%s563_s24 + $0x24] sm:$0xf]  ;;  %v291_v47 = vmax.bf16 %v259_v44, %v227_v43  ;;  %v260_v49 = vld [vmem:[%s558_s21 + $0x28] sm:$0xf]  ;;  %385 = vst.msk [vmem:[%s574_s27 + $0x18] sm:$0xf] %vm378_vm0, %v352_v41  ;;  %v354_v51 = vmax.bf16 %v322_v40, %v290_v42 }
  0x1d   : > { %v324_v50 = vld [vmem:[%s563_s24 + $0x28] sm:$0xf]  ;;  %v292_v52 = vmax.bf16 %v260_v49, %v228_v48  ;;  %v229_v53 = vld [vmem:[%s553_s18 + $0x2c] sm:$0xf]  ;;  %386 = vst.msk [vmem:[%s574_s27 + $0x1c] sm:$0xf] %vm378_vm0, %v353_v46 }
  0x1e   : > { %v261_v54 = vld [vmem:[%s558_s21 + $0x2c] sm:$0xf]  ;;  %v355_v56 = vmax.bf16 %v323_v45, %v291_v47  ;;  %v230_v58 = vld [vmem:[%s553_s18 + $0x30] sm:$0xf]  ;;  %387 = vst.msk [vmem:[%s574_s27 + $0x20] sm:$0xf] %vm378_vm0, %v354_v51 }
  0x1f   : > { %v325_v55 = vld [vmem:[%s563_s24 + $0x2c] sm:$0xf]  ;;  %v293_v57 = vmax.bf16 %v261_v54, %v229_v53  ;;  %v262_v59 = vld [vmem:[%s558_s21 + $0x30] sm:$0xf]  ;;  %v356_v61 = vmax.bf16 %v324_v50, %v292_v52  ;;  %v231_v63 = vld [vmem:[%s553_s18 + $0x34] sm:$0xf] }
  0x20   : > { %v326_v60 = vld [vmem:[%s563_s24 + $0x30] sm:$0xf]  ;;  %v294_v62 = vmax.bf16 %v262_v59, %v230_v58  ;;  %v263_v0 = vld [vmem:[%s558_s21 + $0x34] sm:$0xf]  ;;  %388 = vst.msk [vmem:[%s574_s27 + $0x24] sm:$0xf] %vm378_vm0, %v355_v56 }
  0x21   : > { %v327_v1 = vld [vmem:[%s563_s24 + $0x34] sm:$0xf]  ;;  %v357_v2 = vmax.bf16 %v325_v55, %v293_v57  ;;  %v295_v3 = vmax.bf16 %v263_v0, %v231_v63  ;;  %v232_v4 = vld [vmem:[%s553_s18 + $0x38] sm:$0xf]  ;;  %389 = vst.msk [vmem:[%s574_s27 + $0x28] sm:$0xf] %vm378_vm0, %v356_v61 }
  0x22   : > { %v264_v5 = vld [vmem:[%s558_s21 + $0x38] sm:$0xf]  ;;  %v358_v7 = vmax.bf16 %v326_v60, %v294_v62  ;;  %v233_v9 = vld [vmem:[%s553_s18 + $0x3c] sm:$0xf]  ;;  %v234_v14 = vld [vmem:[%s553_s18 + $0x40] sm:$0xf] }
  0x23   : > { %v328_v6 = vld [vmem:[%s563_s24 + $0x38] sm:$0xf]  ;;  %v296_v8 = vmax.bf16 %v264_v5, %v232_v4  ;;  %v265_v10 = vld [vmem:[%s558_s21 + $0x3c] sm:$0xf]  ;;  %390 = vst.msk [vmem:[%s574_s27 + $0x2c] sm:$0xf] %vm378_vm0, %v357_v2  ;;  %v359_v12 = vmax.bf16 %v327_v1, %v295_v3 }
  0x24   : > { %v329_v11 = vld [vmem:[%s563_s24 + $0x3c] sm:$0xf]  ;;  %v297_v13 = vmax.bf16 %v265_v10, %v233_v9  ;;  %v266_v15 = vld [vmem:[%s558_s21 + $0x40] sm:$0xf]  ;;  %391 = vst.msk [vmem:[%s574_s27 + $0x30] sm:$0xf] %vm378_vm0, %v358_v7 }
  0x25   : > { %v330_v16 = vld [vmem:[%s563_s24 + $0x40] sm:$0xf]  ;;  %v360_v17 = vmax.bf16 %v328_v6, %v296_v8  ;;  %v298_v18 = vmax.bf16 %v266_v15, %v234_v14  ;;  %v235_v19 = vld [vmem:[%s553_s18 + $0x44] sm:$0xf]  ;;  %392 = vst.msk [vmem:[%s574_s27 + $0x34] sm:$0xf] %vm378_vm0, %v359_v12 }
  0x26   : > { %v267_v20 = vld [vmem:[%s558_s21 + $0x44] sm:$0xf]  ;;  %v361_v22 = vmax.bf16 %v329_v11, %v297_v13  ;;  %v236_v24 = vld [vmem:[%s553_s18 + $0x48] sm:$0xf]  ;;  %v237_v29 = vld [vmem:[%s553_s18 + $0x4c] sm:$0xf] }
  0x27   : > { %v331_v21 = vld [vmem:[%s563_s24 + $0x44] sm:$0xf]  ;;  %v299_v23 = vmax.bf16 %v267_v20, %v235_v19  ;;  %v268_v25 = vld [vmem:[%s558_s21 + $0x48] sm:$0xf]  ;;  %393 = vst.msk [vmem:[%s574_s27 + $0x38] sm:$0xf] %vm378_vm0, %v360_v17  ;;  %v362_v27 = vmax.bf16 %v330_v16, %v298_v18 }
  0x28   : > { %v332_v26 = vld [vmem:[%s563_s24 + $0x48] sm:$0xf]  ;;  %v300_v28 = vmax.bf16 %v268_v25, %v236_v24  ;;  %v269_v30 = vld [vmem:[%s558_s21 + $0x4c] sm:$0xf]  ;;  %394 = vst.msk [vmem:[%s574_s27 + $0x3c] sm:$0xf] %vm378_vm0, %v361_v22 }
  0x29   : > { %v333_v31 = vld [vmem:[%s563_s24 + $0x4c] sm:$0xf]  ;;  %v363_v32 = vmax.bf16 %v331_v21, %v299_v23  ;;  %v301_v33 = vmax.bf16 %v269_v30, %v237_v29  ;;  %v238_v34 = vld [vmem:[%s553_s18 + $0x50] sm:$0xf]  ;;  %395 = vst.msk [vmem:[%s574_s27 + $0x40] sm:$0xf] %vm378_vm0, %v362_v27 }
  0x2a   : > { %v270_v35 = vld [vmem:[%s558_s21 + $0x50] sm:$0xf]  ;;  %v364_v37 = vmax.bf16 %v332_v26, %v300_v28  ;;  %v239_v39 = vld [vmem:[%s553_s18 + $0x54] sm:$0xf]  ;;  %v240_v44 = vld [vmem:[%s553_s18 + $0x58] sm:$0xf] }
  0x2b   : > { %v334_v36 = vld [vmem:[%s563_s24 + $0x50] sm:$0xf]  ;;  %v302_v38 = vmax.bf16 %v270_v35, %v238_v34  ;;  %v271_v40 = vld [vmem:[%s558_s21 + $0x54] sm:$0xf]  ;;  %396 = vst.msk [vmem:[%s574_s27 + $0x44] sm:$0xf] %vm378_vm0, %v363_v32  ;;  %v365_v42 = vmax.bf16 %v333_v31, %v301_v33 }
  0x2c   : > { %v335_v41 = vld [vmem:[%s563_s24 + $0x54] sm:$0xf]  ;;  %v303_v43 = vmax.bf16 %v271_v40, %v239_v39  ;;  %v272_v45 = vld [vmem:[%s558_s21 + $0x58] sm:$0xf]  ;;  %397 = vst.msk [vmem:[%s574_s27 + $0x48] sm:$0xf] %vm378_vm0, %v364_v37 }
  0x2d   : > { %v336_v46 = vld [vmem:[%s563_s24 + $0x58] sm:$0xf]  ;;  %v366_v47 = vmax.bf16 %v334_v36, %v302_v38  ;;  %v304_v48 = vmax.bf16 %v272_v45, %v240_v44  ;;  %v241_v49 = vld [vmem:[%s553_s18 + $0x5c] sm:$0xf]  ;;  %398 = vst.msk [vmem:[%s574_s27 + $0x4c] sm:$0xf] %vm378_vm0, %v365_v42 }
  0x2e   : > { %v273_v50 = vld [vmem:[%s558_s21 + $0x5c] sm:$0xf]  ;;  %v367_v52 = vmax.bf16 %v335_v41, %v303_v43  ;;  %v242_v54 = vld [vmem:[%s553_s18 + $0x60] sm:$0xf]  ;;  %v243_v59 = vld [vmem:[%s553_s18 + $0x64] sm:$0xf] }
  0x2f   : > { %v337_v51 = vld [vmem:[%s563_s24 + $0x5c] sm:$0xf]  ;;  %v305_v53 = vmax.bf16 %v273_v50, %v241_v49  ;;  %v274_v55 = vld [vmem:[%s558_s21 + $0x60] sm:$0xf]  ;;  %399 = vst.msk [vmem:[%s574_s27 + $0x50] sm:$0xf] %vm378_vm0, %v366_v47  ;;  %v368_v57 = vmax.bf16 %v336_v46, %v304_v48 }
  0x30   : > { %v338_v56 = vld [vmem:[%s563_s24 + $0x60] sm:$0xf]  ;;  %v306_v58 = vmax.bf16 %v274_v55, %v242_v54  ;;  %v275_v60 = vld [vmem:[%s558_s21 + $0x64] sm:$0xf]  ;;  %400 = vst.msk [vmem:[%s574_s27 + $0x54] sm:$0xf] %vm378_vm0, %v367_v52 }
  0x31   : > { %v339_v61 = vld [vmem:[%s563_s24 + $0x64] sm:$0xf]  ;;  %v369_v62 = vmax.bf16 %v337_v51, %v305_v53  ;;  %v307_v63 = vmax.bf16 %v275_v60, %v243_v59  ;;  %v244_v0 = vld [vmem:[%s553_s18 + $0x68] sm:$0xf]  ;;  %401 = vst.msk [vmem:[%s574_s27 + $0x58] sm:$0xf] %vm378_vm0, %v368_v57 }
  0x32   : > { %v276_v1 = vld [vmem:[%s558_s21 + $0x68] sm:$0xf]  ;;  %v370_v3 = vmax.bf16 %v338_v56, %v306_v58  ;;  %v245_v5 = vld [vmem:[%s553_s18 + $0x6c] sm:$0xf]  ;;  %v246_v10 = vld [vmem:[%s553_s18 + $0x70] sm:$0xf] }
  0x33   : > { %v340_v2 = vld [vmem:[%s563_s24 + $0x68] sm:$0xf]  ;;  %v308_v4 = vmax.bf16 %v276_v1, %v244_v0  ;;  %v277_v6 = vld [vmem:[%s558_s21 + $0x6c] sm:$0xf]  ;;  %402 = vst.msk [vmem:[%s574_s27 + $0x5c] sm:$0xf] %vm378_vm0, %v369_v62  ;;  %v371_v8 = vmax.bf16 %v339_v61, %v307_v63 }
  0x34   : > { %v341_v7 = vld [vmem:[%s563_s24 + $0x6c] sm:$0xf]  ;;  %v309_v9 = vmax.bf16 %v277_v6, %v245_v5  ;;  %v278_v11 = vld [vmem:[%s558_s21 + $0x70] sm:$0xf]  ;;  %403 = vst.msk [vmem:[%s574_s27 + $0x60] sm:$0xf] %vm378_vm0, %v370_v3 }
  0x35   : > { %v342_v12 = vld [vmem:[%s563_s24 + $0x70] sm:$0xf]  ;;  %v372_v13 = vmax.bf16 %v340_v2, %v308_v4  ;;  %v310_v14 = vmax.bf16 %v278_v11, %v246_v10  ;;  %v247_v15 = vld [vmem:[%s553_s18 + $0x74] sm:$0xf]  ;;  %404 = vst.msk [vmem:[%s574_s27 + $0x64] sm:$0xf] %vm378_vm0, %v371_v8 }
  0x36   : > { %v279_v16 = vld [vmem:[%s558_s21 + $0x74] sm:$0xf]  ;;  %v373_v18 = vmax.bf16 %v341_v7, %v309_v9  ;;  %v248_v20 = vld [vmem:[%s553_s18 + $0x78] sm:$0xf]  ;;  %v249_v25 = vld [vmem:[%s553_s18 + $0x7c] sm:$0xf] }
  0x37   : > { %v343_v17 = vld [vmem:[%s563_s24 + $0x74] sm:$0xf]  ;;  %v311_v19 = vmax.bf16 %v279_v16, %v247_v15  ;;  %v280_v21 = vld [vmem:[%s558_s21 + $0x78] sm:$0xf]  ;;  %405 = vst.msk [vmem:[%s574_s27 + $0x68] sm:$0xf] %vm378_vm0, %v372_v13  ;;  %v374_v23 = vmax.bf16 %v342_v12, %v310_v14 }
  0x38   : > { %v344_v22 = vld [vmem:[%s563_s24 + $0x78] sm:$0xf]  ;;  %v312_v24 = vmax.bf16 %v280_v21, %v248_v20  ;;  %v281_v26 = vld [vmem:[%s558_s21 + $0x7c] sm:$0xf]  ;;  %406 = vst.msk [vmem:[%s574_s27 + $0x6c] sm:$0xf] %vm378_vm0, %v373_v18 }
  0x39   : > { %v345_v27 = vld [vmem:[%s563_s24 + $0x7c] sm:$0xf]  ;;  %v375_v28 = vmax.bf16 %v343_v17, %v311_v19  ;;  %v313_v29 = vmax.bf16 %v281_v26, %v249_v25  ;;  %407 = vst.msk [vmem:[%s574_s27 + $0x70] sm:$0xf] %vm378_vm0, %v374_v23 }
  0x3a   : > { %v376_v30 = vmax.bf16 %v344_v22, %v312_v24 }
  0x3b   : > { %408 = vst.msk [vmem:[%s574_s27 + $0x74] sm:$0xf] %vm378_vm0, %v375_v28  ;;  %v377_v31 = vmax.bf16 %v345_v27, %v313_v29 }
  0x3c   : > { %409 = vst.msk [vmem:[%s574_s27 + $0x78] sm:$0xf] %vm378_vm0, %v376_v30 }
  0x3d   : > { %410 = vst.msk [vmem:[%s574_s27 + $0x7c] sm:$0xf] %vm378_vm0, %v377_v31 }
  0x3e PF: > { %s13_s12 = sadd.s32 1, %s520_s12  }
  0x3f   : > { %p10_p4 = scmp.ge.s32.totalorder %s13_s12, 4  }
  0x41   :  { %12 = sbr.rel (!%p10_p4) target bundleno = 1 (0x1), region = 68 }

// kernel: _lambda_.24
= control target key start
LH: loop header
LB: loop body
LE: loop exit
PB: predicated region body
PF: predicated region fallthrough
CT: control target
= control target key end

     0   :  { %s734_s12 = smov 0   ;;  %s1085_s0 = inlined_call_operand.vmem [shape: bf16[1024,64], index: 0, kind: input, shape index: {}]   ;;  %s1086_s1 = inlined_call_operand.vmem [shape: bf16[1024,64], index: 1, kind: input, shape index: {}]   ;;  %s1087_s2 = inlined_call_operand.vmem [shape: bf16[1024,64], index: 2, kind: input, shape index: {}]   ;;  %s1088_s3 = inlined_call_operand.vmem [shape: bf16[1024,64], index: 3, kind: output, shape index: {}]  }
   0x1 LB: > { %s683_s13 = sadd.s32 4294967295, %s712_s12   ;;  %p687_p0 = scmp.ge.s32.totalorder %s712_s12, 1  ;;  %s712_s12 = sphi %s734_s12, %s13_s12  }
   0x2   : > { %p160_p1 = scmp.lt.s32.totalorder %s712_s12, 3 }
   0x4   : > { %p161_p2 = pnand %p687_p0, %p160_p1 }
   0x5   : > { %s688_s14 = sshll.u32 (!%p161_p2), %s683_s13, 6  ;;  %vm538_vm0 = vcmask (!%p161_p2), 519168  }
   0x6   : > { %164 = sbr.rel (%p161_p2) target bundleno = 105 (0x69), region = 32  ;;  %p195_p3 = scmp.lt.s32.totalorder (!%p161_p2), %s688_s14, 127 }
   0xd   : > { %s1090_s14 = smov (!%p195_p3, %s688_s14), 127 }
   0xe   : > { %s689_s15 = sshll.u32 %s1090_s14, 2 }
   0xf   : > { %s745_s18 = scalar_lea.vmem %s1085_s0, %s689_s15  ;;  %s750_s21 = scalar_lea.vmem %s1086_s1, %s689_s15 }
  0x10   : > { %s755_s24 = scalar_lea.vmem %s1087_s2, %s689_s15  ;;  %v218_v0 = vld [vmem:[%s745_s18] sm:$0xf]  ;;  %v219_v2 = vld [vmem:[%s745_s18 + $0x4] sm:$0xf]  ;;  %s766_s27 = scalar_lea.vmem %s1088_s3, %s689_s15  ;;  %v220_v8 = vld [vmem:[%s745_s18 + $0x8] sm:$0xf] }
  0x11   : > { %v282_v1 = vld [vmem:[%s750_s21] sm:$0xf]  ;;  %v283_v5 = vld [vmem:[%s750_s21 + $0x4] sm:$0xf]  ;;  %v284_v9 = vld [vmem:[%s750_s21 + $0x8] sm:$0xf] }
  0x12   : > { %v346_v3 = vmax.bf16 %v282_v1, %v218_v0  ;;  %v410_v4 = vld [vmem:[%s755_s24] sm:$0xf]  ;;  %v411_v6 = vld [vmem:[%s755_s24 + $0x4] sm:$0xf]  ;;  %v347_v7 = vmax.bf16 %v283_v5, %v219_v2  ;;  %v412_v10 = vld [vmem:[%s755_s24 + $0x8] sm:$0xf]  ;;  %v348_v12 = vmax.bf16 %v284_v9, %v220_v8 }
  0x13   : > { %v221_v13 = vld [vmem:[%s745_s18 + $0xc] sm:$0xf]  ;;  %v222_v18 = vld [vmem:[%s745_s18 + $0x10] sm:$0xf]  ;;  %v223_v23 = vld [vmem:[%s745_s18 + $0x14] sm:$0xf] }
  0x14   : > { %v474_v11 = vmax.bf16 %v410_v4, %v346_v3  ;;  %v285_v14 = vld [vmem:[%s750_s21 + $0xc] sm:$0xf]  ;;  %v475_v16 = vmax.bf16 %v411_v6, %v347_v7  ;;  %v286_v19 = vld [vmem:[%s750_s21 + $0x10] sm:$0xf]  ;;  %v476_v21 = vmax.bf16 %v412_v10, %v348_v12  ;;  %v287_v24 = vld [vmem:[%s750_s21 + $0x14] sm:$0xf] }
  0x15   : > { %v413_v15 = vld [vmem:[%s755_s24 + $0xc] sm:$0xf]  ;;  %v349_v17 = vmax.bf16 %v285_v14, %v221_v13  ;;  %v414_v20 = vld [vmem:[%s755_s24 + $0x10] sm:$0xf]  ;;  %v350_v22 = vmax.bf16 %v286_v19, %v222_v18  ;;  %v415_v25 = vld [vmem:[%s755_s24 + $0x14] sm:$0xf]  ;;  %v351_v27 = vmax.bf16 %v287_v24, %v223_v23 }
  0x16   : > { %539 = vst.msk [vmem:[%s766_s27] sm:$0xf] %vm538_vm0, %v474_v11  ;;  %540 = vst.msk [vmem:[%s766_s27 + $0x4] sm:$0xf] %vm538_vm0, %v475_v16  ;;  %v224_v28 = vld [vmem:[%s745_s18 + $0x18] sm:$0xf] }
  0x17   : > { %v477_v26 = vmax.bf16 %v413_v15, %v349_v17  ;;  %v288_v29 = vld [vmem:[%s750_s21 + $0x18] sm:$0xf]  ;;  %541 = vst.msk [vmem:[%s766_s27 + $0x8] sm:$0xf] %vm538_vm0, %v476_v21  ;;  %v478_v31 = vmax.bf16 %v414_v20, %v350_v22  ;;  %v225_v33 = vld [vmem:[%s745_s18 + $0x1c] sm:$0xf]  ;;  %v479_v36 = vmax.bf16 %v415_v25, %v351_v27 }
  0x18   : > { %v416_v30 = vld [vmem:[%s755_s24 + $0x18] sm:$0xf]  ;;  %v352_v32 = vmax.bf16 %v288_v29, %v224_v28  ;;  %v289_v34 = vld [vmem:[%s750_s21 + $0x1c] sm:$0xf]  ;;  %v226_v38 = vld [vmem:[%s745_s18 + $0x20] sm:$0xf] }
  0x19   : > { %v417_v35 = vld [vmem:[%s755_s24 + $0x1c] sm:$0xf]  ;;  %542 = vst.msk [vmem:[%s766_s27 + $0xc] sm:$0xf] %vm538_vm0, %v477_v26  ;;  %v353_v37 = vmax.bf16 %v289_v34, %v225_v33  ;;  %v290_v39 = vld [vmem:[%s750_s21 + $0x20] sm:$0xf] }
  0x1a   : > { %v418_v40 = vld [vmem:[%s755_s24 + $0x20] sm:$0xf]  ;;  %543 = vst.msk [vmem:[%s766_s27 + $0x10] sm:$0xf] %vm538_vm0, %v478_v31  ;;  %v480_v41 = vmax.bf16 %v416_v30, %v352_v32  ;;  %v354_v42 = vmax.bf16 %v290_v39, %v226_v38  ;;  %v227_v43 = vld [vmem:[%s745_s18 + $0x24] sm:$0xf] }
  0x1b   : > { %v291_v44 = vld [vmem:[%s750_s21 + $0x24] sm:$0xf]  ;;  %544 = vst.msk [vmem:[%s766_s27 + $0x14] sm:$0xf] %vm538_vm0, %v479_v36  ;;  %v481_v46 = vmax.bf16 %v417_v35, %v353_v37  ;;  %v228_v48 = vld [vmem:[%s745_s18 + $0x28] sm:$0xf] }
  0x1c   : > { %v419_v45 = vld [vmem:[%s755_s24 + $0x24] sm:$0xf]  ;;  %v355_v47 = vmax.bf16 %v291_v44, %v227_v43  ;;  %v292_v49 = vld [vmem:[%s750_s21 + $0x28] sm:$0xf]  ;;  %545 = vst.msk [vmem:[%s766_s27 + $0x18] sm:$0xf] %vm538_vm0, %v480_v41  ;;  %v482_v51 = vmax.bf16 %v418_v40, %v354_v42 }
  0x1d   : > { %v420_v50 = vld [vmem:[%s755_s24 + $0x28] sm:$0xf]  ;;  %v356_v52 = vmax.bf16 %v292_v49, %v228_v48  ;;  %v229_v53 = vld [vmem:[%s745_s18 + $0x2c] sm:$0xf]  ;;  %546 = vst.msk [vmem:[%s766_s27 + $0x1c] sm:$0xf] %vm538_vm0, %v481_v46 }
  0x1e   : > { %v293_v54 = vld [vmem:[%s750_s21 + $0x2c] sm:$0xf]  ;;  %v483_v56 = vmax.bf16 %v419_v45, %v355_v47  ;;  %v230_v58 = vld [vmem:[%s745_s18 + $0x30] sm:$0xf]  ;;  %547 = vst.msk [vmem:[%s766_s27 + $0x20] sm:$0xf] %vm538_vm0, %v482_v51 }
  0x1f   : > { %v421_v55 = vld [vmem:[%s755_s24 + $0x2c] sm:$0xf]  ;;  %v357_v57 = vmax.bf16 %v293_v54, %v229_v53  ;;  %v294_v59 = vld [vmem:[%s750_s21 + $0x30] sm:$0xf]  ;;  %v484_v61 = vmax.bf16 %v420_v50, %v356_v52  ;;  %v231_v63 = vld [vmem:[%s745_s18 + $0x34] sm:$0xf] }
  0x20   : > { %v422_v60 = vld [vmem:[%s755_s24 + $0x30] sm:$0xf]  ;;  %v358_v62 = vmax.bf16 %v294_v59, %v230_v58  ;;  %v295_v0 = vld [vmem:[%s750_s21 + $0x34] sm:$0xf]  ;;  %548 = vst.msk [vmem:[%s766_s27 + $0x24] sm:$0xf] %vm538_vm0, %v483_v56 }
  0x21   : > { %v423_v1 = vld [vmem:[%s755_s24 + $0x34] sm:$0xf]  ;;  %v485_v2 = vmax.bf16 %v421_v55, %v357_v57  ;;  %v359_v3 = vmax.bf16 %v295_v0, %v231_v63  ;;  %v232_v4 = vld [vmem:[%s745_s18 + $0x38] sm:$0xf]  ;;  %549 = vst.msk [vmem:[%s766_s27 + $0x28] sm:$0xf] %vm538_vm0, %v484_v61 }
  0x22   : > { %v296_v5 = vld [vmem:[%s750_s21 + $0x38] sm:$0xf]  ;;  %v486_v7 = vmax.bf16 %v422_v60, %v358_v62  ;;  %v233_v9 = vld [vmem:[%s745_s18 + $0x3c] sm:$0xf]  ;;  %v234_v14 = vld [vmem:[%s745_s18 + $0x40] sm:$0xf] }
  0x23   : > { %v424_v6 = vld [vmem:[%s755_s24 + $0x38] sm:$0xf]  ;;  %v360_v8 = vmax.bf16 %v296_v5, %v232_v4  ;;  %v297_v10 = vld [vmem:[%s750_s21 + $0x3c] sm:$0xf]  ;;  %550 = vst.msk [vmem:[%s766_s27 + $0x2c] sm:$0xf] %vm538_vm0, %v485_v2  ;;  %v487_v12 = vmax.bf16 %v423_v1, %v359_v3 }
  0x24   : > { %v425_v11 = vld [vmem:[%s755_s24 + $0x3c] sm:$0xf]  ;;  %v361_v13 = vmax.bf16 %v297_v10, %v233_v9  ;;  %v298_v15 = vld [vmem:[%s750_s21 + $0x40] sm:$0xf]  ;;  %551 = vst.msk [vmem:[%s766_s27 + $0x30] sm:$0xf] %vm538_vm0, %v486_v7 }
  0x25   : > { %v426_v16 = vld [vmem:[%s755_s24 + $0x40] sm:$0xf]  ;;  %v488_v17 = vmax.bf16 %v424_v6, %v360_v8  ;;  %v362_v18 = vmax.bf16 %v298_v15, %v234_v14  ;;  %v235_v19 = vld [vmem:[%s745_s18 + $0x44] sm:$0xf]  ;;  %552 = vst.msk [vmem:[%s766_s27 + $0x34] sm:$0xf] %vm538_vm0, %v487_v12 }
  0x26   : > { %v299_v20 = vld [vmem:[%s750_s21 + $0x44] sm:$0xf]  ;;  %v489_v22 = vmax.bf16 %v425_v11, %v361_v13  ;;  %v236_v24 = vld [vmem:[%s745_s18 + $0x48] sm:$0xf]  ;;  %v237_v29 = vld [vmem:[%s745_s18 + $0x4c] sm:$0xf] }
  0x27   : > { %v427_v21 = vld [vmem:[%s755_s24 + $0x44] sm:$0xf]  ;;  %v363_v23 = vmax.bf16 %v299_v20, %v235_v19  ;;  %v300_v25 = vld [vmem:[%s750_s21 + $0x48] sm:$0xf]  ;;  %553 = vst.msk [vmem:[%s766_s27 + $0x38] sm:$0xf] %vm538_vm0, %v488_v17  ;;  %v490_v27 = vmax.bf16 %v426_v16, %v362_v18 }
  0x28   : > { %v428_v26 = vld [vmem:[%s755_s24 + $0x48] sm:$0xf]  ;;  %v364_v28 = vmax.bf16 %v300_v25, %v236_v24  ;;  %v301_v30 = vld [vmem:[%s750_s21 + $0x4c] sm:$0xf]  ;;  %554 = vst.msk [vmem:[%s766_s27 + $0x3c] sm:$0xf] %vm538_vm0, %v489_v22 }
  0x29   : > { %v429_v31 = vld [vmem:[%s755_s24 + $0x4c] sm:$0xf]  ;;  %v491_v32 = vmax.bf16 %v427_v21, %v363_v23  ;;  %v365_v33 = vmax.bf16 %v301_v30, %v237_v29  ;;  %v238_v34 = vld [vmem:[%s745_s18 + $0x50] sm:$0xf]  ;;  %555 = vst.msk [vmem:[%s766_s27 + $0x40] sm:$0xf] %vm538_vm0, %v490_v27 }
  0x2a   : > { %v302_v35 = vld [vmem:[%s750_s21 + $0x50] sm:$0xf]  ;;  %v492_v37 = vmax.bf16 %v428_v26, %v364_v28  ;;  %v239_v39 = vld [vmem:[%s745_s18 + $0x54] sm:$0xf]  ;;  %v240_v44 = vld [vmem:[%s745_s18 + $0x58] sm:$0xf] }
  0x2b   : > { %v430_v36 = vld [vmem:[%s755_s24 + $0x50] sm:$0xf]  ;;  %v366_v38 = vmax.bf16 %v302_v35, %v238_v34  ;;  %v303_v40 = vld [vmem:[%s750_s21 + $0x54] sm:$0xf]  ;;  %556 = vst.msk [vmem:[%s766_s27 + $0x44] sm:$0xf] %vm538_vm0, %v491_v32  ;;  %v493_v42 = vmax.bf16 %v429_v31, %v365_v33 }
  0x2c   : > { %v431_v41 = vld [vmem:[%s755_s24 + $0x54] sm:$0xf]  ;;  %v367_v43 = vmax.bf16 %v303_v40, %v239_v39  ;;  %v304_v45 = vld [vmem:[%s750_s21 + $0x58] sm:$0xf]  ;;  %557 = vst.msk [vmem:[%s766_s27 + $0x48] sm:$0xf] %vm538_vm0, %v492_v37 }
  0x2d   : > { %v432_v46 = vld [vmem:[%s755_s24 + $0x58] sm:$0xf]  ;;  %v494_v47 = vmax.bf16 %v430_v36, %v366_v38  ;;  %v368_v48 = vmax.bf16 %v304_v45, %v240_v44  ;;  %v241_v49 = vld [vmem:[%s745_s18 + $0x5c] sm:$0xf]  ;;  %558 = vst.msk [vmem:[%s766_s27 + $0x4c] sm:$0xf] %vm538_vm0, %v493_v42 }
  0x2e   : > { %v305_v50 = vld [vmem:[%s750_s21 + $0x5c] sm:$0xf]  ;;  %v495_v52 = vmax.bf16 %v431_v41, %v367_v43  ;;  %v242_v54 = vld [vmem:[%s745_s18 + $0x60] sm:$0xf]  ;;  %v243_v59 = vld [vmem:[%s745_s18 + $0x64] sm:$0xf] }
  0x2f   : > { %v433_v51 = vld [vmem:[%s755_s24 + $0x5c] sm:$0xf]  ;;  %v369_v53 = vmax.bf16 %v305_v50, %v241_v49  ;;  %v306_v55 = vld [vmem:[%s750_s21 + $0x60] sm:$0xf]  ;;  %559 = vst.msk [vmem:[%s766_s27 + $0x50] sm:$0xf] %vm538_vm0, %v494_v47  ;;  %v496_v57 = vmax.bf16 %v432_v46, %v368_v48 }
  0x30   : > { %v434_v56 = vld [vmem:[%s755_s24 + $0x60] sm:$0xf]  ;;  %v370_v58 = vmax.bf16 %v306_v55, %v242_v54  ;;  %v307_v60 = vld [vmem:[%s750_s21 + $0x64] sm:$0xf]  ;;  %560 = vst.msk [vmem:[%s766_s27 + $0x54] sm:$0xf] %vm538_vm0, %v495_v52 }
  0x31   : > { %v435_v61 = vld [vmem:[%s755_s24 + $0x64] sm:$0xf]  ;;  %v497_v62 = vmax.bf16 %v433_v51, %v369_v53  ;;  %v371_v63 = vmax.bf16 %v307_v60, %v243_v59  ;;  %v244_v0 = vld [vmem:[%s745_s18 + $0x68] sm:$0xf]  ;;  %561 = vst.msk [vmem:[%s766_s27 + $0x58] sm:$0xf] %vm538_vm0, %v496_v57 }
  0x32   : > { %v308_v1 = vld [vmem:[%s750_s21 + $0x68] sm:$0xf]  ;;  %v498_v3 = vmax.bf16 %v434_v56, %v370_v58  ;;  %v245_v5 = vld [vmem:[%s745_s18 + $0x6c] sm:$0xf]  ;;  %v246_v10 = vld [vmem:[%s745_s18 + $0x70] sm:$0xf] }
  0x33   : > { %v436_v2 = vld [vmem:[%s755_s24 + $0x68] sm:$0xf]  ;;  %v372_v4 = vmax.bf16 %v308_v1, %v244_v0  ;;  %v309_v6 = vld [vmem:[%s750_s21 + $0x6c] sm:$0xf]  ;;  %562 = vst.msk [vmem:[%s766_s27 + $0x5c] sm:$0xf] %vm538_vm0, %v497_v62  ;;  %v499_v8 = vmax.bf16 %v435_v61, %v371_v63 }
  0x34   : > { %v437_v7 = vld [vmem:[%s755_s24 + $0x6c] sm:$0xf]  ;;  %v373_v9 = vmax.bf16 %v309_v6, %v245_v5  ;;  %v310_v11 = vld [vmem:[%s750_s21 + $0x70] sm:$0xf]  ;;  %563 = vst.msk [vmem:[%s766_s27 + $0x60] sm:$0xf] %vm538_vm0, %v498_v3 }
  0x35   : > { %v438_v12 = vld [vmem:[%s755_s24 + $0x70] sm:$0xf]  ;;  %v500_v13 = vmax.bf16 %v436_v2, %v372_v4  ;;  %v374_v14 = vmax.bf16 %v310_v11, %v246_v10  ;;  %v247_v15 = vld [vmem:[%s745_s18 + $0x74] sm:$0xf]  ;;  %564 = vst.msk [vmem:[%s766_s27 + $0x64] sm:$0xf] %vm538_vm0, %v499_v8 }
  0x36   : > { %v311_v16 = vld [vmem:[%s750_s21 + $0x74] sm:$0xf]  ;;  %v501_v18 = vmax.bf16 %v437_v7, %v373_v9  ;;  %v248_v20 = vld [vmem:[%s745_s18 + $0x78] sm:$0xf]  ;;  %v249_v25 = vld [vmem:[%s745_s18 + $0x7c] sm:$0xf] }
  0x37   : > { %v439_v17 = vld [vmem:[%s755_s24 + $0x74] sm:$0xf]  ;;  %v375_v19 = vmax.bf16 %v311_v16, %v247_v15  ;;  %v312_v21 = vld [vmem:[%s750_s21 + $0x78] sm:$0xf]  ;;  %565 = vst.msk [vmem:[%s766_s27 + $0x68] sm:$0xf] %vm538_vm0, %v500_v13  ;;  %v502_v23 = vmax.bf16 %v438_v12, %v374_v14 }
  0x38   : > { %v440_v22 = vld [vmem:[%s755_s24 + $0x78] sm:$0xf]  ;;  %v376_v24 = vmax.bf16 %v312_v21, %v248_v20  ;;  %v313_v26 = vld [vmem:[%s750_s21 + $0x7c] sm:$0xf]  ;;  %566 = vst.msk [vmem:[%s766_s27 + $0x6c] sm:$0xf] %vm538_vm0, %v501_v18 }
  0x39   : > { %v441_v27 = vld [vmem:[%s755_s24 + $0x7c] sm:$0xf]  ;;  %v503_v28 = vmax.bf16 %v439_v17, %v375_v19  ;;  %v377_v29 = vmax.bf16 %v313_v26, %v249_v25  ;;  %v250_v30 = vld [vmem:[%s745_s18 + $0x80] sm:$0xf]  ;;  %567 = vst.msk [vmem:[%s766_s27 + $0x70] sm:$0xf] %vm538_vm0, %v502_v23 }
  0x3a   : > { %v314_v31 = vld [vmem:[%s750_s21 + $0x80] sm:$0xf]  ;;  %v504_v33 = vmax.bf16 %v440_v22, %v376_v24  ;;  %v251_v35 = vld [vmem:[%s745_s18 + $0x84] sm:$0xf]  ;;  %v252_v40 = vld [vmem:[%s745_s18 + $0x88] sm:$0xf] }
  0x3b   : > { %v442_v32 = vld [vmem:[%s755_s24 + $0x80] sm:$0xf]  ;;  %v378_v34 = vmax.bf16 %v314_v31, %v250_v30  ;;  %v315_v36 = vld [vmem:[%s750_s21 + $0x84] sm:$0xf]  ;;  %568 = vst.msk [vmem:[%s766_s27 + $0x74] sm:$0xf] %vm538_vm0, %v503_v28  ;;  %v505_v38 = vmax.bf16 %v441_v27, %v377_v29 }
  0x3c   : > { %v443_v37 = vld [vmem:[%s755_s24 + $0x84] sm:$0xf]  ;;  %v379_v39 = vmax.bf16 %v315_v36, %v251_v35  ;;  %v316_v41 = vld [vmem:[%s750_s21 + $0x88] sm:$0xf]  ;;  %569 = vst.msk [vmem:[%s766_s27 + $0x78] sm:$0xf] %vm538_vm0, %v504_v33 }
  0x3d   : > { %v444_v42 = vld [vmem:[%s755_s24 + $0x88] sm:$0xf]  ;;  %v506_v43 = vmax.bf16 %v442_v32, %v378_v34  ;;  %v380_v44 = vmax.bf16 %v316_v41, %v252_v40  ;;  %v253_v45 = vld [vmem:[%s745_s18 + $0x8c] sm:$0xf]  ;;  %570 = vst.msk [vmem:[%s766_s27 + $0x7c] sm:$0xf] %vm538_vm0, %v505_v38 }
  0x3e   : > { %v317_v46 = vld [vmem:[%s750_s21 + $0x8c] sm:$0xf]  ;;  %v507_v48 = vmax.bf16 %v443_v37, %v379_v39  ;;  %v254_v50 = vld [vmem:[%s745_s18 + $0x90] sm:$0xf]  ;;  %v255_v55 = vld [vmem:[%s745_s18 + $0x94] sm:$0xf] }
  0x3f   : > { %v445_v47 = vld [vmem:[%s755_s24 + $0x8c] sm:$0xf]  ;;  %v381_v49 = vmax.bf16 %v317_v46, %v253_v45  ;;  %v318_v51 = vld [vmem:[%s750_s21 + $0x90] sm:$0xf]  ;;  %571 = vst.msk [vmem:[%s766_s27 + $0x80] sm:$0xf] %vm538_vm0, %v506_v43  ;;  %v508_v53 = vmax.bf16 %v444_v42, %v380_v44 }
  0x40   : > { %v446_v52 = vld [vmem:[%s755_s24 + $0x90] sm:$0xf]  ;;  %v382_v54 = vmax.bf16 %v318_v51, %v254_v50  ;;  %v319_v56 = vld [vmem:[%s750_s21 + $0x94] sm:$0xf]  ;;  %572 = vst.msk [vmem:[%s766_s27 + $0x84] sm:$0xf] %vm538_vm0, %v507_v48 }
  0x41   : > { %v447_v57 = vld [vmem:[%s755_s24 + $0x94] sm:$0xf]  ;;  %v509_v58 = vmax.bf16 %v445_v47, %v381_v49  ;;  %v383_v59 = vmax.bf16 %v319_v56, %v255_v55  ;;  %v256_v60 = vld [vmem:[%s745_s18 + $0x98] sm:$0xf]  ;;  %573 = vst.msk [vmem:[%s766_s27 + $0x88] sm:$0xf] %vm538_vm0, %v508_v53 }
  0x42   : > { %v320_v61 = vld [vmem:[%s750_s21 + $0x98] sm:$0xf]  ;;  %v510_v63 = vmax.bf16 %v446_v52, %v382_v54  ;;  %v257_v1 = vld [vmem:[%s745_s18 + $0x9c] sm:$0xf]  ;;  %v258_v6 = vld [vmem:[%s745_s18 + $0xa0] sm:$0xf] }
  0x43   : > { %v448_v62 = vld [vmem:[%s755_s24 + $0x98] sm:$0xf]  ;;  %v384_v0 = vmax.bf16 %v320_v61, %v256_v60  ;;  %v321_v2 = vld [vmem:[%s750_s21 + $0x9c] sm:$0xf]  ;;  %574 = vst.msk [vmem:[%s766_s27 + $0x8c] sm:$0xf] %vm538_vm0, %v509_v58  ;;  %v511_v4 = vmax.bf16 %v447_v57, %v383_v59 }
  0x44   : > { %v449_v3 = vld [vmem:[%s755_s24 + $0x9c] sm:$0xf]  ;;  %v385_v5 = vmax.bf16 %v321_v2, %v257_v1  ;;  %v322_v7 = vld [vmem:[%s750_s21 + $0xa0] sm:$0xf]  ;;  %575 = vst.msk [vmem:[%s766_s27 + $0x90] sm:$0xf] %vm538_vm0, %v510_v63 }
  0x45   : > { %v450_v8 = vld [vmem:[%s755_s24 + $0xa0] sm:$0xf]  ;;  %v512_v9 = vmax.bf16 %v448_v62, %v384_v0  ;;  %v386_v10 = vmax.bf16 %v322_v7, %v258_v6  ;;  %v259_v11 = vld [vmem:[%s745_s18 + $0xa4] sm:$0xf]  ;;  %576 = vst.msk [vmem:[%s766_s27 + $0x94] sm:$0xf] %vm538_vm0, %v511_v4 }
  0x46   : > { %v323_v12 = vld [vmem:[%s750_s21 + $0xa4] sm:$0xf]  ;;  %v513_v14 = vmax.bf16 %v449_v3, %v385_v5  ;;  %v260_v16 = vld [vmem:[%s745_s18 + $0xa8] sm:$0xf]  ;;  %v261_v21 = vld [vmem:[%s745_s18 + $0xac] sm:$0xf] }
  0x47   : > { %v451_v13 = vld [vmem:[%s755_s24 + $0xa4] sm:$0xf]  ;;  %v387_v15 = vmax.bf16 %v323_v12, %v259_v11  ;;  %v324_v17 = vld [vmem:[%s750_s21 + $0xa8] sm:$0xf]  ;;  %577 = vst.msk [vmem:[%s766_s27 + $0x98] sm:$0xf] %vm538_vm0, %v512_v9  ;;  %v514_v19 = vmax.bf16 %v450_v8, %v386_v10 }
  0x48   : > { %v452_v18 = vld [vmem:[%s755_s24 + $0xa8] sm:$0xf]  ;;  %v388_v20 = vmax.bf16 %v324_v17, %v260_v16  ;;  %v325_v22 = vld [vmem:[%s750_s21 + $0xac] sm:$0xf]  ;;  %578 = vst.msk [vmem:[%s766_s27 + $0x9c] sm:$0xf] %vm538_vm0, %v513_v14 }
  0x49   : > { %v453_v23 = vld [vmem:[%s755_s24 + $0xac] sm:$0xf]  ;;  %v515_v24 = vmax.bf16 %v451_v13, %v387_v15  ;;  %v389_v25 = vmax.bf16 %v325_v22, %v261_v21  ;;  %v262_v26 = vld [vmem:[%s745_s18 + $0xb0] sm:$0xf]  ;;  %579 = vst.msk [vmem:[%s766_s27 + $0xa0] sm:$0xf] %vm538_vm0, %v514_v19 }
  0x4a   : > { %v326_v27 = vld [vmem:[%s750_s21 + $0xb0] sm:$0xf]  ;;  %v516_v29 = vmax.bf16 %v452_v18, %v388_v20  ;;  %v263_v31 = vld [vmem:[%s745_s18 + $0xb4] sm:$0xf]  ;;  %v264_v36 = vld [vmem:[%s745_s18 + $0xb8] sm:$0xf] }
  0x4b   : > { %v454_v28 = vld [vmem:[%s755_s24 + $0xb0] sm:$0xf]  ;;  %v390_v30 = vmax.bf16 %v326_v27, %v262_v26  ;;  %v327_v32 = vld [vmem:[%s750_s21 + $0xb4] sm:$0xf]  ;;  %580 = vst.msk [vmem:[%s766_s27 + $0xa4] sm:$0xf] %vm538_vm0, %v515_v24  ;;  %v517_v34 = vmax.bf16 %v453_v23, %v389_v25 }
  0x4c   : > { %v455_v33 = vld [vmem:[%s755_s24 + $0xb4] sm:$0xf]  ;;  %v391_v35 = vmax.bf16 %v327_v32, %v263_v31  ;;  %v328_v37 = vld [vmem:[%s750_s21 + $0xb8] sm:$0xf]  ;;  %581 = vst.msk [vmem:[%s766_s27 + $0xa8] sm:$0xf] %vm538_vm0, %v516_v29 }
  0x4d   : > { %v456_v38 = vld [vmem:[%s755_s24 + $0xb8] sm:$0xf]  ;;  %v518_v39 = vmax.bf16 %v454_v28, %v390_v30  ;;  %v392_v40 = vmax.bf16 %v328_v37, %v264_v36  ;;  %v265_v41 = vld [vmem:[%s745_s18 + $0xbc] sm:$0xf]  ;;  %582 = vst.msk [vmem:[%s766_s27 + $0xac] sm:$0xf] %vm538_vm0, %v517_v34 }
  0x4e   : > { %v329_v42 = vld [vmem:[%s750_s21 + $0xbc] sm:$0xf]  ;;  %v519_v44 = vmax.bf16 %v455_v33, %v391_v35  ;;  %v266_v46 = vld [vmem:[%s745_s18 + $0xc0] sm:$0xf]  ;;  %v267_v51 = vld [vmem:[%s745_s18 + $0xc4] sm:$0xf] }
  0x4f   : > { %v457_v43 = vld [vmem:[%s755_s24 + $0xbc] sm:$0xf]  ;;  %v393_v45 = vmax.bf16 %v329_v42, %v265_v41  ;;  %v330_v47 = vld [vmem:[%s750_s21 + $0xc0] sm:$0xf]  ;;  %583 = vst.msk [vmem:[%s766_s27 + $0xb0] sm:$0xf] %vm538_vm0, %v518_v39  ;;  %v520_v49 = vmax.bf16 %v456_v38, %v392_v40 }
  0x50   : > { %v458_v48 = vld [vmem:[%s755_s24 + $0xc0] sm:$0xf]  ;;  %v394_v50 = vmax.bf16 %v330_v47, %v266_v46  ;;  %v331_v52 = vld [vmem:[%s750_s21 + $0xc4] sm:$0xf]  ;;  %584 = vst.msk [vmem:[%s766_s27 + $0xb4] sm:$0xf] %vm538_vm0, %v519_v44 }
  0x51   : > { %v459_v53 = vld [vmem:[%s755_s24 + $0xc4] sm:$0xf]  ;;  %v521_v54 = vmax.bf16 %v457_v43, %v393_v45  ;;  %v395_v55 = vmax.bf16 %v331_v52, %v267_v51  ;;  %v268_v56 = vld [vmem:[%s745_s18 + $0xc8] sm:$0xf]  ;;  %585 = vst.msk [vmem:[%s766_s27 + $0xb8] sm:$0xf] %vm538_vm0, %v520_v49 }
  0x52   : > { %v332_v57 = vld [vmem:[%s750_s21 + $0xc8] sm:$0xf]  ;;  %v522_v59 = vmax.bf16 %v458_v48, %v394_v50  ;;  %v269_v61 = vld [vmem:[%s745_s18 + $0xcc] sm:$0xf]  ;;  %v270_v2 = vld [vmem:[%s745_s18 + $0xd0] sm:$0xf] }
  0x53   : > { %v460_v58 = vld [vmem:[%s755_s24 + $0xc8] sm:$0xf]  ;;  %v396_v60 = vmax.bf16 %v332_v57, %v268_v56  ;;  %v333_v62 = vld [vmem:[%s750_s21 + $0xcc] sm:$0xf]  ;;  %586 = vst.msk [vmem:[%s766_s27 + $0xbc] sm:$0xf] %vm538_vm0, %v521_v54  ;;  %v523_v0 = vmax.bf16 %v459_v53, %v395_v55 }
  0x54   : > { %v461_v63 = vld [vmem:[%s755_s24 + $0xcc] sm:$0xf]  ;;  %v397_v1 = vmax.bf16 %v333_v62, %v269_v61  ;;  %v334_v3 = vld [vmem:[%s750_s21 + $0xd0] sm:$0xf]  ;;  %587 = vst.msk [vmem:[%s766_s27 + $0xc0] sm:$0xf] %vm538_vm0, %v522_v59 }
  0x55   : > { %v462_v4 = vld [vmem:[%s755_s24 + $0xd0] sm:$0xf]  ;;  %v524_v5 = vmax.bf16 %v460_v58, %v396_v60  ;;  %v398_v6 = vmax.bf16 %v334_v3, %v270_v2  ;;  %v271_v7 = vld [vmem:[%s745_s18 + $0xd4] sm:$0xf]  ;;  %588 = vst.msk [vmem:[%s766_s27 + $0xc4] sm:$0xf] %vm538_vm0, %v523_v0 }
  0x56   : > { %v335_v8 = vld [vmem:[%s750_s21 + $0xd4] sm:$0xf]  ;;  %v525_v10 = vmax.bf16 %v461_v63, %v397_v1  ;;  %v272_v12 = vld [vmem:[%s745_s18 + $0xd8] sm:$0xf]  ;;  %v273_v17 = vld [vmem:[%s745_s18 + $0xdc] sm:$0xf] }
  0x57   : > { %v463_v9 = vld [vmem:[%s755_s24 + $0xd4] sm:$0xf]  ;;  %v399_v11 = vmax.bf16 %v335_v8, %v271_v7  ;;  %v336_v13 = vld [vmem:[%s750_s21 + $0xd8] sm:$0xf]  ;;  %589 = vst.msk [vmem:[%s766_s27 + $0xc8] sm:$0xf] %vm538_vm0, %v524_v5  ;;  %v526_v15 = vmax.bf16 %v462_v4, %v398_v6 }
  0x58   : > { %v464_v14 = vld [vmem:[%s755_s24 + $0xd8] sm:$0xf]  ;;  %v400_v16 = vmax.bf16 %v336_v13, %v272_v12  ;;  %v337_v18 = vld [vmem:[%s750_s21 + $0xdc] sm:$0xf]  ;;  %590 = vst.msk [vmem:[%s766_s27 + $0xcc] sm:$0xf] %vm538_vm0, %v525_v10 }
  0x59   : > { %v465_v19 = vld [vmem:[%s755_s24 + $0xdc] sm:$0xf]  ;;  %v527_v20 = vmax.bf16 %v463_v9, %v399_v11  ;;  %v401_v21 = vmax.bf16 %v337_v18, %v273_v17  ;;  %v274_v22 = vld [vmem:[%s745_s18 + $0xe0] sm:$0xf]  ;;  %591 = vst.msk [vmem:[%s766_s27 + $0xd0] sm:$0xf] %vm538_vm0, %v526_v15 }
  0x5a   : > { %v338_v23 = vld [vmem:[%s750_s21 + $0xe0] sm:$0xf]  ;;  %v528_v25 = vmax.bf16 %v464_v14, %v400_v16  ;;  %v275_v27 = vld [vmem:[%s745_s18 + $0xe4] sm:$0xf]  ;;  %v276_v32 = vld [vmem:[%s745_s18 + $0xe8] sm:$0xf] }
  0x5b   : > { %v466_v24 = vld [vmem:[%s755_s24 + $0xe0] sm:$0xf]  ;;  %v402_v26 = vmax.bf16 %v338_v23, %v274_v22  ;;  %v339_v28 = vld [vmem:[%s750_s21 + $0xe4] sm:$0xf]  ;;  %592 = vst.msk [vmem:[%s766_s27 + $0xd4] sm:$0xf] %vm538_vm0, %v527_v20  ;;  %v529_v30 = vmax.bf16 %v465_v19, %v401_v21 }
  0x5c   : > { %v467_v29 = vld [vmem:[%s755_s24 + $0xe4] sm:$0xf]  ;;  %v403_v31 = vmax.bf16 %v339_v28, %v275_v27  ;;  %v340_v33 = vld [vmem:[%s750_s21 + $0xe8] sm:$0xf]  ;;  %593 = vst.msk [vmem:[%s766_s27 + $0xd8] sm:$0xf] %vm538_vm0, %v528_v25 }
  0x5d   : > { %v468_v34 = vld [vmem:[%s755_s24 + $0xe8] sm:$0xf]  ;;  %v530_v35 = vmax.bf16 %v466_v24, %v402_v26  ;;  %v404_v36 = vmax.bf16 %v340_v33, %v276_v32  ;;  %v277_v37 = vld [vmem:[%s745_s18 + $0xec] sm:$0xf]  ;;  %594 = vst.msk [vmem:[%s766_s27 + $0xdc] sm:$0xf] %vm538_vm0, %v529_v30 }
  0x5e   : > { %v341_v38 = vld [vmem:[%s750_s21 + $0xec] sm:$0xf]  ;;  %v531_v40 = vmax.bf16 %v467_v29, %v403_v31  ;;  %v278_v42 = vld [vmem:[%s745_s18 + $0xf0] sm:$0xf]  ;;  %v279_v47 = vld [vmem:[%s745_s18 + $0xf4] sm:$0xf] }
  0x5f   : > { %v469_v39 = vld [vmem:[%s755_s24 + $0xec] sm:$0xf]  ;;  %v405_v41 = vmax.bf16 %v341_v38, %v277_v37  ;;  %v342_v43 = vld [vmem:[%s750_s21 + $0xf0] sm:$0xf]  ;;  %595 = vst.msk [vmem:[%s766_s27 + $0xe0] sm:$0xf] %vm538_vm0, %v530_v35  ;;  %v532_v45 = vmax.bf16 %v468_v34, %v404_v36 }
  0x60   : > { %v470_v44 = vld [vmem:[%s755_s24 + $0xf0] sm:$0xf]  ;;  %v406_v46 = vmax.bf16 %v342_v43, %v278_v42  ;;  %v343_v48 = vld [vmem:[%s750_s21 + $0xf4] sm:$0xf]  ;;  %596 = vst.msk [vmem:[%s766_s27 + $0xe4] sm:$0xf] %vm538_vm0, %v531_v40 }
  0x61   : > { %v471_v49 = vld [vmem:[%s755_s24 + $0xf4] sm:$0xf]  ;;  %v533_v50 = vmax.bf16 %v469_v39, %v405_v41  ;;  %v407_v51 = vmax.bf16 %v343_v48, %v279_v47  ;;  %v280_v52 = vld [vmem:[%s745_s18 + $0xf8] sm:$0xf]  ;;  %597 = vst.msk [vmem:[%s766_s27 + $0xe8] sm:$0xf] %vm538_vm0, %v532_v45 }
  0x62   : > { %v344_v53 = vld [vmem:[%s750_s21 + $0xf8] sm:$0xf]  ;;  %v534_v55 = vmax.bf16 %v470_v44, %v406_v46  ;;  %v281_v57 = vld [vmem:[%s745_s18 + $0xfc] sm:$0xf] }
  0x63   : > { %v472_v54 = vld [vmem:[%s755_s24 + $0xf8] sm:$0xf]  ;;  %v408_v56 = vmax.bf16 %v344_v53, %v280_v52  ;;  %v345_v58 = vld [vmem:[%s750_s21 + $0xfc] sm:$0xf]  ;;  %598 = vst.msk [vmem:[%s766_s27 + $0xec] sm:$0xf] %vm538_vm0, %v533_v50  ;;  %v535_v60 = vmax.bf16 %v471_v49, %v407_v51 }
  0x64   : > { %v473_v59 = vld [vmem:[%s755_s24 + $0xfc] sm:$0xf]  ;;  %v409_v61 = vmax.bf16 %v345_v58, %v281_v57  ;;  %599 = vst.msk [vmem:[%s766_s27 + $0xf0] sm:$0xf] %vm538_vm0, %v534_v55 }
  0x65   : > { %v536_v62 = vmax.bf16 %v472_v54, %v408_v56  ;;  %600 = vst.msk [vmem:[%s766_s27 + $0xf4] sm:$0xf] %vm538_vm0, %v535_v60 }
  0x66   : > { %v537_v63 = vmax.bf16 %v473_v59, %v409_v61 }
  0x67   : > { %601 = vst.msk [vmem:[%s766_s27 + $0xf8] sm:$0xf] %vm538_vm0, %v536_v62 }
  0x68   : > { %602 = vst.msk [vmem:[%s766_s27 + $0xfc] sm:$0xf] %vm538_vm0, %v537_v63 }
  0x69 PF: > { %s13_s12 = sadd.s32 1, %s712_s12  }
  0x6a   : > { %p10_p4 = scmp.ge.s32.totalorder %s13_s12, 4  }
  0x6c   :  { %12 = sbr.rel (!%p10_p4) target bundleno = 1 (0x1), region = 68 }

// kernel: _lambda_.26
= control target key start
LH: loop header
LB: loop body
LE: loop exit
PB: predicated region body
PF: predicated region fallthrough
CT: control target
= control target key end

     0   :  { %s1990_s15 = smov 0   ;;  %s1992_s16 = smov 0   ;;  %s2332_s0 = inlined_call_operand.vmem [shape: bf16[512,576], index: 0, kind: input, shape index: {}]   ;;  %s2333_s1 = inlined_call_operand.vmem [shape: bf16[576,64], index: 1, kind: input, shape index: {}]   ;;  %s2334_s2 = inlined_call_operand.vmem [shape: f32[1,64], index: 2, kind: input, shape index: {}]   ;;  %s2335_s3 = inlined_call_operand.vmem [shape: f32[1,64], index: 3, kind: input, shape index: {}]   ;;  %s2336_s4 = inlined_call_operand.vmem [shape: bf16[512,64], index: 4, kind: output, shape index: {}]  }
   0x1   :  { %s1994_s17 = smov 0  }
   0x2 LB: > { %s33_s18 = sadd.s32 1, %s1958_s16  ;;  %p1525_p0 = scmp.ge.s32.totalorder %s1962_s17, 1  ;;  %s1962_s17 = sphi %s1994_s17, %s14_s17   ;;  %s1958_s16 = sphi %s1992_s16, %s2338_s16   ;;  %s1954_s15 = sphi %s1990_s15, %s2337_s15  }
   0x3   : > { %p35_p1 = scmp.ge.s32.totalorder %s33_s18, 4  ;;  %p224_p2 = scmp.lt.s32.totalorder %s1962_s17, 5 }
   0x5   : > { %s2340_s18 = smov (%p35_p1, %s33_s18), 0  ;;  %p225_p3 = pnand %p1525_p0, %p224_p2 }
   0x6   : > { %v1848_v0 = vld [vmem:[%s2333_s1 + $0x40] sm:$0xff] (!%p225_p3)   ;;  %v1852_v4 = vld [vmem:[%s2333_s1 + $0x48] sm:$0xff] (!%p225_p3)   ;;  %v1856_v8 = vld [vmem:[%s2333_s1 + $0x50] sm:$0xff] (!%p225_p3)   ;;  %s1526_s27 = sshll.u32 (!%p225_p3), %s1954_s15, 4  ;;  %vm313_vm0 = vcmask (!%p225_p3), 523264   ;;  %vm1375_vm1 = vcmask (!%p225_p3), 519168  }
   0x7   : > { %228 = sbr.rel (%p225_p3) target bundleno = 350 (0x15e), region = 36  ;;  %v1849_v1 = vld [vmem:[%s2333_s1 + $0xc0] sm:$0xff] (!%p225_p3)   ;;  %1650 = vmatprep.subr.bf16.mxu0 (!%p225_p3), %v1848_v0  ;;  %v1853_v5 = vld [vmem:[%s2333_s1 + $0xc8] sm:$0xff] (!%p225_p3)   ;;  %v1857_v9 = vld [vmem:[%s2333_s1 + $0xd0] sm:$0xff] (!%p225_p3)   ;;  %p274_p4 = scmp.lt.s32.totalorder (!%p225_p3), %s1526_s27, 63 }
   0x8   : > { %v1850_v2 = vld [vmem:[%s2333_s1] sm:$0xff] (!%p225_p3)   ;;  %1714 = vmatprep.subr.bf16.mxu1 (!%p225_p3), %v1849_v1  ;;  %v1854_v6 = vld [vmem:[%s2333_s1 + $0x8] sm:$0xff] (!%p225_p3)   ;;  %v1858_v10 = vld [vmem:[%s2333_s1 + $0x10] sm:$0xff] (!%p225_p3)  }
   0x9   : > { %v1851_v3 = vld [vmem:[%s2333_s1 + $0x80] sm:$0xff] (!%p225_p3)   ;;  %1651 = vmatpush3.bf16.msra.mxu0 (!%p225_p3), %v1850_v2  ;;  %v1855_v7 = vld [vmem:[%s2333_s1 + $0x88] sm:$0xff] (!%p225_p3)   ;;  %v1859_v11 = vld [vmem:[%s2333_s1 + $0x90] sm:$0xff] (!%p225_p3)  }
   0xa   : > { %1715 = vmatpush3.bf16.msra.mxu1 (!%p225_p3), %v1851_v3  ;;  %1652 = vmatprep.subr.bf16.mxu0 (!%p225_p3), %v1852_v4  ;;  %v1860_v12 = vld [vmem:[%s2333_s1 + $0x58] sm:$0xff] (!%p225_p3)   ;;  %v1864_v16 = vld [vmem:[%s2333_s1 + $0x60] sm:$0xff] (!%p225_p3)   ;;  %v1868_v20 = vld [vmem:[%s2333_s1 + $0x68] sm:$0xff] (!%p225_p3)  }
   0xb   : > { %1716 = vmatprep.subr.bf16.mxu1 (!%p225_p3), %v1853_v5  ;;  %v1861_v13 = vld [vmem:[%s2333_s1 + $0xd8] sm:$0xff] (!%p225_p3)   ;;  %v1865_v17 = vld [vmem:[%s2333_s1 + $0xe0] sm:$0xff] (!%p225_p3)   ;;  %v1869_v21 = vld [vmem:[%s2333_s1 + $0xe8] sm:$0xff] (!%p225_p3)  }
   0xc   : > { %v1862_v14 = vld [vmem:[%s2333_s1 + $0x18] sm:$0xff] (!%p225_p3)   ;;  %v1866_v18 = vld [vmem:[%s2333_s1 + $0x20] sm:$0xff] (!%p225_p3)   ;;  %v1870_v22 = vld [vmem:[%s2333_s1 + $0x28] sm:$0xff] (!%p225_p3)  }
   0xd   : > { %1653 = vmatpush3.bf16.msra.mxu0 (!%p225_p3), %v1854_v6  ;;  %v1863_v15 = vld [vmem:[%s2333_s1 + $0x98] sm:$0xff] (!%p225_p3)   ;;  %v1867_v19 = vld [vmem:[%s2333_s1 + $0xa0] sm:$0xff] (!%p225_p3)   ;;  %v1871_v23 = vld [vmem:[%s2333_s1 + $0xa8] sm:$0xff] (!%p225_p3)  }
   0xe   : > { %1717 = vmatpush3.bf16.msra.mxu1 %v1855_v7  ;;  %1654 = vmatprep.subr.bf16.mxu0 %v1856_v8  ;;  %s2342_s27 = smov (!%p274_p4, %s1526_s27), 63  ;;  %v1872_v24 = vld [vmem:[%s2333_s1 + $0x70] sm:$0xff]   ;;  %v1876_v28 = vld [vmem:[%s2333_s1 + $0x78] sm:$0xff]   ;;  %v1886_v36 = vld [vmem:[%s2333_s1 + $0x100] sm:$0xff]  }
   0xf   : > { %1718 = vmatprep.subr.bf16.mxu1 %v1857_v9  ;;  %v1873_v25 = vld [vmem:[%s2333_s1 + $0xf0] sm:$0xff]   ;;  %s1822_s28 = smul.u32 20, %s2342_s27  ;;  %v1877_v29 = vld [vmem:[%s2333_s1 + $0xf8] sm:$0xff]   ;;  %v1899_v42 = vld [vmem:[%s2333_s1 + $0x108] sm:$0xff]   ;;  %s1529_s8 = sshll.u32 %s2342_s27, 2 }
  0x10   : > { %v1874_v26 = vld [vmem:[%s2333_s1 + $0x30] sm:$0xff]   ;;  %v1878_v30 = vld [vmem:[%s2333_s1 + $0x38] sm:$0xff]   ;;  %s2270_s15 = scalar_lea.vmem %s2336_s4, %s1529_s8 }
  0x11   : > { %1655 = vmatpush3.bf16.msra.mxu0 %v1858_v10  ;;  %v1875_v27 = vld [vmem:[%s2333_s1 + $0xb0] sm:$0xff]   ;;  %s2107_s12 = scalar_lea.vmem %s2332_s0, %s1822_s28  ;;  %v1879_v31 = vld [vmem:[%s2333_s1 + $0xb8] sm:$0xff]  }
  0x12   : > { %1719 = vmatpush3.bf16.msra.mxu1 %v1859_v11  ;;  %1656 = vmatprep.subr.bf16.mxu0 %v1860_v12  ;;  %v1880_v32 = vld [vmem:[%s2107_s12] ss:$20 sps:$4 sm:$0xff]   ;;  %v1882_v33 = vld [vmem:[%s2107_s12 + $0x4] ss:$20 sps:$4 sm:$0xff]   ;;  %v1883_v34 = vld [vmem:[%s2107_s12 + $0x8] ss:$20 sps:$4 sm:$0xff]  }
  0x13   : > { %1720 = vmatprep.subr.bf16.mxu1 %v1861_v13  ;;  %v1885_v35 = vld [vmem:[%s2107_s12 + $0xc] ss:$20 sps:$4 sm:$0xff]   ;;  %939 = vmatprep.mubr.bf16.mxu0 %v1882_v33  ;;  %v1889_v38 = vld [vmem:[%s2107_s12 + $0x34] ss:$20 sps:$4 sm:$0xff]   ;;  %v1892_v40 = vld [vmem:[%s2107_s12 + $0x30] ss:$20 sps:$4 sm:$0xff]  }
  0x14   : > { %1036 = vmatprep.mubr.bf16.mxu1 %v1885_v35  ;;  %v1887_v37 = vld [vmem:[%s2107_s12 + $0x2c] ss:$20 sps:$4 sm:$0xff]   ;;  %v1891_v39 = vld [vmem:[%s2107_s12 + $0x28] ss:$20 sps:$4 sm:$0xff]   ;;  %v1897_v44 = vld [vmem:[%s2107_s12 + $0x50] ss:$20 sps:$4 sm:$0xff]  }
  0x15   : > { %1657 = vmatpush3.bf16.msra.mxu0 %v1862_v14  ;;  %v1893_v41 = vld [vmem:[%s2107_s12 + $0x54] ss:$20 sps:$4 sm:$0xff]   ;;  %v1895_v43 = vld [vmem:[%s2107_s12 + $0x5c] ss:$20 sps:$4 sm:$0xff]   ;;  %v1898_v45 = vld [vmem:[%s2107_s12 + $0x58] ss:$20 sps:$4 sm:$0xff]  }
  0x16   : > { %1721 = vmatpush3.bf16.msra.mxu1 %v1863_v15  ;;  %1658 = vmatprep.subr.bf16.mxu0 %v1864_v16  ;;  %v1912_v46 = vld [vmem:[%s2333_s1 + $0x110] sm:$0xff]   ;;  %v1902_v48 = vld [vmem:[%s2107_s12 + $0x84] ss:$20 sps:$4 sm:$0xff]   ;;  %v1908_v53 = vld [vmem:[%s2107_s12 + $0xac] ss:$20 sps:$4 sm:$0xff]   ;;  %v1964_v12 = vmov 0.0  }
  0x17   : > { %1722 = vmatprep.subr.bf16.mxu1 %v1865_v17  ;;  %v1900_v47 = vld [vmem:[%s2107_s12 + $0x7c] ss:$20 sps:$4 sm:$0xff]   ;;  %v1904_v50 = vld [vmem:[%s2107_s12 + $0x78] ss:$20 sps:$4 sm:$0xff]   ;;  %v1905_v51 = vld [vmem:[%s2107_s12 + $0x80] ss:$20 sps:$4 sm:$0xff]  }
  0x18   : > { %v1925_v49 = vld [vmem:[%s2333_s1 + $0x118] sm:$0xff]   ;;  %v1910_v54 = vld [vmem:[%s2107_s12 + $0xa0] ss:$20 sps:$4 sm:$0xff]   ;;  %v1918_v59 = vld [vmem:[%s2107_s12 + $0xd0] ss:$20 sps:$4 sm:$0xff]   ;;  %316 = vst.msk [vmem:[#allocation2 + $0x10] sm:$0xff] %vm313_vm0, %v1964_v12 }
  0x19   : > { %1659 = vmatpush3.bf16.msra.mxu0 %v1866_v18  ;;  %v1906_v52 = vld [vmem:[%s2107_s12 + $0xa4] ss:$20 sps:$4 sm:$0xff]   ;;  %v1911_v55 = vld [vmem:[%s2107_s12 + $0xa8] ss:$20 sps:$4 sm:$0xff]   ;;  %v1913_v56 = vld [vmem:[%s2107_s12 + $0xcc] ss:$20 sps:$4 sm:$0xff]  }
  0x1a   : > { %1723 = vmatpush3.bf16.msra.mxu1 %v1867_v19  ;;  %1660 = vmatprep.subr.bf16.mxu0 %v1868_v20  ;;  %v1915_v57 = vld [vmem:[%s2107_s12 + $0xd4] ss:$20 sps:$4 sm:$0xff]   ;;  %v1921_v61 = vld [vmem:[%s2107_s12 + $0xfc] ss:$20 sps:$4 sm:$0xff]   ;;  %v1924_v63 = vld [vmem:[%s2107_s12 + $0xf8] ss:$20 sps:$4 sm:$0xff]  }
  0x1b   : > { %1724 = vmatprep.subr.bf16.mxu1 %v1869_v21  ;;  %v1917_v58 = vld [vmem:[%s2107_s12 + $0xc8] ss:$20 sps:$4 sm:$0xff]   ;;  %v1923_v62 = vld [vmem:[%s2107_s12 + $0xf0] ss:$20 sps:$4 sm:$0xff]   ;;  %v1930_v2 = vld [vmem:[%s2107_s12 + $0x118] ss:$20 sps:$4 sm:$0xff]  }
  0x1c   : > { %v1919_v60 = vld [vmem:[%s2107_s12 + $0xf4] ss:$20 sps:$4 sm:$0xff]   ;;  %v1926_v0 = vld [vmem:[%s2107_s12 + $0x11c] ss:$20 sps:$4 sm:$0xff]   ;;  %v1928_v1 = vld [vmem:[%s2107_s12 + $0x124] ss:$20 sps:$4 sm:$0xff]  }
  0x1d   : > { %1661 = vmatpush3.bf16.msra.mxu0 %v1870_v22  ;;  %v1931_v3 = vld [vmem:[%s2107_s12 + $0x120] ss:$20 sps:$4 sm:$0xff]   ;;  %v1932_v4 = vld [vmem:[%s2107_s12 + $0x10] ss:$20 sps:$4 sm:$0xff]   ;;  %v1934_v6 = vld [vmem:[%s2107_s12 + $0x38] ss:$20 sps:$4 sm:$0xff]  }
  0x1e   : > { %1725 = vmatpush3.bf16.msra.mxu1 %v1871_v23  ;;  %1662 = vmatprep.subr.bf16.mxu0 %v1872_v24  ;;  %v1933_v5 = vld [vmem:[%s2107_s12 + $0xb0] ss:$20 sps:$4 sm:$0xff]   ;;  %v1935_v7 = vld [vmem:[%s2107_s12 + $0xd8] ss:$20 sps:$4 sm:$0xff]   ;;  %v1936_v8 = vld [vmem:[%s2107_s12 + $0x60] ss:$20 sps:$4 sm:$0xff]  }
  0x1f   : > { %1726 = vmatprep.subr.bf16.mxu1 %v1873_v25  ;;  %v1937_v9 = vld [vmem:[%s2107_s12 + $0x100] ss:$20 sps:$4 sm:$0xff]   ;;  %v1938_v10 = vld [vmem:[%s2107_s12 + $0x88] ss:$20 sps:$4 sm:$0xff]   ;;  %314 = vst.msk [vmem:[#allocation2] sm:$0xff] %vm313_vm0, %v1964_v12  ;;  %315 = vst.msk [vmem:[#allocation2 + $0x8] sm:$0xff] %vm313_vm0, %v1964_v12 }
  0x20   : > { %v1939_v11 = vld [vmem:[%s2107_s12 + $0x128] ss:$20 sps:$4 sm:$0xff]   ;;  %317 = vst.msk [vmem:[#allocation2 + $0x18] sm:$0xff] %vm313_vm0, %v1964_v12  ;;  %318 = vst.msk [vmem:[#allocation2 + $0x20] sm:$0xff] %vm313_vm0, %v1964_v12 }
  0x21   : > { %1663 = vmatpush3.bf16.msra.mxu0 %v1874_v26  ;;  %319 = vst.msk [vmem:[#allocation2 + $0x28] sm:$0xff] %vm313_vm0, %v1964_v12  ;;  %320 = vst.msk [vmem:[#allocation2 + $0x30] sm:$0xff] %vm313_vm0, %v1964_v12 }
  0x22   : > { %1727 = vmatpush3.bf16.msra.mxu1 %v1875_v27  ;;  %1664 = vmatprep.subr.bf16.mxu0 %v1876_v28  ;;  %321 = vst.msk [vmem:[#allocation2 + $0x38] sm:$0xff] %vm313_vm0, %v1964_v12  ;;  %322 = vst.msk [vmem:[#allocation2 + $0x40] sm:$0xff] %vm313_vm0, %v1964_v12 }
  0x23   : > { %1728 = vmatprep.subr.bf16.mxu1 %v1877_v29  ;;  %323 = vst.msk [vmem:[#allocation2 + $0x48] sm:$0xff] %vm313_vm0, %v1964_v12  ;;  %324 = vst.msk [vmem:[#allocation2 + $0x50] sm:$0xff] %vm313_vm0, %v1964_v12 }
  0x24   : > { %325 = vst.msk [vmem:[#allocation2 + $0x58] sm:$0xff] %vm313_vm0, %v1964_v12  ;;  %326 = vst.msk [vmem:[#allocation2 + $0x60] sm:$0xff] %vm313_vm0, %v1964_v12 }
  0x25   : > { %1665 = vmatpush3.bf16.msra.mxu0 %v1878_v30  ;;  %327 = vst.msk [vmem:[#allocation2 + $0x68] sm:$0xff] %vm313_vm0, %v1964_v12  ;;  %328 = vst.msk [vmem:[#allocation2 + $0x70] sm:$0xff] %vm313_vm0, %v1964_v12 }
  0x26   : > { %1729 = vmatpush3.bf16.msra.mxu1 %v1879_v31  ;;  %1790 = vmatprep.subr.bf16.mxu0 %v1886_v36  ;;  %329 = vst.msk [vmem:[#allocation2 + $0x78] sm:$0xff] %vm313_vm0, %v1964_v12 }
  0x27   : > { %1814 = vmatprep.subr.bf16.mxu1 %v1886_v36 }
  0x28   : > { %940 = vmatmul.mubr.bf16.vlgmr.msra.gmra.mrb[0].mxu0 %v1880_v32 }
  0x29   : > { %1037 = vmatmul.mubr.bf16.vlgmr.msra.gmra.mrb[0].mxu1 %v1883_v34  ;;  %1791 = vmatpush3.bf16.msra.mxu0 %v1886_v36 }
  0x2a   : > { %1818 = vmatpush3.bf16.msra.mxu1 %v1886_v36  ;;  %947 = vmatprep.mubr.bf16.mxu0 %v1887_v37 }
  0x2b   : > { %1044 = vmatprep.mubr.bf16.mxu1 %v1889_v38  ;;  %1792 = vmatprep.subr.bf16.mxu0 %v1899_v42 }
  0x2c   : > { %1815 = vmatprep.subr.bf16.mxu1 %v1899_v42 }
  0x2d   : > { %1793 = vmatpush3.bf16.msra.mxu0 %v1899_v42 }
  0x2e   : > { %1819 = vmatpush3.bf16.msra.mxu1 %v1899_v42  ;;  %1794 = vmatprep.subr.bf16.mxu0 %v1912_v46 }
  0x2f   : > { %1816 = vmatprep.subr.bf16.mxu1 %v1912_v46 }
  0x30   : > { %948 = vmatmul.mubr.bf16.gmra.mrb[4].mxu0 %v1891_v39 }
  0x31   : > { %1045 = vmatmul.mubr.bf16.gmra.mrb[4].mxu1 %v1892_v40  ;;  %955 = vmatprep.mubr.bf16.mxu0 %v1893_v41 }
  0x32   : > { %1052 = vmatprep.mubr.bf16.mxu1 %v1895_v43  ;;  %1795 = vmatpush3.bf16.msra.mxu0 %v1912_v46 }
  0x33   : > { %1820 = vmatpush3.bf16.msra.mxu1 %v1912_v46  ;;  %1796 = vmatprep.subr.bf16.mxu0 %v1925_v49 }
  0x34   : > { %1817 = vmatprep.subr.bf16.mxu1 %v1925_v49 }
  0x36   : > { %1797 = vmatpush3.bf16.msra.mxu0 %v1925_v49 }
  0x37   : > { %1821 = vmatpush3.bf16.msra.mxu1 %v1925_v49 }
  0x38   : > { %956 = vmatmul.mubr.bf16.gmra.mrb[8].mxu0 %v1897_v44 }
  0x39   : > { %1053 = vmatmul.mubr.bf16.gmra.mrb[8].mxu1 %v1898_v45  ;;  %963 = vmatprep.mubr.bf16.mxu0 %v1900_v47 }
  0x3a   : > { %1060 = vmatprep.mubr.bf16.mxu1 %v1902_v48 }
  0x40   : > { %964 = vmatmul.mubr.bf16.gmra.mrb[12].mxu0 %v1904_v50 }
  0x41   : > { %1061 = vmatmul.mubr.bf16.gmra.mrb[12].mxu1 %v1905_v51  ;;  %971 = vmatprep.mubr.bf16.mxu0 %v1906_v52 }
  0x42   : > { %1068 = vmatprep.mubr.bf16.mxu1 %v1908_v53 }
  0x48   : > { %972 = vmatmul.mubr.bf16.gmra.mrb[16].mxu0 %v1910_v54 }
  0x49   : > { %1069 = vmatmul.mubr.bf16.gmra.mrb[16].mxu1 %v1911_v55  ;;  %979 = vmatprep.mubr.bf16.mxu0 %v1913_v56 }
  0x4a   : > { %1076 = vmatprep.mubr.bf16.mxu1 %v1915_v57 }
  0x50   : > { %980 = vmatmul.mubr.bf16.gmra.mrb[20].mxu0 %v1917_v58 }
  0x51   : > { %1077 = vmatmul.mubr.bf16.gmra.mrb[20].mxu1 %v1918_v59  ;;  %987 = vmatprep.mubr.bf16.mxu0 %v1919_v60 }
  0x52   : > { %1084 = vmatprep.mubr.bf16.mxu1 %v1921_v61 }
  0x58   : > { %988 = vmatmul.mubr.bf16.gmra.mrb[24].mxu0 %v1923_v62 }
  0x59   : > { %1085 = vmatmul.mubr.bf16.gmra.mrb[24].mxu1 %v1924_v63  ;;  %995 = vmatprep.mubr.bf16.mxu0 %v1926_v0 }
  0x5a   : > { %1092 = vmatprep.mubr.bf16.mxu1 %v1928_v1 }
  0x60   : > { %996 = vmatmul.mubr.bf16.gmra.mrb[28].mxu0 %v1930_v2 }
  0x61   : > { %1093 = vmatmul.mubr.bf16.gmra.mrb[28].mxu1 %v1931_v3  ;;  %1798 = vmatprep.mubr.msk.bf16.mxu0 %vm313_vm0, %v1932_v4 }
  0x62   : > { %1806 = vmatprep.mubr.msk.bf16.mxu1 %vm313_vm0, %v1933_v5 }
  0x68   : > { %1799 = vmatmul.mubr.msk.bf16.vlgmr.msra.gmra.mrb[32].mxu0 %vm313_vm0, %v1934_v6 }
  0x69   : > { %1807 = vmatmul.mubr.msk.bf16.vlgmr.msra.gmra.mrb[32].mxu1 %vm313_vm0, %v1935_v7  ;;  %1802 = vmatprep.mubr.msk.bf16.mxu0 %vm313_vm0, %v1936_v8 }
  0x6a   : > { %1810 = vmatprep.mubr.msk.bf16.mxu1 %vm313_vm0, %v1937_v9 }
  0x70   : > { %1803 = vmatmul.mubr.msk.bf16.gmra.mrb[36].mxu0 %vm313_vm0, %v1938_v10 }
  0x71   : > { %1811 = vmatmul.mubr.msk.bf16.gmra.mrb[36].mxu1 %vm313_vm0, %v1939_v11 }
  0xfb   : > { %v1666_v13 = vpop.f32.mrb[0].mxu0 }
  0xfc   : > { %v1730_v14 = vpop.f32.mrb[0].mxu1  ;;  %v1667_v15 = vpop.f32.mrb[1].mxu0 }
  0xfd   : > { %v1668_v16 = vadd.f32 %v1667_v15, %v1666_v13  ;;  %v1731_v17 = vpop.f32.mrb[1].mxu1  ;;  %v1669_v18 = vpop.f32.mrb[2].mxu0 }
  0xfe   : > { %v1732_v19 = vadd.f32 %v1731_v17, %v1730_v14  ;;  %v1733_v20 = vpop.f32.mrb[2].mxu1  ;;  %v1670_v21 = vpop.f32.mrb[3].mxu0 }
  0xff   : > { %v1671_v22 = vadd.f32 %v1670_v21, %v1669_v18  ;;  %v1734_v23 = vpop.f32.mrb[3].mxu1 }
 0x100   : > { %v1735_v24 = vadd.f32 %v1734_v23, %v1733_v20  ;;  %v2191_v25 = vadd.f32 %v1732_v19, %v1668_v16 }
 0x102   : > { %v2193_v26 = vadd.f32 %v1735_v24, %v1671_v22 }
 0x103   : > { %v1672_v27 = vpop.f32.mrb[4].mxu0 }
 0x104   : > { %v1736_v28 = vpop.f32.mrb[4].mxu1  ;;  %v1673_v29 = vpop.f32.mrb[5].mxu0 }
 0x105   : > { %v1674_v30 = vadd.f32 %v1673_v29, %v1672_v27  ;;  %v1737_v31 = vpop.f32.mrb[5].mxu1  ;;  %v1675_v32 = vpop.f32.mrb[6].mxu0 }
 0x106   : > { %v1738_v33 = vadd.f32 %v1737_v31, %v1736_v28  ;;  %v1739_v34 = vpop.f32.mrb[6].mxu1  ;;  %v1676_v35 = vpop.f32.mrb[7].mxu0 }
 0x107   : > { %v1677_v36 = vadd.f32 %v1676_v35, %v1675_v32  ;;  %v1740_v37 = vpop.f32.mrb[7].mxu1 }
 0x108   : > { %v1741_v38 = vadd.f32 %v1740_v37, %v1739_v34  ;;  %v2195_v39 = vadd.f32 %v1738_v33, %v1674_v30 }
 0x10a   : > { %v2197_v40 = vadd.f32 %v1741_v38, %v1677_v36 }
 0x10b   : > { %v1678_v41 = vpop.f32.mrb[8].mxu0 }
 0x10c   : > { %v1742_v42 = vpop.f32.mrb[8].mxu1  ;;  %v1679_v43 = vpop.f32.mrb[9].mxu0 }
 0x10d   : > { %v1680_v44 = vadd.f32 %v1679_v43, %v1678_v41  ;;  %v1743_v45 = vpop.f32.mrb[9].mxu1  ;;  %v1681_v46 = vpop.f32.mrb[10].mxu0 }
 0x10e   : > { %v1744_v47 = vadd.f32 %v1743_v45, %v1742_v42  ;;  %v1745_v48 = vpop.f32.mrb[10].mxu1  ;;  %v1682_v49 = vpop.f32.mrb[11].mxu0 }
 0x10f   : > { %v1683_v50 = vadd.f32 %v1682_v49, %v1681_v46  ;;  %v1746_v51 = vpop.f32.mrb[11].mxu1 }
 0x110   : > { %v1747_v52 = vadd.f32 %v1746_v51, %v1745_v48  ;;  %v2199_v53 = vadd.f32 %v1744_v47, %v1680_v44 }
 0x112   : > { %v2201_v54 = vadd.f32 %v1747_v52, %v1683_v50 }
 0x113   : > { %v1684_v55 = vpop.f32.mrb[12].mxu0 }
 0x114   : > { %v1748_v56 = vpop.f32.mrb[12].mxu1  ;;  %v1685_v57 = vpop.f32.mrb[13].mxu0 }
 0x115   : > { %v1686_v58 = vadd.f32 %v1685_v57, %v1684_v55  ;;  %v1749_v59 = vpop.f32.mrb[13].mxu1  ;;  %v1687_v60 = vpop.f32.mrb[14].mxu0 }
 0x116   : > { %v1750_v61 = vadd.f32 %v1749_v59, %v1748_v56  ;;  %v1751_v62 = vpop.f32.mrb[14].mxu1  ;;  %v1688_v63 = vpop.f32.mrb[15].mxu0 }
 0x117   : > { %v1689_v0 = vadd.f32 %v1688_v63, %v1687_v60  ;;  %v1752_v1 = vpop.f32.mrb[15].mxu1 }
 0x118   : > { %v1753_v2 = vadd.f32 %v1752_v1, %v1751_v62  ;;  %v2203_v3 = vadd.f32 %v1750_v61, %v1686_v58 }
 0x11a   : > { %v2205_v4 = vadd.f32 %v1753_v2, %v1689_v0 }
 0x11b   : > { %v1690_v5 = vpop.f32.mrb[16].mxu0 }
 0x11c   : > { %v1754_v6 = vpop.f32.mrb[16].mxu1  ;;  %v1691_v7 = vpop.f32.mrb[17].mxu0 }
 0x11d   : > { %v1692_v8 = vadd.f32 %v1691_v7, %v1690_v5  ;;  %v1755_v9 = vpop.f32.mrb[17].mxu1  ;;  %v1693_v10 = vpop.f32.mrb[18].mxu0  ;;  %v332_v5 = vld [vmem:[#allocation2 + $0x10] sm:$0xff] }
 0x11e   : > { %v1756_v11 = vadd.f32 %v1755_v9, %v1754_v6  ;;  %v1757_v12 = vpop.f32.mrb[18].mxu1  ;;  %v1694_v13 = vpop.f32.mrb[19].mxu0 }
 0x11f   : > { %v1695_v14 = vadd.f32 %v1694_v13, %v1693_v10  ;;  %v1758_v15 = vpop.f32.mrb[19].mxu1  ;;  %v330_v10 = vld [vmem:[#allocation2] sm:$0xff] }
 0x120   : > { %v1759_v16 = vadd.f32 %v1758_v15, %v1757_v12  ;;  %v1071_v17 = vadd.f32 %v1756_v11, %v1692_v8  ;;  %v340_v8 = vld [vmem:[#allocation2 + $0x50] sm:$0xff] }
 0x122   : > { %v2207_v18 = vadd.f32 %v1759_v16, %v1695_v14  ;;  %v338_v14 = vld [vmem:[#allocation2 + $0x40] sm:$0xff]  ;;  %v333_v16 = vld [vmem:[#allocation2 + $0x18] sm:$0xff] }
 0x123   : > { %v1696_v19 = vpop.f32.mrb[20].mxu0 }
 0x124   : > { %v1760_v20 = vpop.f32.mrb[20].mxu1  ;;  %v1697_v21 = vpop.f32.mrb[21].mxu0 }
 0x125   : > { %v1698_v22 = vadd.f32 %v1697_v21, %v1696_v19  ;;  %v1761_v23 = vpop.f32.mrb[21].mxu1  ;;  %v1699_v24 = vpop.f32.mrb[22].mxu0 }
 0x126   : > { %v1762_v27 = vadd.f32 %v1761_v23, %v1760_v20  ;;  %v1763_v28 = vpop.f32.mrb[22].mxu1  ;;  %v1700_v29 = vpop.f32.mrb[23].mxu0  ;;  %v341_v23 = vld [vmem:[#allocation2 + $0x58] sm:$0xff] }
 0x127   : > { %v1701_v30 = vadd.f32 %v1700_v29, %v1699_v24  ;;  %v1764_v31 = vpop.f32.mrb[23].mxu1 }
 0x128   : > { %v1765_v32 = vadd.f32 %v1764_v31, %v1763_v28  ;;  %v1079_v33 = vadd.f32 %v1762_v27, %v1698_v22  ;;  %v331_v27 = vld [vmem:[#allocation2 + $0x8] sm:$0xff] }
 0x12a   : > { %v1082_v34 = vadd.f32 %v1765_v32, %v1701_v30  ;;  %v339_v32 = vld [vmem:[#allocation2 + $0x48] sm:$0xff] }
 0x12b   : > { %v1702_v35 = vpop.f32.mrb[24].mxu0 }
 0x12c   : > { %v1766_v36 = vpop.f32.mrb[24].mxu1  ;;  %v1703_v37 = vpop.f32.mrb[25].mxu0 }
 0x12d   : > { %v1704_v38 = vadd.f32 %v1703_v37, %v1702_v35  ;;  %v1767_v41 = vpop.f32.mrb[25].mxu1  ;;  %v1705_v42 = vpop.f32.mrb[26].mxu0 }
 0x12e   : > { %v1768_v43 = vadd.f32 %v1767_v41, %v1766_v36  ;;  %v1769_v44 = vpop.f32.mrb[26].mxu1  ;;  %v1706_v45 = vpop.f32.mrb[27].mxu0 }
 0x12f   : > { %v1707_v46 = vadd.f32 %v1706_v45, %v1705_v42  ;;  %v1770_v47 = vpop.f32.mrb[27].mxu1  ;;  %v334_v42 = vld [vmem:[#allocation2 + $0x20] sm:$0xff] }
 0x130   : > { %v1771_v48 = vadd.f32 %v1770_v47, %v1769_v44  ;;  %v2209_v49 = vadd.f32 %v1768_v43, %v1704_v38  ;;  %v344_v38 = vld [vmem:[#allocation2 + $0x70] sm:$0xff]  ;;  %v2232_v44 = vld [vmem:[%s2334_s2] ss:$0 sm:$0xff] }
 0x131   : > { %v342_v47 = vld [vmem:[#allocation2 + $0x60] sm:$0xff] }
 0x132   : > { %v2211_v50 = vadd.f32 %v1771_v48, %v1707_v46 }
 0x133   : > { %v1708_v51 = vpop.f32.mrb[28].mxu0 }
 0x134   : > { %v1772_v52 = vpop.f32.mrb[28].mxu1  ;;  %v1709_v55 = vpop.f32.mrb[29].mxu0 }
 0x135   : > { %v1710_v56 = vadd.f32 %v1709_v55, %v1708_v51  ;;  %v1773_v57 = vpop.f32.mrb[29].mxu1  ;;  %v1711_v58 = vpop.f32.mrb[30].mxu0  ;;  %v337_v51 = vld [vmem:[#allocation2 + $0x38] sm:$0xff] }
 0x136   : > { %v1774_v59 = vadd.f32 %v1773_v57, %v1772_v52  ;;  %v1775_v60 = vpop.f32.mrb[30].mxu1  ;;  %v1712_v61 = vpop.f32.mrb[31].mxu0  ;;  %v345_v57 = vld [vmem:[#allocation2 + $0x78] sm:$0xff] }
 0x137   : > { %v1713_v62 = vadd.f32 %v1712_v61, %v1711_v58  ;;  %v1776_v63 = vpop.f32.mrb[31].mxu1 }
 0x138   : > { %v1777_v0 = vadd.f32 %v1776_v63, %v1775_v60  ;;  %v1095_v1 = vadd.f32 %v1774_v59, %v1710_v56  ;;  %v335_v59 = vld [vmem:[#allocation2 + $0x28] sm:$0xff] }
 0x13a   : > { %v2213_v2 = vadd.f32 %v1777_v0, %v1713_v62  ;;  %v2240_v62 = vld [vmem:[%s2335_s3] ss:$0 sm:$0xff] }
 0x13b   : > { %v1800_v6 = vpop.f32.mrb[32].mxu0 }
 0x13c   : > { %v1144_v7 = vadd.f32 %v1800_v6, %v2195_v39  ;;  %v1808_v9 = vpop.f32.mrb[32].mxu1  ;;  %v1135_v11 = vpop.f32.mrb[33].mxu0 }
 0x13d   : > { %v1176_v12 = vadd.f32 %v1808_v9, %v1079_v33  ;;  %v1136_v13 = vadd.f32 %v1135_v11, %v2191_v25  ;;  %v1167_v15 = vpop.f32.mrb[33].mxu1  ;;  %v1801_v19 = vpop.f32.mrb[34].mxu0 }
 0x13e   : > { %v1200_v20 = vadd.f32 %v1144_v7, %v332_v5  ;;  %v1168_v21 = vadd.f32 %v1167_v15, %v1071_v17  ;;  %v1147_v22 = vadd.f32 %v1801_v19, %v2197_v40  ;;  %v1809_v24 = vpop.f32.mrb[34].mxu1  ;;  %v1138_v28 = vpop.f32.mrb[35].mxu0  ;;  %v343_v5 = vld [vmem:[#allocation2 + $0x68] sm:$0xff] }
 0x13f   : > { %v1208_v39 = vadd.f32 %v1176_v12, %v340_v8  ;;  %v1198_v29 = vadd.f32 %v1136_v13, %v330_v10  ;;  %v1179_v30 = vadd.f32 %v1809_v24, %v1082_v34  ;;  %v1139_v31 = vadd.f32 %v1138_v28, %v2193_v26  ;;  %v1170_v33 = vpop.f32.mrb[35].mxu1  ;;  %v336_v26 = vld [vmem:[#allocation2 + $0x30] sm:$0xff] }
 0x140   : > { %1216 = vst.msk [vmem:[#allocation2 + $0x10] sm:$0xff] %vm313_vm0, %v1200_v20  ;;  %v1206_v25 = vadd.f32 %v1168_v21, %v338_v14  ;;  %v1201_v35 = vadd.f32 %v1147_v22, %v333_v16  ;;  %v1171_v36 = vadd.f32 %v1170_v33, %v2207_v18 }
 0x141   : > { %1224 = vst.msk [vmem:[#allocation2 + $0x50] sm:$0xff] %vm313_vm0, %v1208_v39  ;;  %1214 = vst.msk [vmem:[#allocation2] sm:$0xff] %vm313_vm0, %v1198_v29  ;;  %v1209_v40 = vadd.f32 %v1179_v30, %v341_v23  ;;  %v1199_v17 = vadd.f32 %v1139_v31, %v331_v27 }
 0x142   : > { %1222 = vst.msk [vmem:[#allocation2 + $0x40] sm:$0xff] %vm313_vm0, %v1206_v25  ;;  %1217 = vst.msk [vmem:[#allocation2 + $0x18] sm:$0xff] %vm313_vm0, %v1201_v35  ;;  %v1207_v34 = vadd.f32 %v1171_v36, %v339_v32 }
 0x143   : > { %1225 = vst.msk [vmem:[#allocation2 + $0x58] sm:$0xff] %vm313_vm0, %v1209_v40  ;;  %1215 = vst.msk [vmem:[#allocation2 + $0x8] sm:$0xff] %vm313_vm0, %v1199_v17  ;;  %v1804_v37 = vpop.f32.mrb[36].mxu0 }
 0x144   : > { %1223 = vst.msk [vmem:[#allocation2 + $0x48] sm:$0xff] %vm313_vm0, %v1207_v34  ;;  %v1160_v18 = vadd.f32 %v1804_v37, %v2203_v3  ;;  %v1812_v41 = vpop.f32.mrb[36].mxu1  ;;  %v1151_v43 = vpop.f32.mrb[37].mxu0 }
 0x145   : > { %v1192_v45 = vadd.f32 %v1812_v41, %v1095_v1  ;;  %v1152_v46 = vadd.f32 %v1151_v43, %v2199_v53  ;;  %v1183_v48 = vpop.f32.mrb[37].mxu1  ;;  %v1805_v52 = vpop.f32.mrb[38].mxu0 }
 0x146   : > { %v1204_v55 = vadd.f32 %v1160_v18, %v336_v26  ;;  %v1184_v3 = vadd.f32 %v1183_v48, %v2209_v49  ;;  %v1163_v56 = vadd.f32 %v1805_v52, %v2205_v4  ;;  %v1813_v58 = vpop.f32.mrb[38].mxu1  ;;  %v1154_v60 = vpop.f32.mrb[39].mxu0 }
 0x147   : > { %v1235_v61 = vld [vmem:[#allocation2 + $0x10] sm:$0xff]  ;;  %v1212_v53 = vadd.f32 %v1192_v45, %v344_v38  ;;  %v1202_v63 = vadd.f32 %v1152_v46, %v334_v42  ;;  %v1195_v0 = vadd.f32 %v1813_v58, %v2213_v2  ;;  %v1155_v1 = vadd.f32 %v1154_v60, %v2201_v54  ;;  %v1186_v49 = vpop.f32.mrb[39].mxu1 }
 0x148   : > { %v1258_v4 = vmul.f32 %v2232_v44, %v1235_v61  ;;  %v1243_v6 = vld [vmem:[#allocation2 + $0x50] sm:$0xff]  ;;  %v1233_v7 = vld [vmem:[#allocation2] sm:$0xff]  ;;  %1220 = vst.msk [vmem:[#allocation2 + $0x30] sm:$0xff] %vm313_vm0, %v1204_v55  ;;  %v1210_v8 = vadd.f32 %v1184_v3, %v342_v47  ;;  %v1205_v9 = vadd.f32 %v1163_v56, %v337_v51  ;;  %v1187_v10 = vadd.f32 %v1186_v49, %v2211_v50 }
 0x149   : > { %v1266_v11 = vmul.f32 %v2232_v44, %v1243_v6  ;;  %v1256_v12 = vmul.f32 %v2232_v44, %v1233_v7  ;;  %v1241_v2 = vld [vmem:[#allocation2 + $0x40] sm:$0xff]  ;;  %v1236_v13 = vld [vmem:[#allocation2 + $0x18] sm:$0xff]  ;;  %1228 = vst.msk [vmem:[#allocation2 + $0x70] sm:$0xff] %vm313_vm0, %v1212_v53  ;;  %1218 = vst.msk [vmem:[#allocation2 + $0x20] sm:$0xff] %vm313_vm0, %v1202_v63  ;;  %v1213_v54 = vadd.f32 %v1195_v0, %v345_v57 }
 0x14a   : > { %v1203_v14 = vadd.f32 %v1155_v1, %v335_v59  ;;  %v1281_v15 = vadd.f32 %v2240_v62, %v1258_v4  ;;  %v1264_v16 = vmul.f32 %v2232_v44, %v1241_v2  ;;  %v1259_v19 = vmul.f32 %v2232_v44, %v1236_v13  ;;  %v1244_v50 = vld [vmem:[#allocation2 + $0x58] sm:$0xff]  ;;  %v1234_v20 = vld [vmem:[#allocation2 + $0x8] sm:$0xff]  ;;  %1226 = vst.msk [vmem:[#allocation2 + $0x60] sm:$0xff] %vm313_vm0, %v1210_v8 }
 0x14b   : > { %1221 = vst.msk [vmem:[#allocation2 + $0x38] sm:$0xff] %vm313_vm0, %v1205_v9  ;;  %v1211_v21 = vadd.f32 %v1187_v10, %v343_v5  ;;  %v1289_v22 = vadd.f32 %v2240_v62, %v1266_v11  ;;  %v1279_v23 = vadd.f32 %v2240_v62, %v1256_v12  ;;  %v1267_v24 = vmul.f32 %v2232_v44, %v1244_v50  ;;  %v1242_v28 = vld [vmem:[#allocation2 + $0x48] sm:$0xff] }
 0x14c   : > { %v1257_v27 = vmul.f32 %v2232_v44, %v1234_v20  ;;  %1229 = vst.msk [vmem:[#allocation2 + $0x78] sm:$0xff] %vm313_vm0, %v1213_v54  ;;  %1219 = vst.msk [vmem:[#allocation2 + $0x28] sm:$0xff] %vm313_vm0, %v1203_v14  ;;  %v1297_v39 = vmax.f32 %v1281_v15, 0.0  ;;  %v1287_v29 = vadd.f32 %v2240_v62, %v1264_v16  ;;  %v1282_v30 = vadd.f32 %v2240_v62, %v1259_v19 }
 0x14d   : > { %v1265_v31 = vmul.f32 %v2232_v44, %v1242_v28  ;;  %1227 = vst.msk [vmem:[#allocation2 + $0x68] sm:$0xff] %vm313_vm0, %v1211_v21  ;;  %v1305_v32 = vmax.f32 %v1289_v22, 0.0  ;;  %v1295_v33 = vmax.f32 %v1279_v23, 0.0  ;;  %v1290_v25 = vadd.f32 %v2240_v62, %v1267_v24 }
 0x14e   : > { %v1280_v35 = vadd.f32 %v2240_v62, %v1257_v27  ;;  %v1636_v36 = vpack.c.bf16 %v1297_v39, %v1297_v39  ;;  %v1303_v40 = vmax.f32 %v1287_v29, 0.0  ;;  %v1298_v17 = vmax.f32 %v1282_v30, 0.0 }
 0x14f   : > { %v1288_v34 = vadd.f32 %v2240_v62, %v1265_v31  ;;  %v1644_v26 = vpack.c.bf16 %v1305_v32, %v1305_v32  ;;  %v1634_v37 = vpack.c.bf16 %v1295_v33, %v1295_v33  ;;  %v1306_v18 = vmax.f32 %v1290_v25, 0.0  ;;  %v1239_v41 = vld [vmem:[#allocation2 + $0x30] sm:$0xff] }
 0x150   : > { %v1296_v38 = vmax.f32 %v1280_v35, 0.0  ;;  %1378 = vst.msk [vmem:[%s2270_s15 + $0x8] sm:$0xf] %vm1375_vm1, %v1636_v36  ;;  %v1642_v42 = vpack.c.bf16 %v1303_v40, %v1303_v40  ;;  %v1637_v43 = vpack.c.bf16 %v1298_v17, %v1298_v17  ;;  %v1262_v46 = vmul.f32 %v2232_v44, %v1239_v41  ;;  %v1247_v47 = vld [vmem:[#allocation2 + $0x70] sm:$0xff]  ;;  %v1237_v48 = vld [vmem:[#allocation2 + $0x20] sm:$0xff] }
 0x151   : > { %v1304_v45 = vmax.f32 %v1288_v34, 0.0  ;;  %1386 = vst.msk [vmem:[%s2270_s15 + $0x28] sm:$0xf] %vm1375_vm1, %v1644_v26  ;;  %1376 = vst.msk [vmem:[%s2270_s15] sm:$0xf] %vm1375_vm1, %v1634_v37  ;;  %v1645_v51 = vpack.c.bf16 %v1306_v18, %v1306_v18  ;;  %v1270_v55 = vmul.f32 %v2232_v44, %v1247_v47  ;;  %v1260_v3 = vmul.f32 %v2232_v44, %v1237_v48  ;;  %v1245_v56 = vld [vmem:[#allocation2 + $0x60] sm:$0xff] }
 0x152   : > { %v1635_v52 = vpack.c.bf16 %v1296_v38, %v1296_v38  ;;  %v1240_v57 = vld [vmem:[#allocation2 + $0x38] sm:$0xff]  ;;  %1384 = vst.msk [vmem:[%s2270_s15 + $0x20] sm:$0xf] %vm1375_vm1, %v1642_v42  ;;  %1379 = vst.msk [vmem:[%s2270_s15 + $0xc] sm:$0xf] %vm1375_vm1, %v1637_v43  ;;  %v1285_v59 = vadd.f32 %v2240_v62, %v1262_v46  ;;  %v1268_v60 = vmul.f32 %v2232_v44, %v1245_v56 }
 0x153   : > { %v1643_v58 = vpack.c.bf16 %v1304_v45, %v1304_v45  ;;  %v1263_v61 = vmul.f32 %v2232_v44, %v1240_v57  ;;  %v1248_v53 = vld [vmem:[#allocation2 + $0x78] sm:$0xff]  ;;  %v1238_v63 = vld [vmem:[#allocation2 + $0x28] sm:$0xff]  ;;  %1387 = vst.msk [vmem:[%s2270_s15 + $0x2c] sm:$0xf] %vm1375_vm1, %v1645_v51  ;;  %v1293_v0 = vadd.f32 %v2240_v62, %v1270_v55  ;;  %v1283_v1 = vadd.f32 %v2240_v62, %v1260_v3 }
 0x154   : > { %1377 = vst.msk [vmem:[%s2270_s15 + $0x4] sm:$0xf] %vm1375_vm1, %v1635_v52  ;;  %v1271_v5 = vmul.f32 %v2232_v44, %v1248_v53  ;;  %v1261_v49 = vmul.f32 %v2232_v44, %v1238_v63  ;;  %v1246_v4 = vld [vmem:[#allocation2 + $0x68] sm:$0xff]  ;;  %v1301_v6 = vmax.f32 %v1285_v59, 0.0  ;;  %v1291_v7 = vadd.f32 %v2240_v62, %v1268_v60 }
 0x155   : > { %1385 = vst.msk [vmem:[%s2270_s15 + $0x24] sm:$0xf] %vm1375_vm1, %v1643_v58  ;;  %v1286_v8 = vadd.f32 %v2240_v62, %v1263_v61  ;;  %v1269_v9 = vmul.f32 %v2232_v44, %v1246_v4  ;;  %v1309_v10 = vmax.f32 %v1293_v0, 0.0  ;;  %v1299_v11 = vmax.f32 %v1283_v1, 0.0 }
 0x156   : > { %v1294_v12 = vadd.f32 %v2240_v62, %v1271_v5  ;;  %v1284_v2 = vadd.f32 %v2240_v62, %v1261_v49  ;;  %v1640_v13 = vpack.c.bf16 %v1301_v6, %v1301_v6  ;;  %v1307_v54 = vmax.f32 %v1291_v7, 0.0 }
 0x157   : > { %v1302_v14 = vmax.f32 %v1286_v8, 0.0  ;;  %v1292_v15 = vadd.f32 %v2240_v62, %v1269_v9  ;;  %v1648_v16 = vpack.c.bf16 %v1309_v10, %v1309_v10  ;;  %v1638_v19 = vpack.c.bf16 %v1299_v11, %v1299_v11 }
 0x158   : > { %v1310_v44 = vmax.f32 %v1294_v12, 0.0  ;;  %v1300_v50 = vmax.f32 %v1284_v2, 0.0  ;;  %1382 = vst.msk [vmem:[%s2270_s15 + $0x18] sm:$0xf] %vm1375_vm1, %v1640_v13  ;;  %v1646_v20 = vpack.c.bf16 %v1307_v54, %v1307_v54 }
 0x159   : > { %v1641_v21 = vpack.c.bf16 %v1302_v14, %v1302_v14  ;;  %v1308_v22 = vmax.f32 %v1292_v15, 0.0  ;;  %1390 = vst.msk [vmem:[%s2270_s15 + $0x38] sm:$0xf] %vm1375_vm1, %v1648_v16  ;;  %1380 = vst.msk [vmem:[%s2270_s15 + $0x10] sm:$0xf] %vm1375_vm1, %v1638_v19 }
 0x15a   : > { %v1649_v23 = vpack.c.bf16 %v1310_v44, %v1310_v44  ;;  %v1639_v24 = vpack.c.bf16 %v1300_v50, %v1300_v50  ;;  %1388 = vst.msk [vmem:[%s2270_s15 + $0x30] sm:$0xf] %vm1375_vm1, %v1646_v20 }
 0x15b   : > { %1383 = vst.msk [vmem:[%s2270_s15 + $0x1c] sm:$0xf] %vm1375_vm1, %v1641_v21  ;;  %v1647_v62 = vpack.c.bf16 %v1308_v22, %v1308_v22 }
 0x15c   : > { %1391 = vst.msk [vmem:[%s2270_s15 + $0x3c] sm:$0xf] %vm1375_vm1, %v1649_v23  ;;  %1381 = vst.msk [vmem:[%s2270_s15 + $0x14] sm:$0xf] %vm1375_vm1, %v1639_v24 }
 0x15d   : > { %1389 = vst.msk [vmem:[%s2270_s15 + $0x34] sm:$0xf] %vm1375_vm1, %v1647_v62 }
 0x15e PF: > { %s14_s17 = sadd.s32 1, %s1962_s17   ;;  %s2337_s15 = smov %s1958_s16 }
 0x15f   : > { %p11_p5 = scmp.ge.s32.totalorder %s14_s17, 6   ;;  %s2338_s16 = smov %s2340_s18 }
 0x161   :  { %13 = sbr.rel (!%p11_p5) target bundleno = 2 (0x2), region = 83 }

// kernel: _lambda_.27
= control target key start
LH: loop header
LB: loop body
LE: loop exit
PB: predicated region body
PF: predicated region fallthrough
CT: control target
= control target key end

     0   :  { %s2159_s18 = smov 0   ;;  %s2161_s19 = smov 0   ;;  %s2588_s0 = inlined_call_operand.vmem [shape: bf16[512,576], index: 0, kind: input, shape index: {}]   ;;  %s2589_s1 = inlined_call_operand.vmem [shape: bf16[576,64], index: 1, kind: input, shape index: {}]   ;;  %s2590_s2 = inlined_call_operand.vmem [shape: f32[1,64], index: 2, kind: input, shape index: {}]   ;;  %s2591_s3 = inlined_call_operand.vmem [shape: f32[1,64], index: 3, kind: input, shape index: {}]   ;;  %s2592_s4 = inlined_call_operand.vmem [shape: bf16[512,64], index: 4, kind: input, shape index: {}]   ;;  %s2593_s5 = inlined_call_operand.vmem [shape: bf16[512,64], index: 5, kind: output, shape index: {}]  }
   0x1   :  { %s2163_s20 = smov 0  }
   0x2 LB: > { %s34_s21 = sadd.s32 1, %s2122_s19  ;;  %p1648_p0 = scmp.ge.s32.totalorder %s2126_s20, 1  ;;  %s2126_s20 = sphi %s2163_s20, %s15_s20   ;;  %s2122_s19 = sphi %s2161_s19, %s2595_s19   ;;  %s2118_s18 = sphi %s2159_s18, %s2594_s18  }
   0x3   : > { %p36_p1 = scmp.ge.s32.totalorder %s34_s21, 4  ;;  %p265_p2 = scmp.lt.s32.totalorder %s2126_s20, 5 }
   0x5   : > { %s2597_s21 = smov (%p36_p1, %s34_s21), 0  ;;  %p266_p3 = pnand %p1648_p0, %p265_p2 }
   0x6   : > { %v2012_v0 = vld [vmem:[%s2589_s1 + $0x40] sm:$0xff] (!%p266_p3)   ;;  %v2016_v4 = vld [vmem:[%s2589_s1 + $0x48] sm:$0xff] (!%p266_p3)   ;;  %v2020_v8 = vld [vmem:[%s2589_s1 + $0x50] sm:$0xff] (!%p266_p3)   ;;  %s1649_s6 = sshll.u32 (!%p266_p3), %s2118_s18, 4  ;;  %vm373_vm0 = vcmask (!%p266_p3), 523264   ;;  %vm1483_vm1 = vcmask (!%p266_p3), 519168  }
   0x7   : > { %269 = sbr.rel (%p266_p3) target bundleno = 354 (0x162), region = 40  ;;  %v2013_v1 = vld [vmem:[%s2589_s1 + $0xc0] sm:$0xff] (!%p266_p3)   ;;  %1814 = vmatprep.subr.bf16.mxu0 (!%p266_p3), %v2012_v0  ;;  %v2017_v5 = vld [vmem:[%s2589_s1 + $0xc8] sm:$0xff] (!%p266_p3)   ;;  %v2021_v9 = vld [vmem:[%s2589_s1 + $0xd0] sm:$0xff] (!%p266_p3)   ;;  %p325_p4 = scmp.lt.s32.totalorder (!%p266_p3), %s1649_s6, 63 }
   0x8   : > { %v2014_v2 = vld [vmem:[%s2589_s1] sm:$0xff] (!%p266_p3)   ;;  %1878 = vmatprep.subr.bf16.mxu1 (!%p266_p3), %v2013_v1  ;;  %v2018_v6 = vld [vmem:[%s2589_s1 + $0x8] sm:$0xff] (!%p266_p3)   ;;  %v2022_v10 = vld [vmem:[%s2589_s1 + $0x10] sm:$0xff] (!%p266_p3)  }
   0x9   : > { %v2015_v3 = vld [vmem:[%s2589_s1 + $0x80] sm:$0xff] (!%p266_p3)   ;;  %1815 = vmatpush3.bf16.msra.mxu0 (!%p266_p3), %v2014_v2  ;;  %v2019_v7 = vld [vmem:[%s2589_s1 + $0x88] sm:$0xff] (!%p266_p3)   ;;  %v2023_v11 = vld [vmem:[%s2589_s1 + $0x90] sm:$0xff] (!%p266_p3)  }
   0xa   : > { %1879 = vmatpush3.bf16.msra.mxu1 (!%p266_p3), %v2015_v3  ;;  %1816 = vmatprep.subr.bf16.mxu0 (!%p266_p3), %v2016_v4  ;;  %v2024_v12 = vld [vmem:[%s2589_s1 + $0x58] sm:$0xff] (!%p266_p3)   ;;  %v2028_v16 = vld [vmem:[%s2589_s1 + $0x60] sm:$0xff] (!%p266_p3)   ;;  %v2032_v20 = vld [vmem:[%s2589_s1 + $0x68] sm:$0xff] (!%p266_p3)  }
   0xb   : > { %1880 = vmatprep.subr.bf16.mxu1 (!%p266_p3), %v2017_v5  ;;  %v2025_v13 = vld [vmem:[%s2589_s1 + $0xd8] sm:$0xff] (!%p266_p3)   ;;  %v2029_v17 = vld [vmem:[%s2589_s1 + $0xe0] sm:$0xff] (!%p266_p3)   ;;  %v2033_v21 = vld [vmem:[%s2589_s1 + $0xe8] sm:$0xff] (!%p266_p3)  }
   0xc   : > { %v2026_v14 = vld [vmem:[%s2589_s1 + $0x18] sm:$0xff] (!%p266_p3)   ;;  %v2030_v18 = vld [vmem:[%s2589_s1 + $0x20] sm:$0xff] (!%p266_p3)   ;;  %v2034_v22 = vld [vmem:[%s2589_s1 + $0x28] sm:$0xff] (!%p266_p3)  }
   0xd   : > { %1817 = vmatpush3.bf16.msra.mxu0 (!%p266_p3), %v2018_v6  ;;  %v2027_v15 = vld [vmem:[%s2589_s1 + $0x98] sm:$0xff] (!%p266_p3)   ;;  %v2031_v19 = vld [vmem:[%s2589_s1 + $0xa0] sm:$0xff] (!%p266_p3)   ;;  %v2035_v23 = vld [vmem:[%s2589_s1 + $0xa8] sm:$0xff] (!%p266_p3)  }
   0xe   : > { %1881 = vmatpush3.bf16.msra.mxu1 %v2019_v7  ;;  %1818 = vmatprep.subr.bf16.mxu0 %v2020_v8  ;;  %s2599_s6 = smov (!%p325_p4, %s1649_s6), 63  ;;  %v2036_v24 = vld [vmem:[%s2589_s1 + $0x70] sm:$0xff]   ;;  %v2040_v28 = vld [vmem:[%s2589_s1 + $0x78] sm:$0xff]   ;;  %v2050_v36 = vld [vmem:[%s2589_s1 + $0x100] sm:$0xff]  }
   0xf   : > { %1882 = vmatprep.subr.bf16.mxu1 %v2021_v9  ;;  %v2037_v25 = vld [vmem:[%s2589_s1 + $0xf0] sm:$0xff]   ;;  %s1986_s8 = smul.u32 20, %s2599_s6  ;;  %v2041_v29 = vld [vmem:[%s2589_s1 + $0xf8] sm:$0xff]   ;;  %v2063_v42 = vld [vmem:[%s2589_s1 + $0x108] sm:$0xff]   ;;  %s1652_s11 = sshll.u32 %s2599_s6, 2 }
  0x10   : > { %v2038_v26 = vld [vmem:[%s2589_s1 + $0x30] sm:$0xff]   ;;  %v2042_v30 = vld [vmem:[%s2589_s1 + $0x38] sm:$0xff]   ;;  %s2392_s14 = scalar_lea.vmem %s2592_s4, %s1652_s11  ;;  %s2507_s24 = scalar_lea.vmem %s2593_s5, %s1652_s11 }
  0x11   : > { %1819 = vmatpush3.bf16.msra.mxu0 %v2022_v10  ;;  %v2039_v27 = vld [vmem:[%s2589_s1 + $0xb0] sm:$0xff]   ;;  %s2276_s22 = scalar_lea.vmem %s2588_s0, %s1986_s8  ;;  %v2043_v31 = vld [vmem:[%s2589_s1 + $0xb8] sm:$0xff]  }
  0x12   : > { %1883 = vmatpush3.bf16.msra.mxu1 %v2023_v11  ;;  %1820 = vmatprep.subr.bf16.mxu0 %v2024_v12  ;;  %v2044_v32 = vld [vmem:[%s2276_s22] ss:$20 sps:$4 sm:$0xff]   ;;  %v2046_v33 = vld [vmem:[%s2276_s22 + $0x4] ss:$20 sps:$4 sm:$0xff]   ;;  %v2047_v34 = vld [vmem:[%s2276_s22 + $0x8] ss:$20 sps:$4 sm:$0xff]  }
  0x13   : > { %1884 = vmatprep.subr.bf16.mxu1 %v2025_v13  ;;  %v2049_v35 = vld [vmem:[%s2276_s22 + $0xc] ss:$20 sps:$4 sm:$0xff]   ;;  %999 = vmatprep.mubr.bf16.mxu0 %v2046_v33  ;;  %v2053_v38 = vld [vmem:[%s2276_s22 + $0x34] ss:$20 sps:$4 sm:$0xff]   ;;  %v2056_v40 = vld [vmem:[%s2276_s22 + $0x30] ss:$20 sps:$4 sm:$0xff]  }
  0x14   : > { %1096 = vmatprep.mubr.bf16.mxu1 %v2049_v35  ;;  %v2051_v37 = vld [vmem:[%s2276_s22 + $0x2c] ss:$20 sps:$4 sm:$0xff]   ;;  %v2055_v39 = vld [vmem:[%s2276_s22 + $0x28] ss:$20 sps:$4 sm:$0xff]   ;;  %v2061_v44 = vld [vmem:[%s2276_s22 + $0x50] ss:$20 sps:$4 sm:$0xff]  }
  0x15   : > { %1821 = vmatpush3.bf16.msra.mxu0 %v2026_v14  ;;  %v2057_v41 = vld [vmem:[%s2276_s22 + $0x54] ss:$20 sps:$4 sm:$0xff]   ;;  %v2059_v43 = vld [vmem:[%s2276_s22 + $0x5c] ss:$20 sps:$4 sm:$0xff]   ;;  %v2062_v45 = vld [vmem:[%s2276_s22 + $0x58] ss:$20 sps:$4 sm:$0xff]  }
  0x16   : > { %1885 = vmatpush3.bf16.msra.mxu1 %v2027_v15  ;;  %1822 = vmatprep.subr.bf16.mxu0 %v2028_v16  ;;  %v2076_v46 = vld [vmem:[%s2589_s1 + $0x110] sm:$0xff]   ;;  %v2066_v48 = vld [vmem:[%s2276_s22 + $0x84] ss:$20 sps:$4 sm:$0xff]   ;;  %v2072_v53 = vld [vmem:[%s2276_s22 + $0xac] ss:$20 sps:$4 sm:$0xff]   ;;  %v2128_v12 = vmov 0.0  }
  0x17   : > { %1886 = vmatprep.subr.bf16.mxu1 %v2029_v17  ;;  %v2064_v47 = vld [vmem:[%s2276_s22 + $0x7c] ss:$20 sps:$4 sm:$0xff]   ;;  %v2068_v50 = vld [vmem:[%s2276_s22 + $0x78] ss:$20 sps:$4 sm:$0xff]   ;;  %v2069_v51 = vld [vmem:[%s2276_s22 + $0x80] ss:$20 sps:$4 sm:$0xff]  }
  0x18   : > { %v2089_v49 = vld [vmem:[%s2589_s1 + $0x118] sm:$0xff]   ;;  %v2074_v54 = vld [vmem:[%s2276_s22 + $0xa0] ss:$20 sps:$4 sm:$0xff]   ;;  %v2082_v59 = vld [vmem:[%s2276_s22 + $0xd0] ss:$20 sps:$4 sm:$0xff]   ;;  %376 = vst.msk [vmem:[#allocation2 + $0x10] sm:$0xff] %vm373_vm0, %v2128_v12 }
  0x19   : > { %1823 = vmatpush3.bf16.msra.mxu0 %v2030_v18  ;;  %v2070_v52 = vld [vmem:[%s2276_s22 + $0xa4] ss:$20 sps:$4 sm:$0xff]   ;;  %v2075_v55 = vld [vmem:[%s2276_s22 + $0xa8] ss:$20 sps:$4 sm:$0xff]   ;;  %v2077_v56 = vld [vmem:[%s2276_s22 + $0xcc] ss:$20 sps:$4 sm:$0xff]  }
  0x1a   : > { %1887 = vmatpush3.bf16.msra.mxu1 %v2031_v19  ;;  %1824 = vmatprep.subr.bf16.mxu0 %v2032_v20  ;;  %v2079_v57 = vld [vmem:[%s2276_s22 + $0xd4] ss:$20 sps:$4 sm:$0xff]   ;;  %v2085_v61 = vld [vmem:[%s2276_s22 + $0xfc] ss:$20 sps:$4 sm:$0xff]   ;;  %v2088_v63 = vld [vmem:[%s2276_s22 + $0xf8] ss:$20 sps:$4 sm:$0xff]  }
  0x1b   : > { %1888 = vmatprep.subr.bf16.mxu1 %v2033_v21  ;;  %v2081_v58 = vld [vmem:[%s2276_s22 + $0xc8] ss:$20 sps:$4 sm:$0xff]   ;;  %v2087_v62 = vld [vmem:[%s2276_s22 + $0xf0] ss:$20 sps:$4 sm:$0xff]   ;;  %v2094_v2 = vld [vmem:[%s2276_s22 + $0x118] ss:$20 sps:$4 sm:$0xff]  }
  0x1c   : > { %v2083_v60 = vld [vmem:[%s2276_s22 + $0xf4] ss:$20 sps:$4 sm:$0xff]   ;;  %v2090_v0 = vld [vmem:[%s2276_s22 + $0x11c] ss:$20 sps:$4 sm:$0xff]   ;;  %v2092_v1 = vld [vmem:[%s2276_s22 + $0x124] ss:$20 sps:$4 sm:$0xff]  }
  0x1d   : > { %1825 = vmatpush3.bf16.msra.mxu0 %v2034_v22  ;;  %v2095_v3 = vld [vmem:[%s2276_s22 + $0x120] ss:$20 sps:$4 sm:$0xff]   ;;  %v2096_v4 = vld [vmem:[%s2276_s22 + $0x10] ss:$20 sps:$4 sm:$0xff]   ;;  %v2098_v6 = vld [vmem:[%s2276_s22 + $0x38] ss:$20 sps:$4 sm:$0xff]  }
  0x1e   : > { %1889 = vmatpush3.bf16.msra.mxu1 %v2035_v23  ;;  %1826 = vmatprep.subr.bf16.mxu0 %v2036_v24  ;;  %v2097_v5 = vld [vmem:[%s2276_s22 + $0xb0] ss:$20 sps:$4 sm:$0xff]   ;;  %v2099_v7 = vld [vmem:[%s2276_s22 + $0xd8] ss:$20 sps:$4 sm:$0xff]   ;;  %v2100_v8 = vld [vmem:[%s2276_s22 + $0x60] ss:$20 sps:$4 sm:$0xff]  }
  0x1f   : > { %1890 = vmatprep.subr.bf16.mxu1 %v2037_v25  ;;  %v2101_v9 = vld [vmem:[%s2276_s22 + $0x100] ss:$20 sps:$4 sm:$0xff]   ;;  %v2102_v10 = vld [vmem:[%s2276_s22 + $0x88] ss:$20 sps:$4 sm:$0xff]   ;;  %374 = vst.msk [vmem:[#allocation2] sm:$0xff] %vm373_vm0, %v2128_v12  ;;  %375 = vst.msk [vmem:[#allocation2 + $0x8] sm:$0xff] %vm373_vm0, %v2128_v12 }
  0x20   : > { %v2103_v11 = vld [vmem:[%s2276_s22 + $0x128] ss:$20 sps:$4 sm:$0xff]   ;;  %377 = vst.msk [vmem:[#allocation2 + $0x18] sm:$0xff] %vm373_vm0, %v2128_v12  ;;  %378 = vst.msk [vmem:[#allocation2 + $0x20] sm:$0xff] %vm373_vm0, %v2128_v12 }
  0x21   : > { %1827 = vmatpush3.bf16.msra.mxu0 %v2038_v26  ;;  %379 = vst.msk [vmem:[#allocation2 + $0x28] sm:$0xff] %vm373_vm0, %v2128_v12  ;;  %380 = vst.msk [vmem:[#allocation2 + $0x30] sm:$0xff] %vm373_vm0, %v2128_v12 }
  0x22   : > { %1891 = vmatpush3.bf16.msra.mxu1 %v2039_v27  ;;  %1828 = vmatprep.subr.bf16.mxu0 %v2040_v28  ;;  %381 = vst.msk [vmem:[#allocation2 + $0x38] sm:$0xff] %vm373_vm0, %v2128_v12  ;;  %382 = vst.msk [vmem:[#allocation2 + $0x40] sm:$0xff] %vm373_vm0, %v2128_v12 }
  0x23   : > { %1892 = vmatprep.subr.bf16.mxu1 %v2041_v29  ;;  %383 = vst.msk [vmem:[#allocation2 + $0x48] sm:$0xff] %vm373_vm0, %v2128_v12  ;;  %384 = vst.msk [vmem:[#allocation2 + $0x50] sm:$0xff] %vm373_vm0, %v2128_v12 }
  0x24   : > { %385 = vst.msk [vmem:[#allocation2 + $0x58] sm:$0xff] %vm373_vm0, %v2128_v12  ;;  %386 = vst.msk [vmem:[#allocation2 + $0x60] sm:$0xff] %vm373_vm0, %v2128_v12 }
  0x25   : > { %1829 = vmatpush3.bf16.msra.mxu0 %v2042_v30  ;;  %387 = vst.msk [vmem:[#allocation2 + $0x68] sm:$0xff] %vm373_vm0, %v2128_v12  ;;  %388 = vst.msk [vmem:[#allocation2 + $0x70] sm:$0xff] %vm373_vm0, %v2128_v12 }
  0x26   : > { %1893 = vmatpush3.bf16.msra.mxu1 %v2043_v31  ;;  %1954 = vmatprep.subr.bf16.mxu0 %v2050_v36  ;;  %389 = vst.msk [vmem:[#allocation2 + $0x78] sm:$0xff] %vm373_vm0, %v2128_v12 }
  0x27   : > { %1978 = vmatprep.subr.bf16.mxu1 %v2050_v36 }
  0x28   : > { %1000 = vmatmul.mubr.bf16.vlgmr.msra.gmra.mrb[0].mxu0 %v2044_v32 }
  0x29   : > { %1097 = vmatmul.mubr.bf16.vlgmr.msra.gmra.mrb[0].mxu1 %v2047_v34  ;;  %1955 = vmatpush3.bf16.msra.mxu0 %v2050_v36 }
  0x2a   : > { %1982 = vmatpush3.bf16.msra.mxu1 %v2050_v36  ;;  %1007 = vmatprep.mubr.bf16.mxu0 %v2051_v37 }
  0x2b   : > { %1104 = vmatprep.mubr.bf16.mxu1 %v2053_v38  ;;  %1956 = vmatprep.subr.bf16.mxu0 %v2063_v42 }
  0x2c   : > { %1979 = vmatprep.subr.bf16.mxu1 %v2063_v42 }
  0x2d   : > { %1957 = vmatpush3.bf16.msra.mxu0 %v2063_v42 }
  0x2e   : > { %1983 = vmatpush3.bf16.msra.mxu1 %v2063_v42  ;;  %1958 = vmatprep.subr.bf16.mxu0 %v2076_v46 }
  0x2f   : > { %1980 = vmatprep.subr.bf16.mxu1 %v2076_v46 }
  0x30   : > { %1008 = vmatmul.mubr.bf16.gmra.mrb[4].mxu0 %v2055_v39 }
  0x31   : > { %1105 = vmatmul.mubr.bf16.gmra.mrb[4].mxu1 %v2056_v40  ;;  %1015 = vmatprep.mubr.bf16.mxu0 %v2057_v41 }
  0x32   : > { %1112 = vmatprep.mubr.bf16.mxu1 %v2059_v43  ;;  %1959 = vmatpush3.bf16.msra.mxu0 %v2076_v46 }
  0x33   : > { %1984 = vmatpush3.bf16.msra.mxu1 %v2076_v46  ;;  %1960 = vmatprep.subr.bf16.mxu0 %v2089_v49 }
  0x34   : > { %1981 = vmatprep.subr.bf16.mxu1 %v2089_v49 }
  0x36   : > { %1961 = vmatpush3.bf16.msra.mxu0 %v2089_v49 }
  0x37   : > { %1985 = vmatpush3.bf16.msra.mxu1 %v2089_v49 }
  0x38   : > { %1016 = vmatmul.mubr.bf16.gmra.mrb[8].mxu0 %v2061_v44 }
  0x39   : > { %1113 = vmatmul.mubr.bf16.gmra.mrb[8].mxu1 %v2062_v45  ;;  %1023 = vmatprep.mubr.bf16.mxu0 %v2064_v47 }
  0x3a   : > { %1120 = vmatprep.mubr.bf16.mxu1 %v2066_v48 }
  0x40   : > { %1024 = vmatmul.mubr.bf16.gmra.mrb[12].mxu0 %v2068_v50 }
  0x41   : > { %1121 = vmatmul.mubr.bf16.gmra.mrb[12].mxu1 %v2069_v51  ;;  %1031 = vmatprep.mubr.bf16.mxu0 %v2070_v52 }
  0x42   : > { %1128 = vmatprep.mubr.bf16.mxu1 %v2072_v53 }
  0x48   : > { %1032 = vmatmul.mubr.bf16.gmra.mrb[16].mxu0 %v2074_v54 }
  0x49   : > { %1129 = vmatmul.mubr.bf16.gmra.mrb[16].mxu1 %v2075_v55  ;;  %1039 = vmatprep.mubr.bf16.mxu0 %v2077_v56 }
  0x4a   : > { %1136 = vmatprep.mubr.bf16.mxu1 %v2079_v57 }
  0x50   : > { %1040 = vmatmul.mubr.bf16.gmra.mrb[20].mxu0 %v2081_v58 }
  0x51   : > { %1137 = vmatmul.mubr.bf16.gmra.mrb[20].mxu1 %v2082_v59  ;;  %1047 = vmatprep.mubr.bf16.mxu0 %v2083_v60 }
  0x52   : > { %1144 = vmatprep.mubr.bf16.mxu1 %v2085_v61 }
  0x58   : > { %1048 = vmatmul.mubr.bf16.gmra.mrb[24].mxu0 %v2087_v62 }
  0x59   : > { %1145 = vmatmul.mubr.bf16.gmra.mrb[24].mxu1 %v2088_v63  ;;  %1055 = vmatprep.mubr.bf16.mxu0 %v2090_v0 }
  0x5a   : > { %1152 = vmatprep.mubr.bf16.mxu1 %v2092_v1 }
  0x60   : > { %1056 = vmatmul.mubr.bf16.gmra.mrb[28].mxu0 %v2094_v2 }
  0x61   : > { %1153 = vmatmul.mubr.bf16.gmra.mrb[28].mxu1 %v2095_v3  ;;  %1962 = vmatprep.mubr.msk.bf16.mxu0 %vm373_vm0, %v2096_v4 }
  0x62   : > { %1970 = vmatprep.mubr.msk.bf16.mxu1 %vm373_vm0, %v2097_v5 }
  0x68   : > { %1963 = vmatmul.mubr.msk.bf16.vlgmr.msra.gmra.mrb[32].mxu0 %vm373_vm0, %v2098_v6 }
  0x69   : > { %1971 = vmatmul.mubr.msk.bf16.vlgmr.msra.gmra.mrb[32].mxu1 %vm373_vm0, %v2099_v7  ;;  %1966 = vmatprep.mubr.msk.bf16.mxu0 %vm373_vm0, %v2100_v8 }
  0x6a   : > { %1974 = vmatprep.mubr.msk.bf16.mxu1 %vm373_vm0, %v2101_v9 }
  0x70   : > { %1967 = vmatmul.mubr.msk.bf16.gmra.mrb[36].mxu0 %vm373_vm0, %v2102_v10 }
  0x71   : > { %1975 = vmatmul.mubr.msk.bf16.gmra.mrb[36].mxu1 %vm373_vm0, %v2103_v11 }
  0xfb   : > { %v1830_v13 = vpop.f32.mrb[0].mxu0 }
  0xfc   : > { %v1894_v14 = vpop.f32.mrb[0].mxu1  ;;  %v1831_v15 = vpop.f32.mrb[1].mxu0 }
  0xfd   : > { %v1832_v16 = vadd.f32 %v1831_v15, %v1830_v13  ;;  %v1895_v17 = vpop.f32.mrb[1].mxu1  ;;  %v1833_v18 = vpop.f32.mrb[2].mxu0 }
  0xfe   : > { %v1896_v19 = vadd.f32 %v1895_v17, %v1894_v14  ;;  %v1897_v20 = vpop.f32.mrb[2].mxu1  ;;  %v1834_v21 = vpop.f32.mrb[3].mxu0 }
  0xff   : > { %v1835_v22 = vadd.f32 %v1834_v21, %v1833_v18  ;;  %v1898_v23 = vpop.f32.mrb[3].mxu1 }
 0x100   : > { %v1899_v24 = vadd.f32 %v1898_v23, %v1897_v20  ;;  %v2360_v25 = vadd.f32 %v1896_v19, %v1832_v16 }
 0x102   : > { %v2362_v26 = vadd.f32 %v1899_v24, %v1835_v22 }
 0x103   : > { %v1836_v27 = vpop.f32.mrb[4].mxu0 }
 0x104   : > { %v1900_v28 = vpop.f32.mrb[4].mxu1  ;;  %v1837_v29 = vpop.f32.mrb[5].mxu0 }
 0x105   : > { %v1838_v30 = vadd.f32 %v1837_v29, %v1836_v27  ;;  %v1901_v31 = vpop.f32.mrb[5].mxu1  ;;  %v1839_v32 = vpop.f32.mrb[6].mxu0 }
 0x106   : > { %v1902_v33 = vadd.f32 %v1901_v31, %v1900_v28  ;;  %v1903_v34 = vpop.f32.mrb[6].mxu1  ;;  %v1840_v35 = vpop.f32.mrb[7].mxu0 }
 0x107   : > { %v1841_v36 = vadd.f32 %v1840_v35, %v1839_v32  ;;  %v1904_v37 = vpop.f32.mrb[7].mxu1 }
 0x108   : > { %v1905_v38 = vadd.f32 %v1904_v37, %v1903_v34  ;;  %v2364_v39 = vadd.f32 %v1902_v33, %v1838_v30 }
 0x10a   : > { %v2366_v40 = vadd.f32 %v1905_v38, %v1841_v36 }
 0x10b   : > { %v1842_v41 = vpop.f32.mrb[8].mxu0 }
 0x10c   : > { %v1906_v42 = vpop.f32.mrb[8].mxu1  ;;  %v1843_v43 = vpop.f32.mrb[9].mxu0 }
 0x10d   : > { %v1844_v44 = vadd.f32 %v1843_v43, %v1842_v41  ;;  %v1907_v45 = vpop.f32.mrb[9].mxu1  ;;  %v1845_v46 = vpop.f32.mrb[10].mxu0 }
 0x10e   : > { %v1908_v47 = vadd.f32 %v1907_v45, %v1906_v42  ;;  %v1909_v48 = vpop.f32.mrb[10].mxu1  ;;  %v1846_v49 = vpop.f32.mrb[11].mxu0 }
 0x10f   : > { %v1847_v50 = vadd.f32 %v1846_v49, %v1845_v46  ;;  %v1910_v51 = vpop.f32.mrb[11].mxu1 }
 0x110   : > { %v1911_v52 = vadd.f32 %v1910_v51, %v1909_v48  ;;  %v2368_v53 = vadd.f32 %v1908_v47, %v1844_v44 }
 0x112   : > { %v2370_v54 = vadd.f32 %v1911_v52, %v1847_v50 }
 0x113   : > { %v1848_v55 = vpop.f32.mrb[12].mxu0 }
 0x114   : > { %v1912_v56 = vpop.f32.mrb[12].mxu1  ;;  %v1849_v57 = vpop.f32.mrb[13].mxu0 }
 0x115   : > { %v1850_v58 = vadd.f32 %v1849_v57, %v1848_v55  ;;  %v1913_v59 = vpop.f32.mrb[13].mxu1  ;;  %v1851_v60 = vpop.f32.mrb[14].mxu0 }
 0x116   : > { %v1914_v61 = vadd.f32 %v1913_v59, %v1912_v56  ;;  %v1915_v62 = vpop.f32.mrb[14].mxu1  ;;  %v1852_v63 = vpop.f32.mrb[15].mxu0 }
 0x117   : > { %v1853_v0 = vadd.f32 %v1852_v63, %v1851_v60  ;;  %v1916_v1 = vpop.f32.mrb[15].mxu1 }
 0x118   : > { %v1917_v2 = vadd.f32 %v1916_v1, %v1915_v62  ;;  %v2372_v3 = vadd.f32 %v1914_v61, %v1850_v58 }
 0x11a   : > { %v2374_v4 = vadd.f32 %v1917_v2, %v1853_v0 }
 0x11b   : > { %v1854_v5 = vpop.f32.mrb[16].mxu0 }
 0x11c   : > { %v1918_v6 = vpop.f32.mrb[16].mxu1  ;;  %v1855_v7 = vpop.f32.mrb[17].mxu0 }
 0x11d   : > { %v1856_v8 = vadd.f32 %v1855_v7, %v1854_v5  ;;  %v1919_v9 = vpop.f32.mrb[17].mxu1  ;;  %v1857_v10 = vpop.f32.mrb[18].mxu0  ;;  %v392_v5 = vld [vmem:[#allocation2 + $0x10] sm:$0xff] }
 0x11e   : > { %v1920_v11 = vadd.f32 %v1919_v9, %v1918_v6  ;;  %v1921_v12 = vpop.f32.mrb[18].mxu1  ;;  %v1858_v13 = vpop.f32.mrb[19].mxu0 }
 0x11f   : > { %v1859_v14 = vadd.f32 %v1858_v13, %v1857_v10  ;;  %v1922_v15 = vpop.f32.mrb[19].mxu1  ;;  %v390_v10 = vld [vmem:[#allocation2] sm:$0xff]  ;;  %v2398_v13 = vld [vmem:[%s2392_s14 + $0x8] sm:$0xff]  }
 0x120   : > { %v1923_v16 = vadd.f32 %v1922_v15, %v1921_v12  ;;  %v2376_v17 = vadd.f32 %v1920_v11, %v1856_v8  ;;  %v400_v8 = vld [vmem:[#allocation2 + $0x50] sm:$0xff]  ;;  %v398_v12 = vld [vmem:[#allocation2 + $0x40] sm:$0xff] }
 0x122   : > { %v2378_v18 = vadd.f32 %v1923_v16, %v1859_v14 }
 0x123   : > { %v1860_v19 = vpop.f32.mrb[20].mxu0 }
 0x124   : > { %v1924_v20 = vpop.f32.mrb[20].mxu1  ;;  %v1861_v21 = vpop.f32.mrb[21].mxu0 }
 0x125   : > { %v1862_v22 = vadd.f32 %v1861_v21, %v1860_v19  ;;  %v1925_v23 = vpop.f32.mrb[21].mxu1  ;;  %v1863_v24 = vpop.f32.mrb[22].mxu0  ;;  %v393_v19 = vld [vmem:[#allocation2 + $0x18] sm:$0xff] }
 0x126   : > { %v1926_v27 = vadd.f32 %v1925_v23, %v1924_v20  ;;  %v1927_v28 = vpop.f32.mrb[22].mxu1  ;;  %v1864_v29 = vpop.f32.mrb[23].mxu0  ;;  %v401_v21 = vld [vmem:[#allocation2 + $0x58] sm:$0xff]  ;;  %v2402_v23 = vld [vmem:[%s2392_s14 + $0x28] sm:$0xff]  }
 0x127   : > { %v1865_v30 = vadd.f32 %v1864_v29, %v1863_v24  ;;  %v1928_v31 = vpop.f32.mrb[23].mxu1  ;;  %v2405_v24 = vld [vmem:[%s2392_s14] sm:$0xff]   ;;  %v391_v29 = vld [vmem:[#allocation2 + $0x8] sm:$0xff] }
 0x128   : > { %v1929_v32 = vadd.f32 %v1928_v31, %v1927_v28  ;;  %v1139_v33 = vadd.f32 %v1926_v27, %v1862_v22 }
 0x12a   : > { %v1142_v34 = vadd.f32 %v1929_v32, %v1865_v30  ;;  %v2410_v32 = vld [vmem:[%s2392_s14 + $0x20] sm:$0xff]  }
 0x12b   : > { %v1866_v35 = vpop.f32.mrb[24].mxu0 }
 0x12c   : > { %v1930_v36 = vpop.f32.mrb[24].mxu1  ;;  %v1867_v37 = vpop.f32.mrb[25].mxu0 }
 0x12d   : > { %v1868_v38 = vadd.f32 %v1867_v37, %v1866_v35  ;;  %v1931_v41 = vpop.f32.mrb[25].mxu1  ;;  %v1869_v42 = vpop.f32.mrb[26].mxu0 }
 0x12e   : > { %v1932_v43 = vadd.f32 %v1931_v41, %v1930_v36  ;;  %v1933_v44 = vpop.f32.mrb[26].mxu1  ;;  %v1870_v45 = vpop.f32.mrb[27].mxu0  ;;  %v399_v36 = vld [vmem:[#allocation2 + $0x48] sm:$0xff] }
 0x12f   : > { %v1871_v46 = vadd.f32 %v1870_v45, %v1869_v42  ;;  %v1934_v47 = vpop.f32.mrb[27].mxu1  ;;  %v2417_v42 = vld [vmem:[%s2392_s14 + $0x18] sm:$0xff]  }
 0x130   : > { %v1935_v48 = vadd.f32 %v1934_v47, %v1933_v44  ;;  %v2380_v49 = vadd.f32 %v1932_v43, %v1868_v38  ;;  %v2420_v43 = vld [vmem:[%s2392_s14 + $0x38] sm:$0xff]   ;;  %v2430_v47 = vld [vmem:[%s2392_s14 + $0x30] sm:$0xff]  }
 0x132   : > { %v2382_v50 = vadd.f32 %v1935_v48, %v1871_v46  ;;  %v2427_v46 = vld [vmem:[%s2392_s14 + $0x10] sm:$0xff]   ;;  %v1782_v48 = vunpack.c.h.bf16 %v2398_v13 }
 0x133   : > { %v1872_v51 = vpop.f32.mrb[28].mxu0 }
 0x134   : > { %v1936_v52 = vpop.f32.mrb[28].mxu1  ;;  %v1873_v55 = vpop.f32.mrb[29].mxu0 }
 0x135   : > { %v1874_v56 = vadd.f32 %v1873_v55, %v1872_v51  ;;  %v1937_v57 = vpop.f32.mrb[29].mxu1  ;;  %v1875_v58 = vpop.f32.mrb[30].mxu0  ;;  %v1798_v51 = vunpack.c.h.bf16 %v2402_v23  ;;  %v1778_v55 = vunpack.c.h.bf16 %v2405_v24 }
 0x136   : > { %v1938_v59 = vadd.f32 %v1937_v57, %v1936_v52  ;;  %v1939_v60 = vpop.f32.mrb[30].mxu1  ;;  %v1876_v61 = vpop.f32.mrb[31].mxu0  ;;  %v396_v57 = vld [vmem:[#allocation2 + $0x30] sm:$0xff] }
 0x137   : > { %v1877_v62 = vadd.f32 %v1876_v61, %v1875_v58  ;;  %v1940_v63 = vpop.f32.mrb[31].mxu1 }
 0x138   : > { %v1941_v0 = vadd.f32 %v1940_v63, %v1939_v60  ;;  %v2385_v1 = vadd.f32 %v1938_v59, %v1874_v56  ;;  %v1794_v56 = vunpack.c.h.bf16 %v2410_v32  ;;  %v1789_v59 = vunpack.c.l.bf16 %v2417_v42 }
 0x139   : > { %v1805_v60 = vunpack.c.l.bf16 %v2420_v43 }
 0x13a   : > { %v2394_v2 = vadd.f32 %v1941_v0, %v1877_v62  ;;  %v404_v62 = vld [vmem:[#allocation2 + $0x70] sm:$0xff]  ;;  %v394_v0 = vld [vmem:[#allocation2 + $0x20] sm:$0xff] }
 0x13b   : > { %v1964_v6 = vpop.f32.mrb[32].mxu0 }
 0x13c   : > { %v1204_v7 = vadd.f32 %v1964_v6, %v2364_v39  ;;  %v1972_v9 = vpop.f32.mrb[32].mxu1  ;;  %v1195_v11 = vpop.f32.mrb[33].mxu0  ;;  %v1785_v6 = vunpack.c.l.bf16 %v2427_v46 }
 0x13d   : > { %v1236_v14 = vadd.f32 %v1972_v9, %v1139_v33  ;;  %v1196_v15 = vadd.f32 %v1195_v11, %v2360_v25  ;;  %v1227_v16 = vpop.f32.mrb[33].mxu1  ;;  %v1965_v20 = vpop.f32.mrb[34].mxu0  ;;  %v2451_v9 = vld [vmem:[%s2590_s2] ss:$0 sm:$0xff] }
 0x13e   : > { %v1260_v22 = vadd.f32 %v1204_v7, %v392_v5  ;;  %v1228_v39 = vadd.f32 %v1227_v16, %v2376_v17  ;;  %v1207_v27 = vadd.f32 %v1965_v20, %v2366_v40  ;;  %v1973_v28 = vpop.f32.mrb[34].mxu1  ;;  %v1198_v30 = vpop.f32.mrb[35].mxu0  ;;  %v1781_v40 = vunpack.c.l.bf16 %v2398_v13 }
 0x13f   : > { %v1268_v31 = vadd.f32 %v1236_v14, %v400_v8  ;;  %v1258_v25 = vadd.f32 %v1196_v15, %v390_v10  ;;  %v1239_v33 = vadd.f32 %v1973_v28, %v1142_v34  ;;  %v1199_v35 = vadd.f32 %v1198_v30, %v2362_v26  ;;  %v1230_v37 = vpop.f32.mrb[35].mxu1  ;;  %v397_v14 = vld [vmem:[#allocation2 + $0x38] sm:$0xff]  ;;  %v395_v28 = vld [vmem:[#allocation2 + $0x28] sm:$0xff]  ;;  %v2463_v30 = vld [vmem:[%s2591_s3] ss:$0 sm:$0xff] }
 0x140   : > { %1276 = vst.msk [vmem:[#allocation2 + $0x10] sm:$0xff] %vm373_vm0, %v1260_v22  ;;  %v1266_v17 = vadd.f32 %v1228_v39, %v398_v12  ;;  %v1261_v38 = vadd.f32 %v1207_v27, %v393_v19  ;;  %v1231_v41 = vadd.f32 %v1230_v37, %v2378_v18  ;;  %v1797_v26 = vunpack.c.l.bf16 %v2402_v23  ;;  %v405_v39 = vld [vmem:[#allocation2 + $0x78] sm:$0xff] }
 0x141   : > { %1284 = vst.msk [vmem:[#allocation2 + $0x50] sm:$0xff] %vm373_vm0, %v1268_v31  ;;  %1274 = vst.msk [vmem:[#allocation2] sm:$0xff] %vm373_vm0, %v1258_v25  ;;  %v1777_v34 = vunpack.c.l.bf16 %v2405_v24  ;;  %v1269_v44 = vadd.f32 %v1239_v33, %v401_v21  ;;  %v1259_v45 = vadd.f32 %v1199_v35, %v391_v29  ;;  %v1793_v18 = vunpack.c.l.bf16 %v2410_v32 }
 0x142   : > { %1282 = vst.msk [vmem:[#allocation2 + $0x40] sm:$0xff] %vm373_vm0, %v1266_v17  ;;  %1277 = vst.msk [vmem:[#allocation2 + $0x18] sm:$0xff] %vm373_vm0, %v1261_v38  ;;  %v1267_v52 = vadd.f32 %v1231_v41, %v399_v36  ;;  %v1801_v7 = vunpack.c.l.bf16 %v2430_v47  ;;  %v1790_v8 = vunpack.c.h.bf16 %v2417_v42  ;;  %v1806_v16 = vunpack.c.h.bf16 %v2420_v43 }
 0x143   : > { %1285 = vst.msk [vmem:[#allocation2 + $0x58] sm:$0xff] %vm373_vm0, %v1269_v44  ;;  %1275 = vst.msk [vmem:[#allocation2 + $0x8] sm:$0xff] %vm373_vm0, %v1259_v45  ;;  %v1968_v58 = vpop.f32.mrb[36].mxu0  ;;  %v1786_v19 = vunpack.c.h.bf16 %v2427_v46 }
 0x144   : > { %1283 = vst.msk [vmem:[#allocation2 + $0x48] sm:$0xff] %vm373_vm0, %v1267_v52  ;;  %v1220_v61 = vadd.f32 %v1968_v58, %v2372_v3  ;;  %v1976_v63 = vpop.f32.mrb[36].mxu1  ;;  %v1211_v5 = vpop.f32.mrb[37].mxu0  ;;  %v402_v3 = vld [vmem:[#allocation2 + $0x60] sm:$0xff] }
 0x145   : > { %v1252_v10 = vadd.f32 %v1976_v63, %v2385_v1  ;;  %v1212_v11 = vadd.f32 %v1211_v5, %v2368_v53  ;;  %v1243_v12 = vpop.f32.mrb[37].mxu1  ;;  %v1969_v15 = vpop.f32.mrb[38].mxu0  ;;  %v1802_v1 = vunpack.c.h.bf16 %v2430_v47 }
 0x146   : > { %v1264_v20 = vadd.f32 %v1220_v61, %v396_v57  ;;  %v1244_v21 = vadd.f32 %v1243_v12, %v2380_v49  ;;  %v1223_v22 = vadd.f32 %v1969_v15, %v2374_v4  ;;  %v1977_v27 = vpop.f32.mrb[38].mxu1  ;;  %v1214_v29 = vpop.f32.mrb[39].mxu0  ;;  %v403_v4 = vld [vmem:[#allocation2 + $0x68] sm:$0xff] }
 0x147   : > { %v1295_v53 = vld [vmem:[#allocation2 + $0x10] sm:$0xff]  ;;  %v1272_v31 = vadd.f32 %v1252_v10, %v404_v62  ;;  %v1262_v25 = vadd.f32 %v1212_v11, %v394_v0  ;;  %v1255_v33 = vadd.f32 %v1977_v27, %v2394_v2  ;;  %v1215_v49 = vadd.f32 %v1214_v29, %v2370_v54  ;;  %v1246_v35 = vpop.f32.mrb[39].mxu1 }
 0x148   : > { %v1318_v36 = vmul.f32 %v2451_v9, %v1295_v53  ;;  %v1303_v37 = vld [vmem:[#allocation2 + $0x50] sm:$0xff]  ;;  %v1293_v17 = vld [vmem:[#allocation2] sm:$0xff]  ;;  %1280 = vst.msk [vmem:[#allocation2 + $0x30] sm:$0xff] %vm373_vm0, %v1264_v20  ;;  %v1270_v38 = vadd.f32 %v1244_v21, %v402_v3  ;;  %v1265_v41 = vadd.f32 %v1223_v22, %v397_v14  ;;  %v1247_v44 = vadd.f32 %v1246_v35, %v2382_v50 }
 0x149   : > { %v1326_v45 = vmul.f32 %v2451_v9, %v1303_v37  ;;  %v1316_v52 = vmul.f32 %v2451_v9, %v1293_v17  ;;  %v1301_v57 = vld [vmem:[#allocation2 + $0x40] sm:$0xff]  ;;  %v1296_v2 = vld [vmem:[#allocation2 + $0x18] sm:$0xff]  ;;  %1288 = vst.msk [vmem:[#allocation2 + $0x70] sm:$0xff] %vm373_vm0, %v1272_v31  ;;  %1278 = vst.msk [vmem:[#allocation2 + $0x20] sm:$0xff] %vm373_vm0, %v1262_v25  ;;  %v1273_v54 = vadd.f32 %v1255_v33, %v405_v39 }
 0x14a   : > { %v1263_v58 = vadd.f32 %v1215_v49, %v395_v28  ;;  %v1341_v61 = vadd.f32 %v2463_v30, %v1318_v36  ;;  %v1324_v62 = vmul.f32 %v2451_v9, %v1301_v57  ;;  %v1319_v63 = vmul.f32 %v2451_v9, %v1296_v2  ;;  %v1304_v0 = vld [vmem:[#allocation2 + $0x58] sm:$0xff]  ;;  %v1294_v50 = vld [vmem:[#allocation2 + $0x8] sm:$0xff]  ;;  %1286 = vst.msk [vmem:[#allocation2 + $0x60] sm:$0xff] %vm373_vm0, %v1270_v38 }
 0x14b   : > { %1281 = vst.msk [vmem:[#allocation2 + $0x38] sm:$0xff] %vm373_vm0, %v1265_v41  ;;  %v1271_v5 = vadd.f32 %v1247_v44, %v403_v4  ;;  %v1349_v10 = vadd.f32 %v2463_v30, %v1326_v45  ;;  %v1339_v11 = vadd.f32 %v2463_v30, %v1316_v52  ;;  %v1327_v3 = vmul.f32 %v2451_v9, %v1304_v0  ;;  %v1302_v14 = vld [vmem:[#allocation2 + $0x48] sm:$0xff] }
 0x14c   : > { %v1317_v12 = vmul.f32 %v2451_v9, %v1294_v50  ;;  %1289 = vst.msk [vmem:[#allocation2 + $0x78] sm:$0xff] %vm373_vm0, %v1273_v54  ;;  %1279 = vst.msk [vmem:[#allocation2 + $0x28] sm:$0xff] %vm373_vm0, %v1263_v58  ;;  %v1389_v15 = vadd.f32 %v1781_v40, %v1341_v61  ;;  %v1347_v20 = vadd.f32 %v2463_v30, %v1324_v62 }
 0x14d   : > { %v1342_v21 = vadd.f32 %v2463_v30, %v1319_v63  ;;  %v1325_v22 = vmul.f32 %v2451_v9, %v1302_v14  ;;  %1287 = vst.msk [vmem:[#allocation2 + $0x68] sm:$0xff] %vm373_vm0, %v1271_v5  ;;  %v1397_v39 = vadd.f32 %v1797_v26, %v1349_v10  ;;  %v1387_v27 = vadd.f32 %v1777_v34, %v1339_v11 }
 0x14e   : > { %v1350_v28 = vadd.f32 %v2463_v30, %v1327_v3  ;;  %v1340_v29 = vadd.f32 %v2463_v30, %v1317_v12  ;;  %v1405_v53 = vmax.f32 %v1389_v15, 0.0  ;;  %v1395_v40 = vadd.f32 %v1793_v18, %v1347_v20 }
 0x14f   : > { %v1390_v31 = vadd.f32 %v1782_v48, %v1342_v21  ;;  %v1348_v25 = vadd.f32 %v2463_v30, %v1325_v22  ;;  %v1413_v26 = vmax.f32 %v1397_v39, 0.0  ;;  %v1403_v34 = vmax.f32 %v1387_v27, 0.0  ;;  %v1299_v49 = vld [vmem:[#allocation2 + $0x30] sm:$0xff] }
 0x150   : > { %v1398_v33 = vadd.f32 %v1798_v51, %v1350_v28  ;;  %v1388_v18 = vadd.f32 %v1778_v55, %v1340_v29  ;;  %v1761_v13 = vpack.c.bf16 %v1405_v53, %v1405_v53  ;;  %v1411_v48 = vmax.f32 %v1395_v40, 0.0  ;;  %v1307_v36 = vld [vmem:[#allocation2 + $0x70] sm:$0xff]  ;;  %v1297_v37 = vld [vmem:[#allocation2 + $0x20] sm:$0xff] }
 0x151   : > { %v1406_v4 = vmax.f32 %v1390_v31, 0.0  ;;  %v1396_v35 = vadd.f32 %v1794_v56, %v1348_v25  ;;  %v1769_v17 = vpack.c.bf16 %v1413_v26, %v1413_v26  ;;  %v1759_v38 = vpack.c.bf16 %v1403_v34, %v1403_v34  ;;  %v1305_v44 = vld [vmem:[#allocation2 + $0x60] sm:$0xff] }
 0x152   : > { %v1414_v41 = vmax.f32 %v1398_v33, 0.0  ;;  %v1404_v23 = vmax.f32 %v1388_v18, 0.0  ;;  %v1300_v51 = vld [vmem:[#allocation2 + $0x38] sm:$0xff]  ;;  %1486 = vst.msk [vmem:[%s2507_s24 + $0x8] sm:$0xf] %vm1483_vm1, %v1761_v13  ;;  %v1767_v24 = vpack.c.bf16 %v1411_v48, %v1411_v48  ;;  %v1322_v32 = vmul.f32 %v2451_v9, %v1299_v49 }
 0x153   : > { %v1762_v55 = vpack.c.bf16 %v1406_v4, %v1406_v4  ;;  %v1412_v45 = vmax.f32 %v1396_v35, 0.0  ;;  %v1308_v56 = vld [vmem:[#allocation2 + $0x78] sm:$0xff]  ;;  %v1298_v52 = vld [vmem:[#allocation2 + $0x28] sm:$0xff]  ;;  %1494 = vst.msk [vmem:[%s2507_s24 + $0x28] sm:$0xf] %vm1483_vm1, %v1769_v17  ;;  %v1330_v54 = vmul.f32 %v2451_v9, %v1307_v36  ;;  %v1320_v58 = vmul.f32 %v2451_v9, %v1297_v37 }
 0x154   : > { %1484 = vst.msk [vmem:[%s2507_s24] sm:$0xf] %vm1483_vm1, %v1759_v38  ;;  %v1770_v57 = vpack.c.bf16 %v1414_v41, %v1414_v41  ;;  %v1760_v2 = vpack.c.bf16 %v1404_v23, %v1404_v23  ;;  %v1306_v61 = vld [vmem:[#allocation2 + $0x68] sm:$0xff]  ;;  %1492 = vst.msk [vmem:[%s2507_s24 + $0x20] sm:$0xf] %vm1483_vm1, %v1767_v24  ;;  %v1345_v63 = vadd.f32 %v2463_v30, %v1322_v32 }
 0x155   : > { %1487 = vst.msk [vmem:[%s2507_s24 + $0xc] sm:$0xf] %vm1483_vm1, %v1762_v55  ;;  %v1768_v62 = vpack.c.bf16 %v1412_v45, %v1412_v45  ;;  %v1328_v0 = vmul.f32 %v2451_v9, %v1305_v44  ;;  %v1323_v50 = vmul.f32 %v2451_v9, %v1300_v51  ;;  %v1353_v5 = vadd.f32 %v2463_v30, %v1330_v54 }
 0x156   : > { %1495 = vst.msk [vmem:[%s2507_s24 + $0x2c] sm:$0xf] %vm1483_vm1, %v1770_v57  ;;  %1485 = vst.msk [vmem:[%s2507_s24 + $0x4] sm:$0xf] %vm1483_vm1, %v1760_v2  ;;  %v1343_v10 = vadd.f32 %v2463_v30, %v1320_v58  ;;  %v1331_v11 = vmul.f32 %v2451_v9, %v1308_v56  ;;  %v1321_v3 = vmul.f32 %v2451_v9, %v1298_v52 }
 0x157   : > { %1493 = vst.msk [vmem:[%s2507_s24 + $0x24] sm:$0xf] %vm1483_vm1, %v1768_v62  ;;  %v1393_v12 = vadd.f32 %v1789_v59, %v1345_v63  ;;  %v1351_v14 = vadd.f32 %v2463_v30, %v1328_v0  ;;  %v1346_v15 = vadd.f32 %v2463_v30, %v1323_v50  ;;  %v1329_v20 = vmul.f32 %v2451_v9, %v1306_v61 }
 0x158   : > { %v1401_v21 = vadd.f32 %v1805_v60, %v1353_v5  ;;  %v1391_v22 = vadd.f32 %v1785_v6, %v1343_v10  ;;  %v1354_v39 = vadd.f32 %v2463_v30, %v1331_v11  ;;  %v1344_v27 = vadd.f32 %v2463_v30, %v1321_v3 }
 0x159   : > { %v1409_v28 = vmax.f32 %v1393_v12, 0.0  ;;  %v1399_v59 = vadd.f32 %v1801_v7, %v1351_v14  ;;  %v1394_v29 = vadd.f32 %v1790_v8, %v1346_v15  ;;  %v1352_v9 = vadd.f32 %v2463_v30, %v1329_v20 }
 0x15a   : > { %v1417_v53 = vmax.f32 %v1401_v21, 0.0  ;;  %v1407_v60 = vmax.f32 %v1391_v22, 0.0  ;;  %v1402_v6 = vadd.f32 %v1806_v16, %v1354_v39  ;;  %v1392_v40 = vadd.f32 %v1786_v19, %v1344_v27 }
 0x15b   : > { %v1765_v31 = vpack.c.bf16 %v1409_v28, %v1409_v28  ;;  %v1415_v25 = vmax.f32 %v1399_v59, 0.0  ;;  %v1410_v7 = vmax.f32 %v1394_v29, 0.0  ;;  %v1400_v42 = vadd.f32 %v1802_v1, %v1352_v9 }
 0x15c   : > { %v1773_v8 = vpack.c.bf16 %v1417_v53, %v1417_v53  ;;  %v1763_v30 = vpack.c.bf16 %v1407_v60, %v1407_v60  ;;  %v1418_v26 = vmax.f32 %v1402_v6, 0.0  ;;  %v1408_v43 = vmax.f32 %v1392_v40, 0.0 }
 0x15d   : > { %1490 = vst.msk [vmem:[%s2507_s24 + $0x18] sm:$0xf] %vm1483_vm1, %v1765_v31  ;;  %v1771_v16 = vpack.c.bf16 %v1415_v25, %v1415_v25  ;;  %v1766_v46 = vpack.c.bf16 %v1410_v7, %v1410_v7  ;;  %v1416_v19 = vmax.f32 %v1400_v42, 0.0 }
 0x15e   : > { %1498 = vst.msk [vmem:[%s2507_s24 + $0x38] sm:$0xf] %vm1483_vm1, %v1773_v8  ;;  %1488 = vst.msk [vmem:[%s2507_s24 + $0x10] sm:$0xf] %vm1483_vm1, %v1763_v30  ;;  %v1774_v34 = vpack.c.bf16 %v1418_v26, %v1418_v26  ;;  %v1764_v33 = vpack.c.bf16 %v1408_v43, %v1408_v43 }
 0x15f   : > { %1496 = vst.msk [vmem:[%s2507_s24 + $0x30] sm:$0xf] %vm1483_vm1, %v1771_v16  ;;  %1491 = vst.msk [vmem:[%s2507_s24 + $0x1c] sm:$0xf] %vm1483_vm1, %v1766_v46  ;;  %v1772_v47 = vpack.c.bf16 %v1416_v19, %v1416_v19 }
 0x160   : > { %1499 = vst.msk [vmem:[%s2507_s24 + $0x3c] sm:$0xf] %vm1483_vm1, %v1774_v34  ;;  %1489 = vst.msk [vmem:[%s2507_s24 + $0x14] sm:$0xf] %vm1483_vm1, %v1764_v33 }
 0x161   : > { %1497 = vst.msk [vmem:[%s2507_s24 + $0x34] sm:$0xf] %vm1483_vm1, %v1772_v47 }
 0x162 PF: > { %s15_s20 = sadd.s32 1, %s2126_s20   ;;  %s2594_s18 = smov %s2122_s19 }
 0x163   : > { %p12_p5 = scmp.ge.s32.totalorder %s15_s20, 6   ;;  %s2595_s19 = smov %s2597_s21 }
 0x165   :  { %14 = sbr.rel (!%p12_p5) target bundleno = 2 (0x2), region = 90 }

// kernel: _lambda_.31
= control target key start
LH: loop header
LB: loop body
LE: loop exit
PB: predicated region body
PF: predicated region fallthrough
CT: control target
= control target key end

     0   :  { %s1545_s15 = smov 0   ;;  %s1547_s16 = smov 0   ;;  %s1721_s0 = inlined_call_operand.vmem [shape: bf16[128,576], index: 0, kind: input, shape index: {}]   ;;  %s1722_s1 = inlined_call_operand.vmem [shape: bf16[576,128], index: 1, kind: input, shape index: {}]   ;;  %s1723_s2 = inlined_call_operand.vmem [shape: f32[1,128], index: 2, kind: input, shape index: {}]   ;;  %s1724_s3 = inlined_call_operand.vmem [shape: f32[1,128], index: 3, kind: input, shape index: {}]   ;;  %s1725_s4 = inlined_call_operand.vmem [shape: bf16[128,128], index: 4, kind: output, shape index: {}]  }
   0x1   :  { %s1549_s17 = smov 0  }
   0x2 LB: > { %s33_s18 = sadd.s32 1, %s1514_s16  ;;  %p1187_p0 = scmp.ge.s32.totalorder %s1518_s17, 1  ;;  %s1518_s17 = sphi %s1549_s17, %s14_s17   ;;  %s1514_s16 = sphi %s1547_s16, %s1727_s16   ;;  %s1510_s15 = sphi %s1545_s15, %s1726_s15  }
   0x3   : > { %p35_p1 = scmp.ge.s32.totalorder %s33_s18, 2  ;;  %p224_p2 = scmp.lt.s32.totalorder %s1518_s17, 3 }
   0x5   : > { %s1729_s18 = smov (%p35_p1, %s33_s18), 0  ;;  %p225_p3 = pnand %p1187_p0, %p224_p2 }
   0x6   : > { %v1432_v0 = vld [vmem:[%s1722_s1 + $0x40] sm:$0xff] (!%p225_p3)   ;;  %v1436_v4 = vld [vmem:[%s1722_s1 + $0x48] sm:$0xff] (!%p225_p3)   ;;  %v1440_v8 = vld [vmem:[%s1722_s1 + $0x50] sm:$0xff] (!%p225_p3)   ;;  %s1188_s27 = sshll.u32 (!%p225_p3), %s1510_s15, 3  ;;  %vm741_vm0 = vcmask (!%p225_p3), 523264  }
   0x7   : > { %228 = sbr.rel (%p225_p3) target bundleno = 299 (0x12b), region = 36  ;;  %v1433_v1 = vld [vmem:[%s1722_s1 + $0xc0] sm:$0xff] (!%p225_p3)   ;;  %1295 = vmatprep.subr.bf16.mxu0 (!%p225_p3), %v1432_v0  ;;  %v1437_v5 = vld [vmem:[%s1722_s1 + $0xc8] sm:$0xff] (!%p225_p3)   ;;  %v1441_v9 = vld [vmem:[%s1722_s1 + $0xd0] sm:$0xff] (!%p225_p3)   ;;  %p274_p4 = scmp.lt.s32.totalorder (!%p225_p3), %s1188_s27, 15 }
   0x8   : > { %v1434_v2 = vld [vmem:[%s1722_s1] sm:$0xff] (!%p225_p3)   ;;  %1335 = vmatprep.subr.bf16.mxu1 (!%p225_p3), %v1433_v1  ;;  %v1438_v6 = vld [vmem:[%s1722_s1 + $0x8] sm:$0xff] (!%p225_p3)   ;;  %v1442_v10 = vld [vmem:[%s1722_s1 + $0x10] sm:$0xff] (!%p225_p3)  }
   0x9   : > { %v1435_v3 = vld [vmem:[%s1722_s1 + $0x80] sm:$0xff] (!%p225_p3)   ;;  %1296 = vmatpush3.bf16.msra.mxu0 (!%p225_p3), %v1434_v2  ;;  %v1439_v7 = vld [vmem:[%s1722_s1 + $0x88] sm:$0xff] (!%p225_p3)   ;;  %v1443_v11 = vld [vmem:[%s1722_s1 + $0x90] sm:$0xff] (!%p225_p3)  }
   0xa   : > { %1336 = vmatpush3.bf16.msra.mxu1 (!%p225_p3), %v1435_v3  ;;  %1297 = vmatprep.subr.bf16.mxu0 (!%p225_p3), %v1436_v4  ;;  %v1444_v12 = vld [vmem:[%s1722_s1 + $0x58] sm:$0xff] (!%p225_p3)   ;;  %v1448_v16 = vld [vmem:[%s1722_s1 + $0x60] sm:$0xff] (!%p225_p3)   ;;  %v1452_v20 = vld [vmem:[%s1722_s1 + $0x68] sm:$0xff] (!%p225_p3)  }
   0xb   : > { %1337 = vmatprep.subr.bf16.mxu1 (!%p225_p3), %v1437_v5  ;;  %v1445_v13 = vld [vmem:[%s1722_s1 + $0xd8] sm:$0xff] (!%p225_p3)   ;;  %v1449_v17 = vld [vmem:[%s1722_s1 + $0xe0] sm:$0xff] (!%p225_p3)   ;;  %v1453_v21 = vld [vmem:[%s1722_s1 + $0xe8] sm:$0xff] (!%p225_p3)  }
   0xc   : > { %v1446_v14 = vld [vmem:[%s1722_s1 + $0x18] sm:$0xff] (!%p225_p3)   ;;  %v1450_v18 = vld [vmem:[%s1722_s1 + $0x20] sm:$0xff] (!%p225_p3)   ;;  %v1454_v22 = vld [vmem:[%s1722_s1 + $0x28] sm:$0xff] (!%p225_p3)  }
   0xd   : > { %1298 = vmatpush3.bf16.msra.mxu0 (!%p225_p3), %v1438_v6  ;;  %v1447_v15 = vld [vmem:[%s1722_s1 + $0x98] sm:$0xff] (!%p225_p3)   ;;  %v1451_v19 = vld [vmem:[%s1722_s1 + $0xa0] sm:$0xff] (!%p225_p3)   ;;  %v1455_v23 = vld [vmem:[%s1722_s1 + $0xa8] sm:$0xff] (!%p225_p3)  }
   0xe   : > { %1338 = vmatpush3.bf16.msra.mxu1 %v1439_v7  ;;  %1299 = vmatprep.subr.bf16.mxu0 %v1440_v8  ;;  %s1731_s27 = smov (!%p274_p4, %s1188_s27), 15  ;;  %v1456_v24 = vld [vmem:[%s1722_s1 + $0x70] sm:$0xff]   ;;  %v1460_v28 = vld [vmem:[%s1722_s1 + $0x78] sm:$0xff]   ;;  %v1470_v36 = vld [vmem:[%s1722_s1 + $0x100] sm:$0xff]  }
   0xf   : > { %1339 = vmatprep.subr.bf16.mxu1 %v1441_v9  ;;  %v1457_v25 = vld [vmem:[%s1722_s1 + $0xf0] sm:$0xff]   ;;  %s1407_s28 = smul.u32 20, %s1731_s27  ;;  %v1461_v29 = vld [vmem:[%s1722_s1 + $0xf8] sm:$0xff]   ;;  %v1477_v39 = vld [vmem:[%s1722_s1 + $0x108] sm:$0xff]   ;;  %s1191_s8 = sshll.u32 %s1731_s27, 2 }
  0x10   : > { %v1458_v26 = vld [vmem:[%s1722_s1 + $0x30] sm:$0xff]   ;;  %v1462_v30 = vld [vmem:[%s1722_s1 + $0x38] sm:$0xff]   ;;  %s306_s10 = scalar_lea.vmem %s1725_s4, %s1191_s8 }
  0x11   : > { %1300 = vmatpush3.bf16.msra.mxu0 %v1442_v10  ;;  %v1459_v27 = vld [vmem:[%s1722_s1 + $0xb0] sm:$0xff]   ;;  %s1662_s12 = scalar_lea.vmem %s1721_s0, %s1407_s28  ;;  %v1463_v31 = vld [vmem:[%s1722_s1 + $0xb8] sm:$0xff]  }
  0x12   : > { %1340 = vmatpush3.bf16.msra.mxu1 %v1443_v11  ;;  %1301 = vmatprep.subr.bf16.mxu0 %v1444_v12  ;;  %v1464_v32 = vld [vmem:[%s1662_s12] ss:$20 sps:$4 sm:$0xff]   ;;  %v1466_v33 = vld [vmem:[%s1662_s12 + $0x4] ss:$20 sps:$4 sm:$0xff]   ;;  %v1467_v34 = vld [vmem:[%s1662_s12 + $0x8] ss:$20 sps:$4 sm:$0xff]  }
  0x13   : > { %1341 = vmatprep.subr.bf16.mxu1 %v1445_v13  ;;  %v1469_v35 = vld [vmem:[%s1662_s12 + $0xc] ss:$20 sps:$4 sm:$0xff]   ;;  %786 = vmatprep.mubr.bf16.mxu0 %v1466_v33  ;;  %v1473_v38 = vld [vmem:[%s1662_s12 + $0x34] ss:$20 sps:$4 sm:$0xff]   ;;  %v1476_v41 = vld [vmem:[%s1662_s12 + $0x30] ss:$20 sps:$4 sm:$0xff]  }
  0x14   : > { %851 = vmatprep.mubr.bf16.mxu1 %v1469_v35  ;;  %v1471_v37 = vld [vmem:[%s1662_s12 + $0x2c] ss:$20 sps:$4 sm:$0xff]   ;;  %v1475_v40 = vld [vmem:[%s1662_s12 + $0x28] ss:$20 sps:$4 sm:$0xff]   ;;  %v1484_v44 = vld [vmem:[%s1722_s1 + $0x110] sm:$0xff]  }
  0x15   : > { %1302 = vmatpush3.bf16.msra.mxu0 %v1446_v14  ;;  %v1478_v42 = vld [vmem:[%s1662_s12 + $0x54] ss:$20 sps:$4 sm:$0xff]   ;;  %v1480_v43 = vld [vmem:[%s1662_s12 + $0x5c] ss:$20 sps:$4 sm:$0xff]   ;;  %v1483_v47 = vld [vmem:[%s1662_s12 + $0x58] ss:$20 sps:$4 sm:$0xff]  }
  0x16   : > { %1342 = vmatpush3.bf16.msra.mxu1 %v1447_v15  ;;  %1303 = vmatprep.subr.bf16.mxu0 %v1448_v16  ;;  %v1491_v45 = vld [vmem:[%s1722_s1 + $0x118] sm:$0xff]   ;;  %v1482_v46 = vld [vmem:[%s1662_s12 + $0x50] ss:$20 sps:$4 sm:$0xff]   ;;  %v1490_v51 = vld [vmem:[%s1662_s12 + $0x80] ss:$20 sps:$4 sm:$0xff]  }
  0x17   : > { %1343 = vmatprep.subr.bf16.mxu1 %v1449_v17  ;;  %v1485_v48 = vld [vmem:[%s1662_s12 + $0x7c] ss:$20 sps:$4 sm:$0xff]   ;;  %v1487_v49 = vld [vmem:[%s1662_s12 + $0x84] ss:$20 sps:$4 sm:$0xff]   ;;  %v1493_v53 = vld [vmem:[%s1662_s12 + $0x60] ss:$20 sps:$4 sm:$0xff]  }
  0x18   : > { %v1489_v50 = vld [vmem:[%s1662_s12 + $0x78] ss:$20 sps:$4 sm:$0xff]   ;;  %v1492_v52 = vld [vmem:[%s1662_s12 + $0x10] ss:$20 sps:$4 sm:$0xff]   ;;  %v1495_v55 = vld [vmem:[%s1662_s12 + $0x88] ss:$20 sps:$4 sm:$0xff]  }
  0x19   : > { %1304 = vmatpush3.bf16.msra.mxu0 %v1450_v18  ;;  %v1494_v54 = vld [vmem:[%s1662_s12 + $0x38] ss:$20 sps:$4 sm:$0xff]  }
  0x1a   : > { %1344 = vmatpush3.bf16.msra.mxu1 %v1451_v19  ;;  %1305 = vmatprep.subr.bf16.mxu0 %v1452_v20 }
  0x1b   : > { %1345 = vmatprep.subr.bf16.mxu1 %v1453_v21 }
  0x1d   : > { %1306 = vmatpush3.bf16.msra.mxu0 %v1454_v22 }
  0x1e   : > { %1346 = vmatpush3.bf16.msra.mxu1 %v1455_v23  ;;  %1307 = vmatprep.subr.bf16.mxu0 %v1456_v24 }
  0x1f   : > { %1347 = vmatprep.subr.bf16.mxu1 %v1457_v25 }
  0x21   : > { %1308 = vmatpush3.bf16.msra.mxu0 %v1458_v26 }
  0x22   : > { %1348 = vmatpush3.bf16.msra.mxu1 %v1459_v27  ;;  %1309 = vmatprep.subr.bf16.mxu0 %v1460_v28 }
  0x23   : > { %1349 = vmatprep.subr.bf16.mxu1 %v1461_v29 }
  0x25   : > { %1310 = vmatpush3.bf16.msra.mxu0 %v1462_v30 }
  0x26   : > { %1350 = vmatpush3.bf16.msra.mxu1 %v1463_v31  ;;  %1383 = vmatprep.subr.bf16.mxu0 %v1470_v36 }
  0x27   : > { %1399 = vmatprep.subr.bf16.mxu1 %v1470_v36 }
  0x28   : > { %787 = vmatmul.mubr.bf16.vlgmr.msra.gmra.mrb[0].mxu0 %v1464_v32 }
  0x29   : > { %852 = vmatmul.mubr.bf16.vlgmr.msra.gmra.mrb[0].mxu1 %v1467_v34  ;;  %1384 = vmatpush3.bf16.msra.mxu0 %v1470_v36 }
  0x2a   : > { %1403 = vmatpush3.bf16.msra.mxu1 %v1470_v36  ;;  %794 = vmatprep.mubr.bf16.mxu0 %v1471_v37 }
  0x2b   : > { %859 = vmatprep.mubr.bf16.mxu1 %v1473_v38  ;;  %1385 = vmatprep.subr.bf16.mxu0 %v1477_v39 }
  0x2c   : > { %1400 = vmatprep.subr.bf16.mxu1 %v1477_v39 }
  0x2d   : > { %1386 = vmatpush3.bf16.msra.mxu0 %v1477_v39 }
  0x2e   : > { %1404 = vmatpush3.bf16.msra.mxu1 %v1477_v39  ;;  %1387 = vmatprep.subr.bf16.mxu0 %v1484_v44 }
  0x2f   : > { %1401 = vmatprep.subr.bf16.mxu1 %v1484_v44 }
  0x30   : > { %795 = vmatmul.mubr.bf16.gmra.mrb[4].mxu0 %v1475_v40 }
  0x31   : > { %860 = vmatmul.mubr.bf16.gmra.mrb[4].mxu1 %v1476_v41  ;;  %802 = vmatprep.mubr.bf16.mxu0 %v1478_v42 }
  0x32   : > { %867 = vmatprep.mubr.bf16.mxu1 %v1480_v43  ;;  %1388 = vmatpush3.bf16.msra.mxu0 %v1484_v44 }
  0x33   : > { %1405 = vmatpush3.bf16.msra.mxu1 %v1484_v44  ;;  %1389 = vmatprep.subr.bf16.mxu0 %v1491_v45 }
  0x34   : > { %1402 = vmatprep.subr.bf16.mxu1 %v1491_v45 }
  0x36   : > { %1390 = vmatpush3.bf16.msra.mxu0 %v1491_v45 }
  0x37   : > { %1406 = vmatpush3.bf16.msra.mxu1 %v1491_v45 }
  0x38   : > { %803 = vmatmul.mubr.bf16.gmra.mrb[8].mxu0 %v1482_v46 }
  0x39   : > { %868 = vmatmul.mubr.bf16.gmra.mrb[8].mxu1 %v1483_v47  ;;  %810 = vmatprep.mubr.bf16.mxu0 %v1485_v48 }
  0x3a   : > { %875 = vmatprep.mubr.bf16.mxu1 %v1487_v49  ;;  %v1252_v49 = vld [vmem:[%s1723_s2] ss:$0 sm:$0xff] }
  0x40   : > { %811 = vmatmul.mubr.bf16.gmra.mrb[12].mxu0 %v1489_v50 }
  0x41   : > { %876 = vmatmul.mubr.bf16.gmra.mrb[12].mxu1 %v1490_v51  ;;  %1391 = vmatprep.mubr.msk.bf16.mxu0 %vm741_vm0, %v1492_v52 }
  0x42   : > { %1395 = vmatprep.mubr.msk.bf16.mxu1 %vm741_vm0, %v1493_v53  ;;  %v1253_v53 = vld [vmem:[%s1724_s3] ss:$0 sm:$0xff] }
  0x48   : > { %1392 = vmatmul.mubr.msk.bf16.vlgmr.msra.gmra.mrb[16].mxu0 %vm741_vm0, %v1494_v54 }
  0x49   : > { %1396 = vmatmul.mubr.msk.bf16.vlgmr.msra.gmra.mrb[16].mxu1 %vm741_vm0, %v1495_v55 }
  0xfb   : > { %v1311_v56 = vpop.f32.mrb[0].mxu0 }
  0xfc   : > { %v1351_v57 = vpop.f32.mrb[0].mxu1  ;;  %v1312_v58 = vpop.f32.mrb[1].mxu0 }
  0xfd   : > { %v1313_v59 = vadd.f32 %v1312_v58, %v1311_v56  ;;  %v1352_v60 = vpop.f32.mrb[1].mxu1  ;;  %v1314_v61 = vpop.f32.mrb[2].mxu0 }
  0xfe   : > { %v1353_v62 = vadd.f32 %v1352_v60, %v1351_v57  ;;  %v1354_v63 = vpop.f32.mrb[2].mxu1  ;;  %v1315_v0 = vpop.f32.mrb[3].mxu0 }
  0xff   : > { %v1316_v1 = vadd.f32 %v1315_v0, %v1314_v61  ;;  %v1355_v2 = vpop.f32.mrb[3].mxu1 }
 0x100   : > { %v1356_v3 = vadd.f32 %v1355_v2, %v1354_v63  ;;  %v854_v4 = vadd.f32 %v1353_v62, %v1313_v59 }
 0x102   : > { %v857_v5 = vadd.f32 %v1356_v3, %v1316_v1 }
 0x103   : > { %v1317_v6 = vpop.f32.mrb[4].mxu0 }
 0x104   : > { %v1357_v7 = vpop.f32.mrb[4].mxu1  ;;  %v1318_v8 = vpop.f32.mrb[5].mxu0 }
 0x105   : > { %v1319_v9 = vadd.f32 %v1318_v8, %v1317_v6  ;;  %v1358_v10 = vpop.f32.mrb[5].mxu1  ;;  %v1320_v11 = vpop.f32.mrb[6].mxu0 }
 0x106   : > { %v1359_v12 = vadd.f32 %v1358_v10, %v1357_v7  ;;  %v1360_v13 = vpop.f32.mrb[6].mxu1  ;;  %v1321_v14 = vpop.f32.mrb[7].mxu0 }
 0x107   : > { %v1322_v15 = vadd.f32 %v1321_v14, %v1320_v11  ;;  %v1361_v16 = vpop.f32.mrb[7].mxu1 }
 0x108   : > { %v1362_v17 = vadd.f32 %v1361_v16, %v1360_v13  ;;  %v862_v18 = vadd.f32 %v1359_v12, %v1319_v9 }
 0x10a   : > { %v865_v19 = vadd.f32 %v1362_v17, %v1322_v15 }
 0x10b   : > { %v1323_v20 = vpop.f32.mrb[8].mxu0 }
 0x10c   : > { %v1363_v21 = vpop.f32.mrb[8].mxu1  ;;  %v1324_v22 = vpop.f32.mrb[9].mxu0 }
 0x10d   : > { %v1325_v23 = vadd.f32 %v1324_v22, %v1323_v20  ;;  %v1364_v24 = vpop.f32.mrb[9].mxu1  ;;  %v1326_v25 = vpop.f32.mrb[10].mxu0 }
 0x10e   : > { %v1365_v26 = vadd.f32 %v1364_v24, %v1363_v21  ;;  %v1366_v27 = vpop.f32.mrb[10].mxu1  ;;  %v1327_v28 = vpop.f32.mrb[11].mxu0 }
 0x10f   : > { %v1328_v29 = vadd.f32 %v1327_v28, %v1326_v25  ;;  %v1367_v30 = vpop.f32.mrb[11].mxu1 }
 0x110   : > { %v1368_v31 = vadd.f32 %v1367_v30, %v1366_v27  ;;  %v870_v32 = vadd.f32 %v1365_v26, %v1325_v23 }
 0x112   : > { %v873_v33 = vadd.f32 %v1368_v31, %v1328_v29 }
 0x113   : > { %v1329_v34 = vpop.f32.mrb[12].mxu0 }
 0x114   : > { %v1369_v35 = vpop.f32.mrb[12].mxu1  ;;  %v1330_v36 = vpop.f32.mrb[13].mxu0 }
 0x115   : > { %v1331_v37 = vadd.f32 %v1330_v36, %v1329_v34  ;;  %v1370_v38 = vpop.f32.mrb[13].mxu1  ;;  %v1332_v39 = vpop.f32.mrb[14].mxu0 }
 0x116   : > { %v1371_v40 = vadd.f32 %v1370_v38, %v1369_v35  ;;  %v1372_v41 = vpop.f32.mrb[14].mxu1  ;;  %v1333_v42 = vpop.f32.mrb[15].mxu0 }
 0x117   : > { %v1334_v43 = vadd.f32 %v1333_v42, %v1332_v39  ;;  %v1373_v44 = vpop.f32.mrb[15].mxu1 }
 0x118   : > { %v1374_v45 = vadd.f32 %v1373_v44, %v1372_v41  ;;  %v878_v46 = vadd.f32 %v1371_v40, %v1331_v37 }
 0x11a   : > { %v881_v47 = vadd.f32 %v1374_v45, %v1334_v43 }
 0x11b   : > { %v1393_v48 = vpop.f32.mrb[16].mxu0 }
 0x11c   : > { %v927_v50 = vadd.f32 %v1393_v48, %v862_v18  ;;  %v1397_v51 = vpop.f32.mrb[16].mxu1  ;;  %v918_v52 = vpop.f32.mrb[17].mxu0 }
 0x11d   : > { %v943_v54 = vadd.f32 %v1397_v51, %v878_v46  ;;  %v919_v55 = vadd.f32 %v918_v52, %v854_v4  ;;  %v934_v56 = vpop.f32.mrb[17].mxu1  ;;  %v1394_v57 = vpop.f32.mrb[18].mxu0 }
 0x11e   : > { %v985_v58 = vmul.f32 %v1252_v49, %v927_v50  ;;  %v935_v59 = vadd.f32 %v934_v56, %v870_v32  ;;  %v930_v60 = vadd.f32 %v1394_v57, %v865_v19  ;;  %v1398_v61 = vpop.f32.mrb[18].mxu1  ;;  %v921_v62 = vpop.f32.mrb[19].mxu0 }
 0x11f   : > { %v989_v63 = vmul.f32 %v1252_v49, %v943_v54  ;;  %v983_v0 = vmul.f32 %v1252_v49, %v919_v55  ;;  %v946_v1 = vadd.f32 %v1398_v61, %v881_v47  ;;  %v922_v2 = vadd.f32 %v921_v62, %v857_v5  ;;  %v937_v3 = vpop.f32.mrb[19].mxu1 }
 0x120   : > { %v1000_v6 = vadd.f32 %v1253_v53, %v985_v58  ;;  %v987_v7 = vmul.f32 %v1252_v49, %v935_v59  ;;  %v986_v8 = vmul.f32 %v1252_v49, %v930_v60  ;;  %v938_v9 = vadd.f32 %v937_v3, %v873_v33 }
 0x121   : > { %v1004_v10 = vadd.f32 %v1253_v53, %v989_v63  ;;  %v998_v11 = vadd.f32 %v1253_v53, %v983_v0  ;;  %v990_v4 = vmul.f32 %v1252_v49, %v946_v1  ;;  %v984_v12 = vmul.f32 %v1252_v49, %v922_v2 }
 0x122   : > { %v1002_v13 = vadd.f32 %v1253_v53, %v987_v7  ;;  %v1001_v14 = vadd.f32 %v1253_v53, %v986_v8  ;;  %v988_v15 = vmul.f32 %v1252_v49, %v938_v9  ;;  %v1008_v18 = vmax.f32 %v1000_v6, 0.0 }
 0x123   : > { %v1005_v16 = vadd.f32 %v1253_v53, %v990_v4  ;;  %v999_v17 = vadd.f32 %v1253_v53, %v984_v12  ;;  %v1012_v21 = vmax.f32 %v1004_v10, 0.0  ;;  %v1006_v5 = vmax.f32 %v998_v11, 0.0 }
 0x124   : > { %v1009_v19 = vmax.f32 %v1001_v14, 0.0  ;;  %v1003_v20 = vadd.f32 %v1253_v53, %v988_v15  ;;  %v1010_v24 = vmax.f32 %v1002_v13, 0.0 }
 0x125   : > { %v1013_v22 = vmax.f32 %v1005_v16, 0.0  ;;  %v1007_v23 = vmax.f32 %v999_v17, 0.0 }
 0x126   : > { %v1280_v25 = vpack.c.bf16 %v1009_v19, %v1008_v18  ;;  %v1011_v26 = vmax.f32 %v1003_v20, 0.0 }
 0x127   : > { %v1290_v27 = vpack.c.bf16 %v1013_v22, %v1012_v21  ;;  %v1275_v28 = vpack.c.bf16 %v1007_v23, %v1006_v5 }
 0x128   : > { %1292 = vst [vmem:[%s306_s10 + $0x8] sm:$0xff] %v1280_v25   ;;  %v1285_v29 = vpack.c.bf16 %v1011_v26, %v1010_v24 }
 0x129   : > { %1294 = vst [vmem:[%s306_s10 + $0x18] sm:$0xff] %v1290_v27   ;;  %1276 = vst [vmem:[%s306_s10] sm:$0xff] %v1275_v28  }
 0x12a   : > { %1293 = vst [vmem:[%s306_s10 + $0x10] sm:$0xff] %v1285_v29  }
 0x12b PF: > { %s14_s17 = sadd.s32 1, %s1518_s17   ;;  %s1726_s15 = smov %s1514_s16 }
 0x12c   : > { %p11_p5 = scmp.ge.s32.totalorder %s14_s17, 4   ;;  %s1727_s16 = smov %s1729_s18 }
 0x12e   :  { %13 = sbr.rel (!%p11_p5) target bundleno = 2 (0x2), region = 83 }

// kernel: _lambda_.30
= control target key start
LH: loop header
LB: loop body
LE: loop exit
PB: predicated region body
PF: predicated region fallthrough
CT: control target
= control target key end

     0   :  { %s859_s15 = smov 0   ;;  %s861_s16 = smov 0   ;;  %s921_s0 = inlined_call_operand.vmem [shape: bf16[128,64], index: 0, kind: input, shape index: {}]   ;;  %s922_s1 = inlined_call_operand.vmem [shape: bf16[64,128], index: 1, kind: input, shape index: {}]   ;;  %s923_s2 = inlined_call_operand.vmem [shape: f32[1,128], index: 2, kind: input, shape index: {}]   ;;  %s924_s3 = inlined_call_operand.vmem [shape: f32[1,128], index: 3, kind: input, shape index: {}]   ;;  %s925_s4 = inlined_call_operand.vmem [shape: bf16[128,128], index: 4, kind: output, shape index: {}]  }
   0x1   :  { %s863_s17 = smov 0  }
   0x2 LB: > { %s33_s18 = sadd.s32 1, %s828_s16  ;;  %p686_p0 = scmp.ge.s32.totalorder %s832_s17, 1  ;;  %s832_s17 = sphi %s863_s17, %s14_s17   ;;  %s828_s16 = sphi %s861_s16, %s927_s16   ;;  %s824_s15 = sphi %s859_s15, %s926_s15  }
   0x3   : > { %p35_p1 = scmp.ge.s32.totalorder %s33_s18, 2  ;;  %p221_p2 = scmp.lt.s32.totalorder %s832_s17, 3 }
   0x5   : > { %s929_s18 = smov (%p35_p1, %s33_s18), 0  ;;  %p222_p3 = pnand %p686_p0, %p221_p2 }
   0x6   : > { %v802_v0 = vld [vmem:[%s922_s1] sm:$0xff] (!%p222_p3)   ;;  %s687_s21 = sshll.u32 (!%p222_p3), %s824_s15, 3  ;;  %v803_v1 = vld [vmem:[%s922_s1 + $0x8] sm:$0xff] (!%p222_p3)   ;;  %v804_v2 = vld [vmem:[%s922_s1 + $0x10] sm:$0xff] (!%p222_p3)   ;;  %vm381_vm0 = vcmask (!%p222_p3), 523264  }
   0x7   : > { %225 = sbr.rel (%p222_p3) target bundleno = 245 (0xf5), region = 36  ;;  %p268_p4 = scmp.lt.s32.totalorder (!%p222_p3), %s687_s21, 15  ;;  %754 = vmatprep.subr.bf16.mxu0 (!%p222_p3), %v802_v0  ;;  %770 = vmatprep.subr.bf16.mxu1 (!%p222_p3), %v802_v0  ;;  %v805_v3 = vld [vmem:[%s922_s1 + $0x18] sm:$0xff] (!%p222_p3)   ;;  %v703_v8 = vld [vmem:[%s923_s2] ss:$0 sm:$0xff] (!%p222_p3) }
   0x8   : > { %755 = vmatpush3.bf16.msra.mxu0 (!%p222_p3), %v802_v0  ;;  %774 = vmatpush3.bf16.msra.mxu1 (!%p222_p3), %v802_v0  ;;  %v704_v15 = vld [vmem:[%s924_s3] ss:$0 sm:$0xff] (!%p222_p3) }
   0x9   : > { %756 = vmatprep.subr.bf16.mxu0 (!%p222_p3), %v803_v1  ;;  %771 = vmatprep.subr.bf16.mxu1 (!%p222_p3), %v803_v1 }
   0xc   : > { %757 = vmatpush3.bf16.msra.mxu0 (!%p222_p3), %v803_v1  ;;  %775 = vmatpush3.bf16.msra.mxu1 (!%p222_p3), %v803_v1 }
   0xd   : > { %758 = vmatprep.subr.bf16.mxu0 (!%p222_p3), %v804_v2  ;;  %772 = vmatprep.subr.bf16.mxu1 (!%p222_p3), %v804_v2 }
   0xe   : > { %s931_s21 = smov (!%p268_p4, %s687_s21), 15 }
   0xf   : > { %s688_s26 = sshll.u32 %s931_s21, 2 }
  0x10   : > { %s274_s5 = scalar_lea.vmem %s921_s0, %s688_s26  ;;  %759 = vmatpush3.bf16.msra.mxu0 %v804_v2  ;;  %776 = vmatpush3.bf16.msra.mxu1 %v804_v2  ;;  %s298_s12 = scalar_lea.vmem %s925_s4, %s688_s26 }
  0x11   : > { %v806_v4 = vld [vmem:[%s274_s5] sm:$0xff]   ;;  %v807_v5 = vld [vmem:[%s274_s5 + $0x10] sm:$0xff]   ;;  %760 = vmatprep.subr.bf16.mxu0 %v805_v3  ;;  %773 = vmatprep.subr.bf16.mxu1 %v805_v3  ;;  %v808_v6 = vld [vmem:[%s274_s5 + $0x8] sm:$0xff]  }
  0x12   : > { %762 = vmatprep.mubr.msk.bf16.mxu0 %vm381_vm0, %v806_v4  ;;  %766 = vmatprep.mubr.msk.bf16.mxu1 %vm381_vm0, %v807_v5  ;;  %v809_v7 = vld [vmem:[%s274_s5 + $0x18] sm:$0xff]  }
  0x14   : > { %761 = vmatpush3.bf16.msra.mxu0 %v805_v3  ;;  %777 = vmatpush3.bf16.msra.mxu1 %v805_v3 }
  0x17   : > { %763 = vmatmul.mubr.msk.bf16.vlgmr.msra.gmra.mrb[0].mxu0 %vm381_vm0, %v808_v6  ;;  %767 = vmatmul.mubr.msk.bf16.vlgmr.msra.gmra.mrb[0].mxu1 %vm381_vm0, %v809_v7 }
  0xea   : > { %v764_v9 = vpop.f32.mrb[0].mxu0  ;;  %v768_v10 = vpop.f32.mrb[0].mxu1 }
  0xeb   : > { %v495_v11 = vmul.f32 %v764_v9, %v703_v8  ;;  %v499_v12 = vmul.f32 %v768_v10, %v703_v8  ;;  %v428_v13 = vpop.f32.mrb[1].mxu0  ;;  %v444_v14 = vpop.f32.mrb[1].mxu1 }
  0xec   : > { %v493_v16 = vmul.f32 %v703_v8, %v428_v13  ;;  %v497_v17 = vmul.f32 %v703_v8, %v444_v14  ;;  %v765_v18 = vpop.f32.mrb[2].mxu0  ;;  %v769_v19 = vpop.f32.mrb[2].mxu1 }
  0xed   : > { %v496_v20 = vmul.f32 %v765_v18, %v703_v8  ;;  %v500_v21 = vmul.f32 %v769_v19, %v703_v8  ;;  %v431_v22 = vpop.f32.mrb[3].mxu0  ;;  %v447_v23 = vpop.f32.mrb[3].mxu1  ;;  %v510_v26 = vadd.f32 %v704_v15, %v495_v11  ;;  %v514_v27 = vadd.f32 %v704_v15, %v499_v12 }
  0xee   : > { %v494_v24 = vmul.f32 %v703_v8, %v431_v22  ;;  %v498_v25 = vmul.f32 %v703_v8, %v447_v23  ;;  %v508_v30 = vadd.f32 %v704_v15, %v493_v16  ;;  %v512_v31 = vadd.f32 %v704_v15, %v497_v17 }
  0xef   : > { %v511_v28 = vadd.f32 %v704_v15, %v496_v20  ;;  %v515_v29 = vadd.f32 %v704_v15, %v500_v21 }
  0xf0   : > { %v509_v32 = vadd.f32 %v704_v15, %v494_v24  ;;  %v513_v33 = vadd.f32 %v704_v15, %v498_v25 }
  0xf1   : > { %v731_v34 = vpack.c.bf16 %v511_v28, %v510_v26  ;;  %v741_v35 = vpack.c.bf16 %v515_v29, %v514_v27 }
  0xf2   : > { %v726_v36 = vpack.c.bf16 %v509_v32, %v508_v30  ;;  %v736_v37 = vpack.c.bf16 %v513_v33, %v512_v31 }
  0xf3   : > { %743 = vst [vmem:[%s298_s12 + $0x8] sm:$0xff] %v731_v34   ;;  %745 = vst [vmem:[%s298_s12 + $0x18] sm:$0xff] %v741_v35  }
  0xf4   : > { %727 = vst [vmem:[%s298_s12] sm:$0xff] %v726_v36   ;;  %744 = vst [vmem:[%s298_s12 + $0x10] sm:$0xff] %v736_v37  }
  0xf5 PF: > { %s14_s17 = sadd.s32 1, %s832_s17   ;;  %s926_s15 = smov %s828_s16 }
  0xf6   : > { %p11_p5 = scmp.ge.s32.totalorder %s14_s17, 4   ;;  %s927_s16 = smov %s929_s18 }
  0xf8   :  { %13 = sbr.rel (!%p11_p5) target bundleno = 2 (0x2), region = 83 }

// kernel: _lambda_.33
= control target key start
LH: loop header
LB: loop body
LE: loop exit
PB: predicated region body
PF: predicated region fallthrough
CT: control target
= control target key end

     0   :  { %s1383_s15 = smov 0   ;;  %s1385_s16 = smov 0   ;;  %s1547_s0 = inlined_call_operand.vmem [shape: bf16[128,1152], index: 0, kind: input, shape index: {}]   ;;  %s1548_s1 = inlined_call_operand.vmem [shape: bf16[1152,128], index: 1, kind: input, shape index: {}]   ;;  %s1549_s2 = inlined_call_operand.vmem [shape: f32[1,128], index: 2, kind: input, shape index: {}]   ;;  %s1550_s3 = inlined_call_operand.vmem [shape: f32[1,128], index: 3, kind: input, shape index: {}]   ;;  %s1551_s4 = inlined_call_operand.vmem [shape: bf16[128,128], index: 4, kind: output, shape index: {}]  }
   0x1   :  { %s1387_s17 = smov 0   ;;  %s1389_s18 = smov 0  }
   0x2   :  { %s1391_s19 = smov 0   ;;  %s1393_s20 = smov 0  }
   0x3   :  { %s1395_s21 = smov 0  }
   0x4 LB: > { %s26_s22 = sadd.s32 1, %s1347_s19  ;;  %s33_s23 = sadd.s32 1, %s1351_s20  ;;  %s1355_s21 = sphi %s1395_s21, %s14_s21   ;;  %s1351_s20 = sphi %s1393_s20, %s1557_s20   ;;  %s1347_s19 = sphi %s1391_s19, %s1556_s19   ;;  %s1343_s18 = sphi %s1389_s18, %s1555_s18   ;;  %s1339_s17 = sphi %s1387_s17, %s1554_s17   ;;  %s1335_s16 = sphi %s1385_s16, %s1553_s16   ;;  %s1331_s15 = sphi %s1383_s15, %s1552_s15  }
   0x5   : > { %p27_p0 = scmp.ge.s32.totalorder %s26_s22, 3  ;;  %p49_p1 = scmp.ne.s32.totalorder %s1335_s16, %s1331_s15 }
   0x6   : > { %p50_p2 = scmp.eq.s32.totalorder %s1355_s21, 0  ;;  %s42_s27 = sadd.s32 1, %s1335_s16 }
   0x7   : > { %s1559_s22 = smov (%p27_p0, %s26_s22), 0  ;;  %s1561_s23 = smov (!%p27_p0, %s33_s23), %s1351_s20 }
   0x8   : > { %p51_p3 = por %p50_p2, %p49_p1  ;;  %p35_p4 = scmp.ge.s32.totalorder %s1561_s23, 2 }
   0x9   : > { %s38_s24 = ssub.s32 %s1347_s19, %s1559_s22  ;;  %p1020_p6 = scmp.ge.s32.totalorder %s1355_s21, 6 }
   0xa   : > { %s1563_s23 = smov (%p35_p4, %s1561_s23), 0 }
   0xb   : > { %s37_s25 = ssub.s32 %s1351_s20, %s1563_s23  ;;  %195 = sbr.rel (%p1020_p6) target bundleno = 36 (0x24), region = 24 }
   0xc   : > { %s39_s26 = sor.u32 %s38_s24, %s37_s25 }
   0xd   : > { %p40_p5 = scmp.eq.s32.totalorder %s39_s26, 0 }
   0xf   : > { %s1434_s28 = scalar_select %p40_p5, %s1335_s16, %s42_s27  }
  0x12   : > { %198 = sbr.rel (!%p51_p3) target bundleno = 36 (0x24), region = 28  ;;  %s200_s29 = sand.u32 (%p51_p3), 1, %s1335_s16  }
  0x13   : > { %s204_s30 = smul.u32 (%p51_p3), 3, %s1347_s19 }
  0x14   : > { %s1201_s5 = smul.u32 (%p51_p3), 96, %s200_s29 }
  0x15   : > { %s1202_s6 = smul.u32 (%p51_p3), 72, %s1351_s20 }
  0x16   : > { %s202_s12 = scalar_lea.vmem (%p51_p3), [#allocation3], %s1201_s5 }
  0x17   : > { %s206_s7 = sadd.s32 (%p51_p3), %s1202_s6, %s204_s30 }
  0x18   : > { %s1023_s8 = sshll.u32 (%p51_p3), %s206_s7, 2 }
  0x19   : > { %s1443_s11 = scalar_lea.vmem %s1547_s0, %s1023_s8 }
  0x1a   : > { %v223_v0 = vld [vmem:[%s1443_s11] sm:$0xff]  ;;  %v227_v2 = vld [vmem:[%s1443_s11 + $0x48] sm:$0xff]  ;;  %v231_v4 = vld [vmem:[%s1443_s11 + $0x90] sm:$0xff] }
  0x1b   : > { %v225_v1 = vld [vmem:[%s1443_s11 + $0x24] sm:$0xff]  ;;  %224 = vst [vmem:[%s202_s12] sm:$0xff] %v223_v0  ;;  %228 = vst [vmem:[%s202_s12 + $0x18] sm:$0xff] %v227_v2  ;;  %v229_v3 = vld [vmem:[%s1443_s11 + $0x6c] sm:$0xff] }
  0x1c   : > { %226 = vst [vmem:[%s202_s12 + $0xc] sm:$0xff] %v225_v1  ;;  %v233_v5 = vld [vmem:[%s1443_s11 + $0xb4] sm:$0xff]  ;;  %230 = vst [vmem:[%s202_s12 + $0x24] sm:$0xff] %v229_v3  ;;  %v237_v7 = vld [vmem:[%s1443_s11 + $0xfc] sm:$0xff] }
  0x1d   : > { %232 = vst [vmem:[%s202_s12 + $0x30] sm:$0xff] %v231_v4  ;;  %234 = vst [vmem:[%s202_s12 + $0x3c] sm:$0xff] %v233_v5  ;;  %v235_v6 = vld [vmem:[%s1443_s11 + $0xd8] sm:$0xff]  ;;  %v1024_v8 = vld [vmem:[%s1443_s11 + $0x8] sm:$0xf] }
  0x1e   : > { %236 = vst [vmem:[%s202_s12 + $0x48] sm:$0xff] %v235_v6  ;;  %238 = vst [vmem:[%s202_s12 + $0x54] sm:$0xff] %v237_v7  ;;  %v1026_v9 = vld [vmem:[%s1443_s11 + $0x2c] sm:$0xf]  ;;  %v1028_v10 = vld [vmem:[%s1443_s11 + $0x50] sm:$0xf] }
  0x1f   : > { %1025 = vst [vmem:[%s202_s12 + $0x8] sm:$0xf] %v1024_v8  ;;  %v1030_v11 = vld [vmem:[%s1443_s11 + $0x74] sm:$0xf]  ;;  %1027 = vst [vmem:[%s202_s12 + $0x14] sm:$0xf] %v1026_v9 }
  0x20   : > { %1029 = vst [vmem:[%s202_s12 + $0x20] sm:$0xf] %v1028_v10  ;;  %1031 = vst [vmem:[%s202_s12 + $0x2c] sm:$0xf] %v1030_v11  ;;  %v1032_v12 = vld [vmem:[%s1443_s11 + $0x98] sm:$0xf] }
  0x21   : > { %v1034_v13 = vld [vmem:[%s1443_s11 + $0xbc] sm:$0xf]  ;;  %v1036_v14 = vld [vmem:[%s1443_s11 + $0xe0] sm:$0xf]  ;;  %1033 = vst [vmem:[%s202_s12 + $0x38] sm:$0xf] %v1032_v12 }
  0x22   : > { %1035 = vst [vmem:[%s202_s12 + $0x44] sm:$0xf] %v1034_v13  ;;  %1037 = vst [vmem:[%s202_s12 + $0x50] sm:$0xf] %v1036_v14  ;;  %v1038_v15 = vld [vmem:[%s1443_s11 + $0x104] sm:$0xf] }
  0x23   : > { %1039 = vst [vmem:[%s202_s12 + $0x5c] sm:$0xf] %v1038_v15 }
  0x24 PF: > { %p1040_p7 = scmp.ge.s32.totalorder %s1355_s21, 1  ;;  %p278_p8 = scmp.lt.s32.totalorder %s1355_s21, 7 }
  0x26   : > { %p279_p9 = pnand %p1040_p7, %p278_p8 }
  0x27   : > { %s285_s13 = sand.u32 (!%p279_p9), 1, %s1331_s15   ;;  %s329_s14 = smul.u32 (!%p279_p9), 48, %s1339_s17 }
  0x28   : > { %282 = sbr.rel (%p279_p9) target bundleno = 352 (0x160), region = 58  ;;  %s1042_s25 = sshll.u32 (!%p279_p9), %s1343_s18, 3 }
  0x29   : > { %s1203_s24 = smul.u32 (!%p279_p9), 96, %s285_s13  ;;  %p330_p10 = scmp.lt.s32.totalorder (!%p279_p9), %s329_s14, 143 }
  0x2a   : > { %p345_p11 = scmp.lt.s32.totalorder (!%p279_p9), %s1042_s25, 15  ;;  %p1044_p12 = scmp.ne.s32.totalorder (!%p279_p9), %s1339_s17, 0 }
  0x2b   : > { %s1476_s15 = scalar_lea.vmem (!%p279_p9), [#allocation3], %s1203_s24 }
  0x2f   : > { %s1565_s14 = smov (!%p330_p10, %s329_s14), 143  ;;  %s1567_s25 = smov (!%p345_p11, %s1042_s25), 15 }
  0x30   : > { %s1041_s26 = sshll.u32 %s1565_s14, 2  ;;  %s1043_s5 = sshll.u32 %s1567_s25, 2  ;;  %v1357_v16 = vmov (!%p1044_p12), 0.0  }
  0x31   : > { %s1469_s30 = scalar_lea.vmem %s1548_s1, %s1041_s26  ;;  %s1474_s8 = scalar_lea.vmem %s1551_s4, %s1043_s5  ;;  %358 = vst [vmem:[#allocation2] sm:$0xff] (!%p1044_p12), %v1357_v16  ;;  %359 = vst [vmem:[#allocation2 + $0x8] sm:$0xff] (!%p1044_p12), %v1357_v16 }
  0x32   : > { %357 = sbr.rel (%p1044_p12) target bundleno = 57 (0x39), region = 66  ;;  %360 = vst [vmem:[#allocation2 + $0x10] sm:$0xff] (!%p1044_p12), %v1357_v16  ;;  %361 = vst [vmem:[#allocation2 + $0x18] sm:$0xff] (!%p1044_p12), %v1357_v16 }
  0x33   : > { %362 = vst [vmem:[#allocation2 + $0x20] sm:$0xff] (!%p1044_p12), %v1357_v16  ;;  %363 = vst [vmem:[#allocation2 + $0x28] sm:$0xff] (!%p1044_p12), %v1357_v16 }
  0x34   : > { %364 = vst [vmem:[#allocation2 + $0x30] sm:$0xff] (!%p1044_p12), %v1357_v16  ;;  %365 = vst [vmem:[#allocation2 + $0x38] sm:$0xff] (!%p1044_p12), %v1357_v16 }
  0x39 PF: > { %v1261_v17 = vld [vmem:[%s1469_s30 + $0x40] sm:$0xff]   ;;  %v1264_v20 = vld [vmem:[%s1469_s30 + $0x48] sm:$0xff]   ;;  %v1267_v23 = vld [vmem:[%s1469_s30 + $0x50] sm:$0xff]   ;;  %p1081_p13 = scmp.ne.s32.totalorder %s1339_s17, 2 }
  0x3a   : > { %v1262_v18 = vld [vmem:[%s1469_s30] sm:$0xff]   ;;  %1125 = vmatprep.subr.bf16.mxu0 %v1261_v17  ;;  %v1265_v21 = vld [vmem:[%s1469_s30 + $0x8] sm:$0xff]   ;;  %v1268_v24 = vld [vmem:[%s1469_s30 + $0x10] sm:$0xff]  }
  0x3b   : > { %v1263_v19 = vld [vmem:[%s1469_s30 + $0x80] sm:$0xff]   ;;  %1126 = vmatpush3.bf16.msra.mxu0 %v1262_v18  ;;  %v1266_v22 = vld [vmem:[%s1469_s30 + $0x88] sm:$0xff]   ;;  %v1269_v25 = vld [vmem:[%s1469_s30 + $0x90] sm:$0xff]  }
  0x3c   : > { %1177 = vmatprep.subr.bf16.mxu1 %v1263_v19  ;;  %1127 = vmatprep.subr.bf16.mxu0 %v1264_v20  ;;  %v1270_v26 = vld [vmem:[%s1469_s30 + $0x58] sm:$0xff]   ;;  %v1273_v29 = vld [vmem:[%s1469_s30 + $0x60] sm:$0xff]   ;;  %v1276_v32 = vld [vmem:[%s1469_s30 + $0x68] sm:$0xff]  }
  0x3d   : > { %1178 = vmatpush3.bf16.msra.mxu1 %v1263_v19  ;;  %v1271_v27 = vld [vmem:[%s1469_s30 + $0x18] sm:$0xff]   ;;  %v1275_v30 = vld [vmem:[%s1469_s30 + $0xa0] sm:$0xff]   ;;  %v1278_v33 = vld [vmem:[%s1469_s30 + $0xa8] sm:$0xff]  }
  0x3e   : > { %1179 = vmatprep.subr.bf16.mxu1 %v1266_v22  ;;  %v1272_v28 = vld [vmem:[%s1469_s30 + $0x98] sm:$0xff]   ;;  %v1274_v31 = vld [vmem:[%s1469_s30 + $0x20] sm:$0xff]   ;;  %v1277_v34 = vld [vmem:[%s1469_s30 + $0x28] sm:$0xff]  }
  0x3f   : > { %1128 = vmatpush3.bf16.msra.mxu0 %v1265_v21  ;;  %v1279_v35 = vld [vmem:[%s1469_s30 + $0x70] sm:$0xff]   ;;  %v1282_v38 = vld [vmem:[%s1469_s30 + $0x78] sm:$0xff]   ;;  %v1285_v43 = vld [vmem:[%s1476_s15] ss:$12 sps:$4 sm:$0xff]  }
  0x40   : > { %1129 = vmatprep.subr.bf16.mxu0 %v1267_v23  ;;  %v1280_v36 = vld [vmem:[%s1469_s30 + $0x30] sm:$0xff]   ;;  %v1284_v39 = vld [vmem:[%s1469_s30 + $0xb8] sm:$0xff]   ;;  %v1289_v45 = vld [vmem:[%s1476_s15 + $0x20] ss:$12 sps:$4 sm:$0xff]  }
  0x41   : > { %1180 = vmatpush3.bf16.msra.mxu1 %v1266_v22  ;;  %v1281_v37 = vld [vmem:[%s1469_s30 + $0xb0] sm:$0xff]   ;;  %v1283_v42 = vld [vmem:[%s1469_s30 + $0x38] sm:$0xff]   ;;  %v366_v59 = vld [vmem:[#allocation2] sm:$0xff] }
  0x42   : > { %1181 = vmatprep.subr.bf16.mxu1 %v1269_v25  ;;  %v1287_v40 = vld [vmem:[%s1476_s15 + $0x4] ss:$12 sps:$4 sm:$0xff]   ;;  %v1288_v41 = vld [vmem:[%s1476_s15 + $0x8] ss:$12 sps:$4 sm:$0xff]   ;;  %v1298_v51 = vld [vmem:[%s1476_s15 + $0x4c] ss:$12 sps:$4 sm:$0xff]  }
  0x43   : > { %1130 = vmatpush3.bf16.msra.mxu0 %v1268_v24  ;;  %678 = vmatprep.mubr.bf16.mxu0 %v1287_v40  ;;  %v1290_v44 = vld [vmem:[%s1476_s15 + $0x1c] ss:$12 sps:$4 sm:$0xff]   ;;  %v1296_v46 = vld [vmem:[%s1476_s15 + $0x38] ss:$12 sps:$4 sm:$0xff]   ;;  %v1293_v48 = vld [vmem:[%s1476_s15 + $0x34] ss:$12 sps:$4 sm:$0xff]  }
  0x44   : > { %1131 = vmatprep.subr.bf16.mxu0 %v1270_v26  ;;  %1193 = vmatprep.mubr.bf16.mxu1 %v1288_v41  ;;  %v1292_v47 = vld [vmem:[%s1476_s15 + $0x18] ss:$12 sps:$4 sm:$0xff]   ;;  %v1297_v49 = vld [vmem:[%s1476_s15 + $0x50] ss:$12 sps:$4 sm:$0xff]   ;;  %v1300_v52 = vld [vmem:[%s1476_s15 + $0x48] ss:$12 sps:$4 sm:$0xff]  }
  0x45   : > { %1182 = vmatpush3.bf16.msra.mxu1 %v1269_v25  ;;  %v1295_v50 = vld [vmem:[%s1476_s15 + $0x30] ss:$12 sps:$4 sm:$0xff]   ;;  %v367_v0 = vld [vmem:[#allocation2 + $0x8] sm:$0xff]  ;;  %v370_v26 = vld [vmem:[#allocation2 + $0x20] sm:$0xff] }
  0x46   : > { %1183 = vmatprep.subr.bf16.mxu1 %v1272_v28  ;;  %v368_v10 = vld [vmem:[#allocation2 + $0x10] sm:$0xff]  ;;  %v369_v16 = vld [vmem:[#allocation2 + $0x18] sm:$0xff] }
  0x47   : > { %1132 = vmatpush3.bf16.msra.mxu0 %v1271_v27  ;;  %v373_v41 = vld [vmem:[#allocation2 + $0x38] sm:$0xff] }
  0x48   : > { %1133 = vmatprep.subr.bf16.mxu0 %v1273_v29  ;;  %v371_v29 = vld [vmem:[#allocation2 + $0x28] sm:$0xff] }
  0x49   : > { %1184 = vmatpush3.bf16.msra.mxu1 %v1272_v28 }
  0x4a   : > { %1185 = vmatprep.subr.bf16.mxu1 %v1275_v30 }
  0x4b   : > { %1134 = vmatpush3.bf16.msra.mxu0 %v1274_v31 }
  0x4c   : > { %1135 = vmatprep.subr.bf16.mxu0 %v1276_v32 }
  0x4d   : > { %1186 = vmatpush3.bf16.msra.mxu1 %v1275_v30 }
  0x4e   : > { %1187 = vmatprep.subr.bf16.mxu1 %v1278_v33 }
  0x4f   : > { %1136 = vmatpush3.bf16.msra.mxu0 %v1277_v34 }
  0x50   : > { %1137 = vmatprep.subr.bf16.mxu0 %v1279_v35 }
  0x51   : > { %1188 = vmatpush3.bf16.msra.mxu1 %v1278_v33 }
  0x52   : > { %1189 = vmatprep.subr.bf16.mxu1 %v1281_v37 }
  0x53   : > { %1138 = vmatpush3.bf16.msra.mxu0 %v1280_v36 }
  0x54   : > { %1139 = vmatprep.subr.bf16.mxu0 %v1282_v38 }
  0x55   : > { %1190 = vmatpush3.bf16.msra.mxu1 %v1281_v37  ;;  %v372_v37 = vld [vmem:[#allocation2 + $0x30] sm:$0xff] }
  0x56   : > { %1191 = vmatprep.subr.bf16.mxu1 %v1284_v39 }
  0x57   : > { %1140 = vmatpush3.bf16.msra.mxu0 %v1283_v42 }
  0x59   : > { %1192 = vmatpush3.bf16.msra.mxu1 %v1284_v39 }
  0x5a   : > { %679 = vmatmul.mubr.bf16.vlgmr.msra.gmra.mrb[0].mxu0 %v1285_v43 }
  0x5b   : > { %686 = vmatprep.mubr.bf16.mxu0 %v1290_v44 }
  0x5c   : > { %1194 = vmatmul.mubr.bf16.vlgmr.msra.gmra.mrb[0].mxu1 %v1289_v45 }
  0x5d   : > { %1197 = vmatprep.mubr.bf16.mxu1 %v1296_v46 }
  0x62   : > { %687 = vmatmul.mubr.bf16.gmra.mrb[4].mxu0 %v1292_v47  ;;  %v1082_v47 = vld [vmem:[%s1549_s2] ss:$0 sm:$0xff] (!%p1081_p13) }
  0x63   : > { %694 = vmatprep.mubr.bf16.mxu0 %v1293_v48 }
  0x64   : > { %1198 = vmatmul.mubr.bf16.gmra.mrb[4].mxu1 %v1297_v49 }
  0x6a   : > { %695 = vmatmul.mubr.bf16.gmra.mrb[8].mxu0 %v1295_v50  ;;  %v1083_v50 = vld [vmem:[%s1550_s3] ss:$0 sm:$0xff] (!%p1081_p13) }
  0x6b   : > { %702 = vmatprep.mubr.bf16.mxu0 %v1298_v51 }
  0x72   : > { %703 = vmatmul.mubr.bf16.gmra.mrb[12].mxu0 %v1300_v52 }
 0x12d   : > { %v1141_v53 = vpop.f32.mrb[0].mxu0 }
 0x12e   : > { %v1142_v54 = vpop.f32.mrb[1].mxu0 }
 0x12f   : > { %v1143_v55 = vadd.f32 %v1142_v54, %v1141_v53  ;;  %v1144_v56 = vpop.f32.mrb[2].mxu0  ;;  %v1195_v57 = vpop.f32.mrb[0].mxu1 }
 0x130   : > { %v1145_v58 = vpop.f32.mrb[3].mxu0  ;;  %v745_v60 = vpop.f32.mrb[1].mxu1 }
 0x131   : > { %v1146_v61 = vadd.f32 %v1145_v58, %v1144_v56  ;;  %v746_v62 = vadd.f32 %v1143_v55, %v745_v60  ;;  %v1196_v63 = vpop.f32.mrb[2].mxu1 }
 0x132   : > { %v748_v1 = vpop.f32.mrb[3].mxu1 }
 0x133   : > { %v776_v2 = vadd.f32 %v746_v62, %v366_v59  ;;  %v749_v3 = vadd.f32 %v1146_v61, %v748_v1 }
 0x135   : > { %784 = vst [vmem:[#allocation2] sm:$0xff] %v776_v2  ;;  %v777_v4 = vadd.f32 %v749_v3, %v367_v0  ;;  %v1147_v5 = vpop.f32.mrb[4].mxu0 }
 0x136   : > { %v1148_v6 = vpop.f32.mrb[5].mxu0 }
 0x137   : > { %785 = vst [vmem:[#allocation2 + $0x8] sm:$0xff] %v777_v4  ;;  %v1149_v7 = vadd.f32 %v1148_v6, %v1147_v5  ;;  %v1150_v8 = vpop.f32.mrb[6].mxu0  ;;  %v1199_v9 = vpop.f32.mrb[4].mxu1 }
 0x138   : > { %v1151_v11 = vpop.f32.mrb[7].mxu0  ;;  %v761_v12 = vpop.f32.mrb[5].mxu1 }
 0x139   : > { %v754_v13 = vadd.f32 %v1195_v57, %v1149_v7  ;;  %v1152_v14 = vadd.f32 %v1151_v11, %v1150_v8  ;;  %v1200_v15 = vpop.f32.mrb[6].mxu1 }
 0x13a   : > { %v764_v17 = vpop.f32.mrb[7].mxu1 }
 0x13b   : > { %v778_v18 = vadd.f32 %v754_v13, %v368_v10  ;;  %v757_v19 = vadd.f32 %v1196_v63, %v1152_v14 }
 0x13c   : > { %v796_v45 = vld [vmem:[#allocation2] sm:$0xff] (!%p1081_p13) }
 0x13d   : > { %786 = vst [vmem:[#allocation2 + $0x10] sm:$0xff] %v778_v18  ;;  %v779_v20 = vadd.f32 %v757_v19, %v369_v16  ;;  %v1153_v21 = vpop.f32.mrb[8].mxu0  ;;  %v811_v48 = vmul.f32 (!%p1081_p13), %v1082_v47, %v796_v45 }
 0x13e   : > { %v1154_v22 = vpop.f32.mrb[9].mxu0  ;;  %v797_v46 = vld [vmem:[#allocation2 + $0x8] sm:$0xff] (!%p1081_p13) }
 0x13f   : > { %787 = vst [vmem:[#allocation2 + $0x18] sm:$0xff] %v779_v20  ;;  %v1155_v23 = vadd.f32 %v1154_v22, %v1153_v21  ;;  %v1156_v24 = vpop.f32.mrb[10].mxu0  ;;  %v812_v49 = vmul.f32 (!%p1081_p13), %v1082_v47, %v797_v46  ;;  %v826_v58 = vadd.f32 (!%p1081_p13), %v1083_v50, %v811_v48 }
 0x140   : > { %v1157_v25 = vpop.f32.mrb[11].mxu0 }
 0x141   : > { %v1158_v27 = vadd.f32 %v1157_v25, %v1156_v24  ;;  %v762_v28 = vadd.f32 %v1155_v23, %v761_v12  ;;  %v827_v59 = vadd.f32 (!%p1081_p13), %v1083_v50, %v812_v49  ;;  %v834_v3 = vmax.f32 (!%p1081_p13), %v826_v58, 0.0 }
 0x143   : > { %v780_v30 = vadd.f32 %v762_v28, %v370_v26  ;;  %v765_v31 = vadd.f32 %v1158_v27, %v764_v17  ;;  %v835_v4 = vmax.f32 (!%p1081_p13), %v827_v59, 0.0 }
 0x144   : > { %v798_v51 = vld [vmem:[#allocation2 + $0x10] sm:$0xff] (!%p1081_p13) }
 0x145   : > { %788 = vst [vmem:[#allocation2 + $0x20] sm:$0xff] %v780_v30  ;;  %v781_v32 = vadd.f32 %v765_v31, %v371_v29  ;;  %v1159_v33 = vpop.f32.mrb[12].mxu0  ;;  %v813_v53 = vmul.f32 (!%p1081_p13), %v1082_v47, %v798_v51  ;;  %v1105_v11 = vpack.c.bf16 (!%p1081_p13), %v835_v4, %v834_v3 }
 0x146   : > { %v1160_v34 = vpop.f32.mrb[13].mxu0  ;;  %v799_v52 = vld [vmem:[#allocation2 + $0x18] sm:$0xff] (!%p1081_p13) }
 0x147   : > { %789 = vst [vmem:[#allocation2 + $0x28] sm:$0xff] %v781_v32  ;;  %v1161_v35 = vadd.f32 %v1160_v34, %v1159_v33  ;;  %v1162_v36 = vpop.f32.mrb[14].mxu0  ;;  %v814_v54 = vmul.f32 (!%p1081_p13), %v1082_v47, %v799_v52  ;;  %v828_v63 = vadd.f32 (!%p1081_p13), %v1083_v50, %v813_v53  ;;  %1106 = vst [vmem:[%s1474_s8] sm:$0xff] (!%p1081_p13), %v1105_v11  }
 0x148   : > { %v1163_v38 = vpop.f32.mrb[15].mxu0 }
 0x149   : > { %v770_v39 = vadd.f32 %v1199_v9, %v1161_v35  ;;  %v1164_v40 = vadd.f32 %v1163_v38, %v1162_v36  ;;  %795 = sbr.rel (%p1081_p13) target bundleno = 352 (0x160), region = 70  ;;  %v829_v0 = vadd.f32 (!%p1081_p13), %v1083_v50, %v814_v54  ;;  %v836_v7 = vmax.f32 (!%p1081_p13), %v828_v63, 0.0 }
 0x14b   : > { %v782_v42 = vadd.f32 %v770_v39, %v372_v37  ;;  %v773_v43 = vadd.f32 %v1200_v15, %v1164_v40  ;;  %v837_v8 = vmax.f32 (!%p1081_p13), %v829_v0, 0.0 }
 0x14c   : > { %v800_v55 = vld [vmem:[#allocation2 + $0x20] sm:$0xff] (!%p1081_p13) }
 0x14d   : > { %790 = vst [vmem:[#allocation2 + $0x30] sm:$0xff] %v782_v42  ;;  %v783_v44 = vadd.f32 %v773_v43, %v373_v41  ;;  %v815_v60 = vmul.f32 (!%p1081_p13), %v1082_v47, %v800_v55  ;;  %v1110_v14 = vpack.c.bf16 (!%p1081_p13), %v837_v8, %v836_v7 }
 0x14e   : > { %v801_v56 = vld [vmem:[#allocation2 + $0x28] sm:$0xff] (!%p1081_p13) }
 0x14f   : > { %791 = vst [vmem:[#allocation2 + $0x38] sm:$0xff] %v783_v44  ;;  %v816_v61 = vmul.f32 (!%p1081_p13), %v1082_v47, %v801_v56  ;;  %v830_v5 = vadd.f32 (!%p1081_p13), %v1083_v50, %v815_v60  ;;  %1122 = vst [vmem:[%s1474_s8 + $0x8] sm:$0xff] (!%p1081_p13), %v1110_v14  }
 0x151   : > { %v831_v6 = vadd.f32 %v1083_v50, %v816_v61  ;;  %v838_v12 = vmax.f32 %v830_v5, 0.0 }
 0x153   : > { %v839_v13 = vmax.f32 %v831_v6, 0.0 }
 0x154   : > { %v802_v57 = vld [vmem:[#allocation2 + $0x30] sm:$0xff] }
 0x155   : > { %v817_v1 = vmul.f32 %v1082_v47, %v802_v57  ;;  %v1115_v17 = vpack.c.bf16 %v839_v13, %v838_v12 }
 0x156   : > { %v803_v62 = vld [vmem:[#allocation2 + $0x38] sm:$0xff] }
 0x157   : > { %v818_v2 = vmul.f32 %v1082_v47, %v803_v62  ;;  %v832_v9 = vadd.f32 %v1083_v50, %v817_v1  ;;  %1123 = vst [vmem:[%s1474_s8 + $0x10] sm:$0xff] %v1115_v17  }
 0x159   : > { %v833_v10 = vadd.f32 %v1083_v50, %v818_v2  ;;  %v840_v15 = vmax.f32 %v832_v9, 0.0 }
 0x15b   : > { %v841_v16 = vmax.f32 %v833_v10, 0.0 }
 0x15d   : > { %v1120_v18 = vpack.c.bf16 %v841_v16, %v840_v15 }
 0x15f   : > { %1124 = vst [vmem:[%s1474_s8 + $0x18] sm:$0xff] %v1120_v18  }
 0x160 PF: > { %s14_s21 = sadd.s32 1, %s1355_s21   ;;  %s1552_s15 = smov %s1335_s16 }
 0x161   : > { %p11_p0 = scmp.ge.s32.totalorder %s14_s21, 8   ;;  %s1553_s16 = smov %s1434_s28 }
 0x162   : > { %s1554_s17 = smov %s1347_s19  ;;  %s1555_s18 = smov %s1351_s20 }
 0x163   : > { %s1556_s19 = smov %s1559_s22  ;;  %s1557_s20 = smov %s1563_s23 }
 0x164   :  { %13 = sbr.rel (!%p11_p0) target bundleno = 4 (0x4), region = 120 }

// kernel: _lambda_.32
= control target key start
LH: loop header
LB: loop body
LE: loop exit
PB: predicated region body
PF: predicated region fallthrough
CT: control target
= control target key end

     0   :  { %s1508_s18 = smov 0   ;;  %s1510_s19 = smov 0   ;;  %s1681_s0 = inlined_call_operand.vmem [shape: bf16[128,1152], index: 0, kind: input, shape index: {}]   ;;  %s1682_s1 = inlined_call_operand.vmem [shape: bf16[1152,128], index: 1, kind: input, shape index: {}]   ;;  %s1683_s2 = inlined_call_operand.vmem [shape: f32[1,128], index: 2, kind: input, shape index: {}]   ;;  %s1684_s3 = inlined_call_operand.vmem [shape: f32[1,128], index: 3, kind: input, shape index: {}]   ;;  %s1685_s4 = inlined_call_operand.vmem [shape: bf16[128,128], index: 4, kind: input, shape index: {}]   ;;  %s1686_s5 = inlined_call_operand.vmem [shape: bf16[128,128], index: 5, kind: output, shape index: {}]  }
   0x1   :  { %s1512_s20 = smov 0   ;;  %s1514_s21 = smov 0  }
   0x2   :  { %s1516_s22 = smov 0   ;;  %s1518_s23 = smov 0  }
   0x3   :  { %s1520_s24 = smov 0  }
   0x4 LB: > { %s27_s25 = sadd.s32 1, %s1467_s22  ;;  %s34_s26 = sadd.s32 1, %s1471_s23  ;;  %s1475_s24 = sphi %s1520_s24, %s15_s24   ;;  %s1471_s23 = sphi %s1518_s23, %s1692_s23   ;;  %s1467_s22 = sphi %s1516_s22, %s1691_s22   ;;  %s1463_s21 = sphi %s1514_s21, %s1690_s21   ;;  %s1459_s20 = sphi %s1512_s20, %s1689_s20   ;;  %s1455_s19 = sphi %s1510_s19, %s1688_s19   ;;  %s1451_s18 = sphi %s1508_s18, %s1687_s18  }
   0x5   : > { %p28_p0 = scmp.ge.s32.totalorder %s27_s25, 3  ;;  %p50_p1 = scmp.ne.s32.totalorder %s1455_s19, %s1451_s18 }
   0x6   : > { %p51_p2 = scmp.eq.s32.totalorder %s1475_s24, 0  ;;  %s43_s30 = sadd.s32 1, %s1455_s19 }
   0x7   : > { %s1694_s25 = smov (%p28_p0, %s27_s25), 0  ;;  %s1696_s26 = smov (!%p28_p0, %s34_s26), %s1471_s23 }
   0x8   : > { %p52_p3 = por %p51_p2, %p50_p1  ;;  %p36_p4 = scmp.ge.s32.totalorder %s1696_s26, 2 }
   0x9   : > { %s39_s27 = ssub.s32 %s1467_s22, %s1694_s25  ;;  %p1119_p6 = scmp.ge.s32.totalorder %s1475_s24, 6 }
   0xa   : > { %s1698_s26 = smov (%p36_p4, %s1696_s26), 0 }
   0xb   : > { %s38_s28 = ssub.s32 %s1471_s23, %s1698_s26  ;;  %224 = sbr.rel (%p1119_p6) target bundleno = 36 (0x24), region = 24 }
   0xc   : > { %s40_s29 = sor.u32 %s39_s27, %s38_s28 }
   0xd   : > { %p41_p5 = scmp.eq.s32.totalorder %s40_s29, 0 }
   0xf   : > { %s1559_s6 = scalar_select %p41_p5, %s1455_s19, %s43_s30  }
  0x12   : > { %227 = sbr.rel (!%p52_p3) target bundleno = 36 (0x24), region = 28  ;;  %s229_s7 = sand.u32 (%p52_p3), 1, %s1455_s19  }
  0x13   : > { %s233_s8 = smul.u32 (%p52_p3), 3, %s1467_s22 }
  0x14   : > { %s1321_s9 = smul.u32 (%p52_p3), 96, %s229_s7 }
  0x15   : > { %s1322_s10 = smul.u32 (%p52_p3), 72, %s1471_s23 }
  0x16   : > { %s231_s16 = scalar_lea.vmem (%p52_p3), [#allocation3], %s1321_s9 }
  0x17   : > { %s235_s11 = sadd.s32 (%p52_p3), %s1322_s10, %s233_s8 }
  0x18   : > { %s1122_s12 = sshll.u32 (%p52_p3), %s235_s11, 2 }
  0x19   : > { %s1568_s15 = scalar_lea.vmem %s1681_s0, %s1122_s12 }
  0x1a   : > { %v252_v0 = vld [vmem:[%s1568_s15] sm:$0xff]  ;;  %v256_v2 = vld [vmem:[%s1568_s15 + $0x48] sm:$0xff]  ;;  %v260_v4 = vld [vmem:[%s1568_s15 + $0x90] sm:$0xff] }
  0x1b   : > { %v254_v1 = vld [vmem:[%s1568_s15 + $0x24] sm:$0xff]  ;;  %253 = vst [vmem:[%s231_s16] sm:$0xff] %v252_v0  ;;  %257 = vst [vmem:[%s231_s16 + $0x18] sm:$0xff] %v256_v2  ;;  %v258_v3 = vld [vmem:[%s1568_s15 + $0x6c] sm:$0xff] }
  0x1c   : > { %255 = vst [vmem:[%s231_s16 + $0xc] sm:$0xff] %v254_v1  ;;  %v262_v5 = vld [vmem:[%s1568_s15 + $0xb4] sm:$0xff]  ;;  %259 = vst [vmem:[%s231_s16 + $0x24] sm:$0xff] %v258_v3  ;;  %v266_v7 = vld [vmem:[%s1568_s15 + $0xfc] sm:$0xff] }
  0x1d   : > { %261 = vst [vmem:[%s231_s16 + $0x30] sm:$0xff] %v260_v4  ;;  %263 = vst [vmem:[%s231_s16 + $0x3c] sm:$0xff] %v262_v5  ;;  %v264_v6 = vld [vmem:[%s1568_s15 + $0xd8] sm:$0xff]  ;;  %v1123_v8 = vld [vmem:[%s1568_s15 + $0x8] sm:$0xf] }
  0x1e   : > { %265 = vst [vmem:[%s231_s16 + $0x48] sm:$0xff] %v264_v6  ;;  %267 = vst [vmem:[%s231_s16 + $0x54] sm:$0xff] %v266_v7  ;;  %v1125_v9 = vld [vmem:[%s1568_s15 + $0x2c] sm:$0xf]  ;;  %v1127_v10 = vld [vmem:[%s1568_s15 + $0x50] sm:$0xf] }
  0x1f   : > { %1124 = vst [vmem:[%s231_s16 + $0x8] sm:$0xf] %v1123_v8  ;;  %v1129_v11 = vld [vmem:[%s1568_s15 + $0x74] sm:$0xf]  ;;  %1126 = vst [vmem:[%s231_s16 + $0x14] sm:$0xf] %v1125_v9 }
  0x20   : > { %1128 = vst [vmem:[%s231_s16 + $0x20] sm:$0xf] %v1127_v10  ;;  %1130 = vst [vmem:[%s231_s16 + $0x2c] sm:$0xf] %v1129_v11  ;;  %v1131_v12 = vld [vmem:[%s1568_s15 + $0x98] sm:$0xf] }
  0x21   : > { %v1133_v13 = vld [vmem:[%s1568_s15 + $0xbc] sm:$0xf]  ;;  %v1135_v14 = vld [vmem:[%s1568_s15 + $0xe0] sm:$0xf]  ;;  %1132 = vst [vmem:[%s231_s16 + $0x38] sm:$0xf] %v1131_v12 }
  0x22   : > { %1134 = vst [vmem:[%s231_s16 + $0x44] sm:$0xf] %v1133_v13  ;;  %1136 = vst [vmem:[%s231_s16 + $0x50] sm:$0xf] %v1135_v14  ;;  %v1137_v15 = vld [vmem:[%s1568_s15 + $0x104] sm:$0xf] }
  0x23   : > { %1138 = vst [vmem:[%s231_s16 + $0x5c] sm:$0xf] %v1137_v15 }
  0x24 PF: > { %p1139_p7 = scmp.ge.s32.totalorder %s1475_s24, 1  ;;  %p319_p8 = scmp.lt.s32.totalorder %s1475_s24, 7 }
  0x26   : > { %p320_p9 = pnand %p1139_p7, %p319_p8 }
  0x27   : > { %s326_s17 = sand.u32 (!%p320_p9), 1, %s1451_s18   ;;  %s380_s27 = smul.u32 (!%p320_p9), 48, %s1459_s20 }
  0x28   : > { %323 = sbr.rel (%p320_p9) target bundleno = 354 (0x162), region = 62  ;;  %s1141_s29 = sshll.u32 (!%p320_p9), %s1463_s21, 3 }
  0x29   : > { %s1323_s28 = smul.u32 (!%p320_p9), 96, %s326_s17  ;;  %p381_p10 = scmp.lt.s32.totalorder (!%p320_p9), %s380_s27, 143 }
  0x2a   : > { %p396_p11 = scmp.lt.s32.totalorder (!%p320_p9), %s1141_s29, 15  ;;  %p1145_p12 = scmp.ne.s32.totalorder (!%p320_p9), %s1459_s20, 0 }
  0x2b   : > { %s1606_s15 = scalar_lea.vmem (!%p320_p9), [#allocation3], %s1323_s28 }
  0x2f   : > { %s1700_s27 = smov (!%p381_p10, %s380_s27), 143  ;;  %s1702_s29 = smov (!%p396_p11, %s1141_s29), 15 }
  0x30   : > { %s1140_s30 = sshll.u32 %s1700_s27, 2  ;;  %s1142_s10 = sshll.u32 %s1702_s29, 2  ;;  %v1477_v16 = vmov (!%p1145_p12), 0.0  }
  0x31   : > { %s1594_s9 = scalar_lea.vmem %s1682_s1, %s1140_s30  ;;  %s1599_s13 = scalar_lea.vmem %s1685_s4, %s1142_s10  ;;  %418 = vst [vmem:[#allocation2] sm:$0xff] (!%p1145_p12), %v1477_v16  ;;  %419 = vst [vmem:[#allocation2 + $0x8] sm:$0xff] (!%p1145_p12), %v1477_v16 }
  0x32   : > { %s1604_s21 = scalar_lea.vmem %s1686_s5, %s1142_s10  ;;  %417 = sbr.rel (%p1145_p12) target bundleno = 57 (0x39), region = 70  ;;  %420 = vst [vmem:[#allocation2 + $0x10] sm:$0xff] (!%p1145_p12), %v1477_v16  ;;  %421 = vst [vmem:[#allocation2 + $0x18] sm:$0xff] (!%p1145_p12), %v1477_v16 }
  0x33   : > { %422 = vst [vmem:[#allocation2 + $0x20] sm:$0xff] (!%p1145_p12), %v1477_v16  ;;  %423 = vst [vmem:[#allocation2 + $0x28] sm:$0xff] (!%p1145_p12), %v1477_v16 }
  0x34   : > { %424 = vst [vmem:[#allocation2 + $0x30] sm:$0xff] (!%p1145_p12), %v1477_v16  ;;  %425 = vst [vmem:[#allocation2 + $0x38] sm:$0xff] (!%p1145_p12), %v1477_v16 }
  0x39 PF: > { %v1381_v17 = vld [vmem:[%s1594_s9 + $0x40] sm:$0xff]   ;;  %v1384_v20 = vld [vmem:[%s1594_s9 + $0x48] sm:$0xff]   ;;  %v1387_v23 = vld [vmem:[%s1594_s9 + $0x50] sm:$0xff]   ;;  %p1182_p13 = scmp.ne.s32.totalorder %s1459_s20, 2 }
  0x3a   : > { %v1382_v18 = vld [vmem:[%s1594_s9] sm:$0xff]   ;;  %1245 = vmatprep.subr.bf16.mxu0 %v1381_v17  ;;  %v1385_v21 = vld [vmem:[%s1594_s9 + $0x8] sm:$0xff]   ;;  %v1388_v24 = vld [vmem:[%s1594_s9 + $0x10] sm:$0xff]  }
  0x3b   : > { %v1383_v19 = vld [vmem:[%s1594_s9 + $0x80] sm:$0xff]   ;;  %1246 = vmatpush3.bf16.msra.mxu0 %v1382_v18  ;;  %v1386_v22 = vld [vmem:[%s1594_s9 + $0x88] sm:$0xff]   ;;  %v1389_v25 = vld [vmem:[%s1594_s9 + $0x90] sm:$0xff]  }
  0x3c   : > { %1297 = vmatprep.subr.bf16.mxu1 %v1383_v19  ;;  %1247 = vmatprep.subr.bf16.mxu0 %v1384_v20  ;;  %v1390_v26 = vld [vmem:[%s1594_s9 + $0x58] sm:$0xff]   ;;  %v1393_v29 = vld [vmem:[%s1594_s9 + $0x60] sm:$0xff]   ;;  %v1396_v32 = vld [vmem:[%s1594_s9 + $0x68] sm:$0xff]  }
  0x3d   : > { %1298 = vmatpush3.bf16.msra.mxu1 %v1383_v19  ;;  %v1391_v27 = vld [vmem:[%s1594_s9 + $0x18] sm:$0xff]   ;;  %v1395_v30 = vld [vmem:[%s1594_s9 + $0xa0] sm:$0xff]   ;;  %v1398_v33 = vld [vmem:[%s1594_s9 + $0xa8] sm:$0xff]  }
  0x3e   : > { %1299 = vmatprep.subr.bf16.mxu1 %v1386_v22  ;;  %v1392_v28 = vld [vmem:[%s1594_s9 + $0x98] sm:$0xff]   ;;  %v1394_v31 = vld [vmem:[%s1594_s9 + $0x20] sm:$0xff]   ;;  %v1397_v34 = vld [vmem:[%s1594_s9 + $0x28] sm:$0xff]  }
  0x3f   : > { %1248 = vmatpush3.bf16.msra.mxu0 %v1385_v21  ;;  %v1399_v35 = vld [vmem:[%s1594_s9 + $0x70] sm:$0xff]   ;;  %v1402_v38 = vld [vmem:[%s1594_s9 + $0x78] sm:$0xff]   ;;  %v1405_v43 = vld [vmem:[%s1606_s15] ss:$12 sps:$4 sm:$0xff]  }
  0x40   : > { %1249 = vmatprep.subr.bf16.mxu0 %v1387_v23  ;;  %v1400_v36 = vld [vmem:[%s1594_s9 + $0x30] sm:$0xff]   ;;  %v1404_v39 = vld [vmem:[%s1594_s9 + $0xb8] sm:$0xff]   ;;  %v1409_v45 = vld [vmem:[%s1606_s15 + $0x20] ss:$12 sps:$4 sm:$0xff]  }
  0x41   : > { %1300 = vmatpush3.bf16.msra.mxu1 %v1386_v22  ;;  %v1401_v37 = vld [vmem:[%s1594_s9 + $0xb0] sm:$0xff]   ;;  %v1403_v42 = vld [vmem:[%s1594_s9 + $0x38] sm:$0xff]   ;;  %v426_v59 = vld [vmem:[#allocation2] sm:$0xff] }
  0x42   : > { %1301 = vmatprep.subr.bf16.mxu1 %v1389_v25  ;;  %v1407_v40 = vld [vmem:[%s1606_s15 + $0x4] ss:$12 sps:$4 sm:$0xff]   ;;  %v1408_v41 = vld [vmem:[%s1606_s15 + $0x8] ss:$12 sps:$4 sm:$0xff]   ;;  %v1418_v51 = vld [vmem:[%s1606_s15 + $0x4c] ss:$12 sps:$4 sm:$0xff]  }
  0x43   : > { %1250 = vmatpush3.bf16.msra.mxu0 %v1388_v24  ;;  %738 = vmatprep.mubr.bf16.mxu0 %v1407_v40  ;;  %v1410_v44 = vld [vmem:[%s1606_s15 + $0x1c] ss:$12 sps:$4 sm:$0xff]   ;;  %v1416_v46 = vld [vmem:[%s1606_s15 + $0x38] ss:$12 sps:$4 sm:$0xff]   ;;  %v1413_v48 = vld [vmem:[%s1606_s15 + $0x34] ss:$12 sps:$4 sm:$0xff]  }
  0x44   : > { %1251 = vmatprep.subr.bf16.mxu0 %v1390_v26  ;;  %1313 = vmatprep.mubr.bf16.mxu1 %v1408_v41  ;;  %v1412_v47 = vld [vmem:[%s1606_s15 + $0x18] ss:$12 sps:$4 sm:$0xff]   ;;  %v1417_v49 = vld [vmem:[%s1606_s15 + $0x50] ss:$12 sps:$4 sm:$0xff]   ;;  %v1420_v52 = vld [vmem:[%s1606_s15 + $0x48] ss:$12 sps:$4 sm:$0xff]  }
  0x45   : > { %1302 = vmatpush3.bf16.msra.mxu1 %v1389_v25  ;;  %v1415_v50 = vld [vmem:[%s1606_s15 + $0x30] ss:$12 sps:$4 sm:$0xff]   ;;  %v427_v0 = vld [vmem:[#allocation2 + $0x8] sm:$0xff]  ;;  %v430_v26 = vld [vmem:[#allocation2 + $0x20] sm:$0xff] }
  0x46   : > { %1303 = vmatprep.subr.bf16.mxu1 %v1392_v28  ;;  %v428_v10 = vld [vmem:[#allocation2 + $0x10] sm:$0xff]  ;;  %v429_v16 = vld [vmem:[#allocation2 + $0x18] sm:$0xff] }
  0x47   : > { %1252 = vmatpush3.bf16.msra.mxu0 %v1391_v27  ;;  %v433_v41 = vld [vmem:[#allocation2 + $0x38] sm:$0xff] }
  0x48   : > { %1253 = vmatprep.subr.bf16.mxu0 %v1393_v29  ;;  %v431_v29 = vld [vmem:[#allocation2 + $0x28] sm:$0xff] }
  0x49   : > { %1304 = vmatpush3.bf16.msra.mxu1 %v1392_v28 }
  0x4a   : > { %1305 = vmatprep.subr.bf16.mxu1 %v1395_v30 }
  0x4b   : > { %1254 = vmatpush3.bf16.msra.mxu0 %v1394_v31 }
  0x4c   : > { %1255 = vmatprep.subr.bf16.mxu0 %v1396_v32 }
  0x4d   : > { %1306 = vmatpush3.bf16.msra.mxu1 %v1395_v30 }
  0x4e   : > { %1307 = vmatprep.subr.bf16.mxu1 %v1398_v33 }
  0x4f   : > { %1256 = vmatpush3.bf16.msra.mxu0 %v1397_v34 }
  0x50   : > { %1257 = vmatprep.subr.bf16.mxu0 %v1399_v35 }
  0x51   : > { %1308 = vmatpush3.bf16.msra.mxu1 %v1398_v33 }
  0x52   : > { %1309 = vmatprep.subr.bf16.mxu1 %v1401_v37 }
  0x53   : > { %1258 = vmatpush3.bf16.msra.mxu0 %v1400_v36 }
  0x54   : > { %1259 = vmatprep.subr.bf16.mxu0 %v1402_v38 }
  0x55   : > { %1310 = vmatpush3.bf16.msra.mxu1 %v1401_v37  ;;  %v432_v37 = vld [vmem:[#allocation2 + $0x30] sm:$0xff] }
  0x56   : > { %1311 = vmatprep.subr.bf16.mxu1 %v1404_v39 }
  0x57   : > { %1260 = vmatpush3.bf16.msra.mxu0 %v1403_v42 }
  0x59   : > { %1312 = vmatpush3.bf16.msra.mxu1 %v1404_v39 }
  0x5a   : > { %739 = vmatmul.mubr.bf16.vlgmr.msra.gmra.mrb[0].mxu0 %v1405_v43 }
  0x5b   : > { %746 = vmatprep.mubr.bf16.mxu0 %v1410_v44 }
  0x5c   : > { %1314 = vmatmul.mubr.bf16.vlgmr.msra.gmra.mrb[0].mxu1 %v1409_v45 }
  0x5d   : > { %1317 = vmatprep.mubr.bf16.mxu1 %v1416_v46 }
  0x62   : > { %747 = vmatmul.mubr.bf16.gmra.mrb[4].mxu0 %v1412_v47  ;;  %v1183_v47 = vld [vmem:[%s1683_s2] ss:$0 sm:$0xff] (!%p1182_p13) }
  0x63   : > { %754 = vmatprep.mubr.bf16.mxu0 %v1413_v48 }
  0x64   : > { %1318 = vmatmul.mubr.bf16.gmra.mrb[4].mxu1 %v1417_v49 }
  0x6a   : > { %755 = vmatmul.mubr.bf16.gmra.mrb[8].mxu0 %v1415_v50  ;;  %v1184_v50 = vld [vmem:[%s1684_s3] ss:$0 sm:$0xff] (!%p1182_p13) }
  0x6b   : > { %762 = vmatprep.mubr.bf16.mxu0 %v1418_v51  ;;  %v1204_v51 = vld [vmem:[%s1599_s13] sm:$0xff] (!%p1182_p13)  }
  0x72   : > { %763 = vmatmul.mubr.bf16.gmra.mrb[12].mxu0 %v1420_v52 }
 0x12d   : > { %v1261_v53 = vpop.f32.mrb[0].mxu0 }
 0x12e   : > { %v1262_v54 = vpop.f32.mrb[1].mxu0 }
 0x12f   : > { %v1263_v55 = vadd.f32 %v1262_v54, %v1261_v53  ;;  %v1264_v56 = vpop.f32.mrb[2].mxu0  ;;  %v1315_v57 = vpop.f32.mrb[0].mxu1  ;;  %v1205_v53 = vunpack.c.l.bf16 (!%p1182_p13), %v1204_v51  ;;  %v1206_v54 = vunpack.c.h.bf16 (!%p1182_p13), %v1204_v51 }
 0x130   : > { %v1265_v58 = vpop.f32.mrb[3].mxu0  ;;  %v805_v60 = vpop.f32.mrb[1].mxu1 }
 0x131   : > { %v1266_v61 = vadd.f32 %v1265_v58, %v1264_v56  ;;  %v806_v62 = vadd.f32 %v1263_v55, %v805_v60  ;;  %v1316_v63 = vpop.f32.mrb[2].mxu1 }
 0x132   : > { %v808_v1 = vpop.f32.mrb[3].mxu1 }
 0x133   : > { %v836_v2 = vadd.f32 %v806_v62, %v426_v59  ;;  %v809_v3 = vadd.f32 %v1266_v61, %v808_v1 }
 0x135   : > { %844 = vst [vmem:[#allocation2] sm:$0xff] %v836_v2  ;;  %v837_v4 = vadd.f32 %v809_v3, %v427_v0  ;;  %v1267_v5 = vpop.f32.mrb[4].mxu0  ;;  %v1240_v0 = vld [vmem:[%s1599_s13 + $0x10] sm:$0xff] (!%p1182_p13)  }
 0x136   : > { %v1268_v6 = vpop.f32.mrb[5].mxu0 }
 0x137   : > { %845 = vst [vmem:[#allocation2 + $0x8] sm:$0xff] %v837_v4  ;;  %v1269_v7 = vadd.f32 %v1268_v6, %v1267_v5  ;;  %v1270_v8 = vpop.f32.mrb[6].mxu0  ;;  %v1319_v9 = vpop.f32.mrb[4].mxu1 }
 0x138   : > { %v1271_v11 = vpop.f32.mrb[7].mxu0  ;;  %v821_v12 = vpop.f32.mrb[5].mxu1 }
 0x139   : > { %v814_v13 = vadd.f32 %v1315_v57, %v1269_v7  ;;  %v1272_v14 = vadd.f32 %v1271_v11, %v1270_v8  ;;  %v1320_v15 = vpop.f32.mrb[6].mxu1  ;;  %v1239_v57 = vld [vmem:[%s1599_s13 + $0x8] sm:$0xff] (!%p1182_p13)  }
 0x13a   : > { %v824_v17 = vpop.f32.mrb[7].mxu1  ;;  %v1209_v62 = vunpack.c.l.bf16 (!%p1182_p13), %v1239_v57  ;;  %v1210_v2 = vunpack.c.h.bf16 (!%p1182_p13), %v1239_v57 }
 0x13b   : > { %v838_v18 = vadd.f32 %v814_v13, %v428_v10  ;;  %v817_v19 = vadd.f32 %v1316_v63, %v1272_v14  ;;  %v1214_v14 = vunpack.c.h.bf16 (!%p1182_p13), %v1240_v0 }
 0x13c   : > { %v856_v45 = vld [vmem:[#allocation2] sm:$0xff] (!%p1182_p13) }
 0x13d   : > { %846 = vst [vmem:[#allocation2 + $0x10] sm:$0xff] %v838_v18  ;;  %v839_v20 = vadd.f32 %v817_v19, %v429_v16  ;;  %v1273_v21 = vpop.f32.mrb[8].mxu0  ;;  %v871_v48 = vmul.f32 (!%p1182_p13), %v1183_v47, %v856_v45 }
 0x13e   : > { %v1274_v22 = vpop.f32.mrb[9].mxu0  ;;  %v857_v46 = vld [vmem:[#allocation2 + $0x8] sm:$0xff] (!%p1182_p13) }
 0x13f   : > { %847 = vst [vmem:[#allocation2 + $0x18] sm:$0xff] %v839_v20  ;;  %v1275_v23 = vadd.f32 %v1274_v22, %v1273_v21  ;;  %v1276_v24 = vpop.f32.mrb[10].mxu0  ;;  %v872_v49 = vmul.f32 (!%p1182_p13), %v1183_v47, %v857_v46  ;;  %v886_v59 = vadd.f32 (!%p1182_p13), %v1184_v50, %v871_v48 }
 0x140   : > { %v1277_v25 = vpop.f32.mrb[11].mxu0 }
 0x141   : > { %v1278_v27 = vadd.f32 %v1277_v25, %v1276_v24  ;;  %v822_v28 = vadd.f32 %v1275_v23, %v821_v12  ;;  %v887_v60 = vadd.f32 (!%p1182_p13), %v1184_v50, %v872_v49  ;;  %v910_v6 = vadd.f32 (!%p1182_p13), %v1205_v53, %v886_v59 }
 0x143   : > { %v840_v30 = vadd.f32 %v822_v28, %v430_v26  ;;  %v825_v31 = vadd.f32 %v1278_v27, %v824_v17  ;;  %v911_v7 = vadd.f32 (!%p1182_p13), %v1206_v54, %v887_v60  ;;  %v918_v16 = vmax.f32 (!%p1182_p13), %v910_v6, 0.0 }
 0x144   : > { %v858_v52 = vld [vmem:[#allocation2 + $0x10] sm:$0xff] (!%p1182_p13) }
 0x145   : > { %848 = vst [vmem:[#allocation2 + $0x20] sm:$0xff] %v840_v30  ;;  %v841_v32 = vadd.f32 %v825_v31, %v431_v29  ;;  %v1279_v33 = vpop.f32.mrb[12].mxu0  ;;  %v873_v56 = vmul.f32 (!%p1182_p13), %v1183_v47, %v858_v52  ;;  %v919_v17 = vmax.f32 (!%p1182_p13), %v911_v7, 0.0 }
 0x146   : > { %v1280_v34 = vpop.f32.mrb[13].mxu0  ;;  %v859_v55 = vld [vmem:[#allocation2 + $0x18] sm:$0xff] (!%p1182_p13) }
 0x147   : > { %849 = vst [vmem:[#allocation2 + $0x28] sm:$0xff] %v841_v32  ;;  %v1281_v35 = vadd.f32 %v1280_v34, %v1279_v33  ;;  %v1282_v36 = vpop.f32.mrb[14].mxu0  ;;  %v874_v61 = vmul.f32 (!%p1182_p13), %v1183_v47, %v859_v55  ;;  %v888_v1 = vadd.f32 (!%p1182_p13), %v1184_v50, %v873_v56  ;;  %v1222_v24 = vpack.c.bf16 (!%p1182_p13), %v919_v17, %v918_v16 }
 0x148   : > { %v1283_v38 = vpop.f32.mrb[15].mxu0 }
 0x149   : > { %v830_v39 = vadd.f32 %v1319_v9, %v1281_v35  ;;  %v1284_v40 = vadd.f32 %v1283_v38, %v1282_v36  ;;  %855 = sbr.rel (%p1182_p13) target bundleno = 354 (0x162), region = 74  ;;  %v889_v8 = vadd.f32 (!%p1182_p13), %v1184_v50, %v874_v61  ;;  %v1213_v9 = vunpack.c.l.bf16 (!%p1182_p13), %v1240_v0  ;;  %1223 = vst [vmem:[%s1604_s21] sm:$0xff] (!%p1182_p13), %v1222_v24  }
 0x14a   : > { %v912_v11 = vadd.f32 (!%p1182_p13), %v1209_v62, %v888_v1 }
 0x14b   : > { %v842_v42 = vadd.f32 %v830_v39, %v432_v37  ;;  %v833_v43 = vadd.f32 %v1320_v15, %v1284_v40  ;;  %v1241_v15 = vld [vmem:[%s1599_s13 + $0x18] sm:$0xff] (!%p1182_p13)   ;;  %v913_v18 = vadd.f32 (!%p1182_p13), %v1210_v2, %v889_v8 }
 0x14c   : > { %v860_v58 = vld [vmem:[#allocation2 + $0x20] sm:$0xff] (!%p1182_p13)  ;;  %v920_v20 = vmax.f32 (!%p1182_p13), %v912_v11, 0.0  ;;  %v1217_v27 = vunpack.c.l.bf16 (!%p1182_p13), %v1241_v15  ;;  %v1218_v31 = vunpack.c.h.bf16 (!%p1182_p13), %v1241_v15 }
 0x14d   : > { %850 = vst [vmem:[#allocation2 + $0x30] sm:$0xff] %v842_v42  ;;  %v843_v44 = vadd.f32 %v833_v43, %v433_v41  ;;  %v875_v3 = vmul.f32 (!%p1182_p13), %v1183_v47, %v860_v58  ;;  %v921_v25 = vmax.f32 (!%p1182_p13), %v913_v18, 0.0 }
 0x14e   : > { %v861_v63 = vld [vmem:[#allocation2 + $0x28] sm:$0xff] (!%p1182_p13) }
 0x14f   : > { %851 = vst [vmem:[#allocation2 + $0x38] sm:$0xff] %v843_v44  ;;  %v876_v4 = vmul.f32 (!%p1182_p13), %v1183_v47, %v861_v63  ;;  %v890_v12 = vadd.f32 (!%p1182_p13), %v1184_v50, %v875_v3  ;;  %v1227_v32 = vpack.c.bf16 (!%p1182_p13), %v921_v25, %v920_v20 }
 0x151   : > { %v891_v13 = vadd.f32 %v1184_v50, %v876_v4  ;;  %v914_v21 = vadd.f32 %v1213_v9, %v890_v12  ;;  %1242 = vst [vmem:[%s1604_s21 + $0x8] sm:$0xff] %v1227_v32  }
 0x153   : > { %v915_v22 = vadd.f32 %v1214_v14, %v891_v13  ;;  %v922_v28 = vmax.f32 %v914_v21, 0.0 }
 0x154   : > { %v862_v5 = vld [vmem:[#allocation2 + $0x30] sm:$0xff] }
 0x155   : > { %v877_v19 = vmul.f32 %v1183_v47, %v862_v5  ;;  %v923_v29 = vmax.f32 %v915_v22, 0.0 }
 0x156   : > { %v863_v10 = vld [vmem:[#allocation2 + $0x38] sm:$0xff] }
 0x157   : > { %v878_v23 = vmul.f32 %v1183_v47, %v863_v10  ;;  %v892_v26 = vadd.f32 %v1184_v50, %v877_v19  ;;  %v1232_v34 = vpack.c.bf16 %v923_v29, %v922_v28 }
 0x159   : > { %v893_v30 = vadd.f32 %v1184_v50, %v878_v23  ;;  %v916_v33 = vadd.f32 %v1217_v27, %v892_v26  ;;  %1243 = vst [vmem:[%s1604_s21 + $0x10] sm:$0xff] %v1232_v34  }
 0x15b   : > { %v917_v35 = vadd.f32 %v1218_v31, %v893_v30  ;;  %v924_v36 = vmax.f32 %v916_v33, 0.0 }
 0x15d   : > { %v925_v37 = vmax.f32 %v917_v35, 0.0 }
 0x15f   : > { %v1237_v38 = vpack.c.bf16 %v925_v37, %v924_v36 }
 0x161   : > { %1244 = vst [vmem:[%s1604_s21 + $0x18] sm:$0xff] %v1237_v38  }
 0x162 PF: > { %s15_s24 = sadd.s32 1, %s1475_s24   ;;  %s1687_s18 = smov %s1455_s19 }
 0x163   : > { %p12_p0 = scmp.ge.s32.totalorder %s15_s24, 8   ;;  %s1688_s19 = smov %s1559_s6 }
 0x164   : > { %s1689_s20 = smov %s1467_s22  ;;  %s1690_s21 = smov %s1471_s23 }
 0x165   : > { %s1691_s22 = smov %s1694_s25  ;;  %s1692_s23 = smov %s1698_s26 }
 0x166   :  { %14 = sbr.rel (!%p12_p0) target bundleno = 4 (0x4), region = 127 }

// kernel: _lambda_.36
= control target key start
LH: loop header
LB: loop body
LE: loop exit
PB: predicated region body
PF: predicated region fallthrough
CT: control target
= control target key end

     0   :  { %s1830_s0 = inlined_call_operand.vmem [shape: bf16[32,1152], index: 0, kind: input, shape index: {}]   ;;  %s1831_s1 = inlined_call_operand.vmem [shape: bf16[1152,256], index: 1, kind: input, shape index: {}]   ;;  %s1832_s2 = inlined_call_operand.vmem [shape: f32[1,256], index: 2, kind: input, shape index: {}]   ;;  %s1833_s3 = inlined_call_operand.vmem [shape: f32[1,256], index: 3, kind: input, shape index: {}]   ;;  %s1834_s4 = inlined_call_operand.vmem [shape: bf16[32,256], index: 4, kind: output, shape index: {}]  }
   0x1   :  { %1838 = sst [smem:[#allocation9_spill]] %s1830_s0 }
   0x2   :  { %1839 = sst [smem:[#allocation10_spill]] %s1831_s1 }
   0x3   :  { %s1506_s15 = smov 0   ;;  %s1508_s16 = smov 0  }
   0x4   :  { %s1510_s17 = smov 0   ;;  %s1512_s18 = smov 0  }
   0x5   :  { %s1514_s19 = smov 0   ;;  %s1516_s20 = smov 0  }
   0x6   :  { %s1518_s21 = smov 0   ;;  %s1520_s22 = smov 0  }
   0x7   :  { %s1522_s23 = smov 0   ;;  %s1524_s24 = smov 0  }
   0x8   :  { %s1526_s25 = smov 0  }
   0x9 LB: > { %1840 = sst [smem:[#allocation6_spill]] %s1474_s24  ;;  %s1133_s26 = sadd.s32 4294967295, %s1478_s25   ;;  %s1478_s25 = sphi %s1526_s25, %s14_s25   ;;  %s1474_s24 = sphi %s1524_s24, %s1850_s24   ;;  %s1470_s23 = sphi %s1522_s23, %s1858_s23   ;;  %s1466_s22 = sphi %s1520_s22, %s1848_s22   ;;  %s1462_s21 = sphi %s1518_s21, %s1857_s21   ;;  %s1458_s20 = sphi %s1516_s20, %s1856_s20   ;;  %s1454_s19 = sphi %s1514_s19, %s1855_s19   ;;  %s1450_s18 = sphi %s1512_s18, %s1854_s18   ;;  %s1446_s17 = sphi %s1510_s17, %s1853_s17   ;;  %s1442_s16 = sphi %s1508_s16, %s1852_s16   ;;  %s1438_s15 = sphi %s1506_s15, %s1851_s15  }
   0xa   : > { %s26_s27 = sadd.s32 1, %s1470_s23  ;;  %s29_s28 = sadd.s32 1, %s1474_s24 }
   0xb   : > { %p27_p0 = scmp.ge.s32.totalorder %s26_s27, 3  ;;  %s42_s29 = sadd.s32 1, %s1458_s20 }
   0xc   : > { %p49_p1 = scmp.ne.s32.totalorder %s1458_s20, %s1454_s19  ;;  %p50_p2 = scmp.eq.s32.totalorder %s1478_s25, 0 }
   0xd   : > { %s1860_s27 = smov (%p27_p0, %s26_s27), 0  ;;  %s1862_s28 = smov (!%p27_p0, %s29_s28), %s1474_s24 }
   0xe   : > { %1841 = sst [smem:[#allocation7_spill]] %s1860_s27  ;;  %s38_s30 = ssub.s32 %s1470_s23, %s1860_s27 }
   0xf   : > { %p31_p3 = scmp.ge.s32.totalorder %s1862_s28, 2  ;;  %p40_p4 = scmp.eq.s32.totalorder %s38_s30, 0 }
  0x10   : > { %p1573_p5 = por %p50_p2, %p49_p1  ;;  %s70_s6 = sadd.s32 1, %s1450_s18 }
  0x11   : > { %s1864_s28 = smov (%p31_p3, %s1862_s28), 0  ;;  %p77_p6 = scmp.ne.s32.totalorder %s1450_s18, %s1446_s17 }
  0x12   : > { %1843 = sst [smem:[#allocation8_spill]] %s1864_s28  ;;  %s66_s8 = ssub.s32 %s1474_s24, %s1864_s28 }
  0x13   : > { %s1581_s7 = scalar_select %p40_p4, %s1458_s20, %s42_s29  }
  0x14   : > { %s67_s9 = sor.u32 %s66_s8, %s38_s30  ;;  %p148_p7 = scmp.eq.s32.totalorder %s66_s8, 0 }
  0x15   : > { %p68_p8 = scmp.eq.s32.totalorder %s67_s9, 0  ;;  %p1587_p9 = por %p77_p6, %p50_p2 }
  0x16   : > { %s150_s11 = sadd.s32 1, %s1442_s16  ;;  %p160_p10 = scmp.ne.s32.totalorder %s1442_s16, %s1438_s15 }
  0x17   : > { %s1595_s12 = scalar_select %p68_p8, %s1450_s18, %s70_s6  }
  0x18   : > { %s1598_s13 = scalar_select %p148_p7, %s1442_s16, %s150_s11  }
  0x19   : > { %p161_p11 = scmp.eq.s32.totalorder %s1133_s26, 5  ;;  %p1136_p13 = scmp.ge.s32.totalorder %s1478_s25, 6 }
  0x1b   : > { %p1600_p12 = por %p161_p11, %p160_p10  ;;  %183 = sbr.rel (%p1136_p13) target bundleno = 88 (0x58), region = 16 }
  0x22   : > { %186 = sbr.rel (!%p1573_p5) target bundleno = 47 (0x2f), region = 20  ;;  %s188_s29 = sand.u32 (%p1573_p5), 1, %s1458_s20  }
  0x23   : > { %s1192_s30 = smul.u32 (%p1573_p5), 12, %s1470_s23  ;;  %s1846_s0 = sld [smem:[#allocation9_spill]] (%p1573_p5) }
  0x24   : > { %s1267_s8 = smul.u32 (%p1573_p5), 48, %s188_s29 }
  0x26   : > { %s190_s26 = scalar_lea.vmem (%p1573_p5), [#allocation3], %s1267_s8 }
  0x29   : > { %s196_s11 = scalar_lea.vmem %s1846_s0, %s1192_s30 }
  0x2a   : > { %v211_v0 = vld [vmem:[%s196_s11] sm:$0xff]  ;;  %v215_v2 = vld [vmem:[%s196_s11 + $0x48] sm:$0xff]  ;;  %v1142_v6 = vld [vmem:[%s196_s11 + $0x50] sm:$0xf] }
  0x2b   : > { %v213_v1 = vld [vmem:[%s196_s11 + $0x24] sm:$0xff]  ;;  %212 = vst [vmem:[%s190_s26] sm:$0xff] %v211_v0  ;;  %216 = vst [vmem:[%s190_s26 + $0x18] sm:$0xff] %v215_v2  ;;  %v217_v3 = vld [vmem:[%s196_s11 + $0x6c] sm:$0xff] }
  0x2c   : > { %214 = vst [vmem:[%s190_s26 + $0xc] sm:$0xff] %v213_v1  ;;  %v1138_v4 = vld [vmem:[%s196_s11 + $0x8] sm:$0xf]  ;;  %v1140_v5 = vld [vmem:[%s196_s11 + $0x2c] sm:$0xf]  ;;  %218 = vst [vmem:[%s190_s26 + $0x24] sm:$0xff] %v217_v3 }
  0x2d   : > { %1139 = vst [vmem:[%s190_s26 + $0x8] sm:$0xf] %v1138_v4  ;;  %1141 = vst [vmem:[%s190_s26 + $0x14] sm:$0xf] %v1140_v5  ;;  %v1144_v7 = vld [vmem:[%s196_s11 + $0x74] sm:$0xf] }
  0x2e   : > { %1143 = vst [vmem:[%s190_s26 + $0x20] sm:$0xf] %v1142_v6  ;;  %1145 = vst [vmem:[%s190_s26 + $0x2c] sm:$0xf] %v1144_v7 }
  0x2f PF: > { %239 = sbr.rel (!%p1587_p9) target bundleno = 88 (0x58), region = 46  ;;  %s241_s5 = sand.u32 (%p1587_p9), 1, %s1450_s18  }
  0x30   : > { %s1193_s29 = smul.u32 (%p1587_p9), 96, %s1470_s23  ;;  %s1847_s1 = sld [smem:[#allocation10_spill]] (%p1587_p9) }
  0x31   : > { %s1268_s30 = smul.u32 (%p1587_p9), 192, %s241_s5 }
  0x32   : > { %s246_s8 = sadd.s32 (%p1587_p9), %s1474_s24, %s1193_s29 }
  0x33   : > { %s1147_s6 = sshll.u32 (%p1587_p9), %s246_s8, 2  ;;  %s1625_s10 = scalar_lea.vmem (%p1587_p9), [#allocation4], %s1268_s30 }
  0x36   : > { %s1620_s28 = scalar_lea.vmem %s1847_s1, %s1147_s6 }
  0x37   : > { %v264_v8 = vld [vmem:[%s1620_s28] sm:$0xf]  ;;  %v266_v9 = vld [vmem:[%s1620_s28 + $0x8] sm:$0xf]  ;;  %v268_v10 = vld [vmem:[%s1620_s28 + $0x10] sm:$0xf] }
  0x38   : > { %265 = vst [vmem:[%s1625_s10] sm:$0xf] %v264_v8  ;;  %267 = vst [vmem:[%s1625_s10 + $0x4] sm:$0xf] %v266_v9  ;;  %v270_v11 = vld [vmem:[%s1620_s28 + $0x18] sm:$0xf] }
  0x39   : > { %269 = vst [vmem:[%s1625_s10 + $0x8] sm:$0xf] %v268_v10  ;;  %v272_v12 = vld [vmem:[%s1620_s28 + $0x20] sm:$0xf]  ;;  %v274_v13 = vld [vmem:[%s1620_s28 + $0x28] sm:$0xf] }
  0x3a   : > { %271 = vst [vmem:[%s1625_s10 + $0xc] sm:$0xf] %v270_v11  ;;  %273 = vst [vmem:[%s1625_s10 + $0x10] sm:$0xf] %v272_v12  ;;  %v276_v14 = vld [vmem:[%s1620_s28 + $0x30] sm:$0xf] }
  0x3b   : > { %275 = vst [vmem:[%s1625_s10 + $0x14] sm:$0xf] %v274_v13  ;;  %v278_v15 = vld [vmem:[%s1620_s28 + $0x38] sm:$0xf]  ;;  %v280_v16 = vld [vmem:[%s1620_s28 + $0x40] sm:$0xf] }
  0x3c   : > { %277 = vst [vmem:[%s1625_s10 + $0x18] sm:$0xf] %v276_v14  ;;  %279 = vst [vmem:[%s1625_s10 + $0x1c] sm:$0xf] %v278_v15  ;;  %v282_v17 = vld [vmem:[%s1620_s28 + $0x48] sm:$0xf] }
  0x3d   : > { %281 = vst [vmem:[%s1625_s10 + $0x20] sm:$0xf] %v280_v16  ;;  %v284_v18 = vld [vmem:[%s1620_s28 + $0x50] sm:$0xf]  ;;  %v286_v19 = vld [vmem:[%s1620_s28 + $0x58] sm:$0xf] }
  0x3e   : > { %283 = vst [vmem:[%s1625_s10 + $0x24] sm:$0xf] %v282_v17  ;;  %285 = vst [vmem:[%s1625_s10 + $0x28] sm:$0xf] %v284_v18  ;;  %v288_v20 = vld [vmem:[%s1620_s28 + $0x60] sm:$0xf] }
  0x3f   : > { %287 = vst [vmem:[%s1625_s10 + $0x2c] sm:$0xf] %v286_v19  ;;  %v290_v21 = vld [vmem:[%s1620_s28 + $0x68] sm:$0xf]  ;;  %v292_v22 = vld [vmem:[%s1620_s28 + $0x70] sm:$0xf] }
  0x40   : > { %289 = vst [vmem:[%s1625_s10 + $0x30] sm:$0xf] %v288_v20  ;;  %291 = vst [vmem:[%s1625_s10 + $0x34] sm:$0xf] %v290_v21  ;;  %v294_v23 = vld [vmem:[%s1620_s28 + $0x78] sm:$0xf] }
  0x41   : > { %293 = vst [vmem:[%s1625_s10 + $0x38] sm:$0xf] %v292_v22  ;;  %v296_v24 = vld [vmem:[%s1620_s28 + $0x80] sm:$0xf]  ;;  %v298_v25 = vld [vmem:[%s1620_s28 + $0x88] sm:$0xf] }
  0x42   : > { %295 = vst [vmem:[%s1625_s10 + $0x3c] sm:$0xf] %v294_v23  ;;  %297 = vst [vmem:[%s1625_s10 + $0x40] sm:$0xf] %v296_v24  ;;  %v300_v26 = vld [vmem:[%s1620_s28 + $0x90] sm:$0xf] }
  0x43   : > { %299 = vst [vmem:[%s1625_s10 + $0x44] sm:$0xf] %v298_v25  ;;  %v302_v27 = vld [vmem:[%s1620_s28 + $0x98] sm:$0xf]  ;;  %v304_v28 = vld [vmem:[%s1620_s28 + $0xa0] sm:$0xf] }
  0x44   : > { %301 = vst [vmem:[%s1625_s10 + $0x48] sm:$0xf] %v300_v26  ;;  %303 = vst [vmem:[%s1625_s10 + $0x4c] sm:$0xf] %v302_v27  ;;  %v306_v29 = vld [vmem:[%s1620_s28 + $0xa8] sm:$0xf] }
  0x45   : > { %305 = vst [vmem:[%s1625_s10 + $0x50] sm:$0xf] %v304_v28  ;;  %v308_v30 = vld [vmem:[%s1620_s28 + $0xb0] sm:$0xf]  ;;  %v310_v31 = vld [vmem:[%s1620_s28 + $0xb8] sm:$0xf] }
  0x46   : > { %307 = vst [vmem:[%s1625_s10 + $0x54] sm:$0xf] %v306_v29  ;;  %309 = vst [vmem:[%s1625_s10 + $0x58] sm:$0xf] %v308_v30  ;;  %v312_v32 = vld [vmem:[%s1620_s28 + $0xc0] sm:$0xf] }
  0x47   : > { %311 = vst [vmem:[%s1625_s10 + $0x5c] sm:$0xf] %v310_v31  ;;  %v314_v33 = vld [vmem:[%s1620_s28 + $0xc8] sm:$0xf]  ;;  %v316_v34 = vld [vmem:[%s1620_s28 + $0xd0] sm:$0xf] }
  0x48   : > { %313 = vst [vmem:[%s1625_s10 + $0x60] sm:$0xf] %v312_v32  ;;  %315 = vst [vmem:[%s1625_s10 + $0x64] sm:$0xf] %v314_v33  ;;  %v318_v35 = vld [vmem:[%s1620_s28 + $0xd8] sm:$0xf] }
  0x49   : > { %317 = vst [vmem:[%s1625_s10 + $0x68] sm:$0xf] %v316_v34  ;;  %v320_v36 = vld [vmem:[%s1620_s28 + $0xe0] sm:$0xf]  ;;  %v322_v37 = vld [vmem:[%s1620_s28 + $0xe8] sm:$0xf] }
  0x4a   : > { %319 = vst [vmem:[%s1625_s10 + $0x6c] sm:$0xf] %v318_v35  ;;  %321 = vst [vmem:[%s1625_s10 + $0x70] sm:$0xf] %v320_v36  ;;  %v324_v38 = vld [vmem:[%s1620_s28 + $0xf0] sm:$0xf] }
  0x4b   : > { %323 = vst [vmem:[%s1625_s10 + $0x74] sm:$0xf] %v322_v37  ;;  %v326_v39 = vld [vmem:[%s1620_s28 + $0xf8] sm:$0xf]  ;;  %v328_v40 = vld [vmem:[%s1620_s28 + $0x100] sm:$0xf] }
  0x4c   : > { %325 = vst [vmem:[%s1625_s10 + $0x78] sm:$0xf] %v324_v38  ;;  %327 = vst [vmem:[%s1625_s10 + $0x7c] sm:$0xf] %v326_v39  ;;  %v330_v41 = vld [vmem:[%s1620_s28 + $0x108] sm:$0xf] }
  0x4d   : > { %329 = vst [vmem:[%s1625_s10 + $0x80] sm:$0xf] %v328_v40  ;;  %v332_v42 = vld [vmem:[%s1620_s28 + $0x110] sm:$0xf]  ;;  %v334_v43 = vld [vmem:[%s1620_s28 + $0x118] sm:$0xf] }
  0x4e   : > { %331 = vst [vmem:[%s1625_s10 + $0x84] sm:$0xf] %v330_v41  ;;  %333 = vst [vmem:[%s1625_s10 + $0x88] sm:$0xf] %v332_v42  ;;  %v336_v44 = vld [vmem:[%s1620_s28 + $0x120] sm:$0xf] }
  0x4f   : > { %335 = vst [vmem:[%s1625_s10 + $0x8c] sm:$0xf] %v334_v43  ;;  %v338_v45 = vld [vmem:[%s1620_s28 + $0x128] sm:$0xf]  ;;  %v340_v46 = vld [vmem:[%s1620_s28 + $0x130] sm:$0xf] }
  0x50   : > { %337 = vst [vmem:[%s1625_s10 + $0x90] sm:$0xf] %v336_v44  ;;  %339 = vst [vmem:[%s1625_s10 + $0x94] sm:$0xf] %v338_v45  ;;  %v342_v47 = vld [vmem:[%s1620_s28 + $0x138] sm:$0xf] }
  0x51   : > { %341 = vst [vmem:[%s1625_s10 + $0x98] sm:$0xf] %v340_v46  ;;  %v344_v48 = vld [vmem:[%s1620_s28 + $0x140] sm:$0xf]  ;;  %v346_v49 = vld [vmem:[%s1620_s28 + $0x148] sm:$0xf] }
  0x52   : > { %343 = vst [vmem:[%s1625_s10 + $0x9c] sm:$0xf] %v342_v47  ;;  %345 = vst [vmem:[%s1625_s10 + $0xa0] sm:$0xf] %v344_v48  ;;  %v348_v50 = vld [vmem:[%s1620_s28 + $0x150] sm:$0xf] }
  0x53   : > { %347 = vst [vmem:[%s1625_s10 + $0xa4] sm:$0xf] %v346_v49  ;;  %v350_v51 = vld [vmem:[%s1620_s28 + $0x158] sm:$0xf]  ;;  %v352_v52 = vld [vmem:[%s1620_s28 + $0x160] sm:$0xf] }
  0x54   : > { %349 = vst [vmem:[%s1625_s10 + $0xa8] sm:$0xf] %v348_v50  ;;  %351 = vst [vmem:[%s1625_s10 + $0xac] sm:$0xf] %v350_v51  ;;  %v354_v53 = vld [vmem:[%s1620_s28 + $0x168] sm:$0xf] }
  0x55   : > { %353 = vst [vmem:[%s1625_s10 + $0xb0] sm:$0xf] %v352_v52  ;;  %v356_v54 = vld [vmem:[%s1620_s28 + $0x170] sm:$0xf]  ;;  %v358_v55 = vld [vmem:[%s1620_s28 + $0x178] sm:$0xf] }
  0x56   : > { %355 = vst [vmem:[%s1625_s10 + $0xb4] sm:$0xf] %v354_v53  ;;  %357 = vst [vmem:[%s1625_s10 + $0xb8] sm:$0xf] %v356_v54 }
  0x57   : > { %359 = vst [vmem:[%s1625_s10 + $0xbc] sm:$0xf] %v358_v55 }
  0x58 PF: > { %p1148_p0 = scmp.ge.s32.totalorder %s1478_s25, 1  ;;  %p489_p1 = scmp.lt.s32.totalorder %s1478_s25, 7 }
  0x5a   : > { %p490_p2 = pnand %p1148_p0, %p489_p1 }
  0x5b   : > { %s496_s0 = sand.u32 (!%p490_p2), 1, %s1454_s19   ;;  %s503_s11 = sand.u32 (!%p490_p2), 1, %s1446_s17  }
  0x5c   : > { %493 = sbr.rel (%p490_p2) target bundleno = 394 (0x18a), region = 95  ;;  %s534_s28 = sand.u32 (!%p490_p2), 1, %s1438_s15  }
  0x5d   : > { %s1269_s26 = smul.u32 (!%p490_p2), 48, %s496_s0  ;;  %s1149_s29 = sshll.u32 (!%p490_p2), %s534_s28, 4 }
  0x5e   : > { %s1270_s5 = smul.u32 (!%p490_p2), 192, %s503_s11  ;;  %p540_p3 = scmp.lt.s32.totalorder (!%p490_p2), %s1466_s22, 1 }
  0x5f   : > { %s1737_s24 = scalar_lea.vmem (!%p490_p2), [#allocation3], %s1269_s26  ;;  %s1741_s15 = scalar_lea.vmem (!%p490_p2), [#allocation5], %s1149_s29 }
  0x60   : > { %s1739_s17 = scalar_lea.vmem (!%p490_p2), [#allocation4], %s1270_s5  ;;  %p1150_p4 = scmp.ne.s32.totalorder (!%p490_p2), %s1462_s21, 0 }
  0x63   : > { %s1727_s30 = scalar_select %p540_p3, %s1466_s22, 1 }
  0x64   : > { %551 = sbr.rel (%p1150_p4) target bundleno = 107 (0x6b), region = 107  ;;  %v1480_v56 = vmov (!%p1150_p4), 0.0  }
  0x65   : > { %s542_s9 = scalar_lea.vmem %s1832_s2, %s1727_s30  ;;  %s545_s27 = scalar_lea.vmem %s1833_s3, %s1727_s30  ;;  %552 = vst [vmem:[#allocation2] sm:$0xff] (!%p1150_p4), %v1480_v56  ;;  %553 = vst [vmem:[#allocation2 + $0x8] sm:$0xff] (!%p1150_p4), %v1480_v56 }
  0x66   : > { %554 = vst [vmem:[#allocation2 + $0x10] sm:$0xff] (!%p1150_p4), %v1480_v56  ;;  %555 = vst [vmem:[#allocation2 + $0x18] sm:$0xff] (!%p1150_p4), %v1480_v56 }
  0x6b PF: > { %v1360_v57 = vld [vmem:[%s1739_s17 + $0x40] sm:$0xff]   ;;  %v1363_v60 = vld [vmem:[%s1739_s17 + $0x48] sm:$0xff]   ;;  %v1366_v63 = vld [vmem:[%s1739_s17 + $0x50] sm:$0xff]   ;;  %p1181_p5 = scmp.ne.s32.totalorder %s1462_s21, 2 }
  0x6c   : > { %v1361_v58 = vld [vmem:[%s1739_s17] sm:$0xff]   ;;  %1209 = vmatprep.subr.bf16.mxu0 %v1360_v57  ;;  %v1364_v61 = vld [vmem:[%s1739_s17 + $0x8] sm:$0xff]   ;;  %v1367_v0 = vld [vmem:[%s1739_s17 + $0x10] sm:$0xff]  }
  0x6d   : > { %v1362_v59 = vld [vmem:[%s1739_s17 + $0x80] sm:$0xff]   ;;  %1210 = vmatpush3.bf16.msra.mxu0 %v1361_v58  ;;  %v1365_v62 = vld [vmem:[%s1739_s17 + $0x88] sm:$0xff]   ;;  %v1368_v1 = vld [vmem:[%s1739_s17 + $0x90] sm:$0xff]  }
  0x6e   : > { %1247 = vmatprep.subr.bf16.mxu1 %v1362_v59  ;;  %1211 = vmatprep.subr.bf16.mxu0 %v1363_v60  ;;  %v1369_v2 = vld [vmem:[%s1739_s17 + $0x58] sm:$0xff]   ;;  %v1372_v5 = vld [vmem:[%s1739_s17 + $0x60] sm:$0xff]   ;;  %v1375_v8 = vld [vmem:[%s1739_s17 + $0x68] sm:$0xff]  }
  0x6f   : > { %1248 = vmatpush3.bf16.msra.mxu1 %v1362_v59  ;;  %v1370_v3 = vld [vmem:[%s1739_s17 + $0x18] sm:$0xff]   ;;  %v1374_v6 = vld [vmem:[%s1739_s17 + $0xa0] sm:$0xff]   ;;  %v1377_v9 = vld [vmem:[%s1739_s17 + $0xa8] sm:$0xff]  }
  0x70   : > { %1249 = vmatprep.subr.bf16.mxu1 %v1365_v62  ;;  %v1371_v4 = vld [vmem:[%s1739_s17 + $0x98] sm:$0xff]   ;;  %v1373_v7 = vld [vmem:[%s1739_s17 + $0x20] sm:$0xff]   ;;  %v1376_v10 = vld [vmem:[%s1739_s17 + $0x28] sm:$0xff]  }
  0x71   : > { %1212 = vmatpush3.bf16.msra.mxu0 %v1364_v61  ;;  %v1378_v11 = vld [vmem:[%s1739_s17 + $0x70] sm:$0xff]   ;;  %v1381_v14 = vld [vmem:[%s1739_s17 + $0x78] sm:$0xff]   ;;  %v556_v29 = vld [vmem:[#allocation2] sm:$0xff] }
  0x72   : > { %1213 = vmatprep.subr.bf16.mxu0 %v1366_v63  ;;  %v1379_v12 = vld [vmem:[%s1739_s17 + $0x30] sm:$0xff]   ;;  %v1383_v15 = vld [vmem:[%s1739_s17 + $0xb8] sm:$0xff]   ;;  %v557_v34 = vld [vmem:[#allocation2 + $0x8] sm:$0xff] }
  0x73   : > { %1250 = vmatpush3.bf16.msra.mxu1 %v1365_v62  ;;  %v1380_v13 = vld [vmem:[%s1739_s17 + $0xb0] sm:$0xff]   ;;  %v1382_v18 = vld [vmem:[%s1739_s17 + $0x38] sm:$0xff]   ;;  %v1182_v53 = vld [vmem:[%s542_s9] ss:$0 sm:$0xff] (!%p1181_p5) }
  0x74   : > { %1251 = vmatprep.subr.bf16.mxu1 %v1368_v1  ;;  %v1386_v16 = vld [vmem:[%s1737_s24 + $0x4] ss:$12 sps:$4 sm:$0xff]   ;;  %v1387_v17 = vld [vmem:[%s1737_s24 + $0x8] ss:$12 sps:$4 sm:$0xff]   ;;  %v1384_v19 = vld [vmem:[%s1737_s24] ss:$12 sps:$4 sm:$0xff]  }
  0x75   : > { %1214 = vmatpush3.bf16.msra.mxu0 %v1367_v0  ;;  %824 = vmatprep.mubr.bf16.mxu0 %v1386_v16  ;;  %v1389_v20 = vld [vmem:[%s1737_s24 + $0x1c] ss:$12 sps:$4 sm:$0xff]   ;;  %v1388_v21 = vld [vmem:[%s1737_s24 + $0x20] ss:$12 sps:$4 sm:$0xff]   ;;  %v1391_v22 = vld [vmem:[%s1737_s24 + $0x18] ss:$12 sps:$4 sm:$0xff]  }
  0x76   : > { %1215 = vmatprep.subr.bf16.mxu0 %v1369_v2  ;;  %1263 = vmatprep.mubr.bf16.mxu1 %v1387_v17  ;;  %v558_v43 = vld [vmem:[#allocation2 + $0x10] sm:$0xff]  ;;  %v559_v47 = vld [vmem:[#allocation2 + $0x18] sm:$0xff]  ;;  %v1183_v56 = vld [vmem:[%s545_s27] ss:$0 sm:$0xff] (!%p1181_p5) }
  0x77   : > { %1252 = vmatpush3.bf16.msra.mxu1 %v1368_v1 }
  0x78   : > { %1253 = vmatprep.subr.bf16.mxu1 %v1371_v4 }
  0x79   : > { %1216 = vmatpush3.bf16.msra.mxu0 %v1370_v3 }
  0x7a   : > { %1217 = vmatprep.subr.bf16.mxu0 %v1372_v5 }
  0x7b   : > { %1254 = vmatpush3.bf16.msra.mxu1 %v1371_v4 }
  0x7c   : > { %1255 = vmatprep.subr.bf16.mxu1 %v1374_v6 }
  0x7d   : > { %1218 = vmatpush3.bf16.msra.mxu0 %v1373_v7 }
  0x7e   : > { %1219 = vmatprep.subr.bf16.mxu0 %v1375_v8 }
  0x7f   : > { %1256 = vmatpush3.bf16.msra.mxu1 %v1374_v6 }
  0x80   : > { %1257 = vmatprep.subr.bf16.mxu1 %v1377_v9 }
  0x81   : > { %1220 = vmatpush3.bf16.msra.mxu0 %v1376_v10 }
  0x82   : > { %1221 = vmatprep.subr.bf16.mxu0 %v1378_v11 }
  0x83   : > { %1258 = vmatpush3.bf16.msra.mxu1 %v1377_v9 }
  0x84   : > { %1259 = vmatprep.subr.bf16.mxu1 %v1380_v13 }
  0x85   : > { %1222 = vmatpush3.bf16.msra.mxu0 %v1379_v12 }
  0x86   : > { %1223 = vmatprep.subr.bf16.mxu0 %v1381_v14 }
  0x87   : > { %1260 = vmatpush3.bf16.msra.mxu1 %v1380_v13 }
  0x88   : > { %1261 = vmatprep.subr.bf16.mxu1 %v1383_v15 }
  0x89   : > { %1224 = vmatpush3.bf16.msra.mxu0 %v1382_v18 }
  0x8b   : > { %1262 = vmatpush3.bf16.msra.mxu1 %v1383_v15 }
  0x8c   : > { %825 = vmatmul.mubr.bf16.vlgmr.msra.gmra.mrb[0].mxu0 %v1384_v19 }
  0x8d   : > { %832 = vmatprep.mubr.bf16.mxu0 %v1389_v20 }
  0x8e   : > { %1264 = vmatmul.mubr.bf16.vlgmr.msra.gmra.mrb[0].mxu1 %v1388_v21 }
  0x94   : > { %833 = vmatmul.mubr.bf16.gmra.mrb[4].mxu0 %v1391_v22 }
 0x15f   : > { %v1225_v23 = vpop.f32.mrb[0].mxu0 }
 0x160   : > { %v1226_v24 = vpop.f32.mrb[1].mxu0 }
 0x161   : > { %v1227_v25 = vadd.f32 %v1226_v24, %v1225_v23  ;;  %v1228_v26 = vpop.f32.mrb[2].mxu0  ;;  %v1265_v27 = vpop.f32.mrb[0].mxu1 }
 0x162   : > { %v1229_v28 = vpop.f32.mrb[3].mxu0  ;;  %v875_v30 = vpop.f32.mrb[1].mxu1 }
 0x163   : > { %v1230_v31 = vadd.f32 %v1229_v28, %v1228_v26  ;;  %v876_v32 = vadd.f32 %v1227_v25, %v875_v30  ;;  %v1266_v33 = vpop.f32.mrb[2].mxu1 }
 0x164   : > { %v878_v35 = vpop.f32.mrb[3].mxu1 }
 0x165   : > { %v890_v36 = vadd.f32 %v876_v32, %v556_v29  ;;  %v879_v37 = vadd.f32 %v1230_v31, %v878_v35 }
 0x167   : > { %894 = vst [vmem:[#allocation2] sm:$0xff] %v890_v36  ;;  %v891_v38 = vadd.f32 %v879_v37, %v557_v34  ;;  %v1231_v39 = vpop.f32.mrb[4].mxu0 }
 0x168   : > { %v1232_v40 = vpop.f32.mrb[5].mxu0 }
 0x169   : > { %895 = vst [vmem:[#allocation2 + $0x8] sm:$0xff] %v891_v38  ;;  %v1233_v41 = vadd.f32 %v1232_v40, %v1231_v39  ;;  %v1234_v42 = vpop.f32.mrb[6].mxu0 }
 0x16a   : > { %v1235_v44 = vpop.f32.mrb[7].mxu0 }
 0x16b   : > { %v884_v45 = vadd.f32 %v1265_v27, %v1233_v41  ;;  %v1236_v46 = vadd.f32 %v1235_v44, %v1234_v42  ;;  %901 = sbr.rel (%p1181_p5) target bundleno = 386 (0x182), region = 111 }
 0x16d   : > { %v892_v48 = vadd.f32 %v884_v45, %v558_v43  ;;  %v887_v49 = vadd.f32 %v1266_v33, %v1236_v46 }
 0x16e   : > { %v902_v51 = vld [vmem:[#allocation2] sm:$0xff] (!%p1181_p5) }
 0x16f   : > { %896 = vst [vmem:[#allocation2 + $0x10] sm:$0xff] %v892_v48  ;;  %v893_v50 = vadd.f32 %v887_v49, %v559_v47  ;;  %v913_v54 = vmul.f32 (!%p1181_p5), %v1182_v53, %v902_v51 }
 0x170   : > { %v903_v52 = vld [vmem:[#allocation2 + $0x8] sm:$0xff] (!%p1181_p5) }
 0x171   : > { %897 = vst [vmem:[#allocation2 + $0x18] sm:$0xff] %v893_v50  ;;  %v914_v55 = vmul.f32 (!%p1181_p5), %v1182_v53, %v903_v52  ;;  %v924_v61 = vadd.f32 (!%p1181_p5), %v1183_v56, %v913_v54 }
 0x173   : > { %v925_v62 = vadd.f32 %v1183_v56, %v914_v55  ;;  %v928_v1 = vmax.f32 %v924_v61, 0.0 }
 0x175   : > { %v929_v2 = vmax.f32 %v925_v62, 0.0 }
 0x176   : > { %v904_v57 = vld [vmem:[#allocation2 + $0x10] sm:$0xff] }
 0x177   : > { %v915_v59 = vmul.f32 %v1182_v53, %v904_v57  ;;  %v1201_v5 = vpack.c.bf16 %v929_v2, %v928_v1 }
 0x178   : > { %v905_v58 = vld [vmem:[#allocation2 + $0x18] sm:$0xff] }
 0x179   : > { %v916_v60 = vmul.f32 %v1182_v53, %v905_v58  ;;  %v926_v63 = vadd.f32 %v1183_v56, %v915_v59  ;;  %1202 = vst [vmem:[%s1741_s15] sm:$0xff] %v1201_v5  }
 0x17b   : > { %v927_v0 = vadd.f32 %v1183_v56, %v916_v60  ;;  %v930_v3 = vmax.f32 %v926_v63, 0.0 }
 0x17d   : > { %v931_v4 = vmax.f32 %v927_v0, 0.0 }
 0x17f   : > { %v1206_v6 = vpack.c.bf16 %v931_v4, %v930_v3 }
 0x181   : > { %1208 = vst [vmem:[%s1741_s15 + $0x8] sm:$0xff] %v1206_v6  }
 0x182 PF: > { %958 = sbr.rel (!%p1600_p12) target bundleno = 394 (0x18a), region = 115  ;;  %s1189_s21 = sshll.u32 (%p1600_p12), %s1466_s22, 2  ;;  %v979_v7 = vld [vmem:[%s1741_s15] sm:$0xf] (%p1600_p12)  ;;  %v981_v8 = vld [vmem:[%s1741_s15 + $0x4] sm:$0xf] (%p1600_p12) }
 0x183   : > { %s963_s26 = scalar_lea.vmem (%p1600_p12), %s1834_s4, %s1189_s21 }
 0x184   : > { %980 = vst [vmem:[%s963_s26] sm:$0xf] (%p1600_p12), %v979_v7  ;;  %982 = vst [vmem:[%s963_s26 + $0x8] sm:$0xf] (%p1600_p12), %v981_v8 }
 0x188   : > { %v983_v9 = vld [vmem:[%s1741_s15 + $0x8] sm:$0xf] (%p1600_p12)  ;;  %v985_v10 = vld [vmem:[%s1741_s15 + $0xc] sm:$0xf] (%p1600_p12) }
 0x189   : > { %984 = vst [vmem:[%s963_s26 + $0x10] sm:$0xf] %v983_v9  ;;  %986 = vst [vmem:[%s963_s26 + $0x18] sm:$0xf] %v985_v10 }
 0x18a PF: > { %s14_s25 = sadd.s32 1, %s1478_s25   ;;  %s1848_s22 = sld [smem:[#allocation6_spill]] }
 0x18b   : > { %p11_p6 = scmp.ge.s32.totalorder %s14_s25, 8   ;;  %s1849_s14 = sld [smem:[#allocation7_spill]] }
 0x18c   : > { %s1850_s24 = sld [smem:[#allocation8_spill]]  ;;  %s1851_s15 = smov %s1442_s16 }
 0x18d   : > { %s1852_s16 = smov %s1598_s13  ;;  %s1853_s17 = smov %s1450_s18 }
 0x18e   : > { %s1854_s18 = smov %s1595_s12  ;;  %s1855_s19 = smov %s1458_s20 }
 0x18f   : > { %s1856_s20 = smov %s1581_s7  ;;  %s1857_s21 = smov %s1470_s23 }
 0x190   :  { %13 = sbr.rel (!%p11_p6) target bundleno = 9 (0x9), region = 207 }
 0x191   : > { %s1858_s23 = smov %s1849_s14 }

// kernel: _lambda_.35
= control target key start
LH: loop header
LB: loop body
LE: loop exit
PB: predicated region body
PF: predicated region fallthrough
CT: control target
= control target key end

     0   :  { %s942_s15 = smov 0   ;;  %s944_s16 = smov 0   ;;  %s1050_s0 = inlined_call_operand.vmem [shape: bf16[32,128], index: 0, kind: input, shape index: {}]   ;;  %s1051_s1 = inlined_call_operand.vmem [shape: bf16[128,256], index: 1, kind: input, shape index: {}]   ;;  %s1052_s2 = inlined_call_operand.vmem [shape: f32[1,256], index: 2, kind: input, shape index: {}]   ;;  %s1053_s3 = inlined_call_operand.vmem [shape: f32[1,256], index: 3, kind: input, shape index: {}]   ;;  %s1054_s4 = inlined_call_operand.vmem [shape: bf16[32,256], index: 4, kind: output, shape index: {}]  }
   0x1   :  { %s946_s17 = smov 0   ;;  %s948_s18 = smov 0  }
   0x2   :  { %s950_s19 = smov 0  }
   0x3 LB: > { %s29_s20 = sadd.s32 1, %s911_s18  ;;  %s752_s21 = sadd.s32 4294967295, %s915_s19   ;;  %s915_s19 = sphi %s950_s19, %s14_s19   ;;  %s911_s18 = sphi %s948_s18, %s1059_s18   ;;  %s907_s17 = sphi %s946_s17, %s1058_s17   ;;  %s903_s16 = sphi %s944_s16, %s1057_s16   ;;  %s899_s15 = sphi %s942_s15, %s1056_s15  }
   0x4   : > { %p31_p0 = scmp.ge.s32.totalorder %s29_s20, 2  ;;  %p77_p1 = scmp.ne.s32.totalorder %s903_s16, %s899_s15 }
   0x5   : > { %p78_p2 = scmp.eq.s32.totalorder %s915_s19, 0  ;;  %p161_p4 = scmp.eq.s32.totalorder %s752_s21, 1 }
   0x6   : > { %s1061_s20 = smov (%p31_p0, %s29_s20), 0  ;;  %s70_s23 = sadd.s32 1, %s903_s16 }
   0x7   : > { %p79_p3 = por %p78_p2, %p77_p1  ;;  %s66_s22 = ssub.s32 %s911_s18, %s1061_s20 }
   0x8   : > { %p68_p5 = scmp.eq.s32.totalorder %s66_s22, 0  ;;  %p977_p6 = por %p161_p4, %p77_p1 }
   0x9   : > { %p756_p7 = scmp.ge.s32.totalorder %s915_s19, 2 }
   0xa   : > { %s982_s25 = scalar_select %p68_p5, %s903_s16, %s70_s23  }
   0xb   : > { %195 = sbr.rel (%p756_p7) target bundleno = 32 (0x20), region = 20 }
  0x12   : > { %198 = sbr.rel (!%p79_p3) target bundleno = 32 (0x20), region = 24  ;;  %s200_s26 = sand.u32 (%p79_p3), 1, %s903_s16  }
  0x13   : > { %s758_s27 = sshll.u32 (%p79_p3), %s911_s18, 2  ;;  %s757_s28 = sshll.u32 (%p79_p3), %s200_s26, 6 }
  0x14   : > { %s990_s5 = scalar_lea.vmem (%p79_p3), %s1051_s1, %s758_s27  ;;  %s202_s6 = scalar_lea.vmem (%p79_p3), [#allocation3], %s757_s28 }
  0x15   : > { %v223_v0 = vld [vmem:[%s990_s5] sm:$0xf] (%p79_p3)  ;;  %v225_v1 = vld [vmem:[%s990_s5 + $0x8] sm:$0xf] (%p79_p3)  ;;  %v227_v2 = vld [vmem:[%s990_s5 + $0x10] sm:$0xf] (%p79_p3) }
  0x16   : > { %224 = vst [vmem:[%s202_s6] sm:$0xf] (%p79_p3), %v223_v0  ;;  %226 = vst [vmem:[%s202_s6 + $0x4] sm:$0xf] (%p79_p3), %v225_v1  ;;  %v229_v3 = vld [vmem:[%s990_s5 + $0x18] sm:$0xf] (%p79_p3) }
  0x17   : > { %v231_v4 = vld [vmem:[%s990_s5 + $0x20] sm:$0xf] (%p79_p3)  ;;  %228 = vst [vmem:[%s202_s6 + $0x8] sm:$0xf] (%p79_p3), %v227_v2  ;;  %230 = vst [vmem:[%s202_s6 + $0xc] sm:$0xf] (%p79_p3), %v229_v3 }
  0x18   : > { %232 = vst [vmem:[%s202_s6 + $0x10] sm:$0xf] (%p79_p3), %v231_v4  ;;  %v233_v5 = vld [vmem:[%s990_s5 + $0x28] sm:$0xf] (%p79_p3)  ;;  %v235_v6 = vld [vmem:[%s990_s5 + $0x30] sm:$0xf] (%p79_p3) }
  0x19   : > { %v237_v7 = vld [vmem:[%s990_s5 + $0x38] sm:$0xf]  ;;  %234 = vst [vmem:[%s202_s6 + $0x14] sm:$0xf] %v233_v5  ;;  %236 = vst [vmem:[%s202_s6 + $0x18] sm:$0xf] %v235_v6 }
  0x1a   : > { %238 = vst [vmem:[%s202_s6 + $0x1c] sm:$0xf] %v237_v7  ;;  %v239_v8 = vld [vmem:[%s990_s5 + $0x40] sm:$0xf]  ;;  %v241_v9 = vld [vmem:[%s990_s5 + $0x48] sm:$0xf] }
  0x1b   : > { %v243_v10 = vld [vmem:[%s990_s5 + $0x50] sm:$0xf]  ;;  %240 = vst [vmem:[%s202_s6 + $0x20] sm:$0xf] %v239_v8  ;;  %242 = vst [vmem:[%s202_s6 + $0x24] sm:$0xf] %v241_v9 }
  0x1c   : > { %244 = vst [vmem:[%s202_s6 + $0x28] sm:$0xf] %v243_v10  ;;  %v245_v11 = vld [vmem:[%s990_s5 + $0x58] sm:$0xf]  ;;  %v247_v12 = vld [vmem:[%s990_s5 + $0x60] sm:$0xf] }
  0x1d   : > { %v249_v13 = vld [vmem:[%s990_s5 + $0x68] sm:$0xf]  ;;  %246 = vst [vmem:[%s202_s6 + $0x2c] sm:$0xf] %v245_v11  ;;  %248 = vst [vmem:[%s202_s6 + $0x30] sm:$0xf] %v247_v12 }
  0x1e   : > { %250 = vst [vmem:[%s202_s6 + $0x34] sm:$0xf] %v249_v13  ;;  %v251_v14 = vld [vmem:[%s990_s5 + $0x70] sm:$0xf]  ;;  %v253_v15 = vld [vmem:[%s990_s5 + $0x78] sm:$0xf] }
  0x1f   : > { %252 = vst [vmem:[%s202_s6 + $0x38] sm:$0xf] %v251_v14  ;;  %254 = vst [vmem:[%s202_s6 + $0x3c] sm:$0xf] %v253_v15 }
  0x20 PF: > { %p759_p8 = scmp.ge.s32.totalorder %s915_s19, 1  ;;  %p320_p9 = scmp.lt.s32.totalorder %s915_s19, 3 }
  0x22   : > { %p321_p10 = pnand %p759_p8, %p320_p9 }
  0x23   : > { %s327_s7 = sand.u32 (!%p321_p10), 1, %s899_s15   ;;  %v875_v16 = vld [vmem:[%s1050_s0] sm:$0xff] (!%p321_p10)   ;;  %v876_v25 = vld [vmem:[%s1050_s0 + $0x8] sm:$0xff] (!%p321_p10)   ;;  %p375_p11 = scmp.lt.s32.totalorder (!%p321_p10), %s907_s17, 1 }
  0x24   : > { %324 = sbr.rel (%p321_p10) target bundleno = 302 (0x12e), region = 73  ;;  %s760_s10 = sshll.u32 (!%p321_p10), %s327_s7, 6  ;;  %823 = vmatprep.mubr.bf16.mxu0 (!%p321_p10), %v875_v16 }
  0x25   : > { %s329_s11 = scalar_lea.vmem (!%p321_p10), [#allocation3], %s760_s10  ;;  %s761_s29 = sshll.u32 (!%p321_p10), %s327_s7, 4 }
  0x26   : > { %v867_v17 = vld [vmem:[%s329_s11] sm:$0xff] (!%p321_p10)   ;;  %v868_v18 = vld [vmem:[%s329_s11 + $0x8] sm:$0xff] (!%p321_p10)   ;;  %v869_v19 = vld [vmem:[%s329_s11 + $0x10] sm:$0xff] (!%p321_p10)   ;;  %s364_s30 = scalar_lea.vmem (!%p321_p10), [#allocation4], %s761_s29 }
  0x27   : > { %807 = vmatprep.subr.bf16.mxu0 (!%p321_p10), %v867_v17  ;;  %v870_v20 = vld [vmem:[%s329_s11 + $0x18] sm:$0xff] (!%p321_p10)   ;;  %v871_v21 = vld [vmem:[%s329_s11 + $0x20] sm:$0xff] (!%p321_p10)   ;;  %v872_v22 = vld [vmem:[%s329_s11 + $0x28] sm:$0xff] (!%p321_p10)  }
  0x28   : > { %808 = vmatpush3.bf16.msra.mxu0 (!%p321_p10), %v867_v17  ;;  %v873_v23 = vld [vmem:[%s329_s11 + $0x30] sm:$0xff] (!%p321_p10)   ;;  %v874_v24 = vld [vmem:[%s329_s11 + $0x38] sm:$0xff] (!%p321_p10)  }
  0x29   : > { %809 = vmatprep.subr.bf16.mxu0 (!%p321_p10), %v868_v18 }
  0x2b   : > { %s376_s14 = scalar_select %p375_p11, %s907_s17, 1 }
  0x2c   : > { %810 = vmatpush3.bf16.msra.mxu0 %v868_v18  ;;  %s779_s5 = sshll.u32 (%p977_p6), %s907_s17, 2 }
  0x2d   : > { %811 = vmatprep.subr.bf16.mxu0 %v869_v19  ;;  %s377_s23 = scalar_lea.vmem %s1052_s2, %s376_s14  ;;  %s380_s28 = scalar_lea.vmem %s1053_s3, %s376_s14 }
  0x2e   : > { %v772_v26 = vld [vmem:[%s377_s23] ss:$0 sm:$0xff]  ;;  %s592_s7 = scalar_lea.vmem (%p977_p6), %s1054_s4, %s779_s5 }
  0x2f   : > { %v773_v30 = vld [vmem:[%s380_s28] ss:$0 sm:$0xff] }
  0x30   : > { %812 = vmatpush3.bf16.msra.mxu0 %v869_v19 }
  0x31   : > { %813 = vmatprep.subr.bf16.mxu0 %v870_v20 }
  0x34   : > { %814 = vmatpush3.bf16.msra.mxu0 %v870_v20 }
  0x35   : > { %815 = vmatprep.subr.bf16.mxu0 %v871_v21 }
  0x38   : > { %816 = vmatpush3.bf16.msra.mxu0 %v871_v21 }
  0x39   : > { %817 = vmatprep.subr.bf16.mxu0 %v872_v22 }
  0x3c   : > { %818 = vmatpush3.bf16.msra.mxu0 %v872_v22 }
  0x3d   : > { %819 = vmatprep.subr.bf16.mxu0 %v873_v23 }
  0x40   : > { %820 = vmatpush3.bf16.msra.mxu0 %v873_v23 }
  0x41   : > { %821 = vmatprep.subr.bf16.mxu0 %v874_v24 }
  0x44   : > { %822 = vmatpush3.bf16.msra.mxu0 %v874_v24 }
  0x47   : > { %824 = vmatmul.mubr.bf16.vlgmr.msra.gmra.mrb[0].mxu0 %v876_v25 }
 0x11a   : > { %v825_v27 = vpop.f32.mrb[0].mxu0 }
 0x11b   : > { %v548_v28 = vmul.f32 %v825_v27, %v772_v26  ;;  %v509_v29 = vpop.f32.mrb[1].mxu0 }
 0x11c   : > { %v546_v31 = vmul.f32 %v772_v26, %v509_v29  ;;  %v826_v32 = vpop.f32.mrb[2].mxu0 }
 0x11d   : > { %v549_v33 = vmul.f32 %v826_v32, %v772_v26  ;;  %v512_v34 = vpop.f32.mrb[3].mxu0  ;;  %v559_v36 = vadd.f32 %v773_v30, %v548_v28 }
 0x11e   : > { %v547_v35 = vmul.f32 %v772_v26, %v512_v34  ;;  %v557_v38 = vadd.f32 %v773_v30, %v546_v31  ;;  %587 = sbr.rel (!%p977_p6) target bundleno = 302 (0x12e), region = 89 }
 0x11f   : > { %v560_v37 = vadd.f32 %v773_v30, %v549_v33 }
 0x120   : > { %v558_v39 = vadd.f32 %v773_v30, %v547_v35 }
 0x121   : > { %v794_v40 = vpack.c.bf16 %v560_v37, %v559_v36 }
 0x122   : > { %v789_v41 = vpack.c.bf16 %v558_v39, %v557_v38 }
 0x123   : > { %796 = vst [vmem:[%s364_s30 + $0x8] sm:$0xff] %v794_v40  }
 0x124   : > { %790 = vst [vmem:[%s364_s30] sm:$0xff] %v789_v41  }
 0x12a   : > { %v612_v44 = vld [vmem:[%s364_s30 + $0x8] sm:$0xf]  ;;  %v614_v45 = vld [vmem:[%s364_s30 + $0xc] sm:$0xf] }
 0x12b   : > { %v608_v42 = vld [vmem:[%s364_s30] sm:$0xf]  ;;  %v610_v43 = vld [vmem:[%s364_s30 + $0x4] sm:$0xf]  ;;  %613 = vst [vmem:[%s592_s7 + $0x10] sm:$0xf] %v612_v44 }
 0x12c   : > { %609 = vst [vmem:[%s592_s7] sm:$0xf] %v608_v42  ;;  %611 = vst [vmem:[%s592_s7 + $0x8] sm:$0xf] %v610_v43 }
 0x12d   : > { %615 = vst [vmem:[%s592_s7 + $0x18] sm:$0xf] %v614_v45 }
 0x12e PF: > { %s14_s19 = sadd.s32 1, %s915_s19   ;;  %s1056_s15 = smov %s903_s16 }
 0x12f   : > { %p11_p12 = scmp.ge.s32.totalorder %s14_s19, 4   ;;  %s1057_s16 = smov %s982_s25 }
 0x130   : > { %s1058_s17 = smov %s911_s18  ;;  %s1059_s18 = smov %s1061_s20 }
 0x131   :  { %13 = sbr.rel (!%p11_p12) target bundleno = 3 (0x3), region = 170 }

// kernel: _lambda_.37
= control target key start
LH: loop header
LB: loop body
LE: loop exit
PB: predicated region body
PF: predicated region fallthrough
CT: control target
= control target key end

     0   :  { %s2010_s0 = inlined_call_operand.vmem [shape: bf16[32,2304], index: 0, kind: input, shape index: {}]   ;;  %s2011_s1 = inlined_call_operand.vmem [shape: bf16[2304,256], index: 1, kind: input, shape index: {}]   ;;  %s2012_s2 = inlined_call_operand.vmem [shape: f32[1,256], index: 2, kind: input, shape index: {}]   ;;  %s2013_s3 = inlined_call_operand.vmem [shape: f32[1,256], index: 3, kind: input, shape index: {}]   ;;  %s2014_s4 = inlined_call_operand.vmem [shape: bf16[32,256], index: 4, kind: input, shape index: {}]   ;;  %s2015_s5 = inlined_call_operand.vmem [shape: bf16[32,256], index: 5, kind: output, shape index: {}]  }
   0x1   :  { %2018 = sst [smem:[#allocation10_spill]] %s2010_s0 }
   0x2   :  { %s1661_s18 = smov 0   ;;  %s1663_s19 = smov 0  }
   0x3   :  { %s1665_s20 = smov 0   ;;  %s1667_s21 = smov 0  }
   0x4   :  { %s1669_s22 = smov 0   ;;  %s1671_s23 = smov 0  }
   0x5   :  { %s1673_s24 = smov 0   ;;  %s1675_s25 = smov 0  }
   0x6   :  { %s1677_s26 = smov 0   ;;  %s1679_s27 = smov 0  }
   0x7   :  { %s1681_s28 = smov 0  }
   0x8 LB: > { %s1271_s29 = sadd.s32 4294967295, %s1628_s28   ;;  %s27_s30 = sadd.s32 1, %s1620_s26  ;;  %s1628_s28 = sphi %s1681_s28, %s15_s28   ;;  %s1624_s27 = sphi %s1679_s27, %s2039_s27   ;;  %s1620_s26 = sphi %s1677_s26, %s2038_s26   ;;  %s1616_s25 = sphi %s1675_s25, %s2037_s25   ;;  %s1612_s24 = sphi %s1673_s24, %s2036_s24   ;;  %s1608_s23 = sphi %s1671_s23, %s2035_s23   ;;  %s1604_s22 = sphi %s1669_s22, %s2034_s22   ;;  %s1600_s21 = sphi %s1667_s21, %s2033_s21   ;;  %s1596_s20 = sphi %s1665_s20, %s2032_s20   ;;  %s1592_s19 = sphi %s1663_s19, %s2031_s19   ;;  %s1588_s18 = sphi %s1661_s18, %s2030_s18  }
   0x9   : > { %p28_p0 = scmp.ge.s32.totalorder %s27_s30, 6  ;;  %s30_s6 = sadd.s32 1, %s1624_s27 }
   0xa   : > { %s43_s7 = sadd.s32 1, %s1608_s23  ;;  %p50_p1 = scmp.ne.s32.totalorder %s1608_s23, %s1604_s22 }
   0xb   : > { %s2041_s30 = smov (%p28_p0, %s27_s30), 0  ;;  %s2043_s6 = smov (!%p28_p0, %s30_s6), %s1624_s27 }
   0xc   : > { %2019 = sst [smem:[#allocation7_spill]] %s2041_s30  ;;  %s39_s8 = ssub.s32 %s1620_s26, %s2041_s30 }
   0xd   : > { %p51_p2 = scmp.eq.s32.totalorder %s1628_s28, 0  ;;  %p32_p3 = scmp.ge.s32.totalorder %s2043_s6, 2 }
   0xe   : > { %p41_p4 = scmp.eq.s32.totalorder %s39_s8, 0  ;;  %s71_s10 = sadd.s32 1, %s1600_s21 }
   0xf   : > { %p1730_p5 = por %p51_p2, %p50_p1  ;;  %s2045_s6 = smov (%p32_p3, %s2043_s6), 0 }
  0x10   : > { %2021 = sst [smem:[#allocation8_spill]] %s2045_s6  ;;  %s67_s12 = ssub.s32 %s1624_s27, %s2045_s6 }
  0x11   : > { %s1738_s11 = scalar_select %p41_p4, %s1608_s23, %s43_s7  }
  0x12   : > { %p78_p6 = scmp.ne.s32.totalorder %s1600_s21, %s1596_s20  ;;  %s68_s13 = sor.u32 %s67_s12, %s39_s8 }
  0x13   : > { %2022 = sst [smem:[#allocation9_spill]] %s1738_s11  ;;  %p149_p7 = scmp.eq.s32.totalorder %s67_s12, 0 }
  0x14   : > { %p69_p8 = scmp.eq.s32.totalorder %s68_s13, 0  ;;  %p1746_p9 = por %p78_p6, %p51_p2 }
  0x15   : > { %s151_s15 = sadd.s32 1, %s1592_s19  ;;  %p158_p10 = scmp.ne.s32.totalorder %s1592_s19, %s1588_s18 }
  0x16   : > { %s1754_s16 = scalar_select %p69_p8, %s1600_s21, %s71_s10  }
  0x17   : > { %s1757_s17 = scalar_select %p149_p7, %s1592_s19, %s151_s15  }
  0x18   : > { %p1761_p11 = por %p158_p10, %p51_p2  ;;  %p190_p12 = scmp.eq.s32.totalorder %s1271_s29, 11 }
  0x19   : > { %p1274_p0 = scmp.ge.s32.totalorder %s1628_s28, 12 }
  0x1a   : > { %p1765_p13 = por %p190_p12, %p158_p10 }
  0x1b   : > { %212 = sbr.rel (%p1274_p0) target bundleno = 93 (0x5d), region = 16 }
  0x22   : > { %215 = sbr.rel (!%p1730_p5) target bundleno = 47 (0x2f), region = 20  ;;  %s217_s10 = sand.u32 (%p1730_p5), 1, %s1608_s23  }
  0x23   : > { %s1333_s12 = smul.u32 (%p1730_p5), 12, %s1620_s26  ;;  %s2026_s0 = sld [smem:[#allocation10_spill]] (%p1730_p5) }
  0x24   : > { %s1417_s13 = smul.u32 (%p1730_p5), 48, %s217_s10 }
  0x26   : > { %s219_s29 = scalar_lea.vmem (%p1730_p5), [#allocation3], %s1417_s13 }
  0x29   : > { %s225_s30 = scalar_lea.vmem %s2026_s0, %s1333_s12 }
  0x2a   : > { %v240_v0 = vld [vmem:[%s225_s30] sm:$0xff]  ;;  %v242_v1 = vld [vmem:[%s225_s30 + $0x48] sm:$0xff]  ;;  %v244_v2 = vld [vmem:[%s225_s30 + $0x90] sm:$0xff] }
  0x2b   : > { %241 = vst [vmem:[%s219_s29] sm:$0xff] %v240_v0  ;;  %243 = vst [vmem:[%s219_s29 + $0xc] sm:$0xff] %v242_v1  ;;  %v246_v3 = vld [vmem:[%s225_s30 + $0xd8] sm:$0xff]  ;;  %v1276_v4 = vld [vmem:[%s225_s30 + $0x8] sm:$0xf] }
  0x2c   : > { %245 = vst [vmem:[%s219_s29 + $0x18] sm:$0xff] %v244_v2  ;;  %v1278_v5 = vld [vmem:[%s225_s30 + $0x50] sm:$0xf]  ;;  %247 = vst [vmem:[%s219_s29 + $0x24] sm:$0xff] %v246_v3  ;;  %v1280_v6 = vld [vmem:[%s225_s30 + $0x98] sm:$0xf] }
  0x2d   : > { %1277 = vst [vmem:[%s219_s29 + $0x8] sm:$0xf] %v1276_v4  ;;  %1279 = vst [vmem:[%s219_s29 + $0x14] sm:$0xf] %v1278_v5  ;;  %v1282_v7 = vld [vmem:[%s225_s30 + $0xe0] sm:$0xf] }
  0x2e   : > { %1281 = vst [vmem:[%s219_s29 + $0x20] sm:$0xf] %v1280_v6  ;;  %1283 = vst [vmem:[%s219_s29 + $0x2c] sm:$0xf] %v1282_v7 }
  0x2f PF: > { %268 = sbr.rel (!%p1746_p9) target bundleno = 86 (0x56), region = 46  ;;  %s270_s6 = sand.u32 (%p1746_p9), 1, %s1600_s21  }
  0x30   : > { %s1334_s9 = smul.u32 (%p1746_p9), 96, %s1620_s26 }
  0x31   : > { %s1418_s10 = smul.u32 (%p1746_p9), 192, %s270_s6 }
  0x32   : > { %s275_s12 = sadd.s32 (%p1746_p9), %s1624_s27, %s1334_s9 }
  0x33   : > { %s1285_s13 = sshll.u32 (%p1746_p9), %s275_s12, 2  ;;  %s1790_s30 = scalar_lea.vmem (%p1746_p9), [#allocation4], %s1418_s10 }
  0x34   : > { %s1785_s11 = scalar_lea.vmem (%p1746_p9), %s2011_s1, %s1285_s13 }
  0x35   : > { %v293_v8 = vld [vmem:[%s1785_s11] sm:$0xf] (%p1746_p9)  ;;  %v295_v9 = vld [vmem:[%s1785_s11 + $0x8] sm:$0xf] (%p1746_p9)  ;;  %v297_v10 = vld [vmem:[%s1785_s11 + $0x10] sm:$0xf] (%p1746_p9) }
  0x36   : > { %294 = vst [vmem:[%s1790_s30] sm:$0xf] %v293_v8  ;;  %296 = vst [vmem:[%s1790_s30 + $0x4] sm:$0xf] %v295_v9  ;;  %v299_v11 = vld [vmem:[%s1785_s11 + $0x18] sm:$0xf] }
  0x37   : > { %298 = vst [vmem:[%s1790_s30 + $0x8] sm:$0xf] %v297_v10  ;;  %v301_v12 = vld [vmem:[%s1785_s11 + $0x20] sm:$0xf]  ;;  %v303_v13 = vld [vmem:[%s1785_s11 + $0x28] sm:$0xf] }
  0x38   : > { %300 = vst [vmem:[%s1790_s30 + $0xc] sm:$0xf] %v299_v11  ;;  %302 = vst [vmem:[%s1790_s30 + $0x10] sm:$0xf] %v301_v12  ;;  %v305_v14 = vld [vmem:[%s1785_s11 + $0x30] sm:$0xf] }
  0x39   : > { %304 = vst [vmem:[%s1790_s30 + $0x14] sm:$0xf] %v303_v13  ;;  %v307_v15 = vld [vmem:[%s1785_s11 + $0x38] sm:$0xf]  ;;  %v309_v16 = vld [vmem:[%s1785_s11 + $0x40] sm:$0xf] }
  0x3a   : > { %306 = vst [vmem:[%s1790_s30 + $0x18] sm:$0xf] %v305_v14  ;;  %308 = vst [vmem:[%s1790_s30 + $0x1c] sm:$0xf] %v307_v15  ;;  %v311_v17 = vld [vmem:[%s1785_s11 + $0x48] sm:$0xf] }
  0x3b   : > { %310 = vst [vmem:[%s1790_s30 + $0x20] sm:$0xf] %v309_v16  ;;  %v313_v18 = vld [vmem:[%s1785_s11 + $0x50] sm:$0xf]  ;;  %v315_v19 = vld [vmem:[%s1785_s11 + $0x58] sm:$0xf] }
  0x3c   : > { %312 = vst [vmem:[%s1790_s30 + $0x24] sm:$0xf] %v311_v17  ;;  %314 = vst [vmem:[%s1790_s30 + $0x28] sm:$0xf] %v313_v18  ;;  %v317_v20 = vld [vmem:[%s1785_s11 + $0x60] sm:$0xf] }
  0x3d   : > { %316 = vst [vmem:[%s1790_s30 + $0x2c] sm:$0xf] %v315_v19  ;;  %v319_v21 = vld [vmem:[%s1785_s11 + $0x68] sm:$0xf]  ;;  %v321_v22 = vld [vmem:[%s1785_s11 + $0x70] sm:$0xf] }
  0x3e   : > { %318 = vst [vmem:[%s1790_s30 + $0x30] sm:$0xf] %v317_v20  ;;  %320 = vst [vmem:[%s1790_s30 + $0x34] sm:$0xf] %v319_v21  ;;  %v323_v23 = vld [vmem:[%s1785_s11 + $0x78] sm:$0xf] }
  0x3f   : > { %322 = vst [vmem:[%s1790_s30 + $0x38] sm:$0xf] %v321_v22  ;;  %v325_v24 = vld [vmem:[%s1785_s11 + $0x80] sm:$0xf]  ;;  %v327_v25 = vld [vmem:[%s1785_s11 + $0x88] sm:$0xf] }
  0x40   : > { %324 = vst [vmem:[%s1790_s30 + $0x3c] sm:$0xf] %v323_v23  ;;  %326 = vst [vmem:[%s1790_s30 + $0x40] sm:$0xf] %v325_v24  ;;  %v329_v26 = vld [vmem:[%s1785_s11 + $0x90] sm:$0xf] }
  0x41   : > { %328 = vst [vmem:[%s1790_s30 + $0x44] sm:$0xf] %v327_v25  ;;  %v331_v27 = vld [vmem:[%s1785_s11 + $0x98] sm:$0xf]  ;;  %v333_v28 = vld [vmem:[%s1785_s11 + $0xa0] sm:$0xf] }
  0x42   : > { %330 = vst [vmem:[%s1790_s30 + $0x48] sm:$0xf] %v329_v26  ;;  %332 = vst [vmem:[%s1790_s30 + $0x4c] sm:$0xf] %v331_v27  ;;  %v335_v29 = vld [vmem:[%s1785_s11 + $0xa8] sm:$0xf] }
  0x43   : > { %334 = vst [vmem:[%s1790_s30 + $0x50] sm:$0xf] %v333_v28  ;;  %v337_v30 = vld [vmem:[%s1785_s11 + $0xb0] sm:$0xf]  ;;  %v339_v31 = vld [vmem:[%s1785_s11 + $0xb8] sm:$0xf] }
  0x44   : > { %336 = vst [vmem:[%s1790_s30 + $0x54] sm:$0xf] %v335_v29  ;;  %338 = vst [vmem:[%s1790_s30 + $0x58] sm:$0xf] %v337_v30  ;;  %v341_v32 = vld [vmem:[%s1785_s11 + $0xc0] sm:$0xf] }
  0x45   : > { %340 = vst [vmem:[%s1790_s30 + $0x5c] sm:$0xf] %v339_v31  ;;  %v343_v33 = vld [vmem:[%s1785_s11 + $0xc8] sm:$0xf]  ;;  %v345_v34 = vld [vmem:[%s1785_s11 + $0xd0] sm:$0xf] }
  0x46   : > { %342 = vst [vmem:[%s1790_s30 + $0x60] sm:$0xf] %v341_v32  ;;  %344 = vst [vmem:[%s1790_s30 + $0x64] sm:$0xf] %v343_v33  ;;  %v347_v35 = vld [vmem:[%s1785_s11 + $0xd8] sm:$0xf] }
  0x47   : > { %346 = vst [vmem:[%s1790_s30 + $0x68] sm:$0xf] %v345_v34  ;;  %v349_v36 = vld [vmem:[%s1785_s11 + $0xe0] sm:$0xf]  ;;  %v351_v37 = vld [vmem:[%s1785_s11 + $0xe8] sm:$0xf] }
  0x48   : > { %348 = vst [vmem:[%s1790_s30 + $0x6c] sm:$0xf] %v347_v35  ;;  %350 = vst [vmem:[%s1790_s30 + $0x70] sm:$0xf] %v349_v36  ;;  %v353_v38 = vld [vmem:[%s1785_s11 + $0xf0] sm:$0xf] }
  0x49   : > { %352 = vst [vmem:[%s1790_s30 + $0x74] sm:$0xf] %v351_v37  ;;  %v355_v39 = vld [vmem:[%s1785_s11 + $0xf8] sm:$0xf]  ;;  %v357_v40 = vld [vmem:[%s1785_s11 + $0x100] sm:$0xf] }
  0x4a   : > { %354 = vst [vmem:[%s1790_s30 + $0x78] sm:$0xf] %v353_v38  ;;  %356 = vst [vmem:[%s1790_s30 + $0x7c] sm:$0xf] %v355_v39  ;;  %v359_v41 = vld [vmem:[%s1785_s11 + $0x108] sm:$0xf] }
  0x4b   : > { %358 = vst [vmem:[%s1790_s30 + $0x80] sm:$0xf] %v357_v40  ;;  %v361_v42 = vld [vmem:[%s1785_s11 + $0x110] sm:$0xf]  ;;  %v363_v43 = vld [vmem:[%s1785_s11 + $0x118] sm:$0xf] }
  0x4c   : > { %360 = vst [vmem:[%s1790_s30 + $0x84] sm:$0xf] %v359_v41  ;;  %362 = vst [vmem:[%s1790_s30 + $0x88] sm:$0xf] %v361_v42  ;;  %v365_v44 = vld [vmem:[%s1785_s11 + $0x120] sm:$0xf] }
  0x4d   : > { %364 = vst [vmem:[%s1790_s30 + $0x8c] sm:$0xf] %v363_v43  ;;  %v367_v45 = vld [vmem:[%s1785_s11 + $0x128] sm:$0xf]  ;;  %v369_v46 = vld [vmem:[%s1785_s11 + $0x130] sm:$0xf] }
  0x4e   : > { %366 = vst [vmem:[%s1790_s30 + $0x90] sm:$0xf] %v365_v44  ;;  %368 = vst [vmem:[%s1790_s30 + $0x94] sm:$0xf] %v367_v45  ;;  %v371_v47 = vld [vmem:[%s1785_s11 + $0x138] sm:$0xf] }
  0x4f   : > { %370 = vst [vmem:[%s1790_s30 + $0x98] sm:$0xf] %v369_v46  ;;  %v373_v48 = vld [vmem:[%s1785_s11 + $0x140] sm:$0xf]  ;;  %v375_v49 = vld [vmem:[%s1785_s11 + $0x148] sm:$0xf] }
  0x50   : > { %372 = vst [vmem:[%s1790_s30 + $0x9c] sm:$0xf] %v371_v47  ;;  %374 = vst [vmem:[%s1790_s30 + $0xa0] sm:$0xf] %v373_v48  ;;  %v377_v50 = vld [vmem:[%s1785_s11 + $0x150] sm:$0xf] }
  0x51   : > { %376 = vst [vmem:[%s1790_s30 + $0xa4] sm:$0xf] %v375_v49  ;;  %v379_v51 = vld [vmem:[%s1785_s11 + $0x158] sm:$0xf]  ;;  %v381_v52 = vld [vmem:[%s1785_s11 + $0x160] sm:$0xf] }
  0x52   : > { %378 = vst [vmem:[%s1790_s30 + $0xa8] sm:$0xf] %v377_v50  ;;  %380 = vst [vmem:[%s1790_s30 + $0xac] sm:$0xf] %v379_v51  ;;  %v383_v53 = vld [vmem:[%s1785_s11 + $0x168] sm:$0xf] }
  0x53   : > { %382 = vst [vmem:[%s1790_s30 + $0xb0] sm:$0xf] %v381_v52  ;;  %v385_v54 = vld [vmem:[%s1785_s11 + $0x170] sm:$0xf]  ;;  %v387_v55 = vld [vmem:[%s1785_s11 + $0x178] sm:$0xf] }
  0x54   : > { %384 = vst [vmem:[%s1790_s30 + $0xb4] sm:$0xf] %v383_v53  ;;  %386 = vst [vmem:[%s1790_s30 + $0xb8] sm:$0xf] %v385_v54 }
  0x55   : > { %388 = vst [vmem:[%s1790_s30 + $0xbc] sm:$0xf] %v387_v55 }
  0x56 PF: > { %519 = sbr.rel (!%p1761_p11) target bundleno = 93 (0x5d), region = 95  ;;  %s521_s0 = sand.u32 (%p1761_p11), 1, %s1592_s19  }
  0x57   : > { %s1287_s14 = sshll.u32 (%p1761_p11), %s1624_s27, 2  ;;  %s1286_s29 = sshll.u32 (%p1761_p11), %s521_s0, 4 }
  0x58   : > { %s528_s10 = scalar_lea.vmem (%p1761_p11), %s2014_s4, %s1287_s14  ;;  %s523_s12 = scalar_lea.vmem (%p1761_p11), [#allocation5], %s1286_s29 }
  0x59   : > { %v544_v56 = vld [vmem:[%s528_s10] sm:$0xf] (%p1761_p11)  ;;  %v546_v57 = vld [vmem:[%s528_s10 + $0x8] sm:$0xf] (%p1761_p11)  ;;  %v548_v58 = vld [vmem:[%s528_s10 + $0x10] sm:$0xf] (%p1761_p11) }
  0x5a   : > { %545 = vst [vmem:[%s523_s12] sm:$0xf] (%p1761_p11), %v544_v56  ;;  %547 = vst [vmem:[%s523_s12 + $0x4] sm:$0xf] (%p1761_p11), %v546_v57  ;;  %v550_v59 = vld [vmem:[%s528_s10 + $0x18] sm:$0xf] (%p1761_p11) }
  0x5b   : > { %549 = vst [vmem:[%s523_s12 + $0x8] sm:$0xf] (%p1761_p11), %v548_v58  ;;  %551 = vst [vmem:[%s523_s12 + $0xc] sm:$0xf] (%p1761_p11), %v550_v59 }
  0x5d PF: > { %p1288_p1 = scmp.ge.s32.totalorder %s1628_s28, 1  ;;  %p581_p2 = scmp.lt.s32.totalorder %s1628_s28, 13 }
  0x5f   : > { %p582_p3 = pnand %p1288_p1, %p581_p2 }
  0x60   : > { %s588_s11 = sand.u32 (!%p582_p3), 1, %s1604_s22   ;;  %s595_s7 = sand.u32 (!%p582_p3), 1, %s1596_s20  }
  0x61   : > { %585 = sbr.rel (%p582_p3) target bundleno = 401 (0x191), region = 136  ;;  %s602_s15 = sand.u32 (!%p582_p3), 1, %s1588_s18  }
  0x62   : > { %s1419_s13 = smul.u32 (!%p582_p3), 48, %s588_s11  ;;  %s1897_s0 = sshll.u32 (!%p582_p3), %s602_s15, 4 }
  0x63   : > { %s1420_s30 = smul.u32 (!%p582_p3), 192, %s595_s7  ;;  %p645_p4 = scmp.lt.s32.totalorder (!%p582_p3), %s1616_s25, 1 }
  0x64   : > { %s1911_s22 = scalar_lea.vmem (!%p582_p3), [#allocation3], %s1419_s13  ;;  %s604_s11 = scalar_lea.vmem (!%p582_p3), [#allocation5], %s1897_s0 }
  0x65   : > { %s1913_s18 = scalar_lea.vmem (!%p582_p3), [#allocation4], %s1420_s30  ;;  %s1917_s7 = scalar_lea.vmem (!%p582_p3), [#allocation6], %s1897_s0 }
  0x66   : > { %p1291_p5 = scmp.ne.s32.totalorder (!%p582_p3), %s1612_s24, 0 }
  0x68   : > { %s1901_s14 = scalar_select %p645_p4, %s1616_s25, 1 }
  0x69   : > { %657 = sbr.rel (%p1291_p5) target bundleno = 112 (0x70), region = 152  ;;  %v1630_v60 = vmov (!%p1291_p5), 0.0  }
  0x6a   : > { %s647_s9 = scalar_lea.vmem %s2012_s2, %s1901_s14  ;;  %s650_s20 = scalar_lea.vmem %s2013_s3, %s1901_s14  ;;  %658 = vst [vmem:[#allocation2] sm:$0xff] (!%p1291_p5), %v1630_v60  ;;  %659 = vst [vmem:[#allocation2 + $0x8] sm:$0xff] (!%p1291_p5), %v1630_v60 }
  0x6b   : > { %660 = vst [vmem:[#allocation2 + $0x10] sm:$0xff] (!%p1291_p5), %v1630_v60  ;;  %661 = vst [vmem:[#allocation2 + $0x18] sm:$0xff] (!%p1291_p5), %v1630_v60 }
  0x70 PF: > { %v1510_v61 = vld [vmem:[%s1913_s18 + $0x40] sm:$0xff]   ;;  %v1513_v0 = vld [vmem:[%s1913_s18 + $0x48] sm:$0xff]   ;;  %v1516_v3 = vld [vmem:[%s1913_s18 + $0x50] sm:$0xff]   ;;  %p1322_p6 = scmp.ne.s32.totalorder %s1612_s24, 5 }
  0x71   : > { %v1511_v62 = vld [vmem:[%s1913_s18] sm:$0xff]   ;;  %1359 = vmatprep.subr.bf16.mxu0 %v1510_v61  ;;  %v1514_v1 = vld [vmem:[%s1913_s18 + $0x8] sm:$0xff]   ;;  %v1517_v4 = vld [vmem:[%s1913_s18 + $0x10] sm:$0xff]  }
  0x72   : > { %v1512_v63 = vld [vmem:[%s1913_s18 + $0x80] sm:$0xff]   ;;  %1360 = vmatpush3.bf16.msra.mxu0 %v1511_v62  ;;  %v1515_v2 = vld [vmem:[%s1913_s18 + $0x88] sm:$0xff]   ;;  %v1518_v5 = vld [vmem:[%s1913_s18 + $0x90] sm:$0xff]  }
  0x73   : > { %1397 = vmatprep.subr.bf16.mxu1 %v1512_v63  ;;  %1361 = vmatprep.subr.bf16.mxu0 %v1513_v0  ;;  %v1519_v6 = vld [vmem:[%s1913_s18 + $0x58] sm:$0xff]   ;;  %v1522_v9 = vld [vmem:[%s1913_s18 + $0x60] sm:$0xff]   ;;  %v1525_v12 = vld [vmem:[%s1913_s18 + $0x68] sm:$0xff]  }
  0x74   : > { %1398 = vmatpush3.bf16.msra.mxu1 %v1512_v63  ;;  %v1520_v7 = vld [vmem:[%s1913_s18 + $0x18] sm:$0xff]   ;;  %v1524_v10 = vld [vmem:[%s1913_s18 + $0xa0] sm:$0xff]   ;;  %v1527_v13 = vld [vmem:[%s1913_s18 + $0xa8] sm:$0xff]  }
  0x75   : > { %1399 = vmatprep.subr.bf16.mxu1 %v1515_v2  ;;  %v1521_v8 = vld [vmem:[%s1913_s18 + $0x98] sm:$0xff]   ;;  %v1523_v11 = vld [vmem:[%s1913_s18 + $0x20] sm:$0xff]   ;;  %v1526_v14 = vld [vmem:[%s1913_s18 + $0x28] sm:$0xff]  }
  0x76   : > { %1362 = vmatpush3.bf16.msra.mxu0 %v1514_v1  ;;  %v1528_v15 = vld [vmem:[%s1913_s18 + $0x70] sm:$0xff]   ;;  %v1531_v18 = vld [vmem:[%s1913_s18 + $0x78] sm:$0xff]   ;;  %v662_v33 = vld [vmem:[#allocation2] sm:$0xff] }
  0x77   : > { %1363 = vmatprep.subr.bf16.mxu0 %v1516_v3  ;;  %v1529_v16 = vld [vmem:[%s1913_s18 + $0x30] sm:$0xff]   ;;  %v1533_v19 = vld [vmem:[%s1913_s18 + $0xb8] sm:$0xff]   ;;  %v663_v38 = vld [vmem:[#allocation2 + $0x8] sm:$0xff] }
  0x78   : > { %1400 = vmatpush3.bf16.msra.mxu1 %v1515_v2  ;;  %v1530_v17 = vld [vmem:[%s1913_s18 + $0xb0] sm:$0xff]   ;;  %v1532_v22 = vld [vmem:[%s1913_s18 + $0x38] sm:$0xff]   ;;  %v1323_v57 = vld [vmem:[%s647_s9] ss:$0 sm:$0xff] (!%p1322_p6) }
  0x79   : > { %1401 = vmatprep.subr.bf16.mxu1 %v1518_v5  ;;  %v1536_v20 = vld [vmem:[%s1911_s22 + $0x4] ss:$12 sps:$4 sm:$0xff]   ;;  %v1537_v21 = vld [vmem:[%s1911_s22 + $0x8] ss:$12 sps:$4 sm:$0xff]   ;;  %v1534_v23 = vld [vmem:[%s1911_s22] ss:$12 sps:$4 sm:$0xff]  }
  0x7a   : > { %1364 = vmatpush3.bf16.msra.mxu0 %v1517_v4  ;;  %930 = vmatprep.mubr.bf16.mxu0 %v1536_v20  ;;  %v1539_v24 = vld [vmem:[%s1911_s22 + $0x1c] ss:$12 sps:$4 sm:$0xff]   ;;  %v1538_v25 = vld [vmem:[%s1911_s22 + $0x20] ss:$12 sps:$4 sm:$0xff]   ;;  %v1541_v26 = vld [vmem:[%s1911_s22 + $0x18] ss:$12 sps:$4 sm:$0xff]  }
  0x7b   : > { %1365 = vmatprep.subr.bf16.mxu0 %v1519_v6  ;;  %1413 = vmatprep.mubr.bf16.mxu1 %v1537_v21  ;;  %v664_v47 = vld [vmem:[#allocation2 + $0x10] sm:$0xff]  ;;  %v665_v51 = vld [vmem:[#allocation2 + $0x18] sm:$0xff]  ;;  %v1324_v60 = vld [vmem:[%s650_s20] ss:$0 sm:$0xff] (!%p1322_p6) }
  0x7c   : > { %1402 = vmatpush3.bf16.msra.mxu1 %v1518_v5  ;;  %v1340_v61 = vld [vmem:[%s604_s11] sm:$0xff] (!%p1322_p6)   ;;  %v1357_v3 = vld [vmem:[%s604_s11 + $0x8] sm:$0xff] (!%p1322_p6)  }
  0x7d   : > { %1403 = vmatprep.subr.bf16.mxu1 %v1521_v8  ;;  %v1341_v63 = vunpack.c.l.bf16 (!%p1322_p6), %v1340_v61  ;;  %v1342_v0 = vunpack.c.h.bf16 (!%p1322_p6), %v1340_v61 }
  0x7e   : > { %1366 = vmatpush3.bf16.msra.mxu0 %v1520_v7  ;;  %v1345_v7 = vunpack.c.l.bf16 (!%p1322_p6), %v1357_v3 }
  0x7f   : > { %1367 = vmatprep.subr.bf16.mxu0 %v1522_v9  ;;  %v1346_v9 = vunpack.c.h.bf16 (!%p1322_p6), %v1357_v3 }
  0x80   : > { %1404 = vmatpush3.bf16.msra.mxu1 %v1521_v8 }
  0x81   : > { %1405 = vmatprep.subr.bf16.mxu1 %v1524_v10 }
  0x82   : > { %1368 = vmatpush3.bf16.msra.mxu0 %v1523_v11 }
  0x83   : > { %1369 = vmatprep.subr.bf16.mxu0 %v1525_v12 }
  0x84   : > { %1406 = vmatpush3.bf16.msra.mxu1 %v1524_v10 }
  0x85   : > { %1407 = vmatprep.subr.bf16.mxu1 %v1527_v13 }
  0x86   : > { %1370 = vmatpush3.bf16.msra.mxu0 %v1526_v14 }
  0x87   : > { %1371 = vmatprep.subr.bf16.mxu0 %v1528_v15 }
  0x88   : > { %1408 = vmatpush3.bf16.msra.mxu1 %v1527_v13 }
  0x89   : > { %1409 = vmatprep.subr.bf16.mxu1 %v1530_v17 }
  0x8a   : > { %1372 = vmatpush3.bf16.msra.mxu0 %v1529_v16 }
  0x8b   : > { %1373 = vmatprep.subr.bf16.mxu0 %v1531_v18 }
  0x8c   : > { %1410 = vmatpush3.bf16.msra.mxu1 %v1530_v17 }
  0x8d   : > { %1411 = vmatprep.subr.bf16.mxu1 %v1533_v19 }
  0x8e   : > { %1374 = vmatpush3.bf16.msra.mxu0 %v1532_v22 }
  0x90   : > { %1412 = vmatpush3.bf16.msra.mxu1 %v1533_v19 }
  0x91   : > { %931 = vmatmul.mubr.bf16.vlgmr.msra.gmra.mrb[0].mxu0 %v1534_v23 }
  0x92   : > { %938 = vmatprep.mubr.bf16.mxu0 %v1539_v24 }
  0x93   : > { %1414 = vmatmul.mubr.bf16.vlgmr.msra.gmra.mrb[0].mxu1 %v1538_v25 }
  0x99   : > { %939 = vmatmul.mubr.bf16.gmra.mrb[4].mxu0 %v1541_v26 }
 0x164   : > { %v1375_v27 = vpop.f32.mrb[0].mxu0 }
 0x165   : > { %v1376_v28 = vpop.f32.mrb[1].mxu0 }
 0x166   : > { %v1377_v29 = vadd.f32 %v1376_v28, %v1375_v27  ;;  %v1378_v30 = vpop.f32.mrb[2].mxu0  ;;  %v1415_v31 = vpop.f32.mrb[0].mxu1 }
 0x167   : > { %v1379_v32 = vpop.f32.mrb[3].mxu0  ;;  %v981_v34 = vpop.f32.mrb[1].mxu1 }
 0x168   : > { %v1380_v35 = vadd.f32 %v1379_v32, %v1378_v30  ;;  %v982_v36 = vadd.f32 %v1377_v29, %v981_v34  ;;  %v1416_v37 = vpop.f32.mrb[2].mxu1 }
 0x169   : > { %v984_v39 = vpop.f32.mrb[3].mxu1 }
 0x16a   : > { %v996_v40 = vadd.f32 %v982_v36, %v662_v33  ;;  %v985_v41 = vadd.f32 %v1380_v35, %v984_v39 }
 0x16c   : > { %1000 = vst [vmem:[#allocation2] sm:$0xff] %v996_v40  ;;  %v997_v42 = vadd.f32 %v985_v41, %v663_v38  ;;  %v1381_v43 = vpop.f32.mrb[4].mxu0 }
 0x16d   : > { %v1382_v44 = vpop.f32.mrb[5].mxu0 }
 0x16e   : > { %1001 = vst [vmem:[#allocation2 + $0x8] sm:$0xff] %v997_v42  ;;  %v1383_v45 = vadd.f32 %v1382_v44, %v1381_v43  ;;  %v1384_v46 = vpop.f32.mrb[6].mxu0 }
 0x16f   : > { %v1385_v48 = vpop.f32.mrb[7].mxu0 }
 0x170   : > { %v990_v49 = vadd.f32 %v1415_v31, %v1383_v45  ;;  %v1386_v50 = vadd.f32 %v1385_v48, %v1384_v46  ;;  %1007 = sbr.rel (%p1322_p6) target bundleno = 393 (0x189), region = 156 }
 0x172   : > { %v998_v52 = vadd.f32 %v990_v49, %v664_v47  ;;  %v993_v53 = vadd.f32 %v1416_v37, %v1386_v50 }
 0x173   : > { %v1008_v55 = vld [vmem:[#allocation2] sm:$0xff] (!%p1322_p6) }
 0x174   : > { %1002 = vst [vmem:[#allocation2 + $0x10] sm:$0xff] %v998_v52  ;;  %v999_v54 = vadd.f32 %v993_v53, %v665_v51  ;;  %v1019_v58 = vmul.f32 (!%p1322_p6), %v1323_v57, %v1008_v55 }
 0x175   : > { %v1009_v56 = vld [vmem:[#allocation2 + $0x8] sm:$0xff] (!%p1322_p6) }
 0x176   : > { %1003 = vst [vmem:[#allocation2 + $0x18] sm:$0xff] %v999_v54  ;;  %v1020_v59 = vmul.f32 (!%p1322_p6), %v1323_v57, %v1009_v56  ;;  %v1030_v4 = vadd.f32 (!%p1322_p6), %v1324_v60, %v1019_v58 }
 0x178   : > { %v1031_v5 = vadd.f32 %v1324_v60, %v1020_v59  ;;  %v1042_v10 = vadd.f32 %v1341_v63, %v1030_v4 }
 0x17a   : > { %v1043_v11 = vadd.f32 %v1342_v0, %v1031_v5  ;;  %v1046_v14 = vmax.f32 %v1042_v10, 0.0 }
 0x17b   : > { %v1010_v62 = vld [vmem:[#allocation2 + $0x10] sm:$0xff] }
 0x17c   : > { %v1021_v2 = vmul.f32 %v1323_v57, %v1010_v62  ;;  %v1047_v15 = vmax.f32 %v1043_v11, 0.0 }
 0x17d   : > { %v1011_v1 = vld [vmem:[#allocation2 + $0x18] sm:$0xff] }
 0x17e   : > { %v1022_v6 = vmul.f32 %v1323_v57, %v1011_v1  ;;  %v1032_v8 = vadd.f32 %v1324_v60, %v1021_v2  ;;  %v1350_v18 = vpack.c.bf16 %v1047_v15, %v1046_v14 }
 0x180   : > { %v1033_v12 = vadd.f32 %v1324_v60, %v1022_v6  ;;  %v1044_v13 = vadd.f32 %v1345_v7, %v1032_v8  ;;  %1351 = vst [vmem:[%s1917_s7] sm:$0xff] %v1350_v18  }
 0x182   : > { %v1045_v16 = vadd.f32 %v1346_v9, %v1033_v12  ;;  %v1048_v17 = vmax.f32 %v1044_v13, 0.0 }
 0x184   : > { %v1049_v19 = vmax.f32 %v1045_v16, 0.0 }
 0x186   : > { %v1355_v20 = vpack.c.bf16 %v1049_v19, %v1048_v17 }
 0x188   : > { %1358 = vst [vmem:[%s1917_s7 + $0x8] sm:$0xff] %v1355_v20  }
 0x189 PF: > { %1076 = sbr.rel (!%p1765_p13) target bundleno = 401 (0x191), region = 160  ;;  %s1330_s24 = sshll.u32 (%p1765_p13), %s1616_s25, 2  ;;  %v1097_v21 = vld [vmem:[%s1917_s7] sm:$0xf] (%p1765_p13)  ;;  %v1099_v22 = vld [vmem:[%s1917_s7 + $0x4] sm:$0xf] (%p1765_p13) }
 0x18a   : > { %s1081_s6 = scalar_lea.vmem (%p1765_p13), %s2015_s5, %s1330_s24 }
 0x18b   : > { %1098 = vst [vmem:[%s1081_s6] sm:$0xf] (%p1765_p13), %v1097_v21  ;;  %1100 = vst [vmem:[%s1081_s6 + $0x8] sm:$0xf] (%p1765_p13), %v1099_v22 }
 0x18f   : > { %v1101_v23 = vld [vmem:[%s1917_s7 + $0x8] sm:$0xf] (%p1765_p13)  ;;  %v1103_v24 = vld [vmem:[%s1917_s7 + $0xc] sm:$0xf] (%p1765_p13) }
 0x190   : > { %1102 = vst [vmem:[%s1081_s6 + $0x10] sm:$0xf] %v1101_v23  ;;  %1104 = vst [vmem:[%s1081_s6 + $0x18] sm:$0xf] %v1103_v24 }
 0x191 PF: > { %s15_s28 = sadd.s32 1, %s1628_s28   ;;  %s2027_s25 = sld [smem:[#allocation9_spill]] }
 0x192   : > { %p12_p7 = scmp.ge.s32.totalorder %s15_s28, 14   ;;  %s2028_s8 = sld [smem:[#allocation7_spill]] }
 0x193   : > { %s2029_s9 = sld [smem:[#allocation8_spill]]  ;;  %s2030_s18 = smov %s1592_s19 }
 0x194   : > { %s2031_s19 = smov %s1757_s17  ;;  %s2032_s20 = smov %s1600_s21 }
 0x195   : > { %s2033_s21 = smov %s1754_s16  ;;  %s2034_s22 = smov %s1608_s23 }
 0x196   : > { %s2036_s24 = smov %s1620_s26  ;;  %14 = sbr.rel (!%p12_p7) target bundleno = 8 (0x8), region = 260 }
 0x197   : > { %s2035_s23 = smov %s2027_s25  ;;  %s2037_s25 = smov %s1624_s27 }
 0x198   : > { %s2038_s26 = smov %s2028_s8 }
 0x199   : > { %s2039_s27 = smov %s2029_s9 }

// kernel: _lambda_.38
= control target key start
LH: loop header
LB: loop body
LE: loop exit
PB: predicated region body
PF: predicated region fallthrough
CT: control target
= control target key end

     0   :  { %s1830_s0 = inlined_call_operand.vmem [shape: bf16[32,2304], index: 0, kind: input, shape index: {}]   ;;  %s1831_s1 = inlined_call_operand.vmem [shape: bf16[2304,256], index: 1, kind: input, shape index: {}]   ;;  %s1832_s2 = inlined_call_operand.vmem [shape: f32[1,256], index: 2, kind: input, shape index: {}]   ;;  %s1833_s3 = inlined_call_operand.vmem [shape: f32[1,256], index: 3, kind: input, shape index: {}]   ;;  %s1834_s4 = inlined_call_operand.vmem [shape: bf16[32,256], index: 4, kind: output, shape index: {}]  }
   0x1   :  { %1838 = sst [smem:[#allocation9_spill]] %s1830_s0 }
   0x2   :  { %1839 = sst [smem:[#allocation10_spill]] %s1831_s1 }
   0x3   :  { %s1506_s15 = smov 0   ;;  %s1508_s16 = smov 0  }
   0x4   :  { %s1510_s17 = smov 0   ;;  %s1512_s18 = smov 0  }
   0x5   :  { %s1514_s19 = smov 0   ;;  %s1516_s20 = smov 0  }
   0x6   :  { %s1518_s21 = smov 0   ;;  %s1520_s22 = smov 0  }
   0x7   :  { %s1522_s23 = smov 0   ;;  %s1524_s24 = smov 0  }
   0x8   :  { %s1526_s25 = smov 0  }
   0x9 LB: > { %1840 = sst [smem:[#allocation6_spill]] %s1474_s24  ;;  %s1133_s26 = sadd.s32 4294967295, %s1478_s25   ;;  %s1478_s25 = sphi %s1526_s25, %s14_s25   ;;  %s1474_s24 = sphi %s1524_s24, %s1850_s24   ;;  %s1470_s23 = sphi %s1522_s23, %s1858_s23   ;;  %s1466_s22 = sphi %s1520_s22, %s1848_s22   ;;  %s1462_s21 = sphi %s1518_s21, %s1857_s21   ;;  %s1458_s20 = sphi %s1516_s20, %s1856_s20   ;;  %s1454_s19 = sphi %s1514_s19, %s1855_s19   ;;  %s1450_s18 = sphi %s1512_s18, %s1854_s18   ;;  %s1446_s17 = sphi %s1510_s17, %s1853_s17   ;;  %s1442_s16 = sphi %s1508_s16, %s1852_s16   ;;  %s1438_s15 = sphi %s1506_s15, %s1851_s15  }
   0xa   : > { %s26_s27 = sadd.s32 1, %s1470_s23  ;;  %s29_s28 = sadd.s32 1, %s1474_s24 }
   0xb   : > { %p27_p0 = scmp.ge.s32.totalorder %s26_s27, 6  ;;  %s42_s29 = sadd.s32 1, %s1458_s20 }
   0xc   : > { %p49_p1 = scmp.ne.s32.totalorder %s1458_s20, %s1454_s19  ;;  %p50_p2 = scmp.eq.s32.totalorder %s1478_s25, 0 }
   0xd   : > { %s1860_s27 = smov (%p27_p0, %s26_s27), 0  ;;  %s1862_s28 = smov (!%p27_p0, %s29_s28), %s1474_s24 }
   0xe   : > { %1841 = sst [smem:[#allocation7_spill]] %s1860_s27  ;;  %s38_s30 = ssub.s32 %s1470_s23, %s1860_s27 }
   0xf   : > { %p31_p3 = scmp.ge.s32.totalorder %s1862_s28, 2  ;;  %p40_p4 = scmp.eq.s32.totalorder %s38_s30, 0 }
  0x10   : > { %p1573_p5 = por %p50_p2, %p49_p1  ;;  %s70_s6 = sadd.s32 1, %s1450_s18 }
  0x11   : > { %s1864_s28 = smov (%p31_p3, %s1862_s28), 0  ;;  %p77_p6 = scmp.ne.s32.totalorder %s1450_s18, %s1446_s17 }
  0x12   : > { %1843 = sst [smem:[#allocation8_spill]] %s1864_s28  ;;  %s66_s8 = ssub.s32 %s1474_s24, %s1864_s28 }
  0x13   : > { %s1581_s7 = scalar_select %p40_p4, %s1458_s20, %s42_s29  }
  0x14   : > { %s67_s9 = sor.u32 %s66_s8, %s38_s30  ;;  %p148_p7 = scmp.eq.s32.totalorder %s66_s8, 0 }
  0x15   : > { %p68_p8 = scmp.eq.s32.totalorder %s67_s9, 0  ;;  %p1587_p9 = por %p77_p6, %p50_p2 }
  0x16   : > { %s150_s11 = sadd.s32 1, %s1442_s16  ;;  %p160_p10 = scmp.ne.s32.totalorder %s1442_s16, %s1438_s15 }
  0x17   : > { %s1595_s12 = scalar_select %p68_p8, %s1450_s18, %s70_s6  }
  0x18   : > { %s1598_s13 = scalar_select %p148_p7, %s1442_s16, %s150_s11  }
  0x19   : > { %p161_p11 = scmp.eq.s32.totalorder %s1133_s26, 11  ;;  %p1136_p13 = scmp.ge.s32.totalorder %s1478_s25, 12 }
  0x1b   : > { %p1600_p12 = por %p161_p11, %p160_p10  ;;  %183 = sbr.rel (%p1136_p13) target bundleno = 88 (0x58), region = 16 }
  0x22   : > { %186 = sbr.rel (!%p1573_p5) target bundleno = 47 (0x2f), region = 20  ;;  %s188_s29 = sand.u32 (%p1573_p5), 1, %s1458_s20  }
  0x23   : > { %s1192_s30 = smul.u32 (%p1573_p5), 12, %s1470_s23  ;;  %s1846_s0 = sld [smem:[#allocation9_spill]] (%p1573_p5) }
  0x24   : > { %s1267_s8 = smul.u32 (%p1573_p5), 48, %s188_s29 }
  0x26   : > { %s190_s26 = scalar_lea.vmem (%p1573_p5), [#allocation3], %s1267_s8 }
  0x29   : > { %s196_s11 = scalar_lea.vmem %s1846_s0, %s1192_s30 }
  0x2a   : > { %v211_v0 = vld [vmem:[%s196_s11] sm:$0xff]  ;;  %v213_v1 = vld [vmem:[%s196_s11 + $0x48] sm:$0xff]  ;;  %v215_v2 = vld [vmem:[%s196_s11 + $0x90] sm:$0xff] }
  0x2b   : > { %212 = vst [vmem:[%s190_s26] sm:$0xff] %v211_v0  ;;  %214 = vst [vmem:[%s190_s26 + $0xc] sm:$0xff] %v213_v1  ;;  %v217_v3 = vld [vmem:[%s196_s11 + $0xd8] sm:$0xff]  ;;  %v1138_v4 = vld [vmem:[%s196_s11 + $0x8] sm:$0xf] }
  0x2c   : > { %216 = vst [vmem:[%s190_s26 + $0x18] sm:$0xff] %v215_v2  ;;  %v1140_v5 = vld [vmem:[%s196_s11 + $0x50] sm:$0xf]  ;;  %218 = vst [vmem:[%s190_s26 + $0x24] sm:$0xff] %v217_v3  ;;  %v1142_v6 = vld [vmem:[%s196_s11 + $0x98] sm:$0xf] }
  0x2d   : > { %1139 = vst [vmem:[%s190_s26 + $0x8] sm:$0xf] %v1138_v4  ;;  %1141 = vst [vmem:[%s190_s26 + $0x14] sm:$0xf] %v1140_v5  ;;  %v1144_v7 = vld [vmem:[%s196_s11 + $0xe0] sm:$0xf] }
  0x2e   : > { %1143 = vst [vmem:[%s190_s26 + $0x20] sm:$0xf] %v1142_v6  ;;  %1145 = vst [vmem:[%s190_s26 + $0x2c] sm:$0xf] %v1144_v7 }
  0x2f PF: > { %239 = sbr.rel (!%p1587_p9) target bundleno = 88 (0x58), region = 46  ;;  %s241_s5 = sand.u32 (%p1587_p9), 1, %s1450_s18  }
  0x30   : > { %s1193_s29 = smul.u32 (%p1587_p9), 96, %s1470_s23  ;;  %s1847_s1 = sld [smem:[#allocation10_spill]] (%p1587_p9) }
  0x31   : > { %s1268_s30 = smul.u32 (%p1587_p9), 192, %s241_s5 }
  0x32   : > { %s246_s8 = sadd.s32 (%p1587_p9), %s1474_s24, %s1193_s29 }
  0x33   : > { %s1147_s6 = sshll.u32 (%p1587_p9), %s246_s8, 2  ;;  %s1625_s10 = scalar_lea.vmem (%p1587_p9), [#allocation4], %s1268_s30 }
  0x36   : > { %s1620_s28 = scalar_lea.vmem %s1847_s1, %s1147_s6 }
  0x37   : > { %v264_v8 = vld [vmem:[%s1620_s28] sm:$0xf]  ;;  %v266_v9 = vld [vmem:[%s1620_s28 + $0x8] sm:$0xf]  ;;  %v268_v10 = vld [vmem:[%s1620_s28 + $0x10] sm:$0xf] }
  0x38   : > { %265 = vst [vmem:[%s1625_s10] sm:$0xf] %v264_v8  ;;  %267 = vst [vmem:[%s1625_s10 + $0x4] sm:$0xf] %v266_v9  ;;  %v270_v11 = vld [vmem:[%s1620_s28 + $0x18] sm:$0xf] }
  0x39   : > { %269 = vst [vmem:[%s1625_s10 + $0x8] sm:$0xf] %v268_v10  ;;  %v272_v12 = vld [vmem:[%s1620_s28 + $0x20] sm:$0xf]  ;;  %v274_v13 = vld [vmem:[%s1620_s28 + $0x28] sm:$0xf] }
  0x3a   : > { %271 = vst [vmem:[%s1625_s10 + $0xc] sm:$0xf] %v270_v11  ;;  %273 = vst [vmem:[%s1625_s10 + $0x10] sm:$0xf] %v272_v12  ;;  %v276_v14 = vld [vmem:[%s1620_s28 + $0x30] sm:$0xf] }
  0x3b   : > { %275 = vst [vmem:[%s1625_s10 + $0x14] sm:$0xf] %v274_v13  ;;  %v278_v15 = vld [vmem:[%s1620_s28 + $0x38] sm:$0xf]  ;;  %v280_v16 = vld [vmem:[%s1620_s28 + $0x40] sm:$0xf] }
  0x3c   : > { %277 = vst [vmem:[%s1625_s10 + $0x18] sm:$0xf] %v276_v14  ;;  %279 = vst [vmem:[%s1625_s10 + $0x1c] sm:$0xf] %v278_v15  ;;  %v282_v17 = vld [vmem:[%s1620_s28 + $0x48] sm:$0xf] }
  0x3d   : > { %281 = vst [vmem:[%s1625_s10 + $0x20] sm:$0xf] %v280_v16  ;;  %v284_v18 = vld [vmem:[%s1620_s28 + $0x50] sm:$0xf]  ;;  %v286_v19 = vld [vmem:[%s1620_s28 + $0x58] sm:$0xf] }
  0x3e   : > { %283 = vst [vmem:[%s1625_s10 + $0x24] sm:$0xf] %v282_v17  ;;  %285 = vst [vmem:[%s1625_s10 + $0x28] sm:$0xf] %v284_v18  ;;  %v288_v20 = vld [vmem:[%s1620_s28 + $0x60] sm:$0xf] }
  0x3f   : > { %287 = vst [vmem:[%s1625_s10 + $0x2c] sm:$0xf] %v286_v19  ;;  %v290_v21 = vld [vmem:[%s1620_s28 + $0x68] sm:$0xf]  ;;  %v292_v22 = vld [vmem:[%s1620_s28 + $0x70] sm:$0xf] }
  0x40   : > { %289 = vst [vmem:[%s1625_s10 + $0x30] sm:$0xf] %v288_v20  ;;  %291 = vst [vmem:[%s1625_s10 + $0x34] sm:$0xf] %v290_v21  ;;  %v294_v23 = vld [vmem:[%s1620_s28 + $0x78] sm:$0xf] }
  0x41   : > { %293 = vst [vmem:[%s1625_s10 + $0x38] sm:$0xf] %v292_v22  ;;  %v296_v24 = vld [vmem:[%s1620_s28 + $0x80] sm:$0xf]  ;;  %v298_v25 = vld [vmem:[%s1620_s28 + $0x88] sm:$0xf] }
  0x42   : > { %295 = vst [vmem:[%s1625_s10 + $0x3c] sm:$0xf] %v294_v23  ;;  %297 = vst [vmem:[%s1625_s10 + $0x40] sm:$0xf] %v296_v24  ;;  %v300_v26 = vld [vmem:[%s1620_s28 + $0x90] sm:$0xf] }
  0x43   : > { %299 = vst [vmem:[%s1625_s10 + $0x44] sm:$0xf] %v298_v25  ;;  %v302_v27 = vld [vmem:[%s1620_s28 + $0x98] sm:$0xf]  ;;  %v304_v28 = vld [vmem:[%s1620_s28 + $0xa0] sm:$0xf] }
  0x44   : > { %301 = vst [vmem:[%s1625_s10 + $0x48] sm:$0xf] %v300_v26  ;;  %303 = vst [vmem:[%s1625_s10 + $0x4c] sm:$0xf] %v302_v27  ;;  %v306_v29 = vld [vmem:[%s1620_s28 + $0xa8] sm:$0xf] }
  0x45   : > { %305 = vst [vmem:[%s1625_s10 + $0x50] sm:$0xf] %v304_v28  ;;  %v308_v30 = vld [vmem:[%s1620_s28 + $0xb0] sm:$0xf]  ;;  %v310_v31 = vld [vmem:[%s1620_s28 + $0xb8] sm:$0xf] }
  0x46   : > { %307 = vst [vmem:[%s1625_s10 + $0x54] sm:$0xf] %v306_v29  ;;  %309 = vst [vmem:[%s1625_s10 + $0x58] sm:$0xf] %v308_v30  ;;  %v312_v32 = vld [vmem:[%s1620_s28 + $0xc0] sm:$0xf] }
  0x47   : > { %311 = vst [vmem:[%s1625_s10 + $0x5c] sm:$0xf] %v310_v31  ;;  %v314_v33 = vld [vmem:[%s1620_s28 + $0xc8] sm:$0xf]  ;;  %v316_v34 = vld [vmem:[%s1620_s28 + $0xd0] sm:$0xf] }
  0x48   : > { %313 = vst [vmem:[%s1625_s10 + $0x60] sm:$0xf] %v312_v32  ;;  %315 = vst [vmem:[%s1625_s10 + $0x64] sm:$0xf] %v314_v33  ;;  %v318_v35 = vld [vmem:[%s1620_s28 + $0xd8] sm:$0xf] }
  0x49   : > { %317 = vst [vmem:[%s1625_s10 + $0x68] sm:$0xf] %v316_v34  ;;  %v320_v36 = vld [vmem:[%s1620_s28 + $0xe0] sm:$0xf]  ;;  %v322_v37 = vld [vmem:[%s1620_s28 + $0xe8] sm:$0xf] }
  0x4a   : > { %319 = vst [vmem:[%s1625_s10 + $0x6c] sm:$0xf] %v318_v35  ;;  %321 = vst [vmem:[%s1625_s10 + $0x70] sm:$0xf] %v320_v36  ;;  %v324_v38 = vld [vmem:[%s1620_s28 + $0xf0] sm:$0xf] }
  0x4b   : > { %323 = vst [vmem:[%s1625_s10 + $0x74] sm:$0xf] %v322_v37  ;;  %v326_v39 = vld [vmem:[%s1620_s28 + $0xf8] sm:$0xf]  ;;  %v328_v40 = vld [vmem:[%s1620_s28 + $0x100] sm:$0xf] }
  0x4c   : > { %325 = vst [vmem:[%s1625_s10 + $0x78] sm:$0xf] %v324_v38  ;;  %327 = vst [vmem:[%s1625_s10 + $0x7c] sm:$0xf] %v326_v39  ;;  %v330_v41 = vld [vmem:[%s1620_s28 + $0x108] sm:$0xf] }
  0x4d   : > { %329 = vst [vmem:[%s1625_s10 + $0x80] sm:$0xf] %v328_v40  ;;  %v332_v42 = vld [vmem:[%s1620_s28 + $0x110] sm:$0xf]  ;;  %v334_v43 = vld [vmem:[%s1620_s28 + $0x118] sm:$0xf] }
  0x4e   : > { %331 = vst [vmem:[%s1625_s10 + $0x84] sm:$0xf] %v330_v41  ;;  %333 = vst [vmem:[%s1625_s10 + $0x88] sm:$0xf] %v332_v42  ;;  %v336_v44 = vld [vmem:[%s1620_s28 + $0x120] sm:$0xf] }
  0x4f   : > { %335 = vst [vmem:[%s1625_s10 + $0x8c] sm:$0xf] %v334_v43  ;;  %v338_v45 = vld [vmem:[%s1620_s28 + $0x128] sm:$0xf]  ;;  %v340_v46 = vld [vmem:[%s1620_s28 + $0x130] sm:$0xf] }
  0x50   : > { %337 = vst [vmem:[%s1625_s10 + $0x90] sm:$0xf] %v336_v44  ;;  %339 = vst [vmem:[%s1625_s10 + $0x94] sm:$0xf] %v338_v45  ;;  %v342_v47 = vld [vmem:[%s1620_s28 + $0x138] sm:$0xf] }
  0x51   : > { %341 = vst [vmem:[%s1625_s10 + $0x98] sm:$0xf] %v340_v46  ;;  %v344_v48 = vld [vmem:[%s1620_s28 + $0x140] sm:$0xf]  ;;  %v346_v49 = vld [vmem:[%s1620_s28 + $0x148] sm:$0xf] }
  0x52   : > { %343 = vst [vmem:[%s1625_s10 + $0x9c] sm:$0xf] %v342_v47  ;;  %345 = vst [vmem:[%s1625_s10 + $0xa0] sm:$0xf] %v344_v48  ;;  %v348_v50 = vld [vmem:[%s1620_s28 + $0x150] sm:$0xf] }
  0x53   : > { %347 = vst [vmem:[%s1625_s10 + $0xa4] sm:$0xf] %v346_v49  ;;  %v350_v51 = vld [vmem:[%s1620_s28 + $0x158] sm:$0xf]  ;;  %v352_v52 = vld [vmem:[%s1620_s28 + $0x160] sm:$0xf] }
  0x54   : > { %349 = vst [vmem:[%s1625_s10 + $0xa8] sm:$0xf] %v348_v50  ;;  %351 = vst [vmem:[%s1625_s10 + $0xac] sm:$0xf] %v350_v51  ;;  %v354_v53 = vld [vmem:[%s1620_s28 + $0x168] sm:$0xf] }
  0x55   : > { %353 = vst [vmem:[%s1625_s10 + $0xb0] sm:$0xf] %v352_v52  ;;  %v356_v54 = vld [vmem:[%s1620_s28 + $0x170] sm:$0xf]  ;;  %v358_v55 = vld [vmem:[%s1620_s28 + $0x178] sm:$0xf] }
  0x56   : > { %355 = vst [vmem:[%s1625_s10 + $0xb4] sm:$0xf] %v354_v53  ;;  %357 = vst [vmem:[%s1625_s10 + $0xb8] sm:$0xf] %v356_v54 }
  0x57   : > { %359 = vst [vmem:[%s1625_s10 + $0xbc] sm:$0xf] %v358_v55 }
  0x58 PF: > { %p1148_p0 = scmp.ge.s32.totalorder %s1478_s25, 1  ;;  %p489_p1 = scmp.lt.s32.totalorder %s1478_s25, 13 }
  0x5a   : > { %p490_p2 = pnand %p1148_p0, %p489_p1 }
  0x5b   : > { %s496_s0 = sand.u32 (!%p490_p2), 1, %s1454_s19   ;;  %s503_s11 = sand.u32 (!%p490_p2), 1, %s1446_s17  }
  0x5c   : > { %493 = sbr.rel (%p490_p2) target bundleno = 394 (0x18a), region = 95  ;;  %s534_s28 = sand.u32 (!%p490_p2), 1, %s1438_s15  }
  0x5d   : > { %s1269_s26 = smul.u32 (!%p490_p2), 48, %s496_s0  ;;  %s1149_s29 = sshll.u32 (!%p490_p2), %s534_s28, 4 }
  0x5e   : > { %s1270_s5 = smul.u32 (!%p490_p2), 192, %s503_s11  ;;  %p540_p3 = scmp.lt.s32.totalorder (!%p490_p2), %s1466_s22, 1 }
  0x5f   : > { %s1737_s24 = scalar_lea.vmem (!%p490_p2), [#allocation3], %s1269_s26  ;;  %s1741_s15 = scalar_lea.vmem (!%p490_p2), [#allocation5], %s1149_s29 }
  0x60   : > { %s1739_s17 = scalar_lea.vmem (!%p490_p2), [#allocation4], %s1270_s5  ;;  %p1150_p4 = scmp.ne.s32.totalorder (!%p490_p2), %s1462_s21, 0 }
  0x63   : > { %s1727_s30 = scalar_select %p540_p3, %s1466_s22, 1 }
  0x64   : > { %551 = sbr.rel (%p1150_p4) target bundleno = 107 (0x6b), region = 107  ;;  %v1480_v56 = vmov (!%p1150_p4), 0.0  }
  0x65   : > { %s542_s9 = scalar_lea.vmem %s1832_s2, %s1727_s30  ;;  %s545_s27 = scalar_lea.vmem %s1833_s3, %s1727_s30  ;;  %552 = vst [vmem:[#allocation2] sm:$0xff] (!%p1150_p4), %v1480_v56  ;;  %553 = vst [vmem:[#allocation2 + $0x8] sm:$0xff] (!%p1150_p4), %v1480_v56 }
  0x66   : > { %554 = vst [vmem:[#allocation2 + $0x10] sm:$0xff] (!%p1150_p4), %v1480_v56  ;;  %555 = vst [vmem:[#allocation2 + $0x18] sm:$0xff] (!%p1150_p4), %v1480_v56 }
  0x6b PF: > { %v1360_v57 = vld [vmem:[%s1739_s17 + $0x40] sm:$0xff]   ;;  %v1363_v60 = vld [vmem:[%s1739_s17 + $0x48] sm:$0xff]   ;;  %v1366_v63 = vld [vmem:[%s1739_s17 + $0x50] sm:$0xff]   ;;  %p1181_p5 = scmp.ne.s32.totalorder %s1462_s21, 5 }
  0x6c   : > { %v1361_v58 = vld [vmem:[%s1739_s17] sm:$0xff]   ;;  %1209 = vmatprep.subr.bf16.mxu0 %v1360_v57  ;;  %v1364_v61 = vld [vmem:[%s1739_s17 + $0x8] sm:$0xff]   ;;  %v1367_v0 = vld [vmem:[%s1739_s17 + $0x10] sm:$0xff]  }
  0x6d   : > { %v1362_v59 = vld [vmem:[%s1739_s17 + $0x80] sm:$0xff]   ;;  %1210 = vmatpush3.bf16.msra.mxu0 %v1361_v58  ;;  %v1365_v62 = vld [vmem:[%s1739_s17 + $0x88] sm:$0xff]   ;;  %v1368_v1 = vld [vmem:[%s1739_s17 + $0x90] sm:$0xff]  }
  0x6e   : > { %1247 = vmatprep.subr.bf16.mxu1 %v1362_v59  ;;  %1211 = vmatprep.subr.bf16.mxu0 %v1363_v60  ;;  %v1369_v2 = vld [vmem:[%s1739_s17 + $0x58] sm:$0xff]   ;;  %v1372_v5 = vld [vmem:[%s1739_s17 + $0x60] sm:$0xff]   ;;  %v1375_v8 = vld [vmem:[%s1739_s17 + $0x68] sm:$0xff]  }
  0x6f   : > { %1248 = vmatpush3.bf16.msra.mxu1 %v1362_v59  ;;  %v1370_v3 = vld [vmem:[%s1739_s17 + $0x18] sm:$0xff]   ;;  %v1374_v6 = vld [vmem:[%s1739_s17 + $0xa0] sm:$0xff]   ;;  %v1377_v9 = vld [vmem:[%s1739_s17 + $0xa8] sm:$0xff]  }
  0x70   : > { %1249 = vmatprep.subr.bf16.mxu1 %v1365_v62  ;;  %v1371_v4 = vld [vmem:[%s1739_s17 + $0x98] sm:$0xff]   ;;  %v1373_v7 = vld [vmem:[%s1739_s17 + $0x20] sm:$0xff]   ;;  %v1376_v10 = vld [vmem:[%s1739_s17 + $0x28] sm:$0xff]  }
  0x71   : > { %1212 = vmatpush3.bf16.msra.mxu0 %v1364_v61  ;;  %v1378_v11 = vld [vmem:[%s1739_s17 + $0x70] sm:$0xff]   ;;  %v1381_v14 = vld [vmem:[%s1739_s17 + $0x78] sm:$0xff]   ;;  %v556_v29 = vld [vmem:[#allocation2] sm:$0xff] }
  0x72   : > { %1213 = vmatprep.subr.bf16.mxu0 %v1366_v63  ;;  %v1379_v12 = vld [vmem:[%s1739_s17 + $0x30] sm:$0xff]   ;;  %v1383_v15 = vld [vmem:[%s1739_s17 + $0xb8] sm:$0xff]   ;;  %v557_v34 = vld [vmem:[#allocation2 + $0x8] sm:$0xff] }
  0x73   : > { %1250 = vmatpush3.bf16.msra.mxu1 %v1365_v62  ;;  %v1380_v13 = vld [vmem:[%s1739_s17 + $0xb0] sm:$0xff]   ;;  %v1382_v18 = vld [vmem:[%s1739_s17 + $0x38] sm:$0xff]   ;;  %v1182_v53 = vld [vmem:[%s542_s9] ss:$0 sm:$0xff] (!%p1181_p5) }
  0x74   : > { %1251 = vmatprep.subr.bf16.mxu1 %v1368_v1  ;;  %v1386_v16 = vld [vmem:[%s1737_s24 + $0x4] ss:$12 sps:$4 sm:$0xff]   ;;  %v1387_v17 = vld [vmem:[%s1737_s24 + $0x8] ss:$12 sps:$4 sm:$0xff]   ;;  %v1384_v19 = vld [vmem:[%s1737_s24] ss:$12 sps:$4 sm:$0xff]  }
  0x75   : > { %1214 = vmatpush3.bf16.msra.mxu0 %v1367_v0  ;;  %824 = vmatprep.mubr.bf16.mxu0 %v1386_v16  ;;  %v1389_v20 = vld [vmem:[%s1737_s24 + $0x1c] ss:$12 sps:$4 sm:$0xff]   ;;  %v1388_v21 = vld [vmem:[%s1737_s24 + $0x20] ss:$12 sps:$4 sm:$0xff]   ;;  %v1391_v22 = vld [vmem:[%s1737_s24 + $0x18] ss:$12 sps:$4 sm:$0xff]  }
  0x76   : > { %1215 = vmatprep.subr.bf16.mxu0 %v1369_v2  ;;  %1263 = vmatprep.mubr.bf16.mxu1 %v1387_v17  ;;  %v558_v43 = vld [vmem:[#allocation2 + $0x10] sm:$0xff]  ;;  %v559_v47 = vld [vmem:[#allocation2 + $0x18] sm:$0xff]  ;;  %v1183_v56 = vld [vmem:[%s545_s27] ss:$0 sm:$0xff] (!%p1181_p5) }
  0x77   : > { %1252 = vmatpush3.bf16.msra.mxu1 %v1368_v1 }
  0x78   : > { %1253 = vmatprep.subr.bf16.mxu1 %v1371_v4 }
  0x79   : > { %1216 = vmatpush3.bf16.msra.mxu0 %v1370_v3 }
  0x7a   : > { %1217 = vmatprep.subr.bf16.mxu0 %v1372_v5 }
  0x7b   : > { %1254 = vmatpush3.bf16.msra.mxu1 %v1371_v4 }
  0x7c   : > { %1255 = vmatprep.subr.bf16.mxu1 %v1374_v6 }
  0x7d   : > { %1218 = vmatpush3.bf16.msra.mxu0 %v1373_v7 }
  0x7e   : > { %1219 = vmatprep.subr.bf16.mxu0 %v1375_v8 }
  0x7f   : > { %1256 = vmatpush3.bf16.msra.mxu1 %v1374_v6 }
  0x80   : > { %1257 = vmatprep.subr.bf16.mxu1 %v1377_v9 }
  0x81   : > { %1220 = vmatpush3.bf16.msra.mxu0 %v1376_v10 }
  0x82   : > { %1221 = vmatprep.subr.bf16.mxu0 %v1378_v11 }
  0x83   : > { %1258 = vmatpush3.bf16.msra.mxu1 %v1377_v9 }
  0x84   : > { %1259 = vmatprep.subr.bf16.mxu1 %v1380_v13 }
  0x85   : > { %1222 = vmatpush3.bf16.msra.mxu0 %v1379_v12 }
  0x86   : > { %1223 = vmatprep.subr.bf16.mxu0 %v1381_v14 }
  0x87   : > { %1260 = vmatpush3.bf16.msra.mxu1 %v1380_v13 }
  0x88   : > { %1261 = vmatprep.subr.bf16.mxu1 %v1383_v15 }
  0x89   : > { %1224 = vmatpush3.bf16.msra.mxu0 %v1382_v18 }
  0x8b   : > { %1262 = vmatpush3.bf16.msra.mxu1 %v1383_v15 }
  0x8c   : > { %825 = vmatmul.mubr.bf16.vlgmr.msra.gmra.mrb[0].mxu0 %v1384_v19 }
  0x8d   : > { %832 = vmatprep.mubr.bf16.mxu0 %v1389_v20 }
  0x8e   : > { %1264 = vmatmul.mubr.bf16.vlgmr.msra.gmra.mrb[0].mxu1 %v1388_v21 }
  0x94   : > { %833 = vmatmul.mubr.bf16.gmra.mrb[4].mxu0 %v1391_v22 }
 0x15f   : > { %v1225_v23 = vpop.f32.mrb[0].mxu0 }
 0x160   : > { %v1226_v24 = vpop.f32.mrb[1].mxu0 }
 0x161   : > { %v1227_v25 = vadd.f32 %v1226_v24, %v1225_v23  ;;  %v1228_v26 = vpop.f32.mrb[2].mxu0  ;;  %v1265_v27 = vpop.f32.mrb[0].mxu1 }
 0x162   : > { %v1229_v28 = vpop.f32.mrb[3].mxu0  ;;  %v875_v30 = vpop.f32.mrb[1].mxu1 }
 0x163   : > { %v1230_v31 = vadd.f32 %v1229_v28, %v1228_v26  ;;  %v876_v32 = vadd.f32 %v1227_v25, %v875_v30  ;;  %v1266_v33 = vpop.f32.mrb[2].mxu1 }
 0x164   : > { %v878_v35 = vpop.f32.mrb[3].mxu1 }
 0x165   : > { %v890_v36 = vadd.f32 %v876_v32, %v556_v29  ;;  %v879_v37 = vadd.f32 %v1230_v31, %v878_v35 }
 0x167   : > { %894 = vst [vmem:[#allocation2] sm:$0xff] %v890_v36  ;;  %v891_v38 = vadd.f32 %v879_v37, %v557_v34  ;;  %v1231_v39 = vpop.f32.mrb[4].mxu0 }
 0x168   : > { %v1232_v40 = vpop.f32.mrb[5].mxu0 }
 0x169   : > { %895 = vst [vmem:[#allocation2 + $0x8] sm:$0xff] %v891_v38  ;;  %v1233_v41 = vadd.f32 %v1232_v40, %v1231_v39  ;;  %v1234_v42 = vpop.f32.mrb[6].mxu0 }
 0x16a   : > { %v1235_v44 = vpop.f32.mrb[7].mxu0 }
 0x16b   : > { %v884_v45 = vadd.f32 %v1265_v27, %v1233_v41  ;;  %v1236_v46 = vadd.f32 %v1235_v44, %v1234_v42  ;;  %901 = sbr.rel (%p1181_p5) target bundleno = 386 (0x182), region = 111 }
 0x16d   : > { %v892_v48 = vadd.f32 %v884_v45, %v558_v43  ;;  %v887_v49 = vadd.f32 %v1266_v33, %v1236_v46 }
 0x16e   : > { %v902_v51 = vld [vmem:[#allocation2] sm:$0xff] (!%p1181_p5) }
 0x16f   : > { %896 = vst [vmem:[#allocation2 + $0x10] sm:$0xff] %v892_v48  ;;  %v893_v50 = vadd.f32 %v887_v49, %v559_v47  ;;  %v913_v54 = vmul.f32 (!%p1181_p5), %v1182_v53, %v902_v51 }
 0x170   : > { %v903_v52 = vld [vmem:[#allocation2 + $0x8] sm:$0xff] (!%p1181_p5) }
 0x171   : > { %897 = vst [vmem:[#allocation2 + $0x18] sm:$0xff] %v893_v50  ;;  %v914_v55 = vmul.f32 (!%p1181_p5), %v1182_v53, %v903_v52  ;;  %v924_v61 = vadd.f32 (!%p1181_p5), %v1183_v56, %v913_v54 }
 0x173   : > { %v925_v62 = vadd.f32 %v1183_v56, %v914_v55  ;;  %v928_v1 = vmax.f32 %v924_v61, 0.0 }
 0x175   : > { %v929_v2 = vmax.f32 %v925_v62, 0.0 }
 0x176   : > { %v904_v57 = vld [vmem:[#allocation2 + $0x10] sm:$0xff] }
 0x177   : > { %v915_v59 = vmul.f32 %v1182_v53, %v904_v57  ;;  %v1201_v5 = vpack.c.bf16 %v929_v2, %v928_v1 }
 0x178   : > { %v905_v58 = vld [vmem:[#allocation2 + $0x18] sm:$0xff] }
 0x179   : > { %v916_v60 = vmul.f32 %v1182_v53, %v905_v58  ;;  %v926_v63 = vadd.f32 %v1183_v56, %v915_v59  ;;  %1202 = vst [vmem:[%s1741_s15] sm:$0xff] %v1201_v5  }
 0x17b   : > { %v927_v0 = vadd.f32 %v1183_v56, %v916_v60  ;;  %v930_v3 = vmax.f32 %v926_v63, 0.0 }
 0x17d   : > { %v931_v4 = vmax.f32 %v927_v0, 0.0 }
 0x17f   : > { %v1206_v6 = vpack.c.bf16 %v931_v4, %v930_v3 }
 0x181   : > { %1208 = vst [vmem:[%s1741_s15 + $0x8] sm:$0xff] %v1206_v6  }
 0x182 PF: > { %958 = sbr.rel (!%p1600_p12) target bundleno = 394 (0x18a), region = 115  ;;  %s1189_s21 = sshll.u32 (%p1600_p12), %s1466_s22, 2  ;;  %v979_v7 = vld [vmem:[%s1741_s15] sm:$0xf] (%p1600_p12)  ;;  %v981_v8 = vld [vmem:[%s1741_s15 + $0x4] sm:$0xf] (%p1600_p12) }
 0x183   : > { %s963_s26 = scalar_lea.vmem (%p1600_p12), %s1834_s4, %s1189_s21 }
 0x184   : > { %980 = vst [vmem:[%s963_s26] sm:$0xf] (%p1600_p12), %v979_v7  ;;  %982 = vst [vmem:[%s963_s26 + $0x8] sm:$0xf] (%p1600_p12), %v981_v8 }
 0x188   : > { %v983_v9 = vld [vmem:[%s1741_s15 + $0x8] sm:$0xf] (%p1600_p12)  ;;  %v985_v10 = vld [vmem:[%s1741_s15 + $0xc] sm:$0xf] (%p1600_p12) }
 0x189   : > { %984 = vst [vmem:[%s963_s26 + $0x10] sm:$0xf] %v983_v9  ;;  %986 = vst [vmem:[%s963_s26 + $0x18] sm:$0xf] %v985_v10 }
 0x18a PF: > { %s14_s25 = sadd.s32 1, %s1478_s25   ;;  %s1848_s22 = sld [smem:[#allocation6_spill]] }
 0x18b   : > { %p11_p6 = scmp.ge.s32.totalorder %s14_s25, 14   ;;  %s1849_s14 = sld [smem:[#allocation7_spill]] }
 0x18c   : > { %s1850_s24 = sld [smem:[#allocation8_spill]]  ;;  %s1851_s15 = smov %s1442_s16 }
 0x18d   : > { %s1852_s16 = smov %s1598_s13  ;;  %s1853_s17 = smov %s1450_s18 }
 0x18e   : > { %s1854_s18 = smov %s1595_s12  ;;  %s1855_s19 = smov %s1458_s20 }
 0x18f   : > { %s1856_s20 = smov %s1581_s7  ;;  %s1857_s21 = smov %s1470_s23 }
 0x190   :  { %13 = sbr.rel (!%p11_p6) target bundleno = 9 (0x9), region = 207 }
 0x191   : > { %s1858_s23 = smov %s1849_s14 }

// kernel: _lambda_.41
= control target key start
LH: loop header
LB: loop body
LE: loop exit
PB: predicated region body
PF: predicated region fallthrough
CT: control target
= control target key end

     0   :  { %s1394_s15 = smov 0   ;;  %s1396_s16 = smov 0   ;;  %s1666_s0 = inlined_call_operand.vmem [shape: bf16[8,2304], index: 0, kind: input, shape index: {}]   ;;  %s1667_s1 = inlined_call_operand.vmem [shape: bf16[2304,512], index: 1, kind: input, shape index: {}]   ;;  %s1668_s2 = inlined_call_operand.vmem [shape: f32[1,512], index: 2, kind: input, shape index: {}]   ;;  %s1669_s3 = inlined_call_operand.vmem [shape: f32[1,512], index: 3, kind: input, shape index: {}]   ;;  %s1670_s4 = inlined_call_operand.vmem [shape: bf16[8,512], index: 4, kind: output, shape index: {}]  }
   0x1   :  { %s1398_s17 = smov 0   ;;  %s1400_s18 = smov 0  }
   0x2   :  { %s1402_s19 = smov 0   ;;  %s1404_s20 = smov 0  }
   0x3   :  { %s1406_s21 = smov 0  }
   0x4 LB: > { %s26_s22 = sadd.s32 1, %s1357_s19  ;;  %s29_s23 = sadd.s32 1, %s1361_s20  ;;  %s1365_s21 = sphi %s1406_s21, %s14_s21   ;;  %s1361_s20 = sphi %s1404_s20, %s1676_s20   ;;  %s1357_s19 = sphi %s1402_s19, %s1675_s19   ;;  %s1353_s18 = sphi %s1400_s18, %s1674_s18   ;;  %s1349_s17 = sphi %s1398_s17, %s1673_s17   ;;  %s1345_s16 = sphi %s1396_s16, %s1672_s16   ;;  %s1341_s15 = sphi %s1394_s15, %s1671_s15  }
   0x5   : > { %p27_p0 = scmp.ge.s32.totalorder %s26_s22, 6  ;;  %p77_p1 = scmp.ne.s32.totalorder %s1345_s16, %s1341_s15 }
   0x6   : > { %p78_p2 = scmp.eq.s32.totalorder %s1365_s21, 0  ;;  %s70_s27 = sadd.s32 1, %s1345_s16 }
   0x7   : > { %s1678_s22 = smov (%p27_p0, %s26_s22), 0  ;;  %s1680_s23 = smov (!%p27_p0, %s29_s23), %s1361_s20 }
   0x8   : > { %p79_p3 = por %p78_p2, %p77_p1  ;;  %p31_p4 = scmp.ge.s32.totalorder %s1680_s23, 2 }
   0x9   : > { %s65_s24 = ssub.s32 %s1357_s19, %s1678_s22  ;;  %p1108_p6 = scmp.ge.s32.totalorder %s1365_s21, 12 }
   0xa   : > { %s1682_s23 = smov (%p31_p4, %s1680_s23), 0 }
   0xb   : > { %s66_s25 = ssub.s32 %s1361_s20, %s1682_s23  ;;  %183 = sbr.rel (%p1108_p6) target bundleno = 50 (0x32), region = 16 }
   0xc   : > { %s67_s26 = sor.u32 %s66_s25, %s65_s24 }
   0xd   : > { %p68_p5 = scmp.eq.s32.totalorder %s67_s26, 0 }
   0xf   : > { %s1445_s28 = scalar_select %p68_p5, %s1345_s16, %s70_s27  }
  0x12   : > { %199 = sbr.rel (!%p79_p3) target bundleno = 50 (0x32), region = 24  ;;  %s201_s29 = sand.u32 (%p79_p3), 1, %s1345_s16  }
  0x13   : > { %s1176_s30 = smul.u32 (%p79_p3), 384, %s201_s29  ;;  %s1109_s5 = sshll.u32 (%p79_p3), %s1361_s20, 1 }
  0x14   : > { %s1174_s6 = smul.u32 (%p79_p3), 192, %s1357_s19 }
  0x15   : > { %s1459_s12 = scalar_lea.vmem (%p79_p3), [#allocation3], %s1176_s30 }
  0x16   : > { %s207_s7 = sadd.s32 (%p79_p3), %s1174_s6, %s1109_s5 }
  0x17   : > { %s1111_s8 = sshll.u32 (%p79_p3), %s207_s7, 2 }
  0x18   : > { %s1454_s11 = scalar_lea.vmem (%p79_p3), %s1667_s1, %s1111_s8 }
  0x19   : > { %v331_v0 = vld [vmem:[%s1454_s11] sm:$0xff]  ;;  %v333_v1 = vld [vmem:[%s1454_s11 + $0x10] sm:$0xff] }
  0x1a   : > { %v335_v2 = vld [vmem:[%s1454_s11 + $0x20] sm:$0xff]  ;;  %332 = vst [vmem:[%s1459_s12] sm:$0xff] %v331_v0  ;;  %334 = vst [vmem:[%s1459_s12 + $0x8] sm:$0xff] %v333_v1  ;;  %v337_v3 = vld [vmem:[%s1454_s11 + $0x30] sm:$0xff] }
  0x1b   : > { %336 = vst [vmem:[%s1459_s12 + $0x10] sm:$0xff] %v335_v2  ;;  %v339_v4 = vld [vmem:[%s1454_s11 + $0x40] sm:$0xff]  ;;  %v341_v5 = vld [vmem:[%s1454_s11 + $0x50] sm:$0xff]  ;;  %338 = vst [vmem:[%s1459_s12 + $0x18] sm:$0xff] %v337_v3 }
  0x1c   : > { %340 = vst [vmem:[%s1459_s12 + $0x20] sm:$0xff] %v339_v4  ;;  %342 = vst [vmem:[%s1459_s12 + $0x28] sm:$0xff] %v341_v5  ;;  %v343_v6 = vld [vmem:[%s1454_s11 + $0x60] sm:$0xff]  ;;  %v345_v7 = vld [vmem:[%s1454_s11 + $0x70] sm:$0xff] }
  0x1d   : > { %v347_v8 = vld [vmem:[%s1454_s11 + $0x80] sm:$0xff]  ;;  %344 = vst [vmem:[%s1459_s12 + $0x30] sm:$0xff] %v343_v6  ;;  %346 = vst [vmem:[%s1459_s12 + $0x38] sm:$0xff] %v345_v7  ;;  %v349_v9 = vld [vmem:[%s1454_s11 + $0x90] sm:$0xff] }
  0x1e   : > { %348 = vst [vmem:[%s1459_s12 + $0x40] sm:$0xff] %v347_v8  ;;  %v351_v10 = vld [vmem:[%s1454_s11 + $0xa0] sm:$0xff]  ;;  %v353_v11 = vld [vmem:[%s1454_s11 + $0xb0] sm:$0xff]  ;;  %350 = vst [vmem:[%s1459_s12 + $0x48] sm:$0xff] %v349_v9 }
  0x1f   : > { %352 = vst [vmem:[%s1459_s12 + $0x50] sm:$0xff] %v351_v10  ;;  %354 = vst [vmem:[%s1459_s12 + $0x58] sm:$0xff] %v353_v11  ;;  %v355_v12 = vld [vmem:[%s1454_s11 + $0xc0] sm:$0xff]  ;;  %v357_v13 = vld [vmem:[%s1454_s11 + $0xd0] sm:$0xff] }
  0x20   : > { %v359_v14 = vld [vmem:[%s1454_s11 + $0xe0] sm:$0xff]  ;;  %356 = vst [vmem:[%s1459_s12 + $0x60] sm:$0xff] %v355_v12  ;;  %358 = vst [vmem:[%s1459_s12 + $0x68] sm:$0xff] %v357_v13  ;;  %v361_v15 = vld [vmem:[%s1454_s11 + $0xf0] sm:$0xff] }
  0x21   : > { %360 = vst [vmem:[%s1459_s12 + $0x70] sm:$0xff] %v359_v14  ;;  %v363_v16 = vld [vmem:[%s1454_s11 + $0x100] sm:$0xff]  ;;  %v365_v17 = vld [vmem:[%s1454_s11 + $0x110] sm:$0xff]  ;;  %362 = vst [vmem:[%s1459_s12 + $0x78] sm:$0xff] %v361_v15 }
  0x22   : > { %364 = vst [vmem:[%s1459_s12 + $0x80] sm:$0xff] %v363_v16  ;;  %366 = vst [vmem:[%s1459_s12 + $0x88] sm:$0xff] %v365_v17  ;;  %v367_v18 = vld [vmem:[%s1454_s11 + $0x120] sm:$0xff]  ;;  %v369_v19 = vld [vmem:[%s1454_s11 + $0x130] sm:$0xff] }
  0x23   : > { %v371_v20 = vld [vmem:[%s1454_s11 + $0x140] sm:$0xff]  ;;  %368 = vst [vmem:[%s1459_s12 + $0x90] sm:$0xff] %v367_v18  ;;  %370 = vst [vmem:[%s1459_s12 + $0x98] sm:$0xff] %v369_v19  ;;  %v373_v21 = vld [vmem:[%s1454_s11 + $0x150] sm:$0xff] }
  0x24   : > { %372 = vst [vmem:[%s1459_s12 + $0xa0] sm:$0xff] %v371_v20  ;;  %v375_v22 = vld [vmem:[%s1454_s11 + $0x160] sm:$0xff]  ;;  %v377_v23 = vld [vmem:[%s1454_s11 + $0x170] sm:$0xff]  ;;  %374 = vst [vmem:[%s1459_s12 + $0xa8] sm:$0xff] %v373_v21 }
  0x25   : > { %376 = vst [vmem:[%s1459_s12 + $0xb0] sm:$0xff] %v375_v22  ;;  %378 = vst [vmem:[%s1459_s12 + $0xb8] sm:$0xff] %v377_v23  ;;  %v379_v24 = vld [vmem:[%s1454_s11 + $0x180] sm:$0xff]  ;;  %v381_v25 = vld [vmem:[%s1454_s11 + $0x190] sm:$0xff] }
  0x26   : > { %v383_v26 = vld [vmem:[%s1454_s11 + $0x1a0] sm:$0xff]  ;;  %380 = vst [vmem:[%s1459_s12 + $0xc0] sm:$0xff] %v379_v24  ;;  %382 = vst [vmem:[%s1459_s12 + $0xc8] sm:$0xff] %v381_v25  ;;  %v385_v27 = vld [vmem:[%s1454_s11 + $0x1b0] sm:$0xff] }
  0x27   : > { %384 = vst [vmem:[%s1459_s12 + $0xd0] sm:$0xff] %v383_v26  ;;  %v387_v28 = vld [vmem:[%s1454_s11 + $0x1c0] sm:$0xff]  ;;  %v389_v29 = vld [vmem:[%s1454_s11 + $0x1d0] sm:$0xff]  ;;  %386 = vst [vmem:[%s1459_s12 + $0xd8] sm:$0xff] %v385_v27 }
  0x28   : > { %388 = vst [vmem:[%s1459_s12 + $0xe0] sm:$0xff] %v387_v28  ;;  %390 = vst [vmem:[%s1459_s12 + $0xe8] sm:$0xff] %v389_v29  ;;  %v391_v30 = vld [vmem:[%s1454_s11 + $0x1e0] sm:$0xff]  ;;  %v393_v31 = vld [vmem:[%s1454_s11 + $0x1f0] sm:$0xff] }
  0x29   : > { %v395_v32 = vld [vmem:[%s1454_s11 + $0x200] sm:$0xff]  ;;  %392 = vst [vmem:[%s1459_s12 + $0xf0] sm:$0xff] %v391_v30  ;;  %394 = vst [vmem:[%s1459_s12 + $0xf8] sm:$0xff] %v393_v31  ;;  %v397_v33 = vld [vmem:[%s1454_s11 + $0x210] sm:$0xff] }
  0x2a   : > { %396 = vst [vmem:[%s1459_s12 + $0x100] sm:$0xff] %v395_v32  ;;  %v399_v34 = vld [vmem:[%s1454_s11 + $0x220] sm:$0xff]  ;;  %v401_v35 = vld [vmem:[%s1454_s11 + $0x230] sm:$0xff]  ;;  %398 = vst [vmem:[%s1459_s12 + $0x108] sm:$0xff] %v397_v33 }
  0x2b   : > { %400 = vst [vmem:[%s1459_s12 + $0x110] sm:$0xff] %v399_v34  ;;  %402 = vst [vmem:[%s1459_s12 + $0x118] sm:$0xff] %v401_v35  ;;  %v403_v36 = vld [vmem:[%s1454_s11 + $0x240] sm:$0xff]  ;;  %v405_v37 = vld [vmem:[%s1454_s11 + $0x250] sm:$0xff] }
  0x2c   : > { %v407_v38 = vld [vmem:[%s1454_s11 + $0x260] sm:$0xff]  ;;  %404 = vst [vmem:[%s1459_s12 + $0x120] sm:$0xff] %v403_v36  ;;  %406 = vst [vmem:[%s1459_s12 + $0x128] sm:$0xff] %v405_v37  ;;  %v409_v39 = vld [vmem:[%s1454_s11 + $0x270] sm:$0xff] }
  0x2d   : > { %408 = vst [vmem:[%s1459_s12 + $0x130] sm:$0xff] %v407_v38  ;;  %v411_v40 = vld [vmem:[%s1454_s11 + $0x280] sm:$0xff]  ;;  %v413_v41 = vld [vmem:[%s1454_s11 + $0x290] sm:$0xff]  ;;  %410 = vst [vmem:[%s1459_s12 + $0x138] sm:$0xff] %v409_v39 }
  0x2e   : > { %412 = vst [vmem:[%s1459_s12 + $0x140] sm:$0xff] %v411_v40  ;;  %414 = vst [vmem:[%s1459_s12 + $0x148] sm:$0xff] %v413_v41  ;;  %v415_v42 = vld [vmem:[%s1454_s11 + $0x2a0] sm:$0xff]  ;;  %v417_v43 = vld [vmem:[%s1454_s11 + $0x2b0] sm:$0xff] }
  0x2f   : > { %v419_v44 = vld [vmem:[%s1454_s11 + $0x2c0] sm:$0xff]  ;;  %416 = vst [vmem:[%s1459_s12 + $0x150] sm:$0xff] %v415_v42  ;;  %418 = vst [vmem:[%s1459_s12 + $0x158] sm:$0xff] %v417_v43  ;;  %v421_v45 = vld [vmem:[%s1454_s11 + $0x2d0] sm:$0xff] }
  0x30   : > { %420 = vst [vmem:[%s1459_s12 + $0x160] sm:$0xff] %v419_v44  ;;  %v423_v46 = vld [vmem:[%s1454_s11 + $0x2e0] sm:$0xff]  ;;  %v425_v47 = vld [vmem:[%s1454_s11 + $0x2f0] sm:$0xff]  ;;  %422 = vst [vmem:[%s1459_s12 + $0x168] sm:$0xff] %v421_v45 }
  0x31   : > { %424 = vst [vmem:[%s1459_s12 + $0x170] sm:$0xff] %v423_v46  ;;  %426 = vst [vmem:[%s1459_s12 + $0x178] sm:$0xff] %v425_v47 }
  0x32 PF: > { %p1112_p7 = scmp.ge.s32.totalorder %s1365_s21, 1  ;;  %p447_p8 = scmp.lt.s32.totalorder %s1365_s21, 13 }
  0x34   : > { %p448_p9 = pnand %p1112_p7, %p447_p8 }
  0x35   : > { %s454_s13 = sand.u32 (!%p448_p9), 1, %s1341_s15   ;;  %s500_s14 = smul.u32 (!%p448_p9), 3, %s1349_s17 }
  0x36   : > { %451 = sbr.rel (%p448_p9) target bundleno = 370 (0x172), region = 70  ;;  %s1114_s25 = sshll.u32 (!%p448_p9), %s1353_s18, 1 }
  0x37   : > { %s1177_s24 = smul.u32 (!%p448_p9), 384, %s454_s13  ;;  %p503_p10 = scmp.lt.s32.totalorder (!%p448_p9), %s500_s14, 17 }
  0x38   : > { %p513_p11 = scmp.lt.s32.totalorder (!%p448_p9), %s1114_s25, 3  ;;  %p1118_p12 = scmp.ne.s32.totalorder (!%p448_p9), %s1349_s17, 0 }
  0x39   : > { %s1580_s13 = scalar_lea.vmem (!%p448_p9), [#allocation3], %s1177_s24 }
  0x3d   : > { %s1684_s14 = smov (!%p503_p10, %s500_s14), 17  ;;  %s1686_s25 = smov (!%p513_p11, %s1114_s25), 3 }
  0x3e   : > { %s1113_s26 = sshll.u32 %s1684_s14, 2  ;;  %s515_s15 = scalar_lea.vmem %s1668_s2, %s1686_s25  ;;  %v1367_v48 = vmov (!%p1118_p12), 0.0  }
  0x3f   : > { %s1564_s30 = scalar_lea.vmem %s1666_s0, %s1113_s26  ;;  %s520_s8 = scalar_lea.vmem %s1669_s3, %s1686_s25  ;;  %537 = vst [vmem:[#allocation2] sm:$0xff] (!%p1118_p12), %v1367_v48  ;;  %538 = vst [vmem:[#allocation2 + $0x8] sm:$0xff] (!%p1118_p12), %v1367_v48 }
  0x40   : > { %s1117_s9 = sshll.u32 %s1686_s25, 2  ;;  %536 = sbr.rel (%p1118_p12) target bundleno = 71 (0x47), region = 78 }
  0x41   : > { %s1578_s12 = scalar_lea.vmem %s1670_s4, %s1117_s9 }
  0x47 PF: > { %v1236_v49 = vld [vmem:[%s1580_s13 + $0x4] ss:$8 sps:$4 sm:$0xff]   ;;  %v1238_v50 = vld [vmem:[%s1580_s13] ss:$8 sps:$4 sm:$0xff]   ;;  %v1368_v51 = vmov 0   ;;  %v541_v18 = vld [vmem:[%s1564_s30] sm:$0xff] }
  0x48   : > { %915 = vmatprep.mubr.bf16.mxu1 %v1368_v51  ;;  %842 = vmatprep.subr.bf16.mxu0 %v1236_v49  ;;  %v1239_v52 = vld [vmem:[%s1580_s13 + $0x14] ss:$8 sps:$4 sm:$0xff]   ;;  %v1241_v53 = vld [vmem:[%s1580_s13 + $0x10] ss:$8 sps:$4 sm:$0xff]   ;;  %v1242_v54 = vld [vmem:[%s1580_s13 + $0x24] ss:$8 sps:$4 sm:$0xff]   ;;  %v1120_v19 = vcombine.high %v541_v18, %v541_v18  ;;  %v1119_v37 = vcombine.low %v541_v18, %v541_v18 }
  0x49   : > { %843 = vmatpush1.bf16.msra.mxu0 %v1238_v50  ;;  %v1244_v55 = vld [vmem:[%s1580_s13 + $0x20] ss:$8 sps:$4 sm:$0xff]   ;;  %v1245_v56 = vld [vmem:[%s1580_s13 + $0x34] ss:$8 sps:$4 sm:$0xff]   ;;  %v1247_v57 = vld [vmem:[%s1580_s13 + $0x30] ss:$8 sps:$4 sm:$0xff]  }
  0x4a   : > { %844 = vmatprep.subr.bf16.mxu0 %v1239_v52  ;;  %v1260_v58 = vld [vmem:[%s1580_s13 + $0x104] ss:$8 sps:$4 sm:$0xff]   ;;  %v1262_v59 = vld [vmem:[%s1580_s13 + $0x100] ss:$8 sps:$4 sm:$0xff]   ;;  %v1266_v61 = vld [vmem:[%s1580_s13 + $0x114] ss:$8 sps:$4 sm:$0xff]   ;;  %874 = vmatprep.mubr.bf16.mxu0 %v1120_v19 }
  0x4b   : > { %v1248_v60 = vld [vmem:[%s1580_s13 + $0x44] ss:$8 sps:$4 sm:$0xff]   ;;  %883 = vmatprep.subr.bf16.mxu1 %v1260_v58  ;;  %v1268_v62 = vld [vmem:[%s1580_s13 + $0x110] ss:$8 sps:$4 sm:$0xff]   ;;  %v1250_v63 = vld [vmem:[%s1580_s13 + $0x40] ss:$8 sps:$4 sm:$0xff]  }
  0x4c   : > { %884 = vmatpush1.bf16.msra.mxu1 %v1262_v59  ;;  %v1251_v0 = vld [vmem:[%s1580_s13 + $0x54] ss:$8 sps:$4 sm:$0xff]   ;;  %v1272_v1 = vld [vmem:[%s1580_s13 + $0x124] ss:$8 sps:$4 sm:$0xff]   ;;  %v1274_v2 = vld [vmem:[%s1580_s13 + $0x120] ss:$8 sps:$4 sm:$0xff]  }
  0x4d   : > { %845 = vmatpush1.bf16.msra.mxu0 %v1241_v53  ;;  %885 = vmatprep.subr.bf16.mxu1 %v1266_v61  ;;  %v1253_v3 = vld [vmem:[%s1580_s13 + $0x50] ss:$8 sps:$4 sm:$0xff]   ;;  %v1278_v4 = vld [vmem:[%s1580_s13 + $0x134] ss:$8 sps:$4 sm:$0xff]   ;;  %v1254_v5 = vld [vmem:[%s1580_s13 + $0x64] ss:$8 sps:$4 sm:$0xff]  }
  0x4e   : > { %846 = vmatprep.subr.bf16.mxu0 %v1242_v54  ;;  %v1280_v6 = vld [vmem:[%s1580_s13 + $0x130] ss:$8 sps:$4 sm:$0xff]   ;;  %v1256_v7 = vld [vmem:[%s1580_s13 + $0x60] ss:$8 sps:$4 sm:$0xff]   ;;  %v1284_v8 = vld [vmem:[%s1580_s13 + $0x144] ss:$8 sps:$4 sm:$0xff]  }
  0x4f   : > { %v1257_v9 = vld [vmem:[%s1580_s13 + $0x74] ss:$8 sps:$4 sm:$0xff]   ;;  %v1286_v10 = vld [vmem:[%s1580_s13 + $0x140] ss:$8 sps:$4 sm:$0xff]   ;;  %v1259_v11 = vld [vmem:[%s1580_s13 + $0x70] ss:$8 sps:$4 sm:$0xff]  }
  0x50   : > { %886 = vmatpush1.bf16.msra.mxu1 %v1268_v62  ;;  %v1290_v12 = vld [vmem:[%s1580_s13 + $0x154] ss:$8 sps:$4 sm:$0xff]   ;;  %v1263_v13 = vld [vmem:[%s1580_s13 + $0x84] ss:$8 sps:$4 sm:$0xff]   ;;  %v1292_v14 = vld [vmem:[%s1580_s13 + $0x150] ss:$8 sps:$4 sm:$0xff]  }
  0x51   : > { %847 = vmatpush1.bf16.msra.mxu0 %v1244_v55  ;;  %887 = vmatprep.subr.bf16.mxu1 %v1272_v1  ;;  %v1265_v15 = vld [vmem:[%s1580_s13 + $0x80] ss:$8 sps:$4 sm:$0xff]   ;;  %v1296_v16 = vld [vmem:[%s1580_s13 + $0x164] ss:$8 sps:$4 sm:$0xff]   ;;  %v1269_v17 = vld [vmem:[%s1580_s13 + $0x94] ss:$8 sps:$4 sm:$0xff]  }
  0x52   : > { %848 = vmatprep.subr.bf16.mxu0 %v1245_v56  ;;  %v1298_v20 = vld [vmem:[%s1580_s13 + $0x160] ss:$8 sps:$4 sm:$0xff]   ;;  %v1271_v21 = vld [vmem:[%s1580_s13 + $0x90] ss:$8 sps:$4 sm:$0xff]   ;;  %v1302_v22 = vld [vmem:[%s1580_s13 + $0x174] ss:$8 sps:$4 sm:$0xff]  }
  0x53   : > { %v1275_v23 = vld [vmem:[%s1580_s13 + $0xa4] ss:$8 sps:$4 sm:$0xff]   ;;  %v1304_v24 = vld [vmem:[%s1580_s13 + $0x170] ss:$8 sps:$4 sm:$0xff]   ;;  %v1277_v25 = vld [vmem:[%s1580_s13 + $0xa0] ss:$8 sps:$4 sm:$0xff]  }
  0x54   : > { %888 = vmatpush1.bf16.msra.mxu1 %v1274_v2  ;;  %v1281_v26 = vld [vmem:[%s1580_s13 + $0xb4] ss:$8 sps:$4 sm:$0xff]   ;;  %v1308_v27 = vld [vmem:[%s1564_s30 + $0x8] ss:$0 sps:$4 sm:$0xff]   ;;  %v1287_v29 = vld [vmem:[%s1580_s13 + $0xc4] ss:$8 sps:$4 sm:$0xff]  }
  0x55   : > { %849 = vmatpush1.bf16.msra.mxu0 %v1247_v57  ;;  %889 = vmatprep.subr.bf16.mxu1 %v1278_v4  ;;  %v1283_v28 = vld [vmem:[%s1580_s13 + $0xb0] ss:$8 sps:$4 sm:$0xff]   ;;  %v1289_v30 = vld [vmem:[%s1580_s13 + $0xc0] ss:$8 sps:$4 sm:$0xff]   ;;  %v1293_v31 = vld [vmem:[%s1580_s13 + $0xd4] ss:$8 sps:$4 sm:$0xff]  }
  0x56   : > { %850 = vmatprep.subr.bf16.mxu0 %v1248_v60  ;;  %v1295_v32 = vld [vmem:[%s1580_s13 + $0xd0] ss:$8 sps:$4 sm:$0xff]   ;;  %v1299_v33 = vld [vmem:[%s1580_s13 + $0xe4] ss:$8 sps:$4 sm:$0xff]   ;;  %v1301_v34 = vld [vmem:[%s1580_s13 + $0xe0] ss:$8 sps:$4 sm:$0xff]  }
  0x57   : > { %v1305_v35 = vld [vmem:[%s1580_s13 + $0xf4] ss:$8 sps:$4 sm:$0xff]   ;;  %v1307_v36 = vld [vmem:[%s1580_s13 + $0xf0] ss:$8 sps:$4 sm:$0xff]   ;;  %p1170_p13 = scmp.ne.s32.totalorder %s1349_s17, 5 }
  0x58   : > { %890 = vmatpush1.bf16.msra.mxu1 %v1280_v6  ;;  %v539_v42 = vld [vmem:[#allocation2] sm:$0xff]  ;;  %v540_v45 = vld [vmem:[#allocation2 + $0x8] sm:$0xff]  ;;  %v936_v52 = vlaneseq (!%p1170_p13) }
  0x59   : > { %851 = vmatpush1.bf16.msra.mxu0 %v1250_v63  ;;  %891 = vmatprep.subr.bf16.mxu1 %v1284_v8  ;;  %v934_v54 = vld [vmem:[%s515_s15] sm:$0x3] (!%p1170_p13) }
  0x5a   : > { %852 = vmatprep.subr.bf16.mxu0 %v1251_v0  ;;  %v937_v53 = vshrl.u32 (!%p1170_p13), %v936_v52, 7  ;;  %v948_v55 = vld [vmem:[%s520_s8] sm:$0x3] (!%p1170_p13) }
  0x5c   : > { %892 = vmatpush1.bf16.msra.mxu1 %v1286_v10  ;;  %v938_v56 = vsub.s32 (!%p1170_p13), 0, %v937_v53  ;;  %v942_v57 = vsub.s32 (!%p1170_p13), 1, %v937_v53 }
  0x5d   : > { %853 = vmatpush1.bf16.msra.mxu0 %v1253_v3  ;;  %893 = vmatprep.subr.bf16.mxu1 %v1290_v12 }
  0x5e   : > { %854 = vmatprep.subr.bf16.mxu0 %v1254_v5  ;;  %v939_v60 = vrot.slane (!%p1170_p13), %v934_v54, %v938_v56  ;;  %v943_v61 = vrot.slane (!%p1170_p13), %v934_v54, %v942_v57  ;;  %v953_v62 = vrot.slane (!%p1170_p13), %v948_v55, %v938_v56  ;;  %v957_v63 = vrot.slane (!%p1170_p13), %v948_v55, %v942_v57 }
  0x60   : > { %894 = vmatpush1.bf16.msra.mxu1 %v1292_v14 }
  0x61   : > { %855 = vmatpush1.bf16.msra.mxu0 %v1256_v7  ;;  %895 = vmatprep.subr.bf16.mxu1 %v1296_v16 }
  0x62   : > { %856 = vmatprep.subr.bf16.mxu0 %v1257_v9 }
  0x64   : > { %896 = vmatpush1.bf16.msra.mxu1 %v1298_v20 }
  0x65   : > { %857 = vmatpush1.bf16.msra.mxu0 %v1259_v11  ;;  %897 = vmatprep.subr.bf16.mxu1 %v1302_v22 }
  0x66   : > { %858 = vmatprep.subr.bf16.mxu0 %v1263_v13 }
  0x68   : > { %898 = vmatpush1.bf16.msra.mxu1 %v1304_v24 }
  0x69   : > { %859 = vmatpush1.bf16.msra.mxu0 %v1265_v15 }
  0x6a   : > { %860 = vmatprep.subr.bf16.mxu0 %v1269_v17 }
  0x6b   : > { %916 = vmatmul.mubr.bf16.vlgmr.msra.gmra.mrb[0].mxu1 %v1308_v27 }
  0x6d   : > { %861 = vmatpush1.bf16.msra.mxu0 %v1271_v21 }
  0x6e   : > { %862 = vmatprep.subr.bf16.mxu0 %v1275_v23 }
  0x71   : > { %863 = vmatpush1.bf16.msra.mxu0 %v1277_v25 }
  0x72   : > { %864 = vmatprep.subr.bf16.mxu0 %v1281_v26 }
  0x75   : > { %865 = vmatpush1.bf16.msra.mxu0 %v1283_v28 }
  0x76   : > { %866 = vmatprep.subr.bf16.mxu0 %v1287_v29 }
  0x79   : > { %867 = vmatpush1.bf16.msra.mxu0 %v1289_v30 }
  0x7a   : > { %868 = vmatprep.subr.bf16.mxu0 %v1293_v31 }
  0x7d   : > { %869 = vmatpush1.bf16.msra.mxu0 %v1295_v32 }
  0x7e   : > { %870 = vmatprep.subr.bf16.mxu0 %v1299_v33 }
  0x81   : > { %871 = vmatpush1.bf16.msra.mxu0 %v1301_v34 }
  0x82   : > { %872 = vmatprep.subr.bf16.mxu0 %v1305_v35 }
  0x85   : > { %873 = vmatpush1.bf16.msra.mxu0 %v1307_v36 }
  0x88   : > { %875 = vmatmul.mubr.bf16.vlgmr.msra.gmra.mrb[0].mxu0 %v1119_v37 }
 0x13e   : > { %v917_v38 = vpop.f32.mrb[0].mxu1 }
 0x13f   : > { %v919_v39 = vpop.f32.mrb[1].mxu1 }
 0x140   : > { %v921_v40 = vpop.f32.mrb[2].mxu1 }
 0x141   : > { %v922_v41 = vpop.f32.mrb[3].mxu1 }
 0x15b   : > { %v876_v43 = vpop.f32.mrb[0].mxu0  ;;  %931 = sbr.rel (%p1170_p13) target bundleno = 370 (0x172), region = 82 }
 0x15c   : > { %v918_v44 = vadd.f32 %v917_v38, %v876_v43  ;;  %v878_v46 = vpop.f32.mrb[1].mxu0 }
 0x15d   : > { %v920_v47 = vadd.f32 %v919_v39, %v878_v46  ;;  %v880_v48 = vpop.f32.mrb[2].mxu0 }
 0x15e   : > { %v924_v49 = vadd.f32 %v918_v44, %v539_v42  ;;  %v881_v50 = vpop.f32.mrb[3].mxu0 }
 0x15f   : > { %v925_v51 = vadd.f32 %v920_v47, %v540_v45 }
 0x160   : > { %926 = vst [vmem:[#allocation2] sm:$0xff] %v924_v49 }
 0x161   : > { %927 = vst [vmem:[#allocation2 + $0x8] sm:$0xff] %v925_v51 }
 0x167   : > { %v932_v58 = vld [vmem:[#allocation2] sm:$0xff] }
 0x168   : > { %v933_v59 = vld [vmem:[#allocation2 + $0x8] sm:$0xff]  ;;  %v946_v0 = vmul.f32 %v939_v60, %v932_v58 }
 0x169   : > { %v947_v1 = vmul.f32 %v943_v61, %v933_v59 }
 0x16a   : > { %v960_v2 = vadd.f32 %v953_v62, %v946_v0 }
 0x16b   : > { %v961_v3 = vadd.f32 %v957_v63, %v947_v1 }
 0x16c   : > { %v962_v4 = vmax.f32 %v960_v2, 0.0 }
 0x16d   : > { %v963_v5 = vmax.f32 %v961_v3, 0.0 }
 0x16f   : > { %v1175_v6 = vpack.c.bf16 %v963_v5, %v962_v4 }
 0x171   : > { %972 = vst [vmem:[%s1578_s12] sm:$0xff] %v1175_v6 }
 0x172 PF: > { %s14_s21 = sadd.s32 1, %s1365_s21   ;;  %s1671_s15 = smov %s1345_s16 }
 0x173   : > { %p11_p0 = scmp.ge.s32.totalorder %s14_s21, 14   ;;  %s1672_s16 = smov %s1445_s28 }
 0x174   : > { %s1673_s17 = smov %s1357_s19  ;;  %s1674_s18 = smov %s1361_s20 }
 0x175   : > { %s1675_s19 = smov %s1678_s22  ;;  %s1676_s20 = smov %s1682_s23 }
 0x176   :  { %13 = sbr.rel (!%p11_p0) target bundleno = 4 (0x4), region = 126 }

// kernel: _lambda_.40
= control target key start
LH: loop header
LB: loop body
LE: loop exit
PB: predicated region body
PF: predicated region fallthrough
CT: control target
= control target key end

     0   :  { %s1103_s15 = smov 0   ;;  %s1105_s16 = smov 0   ;;  %s1285_s0 = inlined_call_operand.vmem [shape: bf16[8,256], index: 0, kind: input, shape index: {}]   ;;  %s1286_s1 = inlined_call_operand.vmem [shape: bf16[256,512], index: 1, kind: input, shape index: {}]   ;;  %s1287_s2 = inlined_call_operand.vmem [shape: f32[1,512], index: 2, kind: input, shape index: {}]   ;;  %s1288_s3 = inlined_call_operand.vmem [shape: f32[1,512], index: 3, kind: input, shape index: {}]   ;;  %s1289_s4 = inlined_call_operand.vmem [shape: bf16[8,512], index: 4, kind: output, shape index: {}]  }
   0x1   :  { %s1107_s17 = smov 0   ;;  %s1109_s18 = smov 0  }
   0x2   :  { %s1111_s19 = smov 0  }
   0x3 LB: > { %s29_s20 = sadd.s32 1, %s1072_s18  ;;  %p77_p1 = scmp.ne.s32.totalorder %s1064_s16, %s1060_s15  ;;  %s1076_s19 = sphi %s1111_s19, %s14_s19   ;;  %s1072_s18 = sphi %s1109_s18, %s1293_s18   ;;  %s1068_s17 = sphi %s1107_s17, %s1292_s17   ;;  %s1064_s16 = sphi %s1105_s16, %s1291_s16   ;;  %s1060_s15 = sphi %s1103_s15, %s1290_s15  }
   0x4   : > { %p31_p0 = scmp.ge.s32.totalorder %s29_s20, 2  ;;  %p78_p2 = scmp.eq.s32.totalorder %s1076_s19, 0 }
   0x5   : > { %s70_s22 = sadd.s32 1, %s1064_s16  ;;  %p899_p5 = scmp.ge.s32.totalorder %s1076_s19, 2 }
   0x6   : > { %s1295_s20 = smov (%p31_p0, %s29_s20), 0  ;;  %p79_p3 = por %p78_p2, %p77_p1 }
   0x7   : > { %s66_s21 = ssub.s32 %s1072_s18, %s1295_s20  ;;  %196 = sbr.rel (%p899_p5) target bundleno = 34 (0x22), region = 20 }
   0x8   : > { %p68_p4 = scmp.eq.s32.totalorder %s66_s21, 0 }
   0xa   : > { %s1138_s23 = scalar_select %p68_p4, %s1064_s16, %s70_s22  }
   0xe   : > { %199 = sbr.rel (!%p79_p3) target bundleno = 34 (0x22), region = 24  ;;  %s201_s24 = sand.u32 (%p79_p3), 1, %s1064_s16  }
   0xf   : > { %s946_s25 = sshll.u32 (%p79_p3), %s1072_s18, 3  ;;  %s900_s26 = sshll.u32 (%p79_p3), %s201_s24, 8 }
  0x10   : > { %s1146_s29 = scalar_lea.vmem (%p79_p3), %s1286_s1, %s946_s25  ;;  %s1151_s30 = scalar_lea.vmem (%p79_p3), [#allocation3], %s900_s26 }
  0x11   : > { %v299_v0 = vld [vmem:[%s1146_s29] sm:$0xff] (%p79_p3)  ;;  %v301_v1 = vld [vmem:[%s1146_s29 + $0x10] sm:$0xff] (%p79_p3) }
  0x12   : > { %v303_v2 = vld [vmem:[%s1146_s29 + $0x20] sm:$0xff] (%p79_p3)  ;;  %300 = vst [vmem:[%s1151_s30] sm:$0xff] (%p79_p3), %v299_v0  ;;  %302 = vst [vmem:[%s1151_s30 + $0x8] sm:$0xff] (%p79_p3), %v301_v1  ;;  %v305_v3 = vld [vmem:[%s1146_s29 + $0x30] sm:$0xff] (%p79_p3) }
  0x13   : > { %304 = vst [vmem:[%s1151_s30 + $0x10] sm:$0xff] (%p79_p3), %v303_v2  ;;  %v307_v4 = vld [vmem:[%s1146_s29 + $0x40] sm:$0xff] (%p79_p3)  ;;  %v309_v5 = vld [vmem:[%s1146_s29 + $0x50] sm:$0xff] (%p79_p3)  ;;  %306 = vst [vmem:[%s1151_s30 + $0x18] sm:$0xff] (%p79_p3), %v305_v3 }
  0x14   : > { %308 = vst [vmem:[%s1151_s30 + $0x20] sm:$0xff] (%p79_p3), %v307_v4  ;;  %310 = vst [vmem:[%s1151_s30 + $0x28] sm:$0xff] (%p79_p3), %v309_v5  ;;  %v311_v6 = vld [vmem:[%s1146_s29 + $0x60] sm:$0xff] (%p79_p3)  ;;  %v313_v7 = vld [vmem:[%s1146_s29 + $0x70] sm:$0xff] (%p79_p3) }
  0x15   : > { %v315_v8 = vld [vmem:[%s1146_s29 + $0x80] sm:$0xff]  ;;  %312 = vst [vmem:[%s1151_s30 + $0x30] sm:$0xff] %v311_v6  ;;  %314 = vst [vmem:[%s1151_s30 + $0x38] sm:$0xff] %v313_v7  ;;  %v317_v9 = vld [vmem:[%s1146_s29 + $0x90] sm:$0xff] }
  0x16   : > { %316 = vst [vmem:[%s1151_s30 + $0x40] sm:$0xff] %v315_v8  ;;  %v319_v10 = vld [vmem:[%s1146_s29 + $0xa0] sm:$0xff]  ;;  %v321_v11 = vld [vmem:[%s1146_s29 + $0xb0] sm:$0xff]  ;;  %318 = vst [vmem:[%s1151_s30 + $0x48] sm:$0xff] %v317_v9 }
  0x17   : > { %320 = vst [vmem:[%s1151_s30 + $0x50] sm:$0xff] %v319_v10  ;;  %322 = vst [vmem:[%s1151_s30 + $0x58] sm:$0xff] %v321_v11  ;;  %v323_v12 = vld [vmem:[%s1146_s29 + $0xc0] sm:$0xff]  ;;  %v325_v13 = vld [vmem:[%s1146_s29 + $0xd0] sm:$0xff] }
  0x18   : > { %v327_v14 = vld [vmem:[%s1146_s29 + $0xe0] sm:$0xff]  ;;  %324 = vst [vmem:[%s1151_s30 + $0x60] sm:$0xff] %v323_v12  ;;  %326 = vst [vmem:[%s1151_s30 + $0x68] sm:$0xff] %v325_v13  ;;  %v329_v15 = vld [vmem:[%s1146_s29 + $0xf0] sm:$0xff] }
  0x19   : > { %328 = vst [vmem:[%s1151_s30 + $0x70] sm:$0xff] %v327_v14  ;;  %v331_v16 = vld [vmem:[%s1146_s29 + $0x100] sm:$0xff]  ;;  %v333_v17 = vld [vmem:[%s1146_s29 + $0x110] sm:$0xff]  ;;  %330 = vst [vmem:[%s1151_s30 + $0x78] sm:$0xff] %v329_v15 }
  0x1a   : > { %332 = vst [vmem:[%s1151_s30 + $0x80] sm:$0xff] %v331_v16  ;;  %334 = vst [vmem:[%s1151_s30 + $0x88] sm:$0xff] %v333_v17  ;;  %v335_v18 = vld [vmem:[%s1146_s29 + $0x120] sm:$0xff]  ;;  %v337_v19 = vld [vmem:[%s1146_s29 + $0x130] sm:$0xff] }
  0x1b   : > { %v339_v20 = vld [vmem:[%s1146_s29 + $0x140] sm:$0xff]  ;;  %336 = vst [vmem:[%s1151_s30 + $0x90] sm:$0xff] %v335_v18  ;;  %338 = vst [vmem:[%s1151_s30 + $0x98] sm:$0xff] %v337_v19  ;;  %v341_v21 = vld [vmem:[%s1146_s29 + $0x150] sm:$0xff] }
  0x1c   : > { %340 = vst [vmem:[%s1151_s30 + $0xa0] sm:$0xff] %v339_v20  ;;  %v343_v22 = vld [vmem:[%s1146_s29 + $0x160] sm:$0xff]  ;;  %v345_v23 = vld [vmem:[%s1146_s29 + $0x170] sm:$0xff]  ;;  %342 = vst [vmem:[%s1151_s30 + $0xa8] sm:$0xff] %v341_v21 }
  0x1d   : > { %344 = vst [vmem:[%s1151_s30 + $0xb0] sm:$0xff] %v343_v22  ;;  %346 = vst [vmem:[%s1151_s30 + $0xb8] sm:$0xff] %v345_v23  ;;  %v347_v24 = vld [vmem:[%s1146_s29 + $0x180] sm:$0xff]  ;;  %v349_v25 = vld [vmem:[%s1146_s29 + $0x190] sm:$0xff] }
  0x1e   : > { %v351_v26 = vld [vmem:[%s1146_s29 + $0x1a0] sm:$0xff]  ;;  %348 = vst [vmem:[%s1151_s30 + $0xc0] sm:$0xff] %v347_v24  ;;  %350 = vst [vmem:[%s1151_s30 + $0xc8] sm:$0xff] %v349_v25  ;;  %v353_v27 = vld [vmem:[%s1146_s29 + $0x1b0] sm:$0xff] }
  0x1f   : > { %352 = vst [vmem:[%s1151_s30 + $0xd0] sm:$0xff] %v351_v26  ;;  %v355_v28 = vld [vmem:[%s1146_s29 + $0x1c0] sm:$0xff]  ;;  %v357_v29 = vld [vmem:[%s1146_s29 + $0x1d0] sm:$0xff]  ;;  %354 = vst [vmem:[%s1151_s30 + $0xd8] sm:$0xff] %v353_v27 }
  0x20   : > { %356 = vst [vmem:[%s1151_s30 + $0xe0] sm:$0xff] %v355_v28  ;;  %358 = vst [vmem:[%s1151_s30 + $0xe8] sm:$0xff] %v357_v29  ;;  %v359_v30 = vld [vmem:[%s1146_s29 + $0x1e0] sm:$0xff]  ;;  %v361_v31 = vld [vmem:[%s1146_s29 + $0x1f0] sm:$0xff] }
  0x21   : > { %360 = vst [vmem:[%s1151_s30 + $0xf0] sm:$0xff] %v359_v30  ;;  %362 = vst [vmem:[%s1151_s30 + $0xf8] sm:$0xff] %v361_v31 }
  0x22 PF: > { %p903_p6 = scmp.ge.s32.totalorder %s1076_s19, 1  ;;  %p383_p7 = scmp.lt.s32.totalorder %s1076_s19, 3 }
  0x24   : > { %p384_p8 = pnand %p903_p6, %p383_p7 }
  0x25   : > { %s390_s5 = sand.u32 (!%p384_p8), 1, %s1060_s15   ;;  %v1220_v32 = vld [vmem:[%s1285_s0] sm:$0xff] (!%p384_p8)  ;;  %s905_s10 = sshll.u32 (!%p384_p8), %s1068_s17, 1  ;;  %v728_v3 = vlaneseq (!%p384_p8) }
  0x26   : > { %387 = sbr.rel (%p384_p8) target bundleno = 325 (0x145), region = 70  ;;  %s904_s8 = sshll.u32 (!%p384_p8), %s390_s5, 8  ;;  %v910_v33 = vcombine.high (!%p384_p8), %v1220_v32, %v1220_v32  ;;  %v909_v2 = vcombine.low (!%p384_p8), %v1220_v32, %v1220_v32 }
  0x27   : > { %s1224_s9 = scalar_lea.vmem (!%p384_p8), [#allocation3], %s904_s8  ;;  %p449_p9 = scmp.lt.s32.totalorder (!%p384_p8), %s905_s10, 3  ;;  %v729_v4 = vshrl.u32 (!%p384_p8), %v728_v3, 7 }
  0x28   : > { %v988_v34 = vld [vmem:[%s1224_s9 + $0x4] ss:$8 sps:$4 sm:$0xff] (!%p384_p8)   ;;  %708 = vmatprep.mubr.bf16.mxu0 (!%p384_p8), %v910_v33  ;;  %v990_v35 = vld [vmem:[%s1224_s9] ss:$8 sps:$4 sm:$0xff] (!%p384_p8)   ;;  %v991_v36 = vld [vmem:[%s1224_s9 + $0x14] ss:$8 sps:$4 sm:$0xff] (!%p384_p8)  }
  0x29   : > { %676 = vmatprep.subr.bf16.mxu0 (!%p384_p8), %v988_v34  ;;  %v993_v37 = vld [vmem:[%s1224_s9 + $0x10] ss:$8 sps:$4 sm:$0xff] (!%p384_p8)   ;;  %v994_v38 = vld [vmem:[%s1224_s9 + $0x24] ss:$8 sps:$4 sm:$0xff] (!%p384_p8)   ;;  %v996_v39 = vld [vmem:[%s1224_s9 + $0x20] ss:$8 sps:$4 sm:$0xff] (!%p384_p8)  }
  0x2a   : > { %677 = vmatpush1.bf16.msra.mxu0 (!%p384_p8), %v990_v35  ;;  %v997_v40 = vld [vmem:[%s1224_s9 + $0x34] ss:$8 sps:$4 sm:$0xff] (!%p384_p8)   ;;  %v999_v41 = vld [vmem:[%s1224_s9 + $0x30] ss:$8 sps:$4 sm:$0xff] (!%p384_p8)   ;;  %v1000_v42 = vld [vmem:[%s1224_s9 + $0x44] ss:$8 sps:$4 sm:$0xff] (!%p384_p8)  }
  0x2b   : > { %678 = vmatprep.subr.bf16.mxu0 (!%p384_p8), %v991_v36  ;;  %v1002_v43 = vld [vmem:[%s1224_s9 + $0x40] ss:$8 sps:$4 sm:$0xff] (!%p384_p8)   ;;  %v1003_v44 = vld [vmem:[%s1224_s9 + $0x54] ss:$8 sps:$4 sm:$0xff] (!%p384_p8)   ;;  %v1005_v45 = vld [vmem:[%s1224_s9 + $0x50] ss:$8 sps:$4 sm:$0xff] (!%p384_p8)  }
  0x2c   : > { %v1006_v46 = vld [vmem:[%s1224_s9 + $0x64] ss:$8 sps:$4 sm:$0xff] (!%p384_p8)   ;;  %v1008_v47 = vld [vmem:[%s1224_s9 + $0x60] ss:$8 sps:$4 sm:$0xff] (!%p384_p8)   ;;  %v1009_v48 = vld [vmem:[%s1224_s9 + $0x74] ss:$8 sps:$4 sm:$0xff] (!%p384_p8)  }
  0x2d   : > { %v1011_v49 = vld [vmem:[%s1224_s9 + $0x70] ss:$8 sps:$4 sm:$0xff]   ;;  %v1012_v50 = vld [vmem:[%s1224_s9 + $0x84] ss:$8 sps:$4 sm:$0xff]   ;;  %v1014_v51 = vld [vmem:[%s1224_s9 + $0x80] ss:$8 sps:$4 sm:$0xff]  }
  0x2e   : > { %679 = vmatpush1.bf16.msra.mxu0 %v993_v37  ;;  %v1015_v52 = vld [vmem:[%s1224_s9 + $0x94] ss:$8 sps:$4 sm:$0xff]   ;;  %v1017_v53 = vld [vmem:[%s1224_s9 + $0x90] ss:$8 sps:$4 sm:$0xff]   ;;  %v1018_v54 = vld [vmem:[%s1224_s9 + $0xa4] ss:$8 sps:$4 sm:$0xff]  }
  0x2f   : > { %680 = vmatprep.subr.bf16.mxu0 %v994_v38  ;;  %v1020_v55 = vld [vmem:[%s1224_s9 + $0xa0] ss:$8 sps:$4 sm:$0xff]   ;;  %v1021_v56 = vld [vmem:[%s1224_s9 + $0xb4] ss:$8 sps:$4 sm:$0xff]   ;;  %v1023_v57 = vld [vmem:[%s1224_s9 + $0xb0] ss:$8 sps:$4 sm:$0xff]  }
  0x30   : > { %v1024_v58 = vld [vmem:[%s1224_s9 + $0xc4] ss:$8 sps:$4 sm:$0xff]   ;;  %v1026_v59 = vld [vmem:[%s1224_s9 + $0xc0] ss:$8 sps:$4 sm:$0xff]   ;;  %v1027_v60 = vld [vmem:[%s1224_s9 + $0xd4] ss:$8 sps:$4 sm:$0xff]  }
  0x31   : > { %v1029_v61 = vld [vmem:[%s1224_s9 + $0xd0] ss:$8 sps:$4 sm:$0xff]   ;;  %v1030_v62 = vld [vmem:[%s1224_s9 + $0xe4] ss:$8 sps:$4 sm:$0xff]   ;;  %v1032_v63 = vld [vmem:[%s1224_s9 + $0xe0] ss:$8 sps:$4 sm:$0xff]  }
  0x32   : > { %681 = vmatpush1.bf16.msra.mxu0 %v996_v39  ;;  %v1033_v0 = vld [vmem:[%s1224_s9 + $0xf4] ss:$8 sps:$4 sm:$0xff]   ;;  %v1035_v1 = vld [vmem:[%s1224_s9 + $0xf0] ss:$8 sps:$4 sm:$0xff]   ;;  %s1297_s10 = smov (!%p449_p9, %s905_s10), 3  ;;  %v730_v5 = vsub.s32 0, %v729_v4 }
  0x33   : > { %682 = vmatprep.subr.bf16.mxu0 %v997_v40  ;;  %s451_s13 = scalar_lea.vmem %s1287_s2, %s1297_s10  ;;  %s456_s21 = scalar_lea.vmem %s1288_s3, %s1297_s10  ;;  %v734_v7 = vsub.s32 1, %v729_v4 }
  0x34   : > { %v726_v6 = vld [vmem:[%s451_s13] sm:$0x3]  ;;  %s908_s17 = sshll.u32 %s1297_s10, 2 }
  0x35   : > { %v740_v8 = vld [vmem:[%s456_s21] sm:$0x3]  ;;  %v731_v9 = vrot.slane %v726_v6, %v730_v5  ;;  %v735_v10 = vrot.slane %v726_v6, %v734_v7  ;;  %s466_s25 = scalar_lea.vmem %s1289_s4, %s908_s17 }
  0x36   : > { %683 = vmatpush1.bf16.msra.mxu0 %v999_v41  ;;  %v745_v11 = vrot.slane %v740_v8, %v730_v5  ;;  %v749_v13 = vrot.slane %v740_v8, %v734_v7 }
  0x37   : > { %684 = vmatprep.subr.bf16.mxu0 %v1000_v42 }
  0x3a   : > { %685 = vmatpush1.bf16.msra.mxu0 %v1002_v43 }
  0x3b   : > { %686 = vmatprep.subr.bf16.mxu0 %v1003_v44 }
  0x3e   : > { %687 = vmatpush1.bf16.msra.mxu0 %v1005_v45 }
  0x3f   : > { %688 = vmatprep.subr.bf16.mxu0 %v1006_v46 }
  0x42   : > { %689 = vmatpush1.bf16.msra.mxu0 %v1008_v47 }
  0x43   : > { %690 = vmatprep.subr.bf16.mxu0 %v1009_v48 }
  0x46   : > { %691 = vmatpush1.bf16.msra.mxu0 %v1011_v49 }
  0x47   : > { %692 = vmatprep.subr.bf16.mxu0 %v1012_v50 }
  0x4a   : > { %693 = vmatpush1.bf16.msra.mxu0 %v1014_v51 }
  0x4b   : > { %694 = vmatprep.subr.bf16.mxu0 %v1015_v52 }
  0x4e   : > { %695 = vmatpush1.bf16.msra.mxu0 %v1017_v53 }
  0x4f   : > { %696 = vmatprep.subr.bf16.mxu0 %v1018_v54 }
  0x52   : > { %697 = vmatpush1.bf16.msra.mxu0 %v1020_v55 }
  0x53   : > { %698 = vmatprep.subr.bf16.mxu0 %v1021_v56 }
  0x56   : > { %699 = vmatpush1.bf16.msra.mxu0 %v1023_v57 }
  0x57   : > { %700 = vmatprep.subr.bf16.mxu0 %v1024_v58 }
  0x5a   : > { %701 = vmatpush1.bf16.msra.mxu0 %v1026_v59 }
  0x5b   : > { %702 = vmatprep.subr.bf16.mxu0 %v1027_v60 }
  0x5e   : > { %703 = vmatpush1.bf16.msra.mxu0 %v1029_v61 }
  0x5f   : > { %704 = vmatprep.subr.bf16.mxu0 %v1030_v62 }
  0x62   : > { %705 = vmatpush1.bf16.msra.mxu0 %v1032_v63 }
  0x63   : > { %706 = vmatprep.subr.bf16.mxu0 %v1033_v0 }
  0x66   : > { %707 = vmatpush1.bf16.msra.mxu0 %v1035_v1 }
  0x69   : > { %709 = vmatmul.mubr.bf16.vlgmr.msra.gmra.mrb[0].mxu0 %v909_v2 }
 0x13c   : > { %v710_v12 = vpop.f32.mrb[0].mxu0 }
 0x13d   : > { %v738_v14 = vmul.f32 %v731_v9, %v710_v12  ;;  %v712_v15 = vpop.f32.mrb[1].mxu0 }
 0x13e   : > { %v739_v16 = vmul.f32 %v735_v10, %v712_v15  ;;  %v714_v17 = vpop.f32.mrb[2].mxu0 }
 0x13f   : > { %v752_v18 = vadd.f32 %v745_v11, %v738_v14  ;;  %v715_v19 = vpop.f32.mrb[3].mxu0 }
 0x140   : > { %v753_v20 = vadd.f32 %v749_v13, %v739_v16 }
 0x142   : > { %v947_v21 = vpack.c.bf16 %v753_v20, %v752_v18 }
 0x144   : > { %762 = vst [vmem:[%s466_s25] sm:$0xff] %v947_v21 }
 0x145 PF: > { %s14_s19 = sadd.s32 1, %s1076_s19   ;;  %s1290_s15 = smov %s1064_s16 }
 0x146   : > { %p11_p10 = scmp.ge.s32.totalorder %s14_s19, 4   ;;  %s1291_s16 = smov %s1138_s23 }
 0x147   : > { %s1292_s17 = smov %s1072_s18  ;;  %s1293_s18 = smov %s1295_s20 }
 0x148   :  { %13 = sbr.rel (!%p11_p10) target bundleno = 3 (0x3), region = 126 }

// kernel: _lambda_.43
= control target key start
LH: loop header
LB: loop body
LE: loop exit
PB: predicated region body
PF: predicated region fallthrough
CT: control target
= control target key end

     0   :  { %s1598_s15 = smov 0   ;;  %s1600_s16 = smov 0   ;;  %s1918_s0 = inlined_call_operand.vmem [shape: bf16[8,4608], index: 0, kind: input, shape index: {}]   ;;  %s1919_s1 = inlined_call_operand.vmem [shape: bf16[4608,512], index: 1, kind: input, shape index: {}]   ;;  %s1920_s2 = inlined_call_operand.vmem [shape: f32[1,512], index: 2, kind: input, shape index: {}]   ;;  %s1921_s3 = inlined_call_operand.vmem [shape: f32[1,512], index: 3, kind: input, shape index: {}]   ;;  %s1922_s4 = inlined_call_operand.vmem [shape: bf16[8,512], index: 4, kind: output, shape index: {}]  }
   0x1   :  { %s1602_s17 = smov 0   ;;  %s1604_s18 = smov 0  }
   0x2   :  { %s1606_s19 = smov 0   ;;  %s1608_s20 = smov 0  }
   0x3   :  { %s1610_s21 = smov 0  }
   0x4 LB: > { %s26_s22 = sadd.s32 1, %s1562_s19  ;;  %s29_s23 = sadd.s32 1, %s1566_s20  ;;  %s1570_s21 = sphi %s1610_s21, %s14_s21   ;;  %s1566_s20 = sphi %s1608_s20, %s1928_s20   ;;  %s1562_s19 = sphi %s1606_s19, %s1927_s19   ;;  %s1558_s18 = sphi %s1604_s18, %s1926_s18   ;;  %s1554_s17 = sphi %s1602_s17, %s1925_s17   ;;  %s1550_s16 = sphi %s1600_s16, %s1924_s16   ;;  %s1546_s15 = sphi %s1598_s15, %s1923_s15  }
   0x5   : > { %p27_p0 = scmp.ge.s32.totalorder %s26_s22, 9  ;;  %p77_p1 = scmp.ne.s32.totalorder %s1550_s16, %s1546_s15 }
   0x6   : > { %p78_p2 = scmp.eq.s32.totalorder %s1570_s21, 0  ;;  %s70_s27 = sadd.s32 1, %s1550_s16 }
   0x7   : > { %s1930_s22 = smov (%p27_p0, %s26_s22), 0  ;;  %s1932_s23 = smov (!%p27_p0, %s29_s23), %s1566_s20 }
   0x8   : > { %p79_p3 = por %p78_p2, %p77_p1  ;;  %p31_p4 = scmp.ge.s32.totalorder %s1932_s23, 2 }
   0x9   : > { %s65_s24 = ssub.s32 %s1562_s19, %s1930_s22  ;;  %p1270_p6 = scmp.ge.s32.totalorder %s1570_s21, 18 }
   0xa   : > { %s1934_s23 = smov (%p31_p4, %s1932_s23), 0 }
   0xb   : > { %s66_s25 = ssub.s32 %s1566_s20, %s1934_s23  ;;  %183 = sbr.rel (%p1270_p6) target bundleno = 57 (0x39), region = 16 }
   0xc   : > { %s67_s26 = sor.u32 %s66_s25, %s65_s24 }
   0xd   : > { %p68_p5 = scmp.eq.s32.totalorder %s67_s26, 0 }
   0xf   : > { %s1649_s28 = scalar_select %p68_p5, %s1550_s16, %s70_s27  }
  0x12   : > { %199 = sbr.rel (!%p79_p3) target bundleno = 57 (0x39), region = 24  ;;  %s201_s29 = sand.u32 (%p79_p3), 1, %s1550_s16  }
  0x13   : > { %s1273_s30 = sshll.u32 (%p79_p3), %s1566_s20, 1  ;;  %s1271_s5 = sshll.u32 (%p79_p3), %s201_s29, 9 }
  0x14   : > { %s1357_s6 = sshll.u32 (%p79_p3), %s1562_s19, 8  ;;  %s1663_s12 = scalar_lea.vmem (%p79_p3), [#allocation3], %s1271_s5 }
  0x15   : > { %s207_s7 = sadd.s32 (%p79_p3), %s1357_s6, %s1273_s30 }
  0x16   : > { %s1275_s8 = sshll.u32 (%p79_p3), %s207_s7, 2 }
  0x17   : > { %s1658_s11 = scalar_lea.vmem (%p79_p3), %s1919_s1, %s1275_s8 }
  0x18   : > { %v363_v0 = vld [vmem:[%s1658_s11] sm:$0xff] (%p79_p3)  ;;  %v365_v1 = vld [vmem:[%s1658_s11 + $0x10] sm:$0xff] (%p79_p3) }
  0x19   : > { %v367_v2 = vld [vmem:[%s1658_s11 + $0x20] sm:$0xff]  ;;  %364 = vst [vmem:[%s1663_s12] sm:$0xff] %v363_v0  ;;  %366 = vst [vmem:[%s1663_s12 + $0x8] sm:$0xff] %v365_v1  ;;  %v369_v3 = vld [vmem:[%s1658_s11 + $0x30] sm:$0xff] }
  0x1a   : > { %368 = vst [vmem:[%s1663_s12 + $0x10] sm:$0xff] %v367_v2  ;;  %v371_v4 = vld [vmem:[%s1658_s11 + $0x40] sm:$0xff]  ;;  %v373_v5 = vld [vmem:[%s1658_s11 + $0x50] sm:$0xff]  ;;  %370 = vst [vmem:[%s1663_s12 + $0x18] sm:$0xff] %v369_v3 }
  0x1b   : > { %372 = vst [vmem:[%s1663_s12 + $0x20] sm:$0xff] %v371_v4  ;;  %374 = vst [vmem:[%s1663_s12 + $0x28] sm:$0xff] %v373_v5  ;;  %v375_v6 = vld [vmem:[%s1658_s11 + $0x60] sm:$0xff]  ;;  %v377_v7 = vld [vmem:[%s1658_s11 + $0x70] sm:$0xff] }
  0x1c   : > { %v379_v8 = vld [vmem:[%s1658_s11 + $0x80] sm:$0xff]  ;;  %376 = vst [vmem:[%s1663_s12 + $0x30] sm:$0xff] %v375_v6  ;;  %378 = vst [vmem:[%s1663_s12 + $0x38] sm:$0xff] %v377_v7  ;;  %v381_v9 = vld [vmem:[%s1658_s11 + $0x90] sm:$0xff] }
  0x1d   : > { %380 = vst [vmem:[%s1663_s12 + $0x40] sm:$0xff] %v379_v8  ;;  %v383_v10 = vld [vmem:[%s1658_s11 + $0xa0] sm:$0xff]  ;;  %v385_v11 = vld [vmem:[%s1658_s11 + $0xb0] sm:$0xff]  ;;  %382 = vst [vmem:[%s1663_s12 + $0x48] sm:$0xff] %v381_v9 }
  0x1e   : > { %384 = vst [vmem:[%s1663_s12 + $0x50] sm:$0xff] %v383_v10  ;;  %386 = vst [vmem:[%s1663_s12 + $0x58] sm:$0xff] %v385_v11  ;;  %v387_v12 = vld [vmem:[%s1658_s11 + $0xc0] sm:$0xff]  ;;  %v389_v13 = vld [vmem:[%s1658_s11 + $0xd0] sm:$0xff] }
  0x1f   : > { %v391_v14 = vld [vmem:[%s1658_s11 + $0xe0] sm:$0xff]  ;;  %388 = vst [vmem:[%s1663_s12 + $0x60] sm:$0xff] %v387_v12  ;;  %390 = vst [vmem:[%s1663_s12 + $0x68] sm:$0xff] %v389_v13  ;;  %v393_v15 = vld [vmem:[%s1658_s11 + $0xf0] sm:$0xff] }
  0x20   : > { %392 = vst [vmem:[%s1663_s12 + $0x70] sm:$0xff] %v391_v14  ;;  %v395_v16 = vld [vmem:[%s1658_s11 + $0x100] sm:$0xff]  ;;  %v397_v17 = vld [vmem:[%s1658_s11 + $0x110] sm:$0xff]  ;;  %394 = vst [vmem:[%s1663_s12 + $0x78] sm:$0xff] %v393_v15 }
  0x21   : > { %396 = vst [vmem:[%s1663_s12 + $0x80] sm:$0xff] %v395_v16  ;;  %398 = vst [vmem:[%s1663_s12 + $0x88] sm:$0xff] %v397_v17  ;;  %v399_v18 = vld [vmem:[%s1658_s11 + $0x120] sm:$0xff]  ;;  %v401_v19 = vld [vmem:[%s1658_s11 + $0x130] sm:$0xff] }
  0x22   : > { %v403_v20 = vld [vmem:[%s1658_s11 + $0x140] sm:$0xff]  ;;  %400 = vst [vmem:[%s1663_s12 + $0x90] sm:$0xff] %v399_v18  ;;  %402 = vst [vmem:[%s1663_s12 + $0x98] sm:$0xff] %v401_v19  ;;  %v405_v21 = vld [vmem:[%s1658_s11 + $0x150] sm:$0xff] }
  0x23   : > { %404 = vst [vmem:[%s1663_s12 + $0xa0] sm:$0xff] %v403_v20  ;;  %v407_v22 = vld [vmem:[%s1658_s11 + $0x160] sm:$0xff]  ;;  %v409_v23 = vld [vmem:[%s1658_s11 + $0x170] sm:$0xff]  ;;  %406 = vst [vmem:[%s1663_s12 + $0xa8] sm:$0xff] %v405_v21 }
  0x24   : > { %408 = vst [vmem:[%s1663_s12 + $0xb0] sm:$0xff] %v407_v22  ;;  %410 = vst [vmem:[%s1663_s12 + $0xb8] sm:$0xff] %v409_v23  ;;  %v411_v24 = vld [vmem:[%s1658_s11 + $0x180] sm:$0xff]  ;;  %v413_v25 = vld [vmem:[%s1658_s11 + $0x190] sm:$0xff] }
  0x25   : > { %v415_v26 = vld [vmem:[%s1658_s11 + $0x1a0] sm:$0xff]  ;;  %412 = vst [vmem:[%s1663_s12 + $0xc0] sm:$0xff] %v411_v24  ;;  %414 = vst [vmem:[%s1663_s12 + $0xc8] sm:$0xff] %v413_v25  ;;  %v417_v27 = vld [vmem:[%s1658_s11 + $0x1b0] sm:$0xff] }
  0x26   : > { %416 = vst [vmem:[%s1663_s12 + $0xd0] sm:$0xff] %v415_v26  ;;  %v419_v28 = vld [vmem:[%s1658_s11 + $0x1c0] sm:$0xff]  ;;  %v421_v29 = vld [vmem:[%s1658_s11 + $0x1d0] sm:$0xff]  ;;  %418 = vst [vmem:[%s1663_s12 + $0xd8] sm:$0xff] %v417_v27 }
  0x27   : > { %420 = vst [vmem:[%s1663_s12 + $0xe0] sm:$0xff] %v419_v28  ;;  %422 = vst [vmem:[%s1663_s12 + $0xe8] sm:$0xff] %v421_v29  ;;  %v423_v30 = vld [vmem:[%s1658_s11 + $0x1e0] sm:$0xff]  ;;  %v425_v31 = vld [vmem:[%s1658_s11 + $0x1f0] sm:$0xff] }
  0x28   : > { %v427_v32 = vld [vmem:[%s1658_s11 + $0x200] sm:$0xff]  ;;  %424 = vst [vmem:[%s1663_s12 + $0xf0] sm:$0xff] %v423_v30  ;;  %426 = vst [vmem:[%s1663_s12 + $0xf8] sm:$0xff] %v425_v31  ;;  %v429_v33 = vld [vmem:[%s1658_s11 + $0x210] sm:$0xff] }
  0x29   : > { %428 = vst [vmem:[%s1663_s12 + $0x100] sm:$0xff] %v427_v32  ;;  %v431_v34 = vld [vmem:[%s1658_s11 + $0x220] sm:$0xff]  ;;  %v433_v35 = vld [vmem:[%s1658_s11 + $0x230] sm:$0xff]  ;;  %430 = vst [vmem:[%s1663_s12 + $0x108] sm:$0xff] %v429_v33 }
  0x2a   : > { %432 = vst [vmem:[%s1663_s12 + $0x110] sm:$0xff] %v431_v34  ;;  %434 = vst [vmem:[%s1663_s12 + $0x118] sm:$0xff] %v433_v35  ;;  %v435_v36 = vld [vmem:[%s1658_s11 + $0x240] sm:$0xff]  ;;  %v437_v37 = vld [vmem:[%s1658_s11 + $0x250] sm:$0xff] }
  0x2b   : > { %v439_v38 = vld [vmem:[%s1658_s11 + $0x260] sm:$0xff]  ;;  %436 = vst [vmem:[%s1663_s12 + $0x120] sm:$0xff] %v435_v36  ;;  %438 = vst [vmem:[%s1663_s12 + $0x128] sm:$0xff] %v437_v37  ;;  %v441_v39 = vld [vmem:[%s1658_s11 + $0x270] sm:$0xff] }
  0x2c   : > { %440 = vst [vmem:[%s1663_s12 + $0x130] sm:$0xff] %v439_v38  ;;  %v443_v40 = vld [vmem:[%s1658_s11 + $0x280] sm:$0xff]  ;;  %v445_v41 = vld [vmem:[%s1658_s11 + $0x290] sm:$0xff]  ;;  %442 = vst [vmem:[%s1663_s12 + $0x138] sm:$0xff] %v441_v39 }
  0x2d   : > { %444 = vst [vmem:[%s1663_s12 + $0x140] sm:$0xff] %v443_v40  ;;  %446 = vst [vmem:[%s1663_s12 + $0x148] sm:$0xff] %v445_v41  ;;  %v447_v42 = vld [vmem:[%s1658_s11 + $0x2a0] sm:$0xff]  ;;  %v449_v43 = vld [vmem:[%s1658_s11 + $0x2b0] sm:$0xff] }
  0x2e   : > { %v451_v44 = vld [vmem:[%s1658_s11 + $0x2c0] sm:$0xff]  ;;  %448 = vst [vmem:[%s1663_s12 + $0x150] sm:$0xff] %v447_v42  ;;  %450 = vst [vmem:[%s1663_s12 + $0x158] sm:$0xff] %v449_v43  ;;  %v453_v45 = vld [vmem:[%s1658_s11 + $0x2d0] sm:$0xff] }
  0x2f   : > { %452 = vst [vmem:[%s1663_s12 + $0x160] sm:$0xff] %v451_v44  ;;  %v455_v46 = vld [vmem:[%s1658_s11 + $0x2e0] sm:$0xff]  ;;  %v457_v47 = vld [vmem:[%s1658_s11 + $0x2f0] sm:$0xff]  ;;  %454 = vst [vmem:[%s1663_s12 + $0x168] sm:$0xff] %v453_v45 }
  0x30   : > { %456 = vst [vmem:[%s1663_s12 + $0x170] sm:$0xff] %v455_v46  ;;  %458 = vst [vmem:[%s1663_s12 + $0x178] sm:$0xff] %v457_v47  ;;  %v459_v48 = vld [vmem:[%s1658_s11 + $0x300] sm:$0xff]  ;;  %v461_v49 = vld [vmem:[%s1658_s11 + $0x310] sm:$0xff] }
  0x31   : > { %v463_v50 = vld [vmem:[%s1658_s11 + $0x320] sm:$0xff]  ;;  %460 = vst [vmem:[%s1663_s12 + $0x180] sm:$0xff] %v459_v48  ;;  %462 = vst [vmem:[%s1663_s12 + $0x188] sm:$0xff] %v461_v49  ;;  %v465_v51 = vld [vmem:[%s1658_s11 + $0x330] sm:$0xff] }
  0x32   : > { %464 = vst [vmem:[%s1663_s12 + $0x190] sm:$0xff] %v463_v50  ;;  %v467_v52 = vld [vmem:[%s1658_s11 + $0x340] sm:$0xff]  ;;  %v469_v53 = vld [vmem:[%s1658_s11 + $0x350] sm:$0xff]  ;;  %466 = vst [vmem:[%s1663_s12 + $0x198] sm:$0xff] %v465_v51 }
  0x33   : > { %468 = vst [vmem:[%s1663_s12 + $0x1a0] sm:$0xff] %v467_v52  ;;  %470 = vst [vmem:[%s1663_s12 + $0x1a8] sm:$0xff] %v469_v53  ;;  %v471_v54 = vld [vmem:[%s1658_s11 + $0x360] sm:$0xff]  ;;  %v473_v55 = vld [vmem:[%s1658_s11 + $0x370] sm:$0xff] }
  0x34   : > { %v475_v56 = vld [vmem:[%s1658_s11 + $0x380] sm:$0xff]  ;;  %472 = vst [vmem:[%s1663_s12 + $0x1b0] sm:$0xff] %v471_v54  ;;  %474 = vst [vmem:[%s1663_s12 + $0x1b8] sm:$0xff] %v473_v55  ;;  %v477_v57 = vld [vmem:[%s1658_s11 + $0x390] sm:$0xff] }
  0x35   : > { %476 = vst [vmem:[%s1663_s12 + $0x1c0] sm:$0xff] %v475_v56  ;;  %v479_v58 = vld [vmem:[%s1658_s11 + $0x3a0] sm:$0xff]  ;;  %v481_v59 = vld [vmem:[%s1658_s11 + $0x3b0] sm:$0xff]  ;;  %478 = vst [vmem:[%s1663_s12 + $0x1c8] sm:$0xff] %v477_v57 }
  0x36   : > { %480 = vst [vmem:[%s1663_s12 + $0x1d0] sm:$0xff] %v479_v58  ;;  %482 = vst [vmem:[%s1663_s12 + $0x1d8] sm:$0xff] %v481_v59  ;;  %v483_v60 = vld [vmem:[%s1658_s11 + $0x3c0] sm:$0xff]  ;;  %v485_v61 = vld [vmem:[%s1658_s11 + $0x3d0] sm:$0xff] }
  0x37   : > { %v487_v62 = vld [vmem:[%s1658_s11 + $0x3e0] sm:$0xff]  ;;  %484 = vst [vmem:[%s1663_s12 + $0x1e0] sm:$0xff] %v483_v60  ;;  %486 = vst [vmem:[%s1663_s12 + $0x1e8] sm:$0xff] %v485_v61  ;;  %v489_v63 = vld [vmem:[%s1658_s11 + $0x3f0] sm:$0xff] }
  0x38   : > { %488 = vst [vmem:[%s1663_s12 + $0x1f0] sm:$0xff] %v487_v62  ;;  %490 = vst [vmem:[%s1663_s12 + $0x1f8] sm:$0xff] %v489_v63 }
  0x39 PF: > { %p1276_p7 = scmp.ge.s32.totalorder %s1570_s21, 1  ;;  %p511_p8 = scmp.lt.s32.totalorder %s1570_s21, 19 }
  0x3b   : > { %p512_p9 = pnand %p1276_p7, %p511_p8 }
  0x3c   : > { %s518_s13 = sand.u32 (!%p512_p9), 1, %s1546_s15   ;;  %s1278_s14 = sshll.u32 (!%p512_p9), %s1554_s17, 2 }
  0x3d   : > { %515 = sbr.rel (%p512_p9) target bundleno = 378 (0x17a), region = 70  ;;  %s1277_s24 = sshll.u32 (!%p512_p9), %s518_s13, 9 }
  0x3e   : > { %p567_p10 = scmp.lt.s32.totalorder (!%p512_p9), %s1278_s14, 35  ;;  %s1280_s25 = sshll.u32 (!%p512_p9), %s1558_s18, 1 }
  0x3f   : > { %p577_p11 = scmp.lt.s32.totalorder (!%p512_p9), %s1280_s25, 3  ;;  %s1816_s13 = scalar_lea.vmem (!%p512_p9), [#allocation3], %s1277_s24 }
  0x40   : > { %p1284_p12 = scmp.ne.s32.totalorder (!%p512_p9), %s1554_s17, 0 }
  0x44   : > { %s1936_s14 = smov (!%p567_p10, %s1278_s14), 35  ;;  %s1938_s25 = smov (!%p577_p11, %s1280_s25), 3 }
  0x45   : > { %s1279_s26 = sshll.u32 %s1936_s14, 2  ;;  %s579_s15 = scalar_lea.vmem %s1920_s2, %s1938_s25  ;;  %v1572_v0 = vmov (!%p1284_p12), 0.0  }
  0x46   : > { %s1798_s30 = scalar_lea.vmem %s1918_s0, %s1279_s26  ;;  %s584_s18 = scalar_lea.vmem %s1921_s3, %s1938_s25  ;;  %600 = vst [vmem:[#allocation2] sm:$0xff] (!%p1284_p12), %v1572_v0  ;;  %601 = vst [vmem:[#allocation2 + $0x8] sm:$0xff] (!%p1284_p12), %v1572_v0 }
  0x47   : > { %s1283_s9 = sshll.u32 %s1938_s25, 2  ;;  %599 = sbr.rel (%p1284_p12) target bundleno = 78 (0x4e), region = 78 }
  0x48   : > { %s1814_s12 = scalar_lea.vmem %s1922_s4, %s1283_s9 }
  0x4e PF: > { %v1416_v1 = vld [vmem:[%s1816_s13 + $0x4] ss:$8 sps:$4 sm:$0xff]   ;;  %v1420_v3 = vld [vmem:[%s1816_s13] ss:$8 sps:$4 sm:$0xff]   ;;  %v1422_v5 = vld [vmem:[%s1816_s13 + $0x14] ss:$8 sps:$4 sm:$0xff]  }
  0x4f   : > { %v1418_v2 = vld [vmem:[%s1816_s13 + $0x104] ss:$8 sps:$4 sm:$0xff]   ;;  %1004 = vmatprep.subr.bf16.mxu0 %v1416_v1  ;;  %v1421_v4 = vld [vmem:[%s1816_s13 + $0x100] ss:$8 sps:$4 sm:$0xff]   ;;  %v1424_v6 = vld [vmem:[%s1816_s13 + $0x114] ss:$8 sps:$4 sm:$0xff]  }
  0x50   : > { %1045 = vmatprep.subr.bf16.mxu1 %v1418_v2  ;;  %1005 = vmatpush1.bf16.msra.mxu0 %v1420_v3  ;;  %v1426_v7 = vld [vmem:[%s1816_s13 + $0x10] ss:$8 sps:$4 sm:$0xff]   ;;  %v1428_v9 = vld [vmem:[%s1816_s13 + $0x24] ss:$8 sps:$4 sm:$0xff]   ;;  %v1432_v11 = vld [vmem:[%s1816_s13 + $0x20] ss:$8 sps:$4 sm:$0xff]  }
  0x51   : > { %1046 = vmatpush1.bf16.msra.mxu1 %v1421_v4  ;;  %1006 = vmatprep.subr.bf16.mxu0 %v1422_v5  ;;  %v1427_v8 = vld [vmem:[%s1816_s13 + $0x110] ss:$8 sps:$4 sm:$0xff]   ;;  %v1430_v10 = vld [vmem:[%s1816_s13 + $0x124] ss:$8 sps:$4 sm:$0xff]   ;;  %v1433_v12 = vld [vmem:[%s1816_s13 + $0x120] ss:$8 sps:$4 sm:$0xff]  }
  0x52   : > { %1047 = vmatprep.subr.bf16.mxu1 %v1424_v6  ;;  %v1434_v13 = vld [vmem:[%s1816_s13 + $0x34] ss:$8 sps:$4 sm:$0xff]   ;;  %v1438_v15 = vld [vmem:[%s1816_s13 + $0x30] ss:$8 sps:$4 sm:$0xff]   ;;  %v1440_v17 = vld [vmem:[%s1816_s13 + $0x44] ss:$8 sps:$4 sm:$0xff]  }
  0x53   : > { %v1436_v14 = vld [vmem:[%s1816_s13 + $0x134] ss:$8 sps:$4 sm:$0xff]   ;;  %v1439_v16 = vld [vmem:[%s1816_s13 + $0x130] ss:$8 sps:$4 sm:$0xff]   ;;  %v1442_v18 = vld [vmem:[%s1816_s13 + $0x144] ss:$8 sps:$4 sm:$0xff]  }
  0x54   : > { %1007 = vmatpush1.bf16.msra.mxu0 %v1426_v7  ;;  %v1444_v19 = vld [vmem:[%s1816_s13 + $0x40] ss:$8 sps:$4 sm:$0xff]   ;;  %v1446_v21 = vld [vmem:[%s1816_s13 + $0x54] ss:$8 sps:$4 sm:$0xff]   ;;  %v1450_v23 = vld [vmem:[%s1816_s13 + $0x50] ss:$8 sps:$4 sm:$0xff]  }
  0x55   : > { %1048 = vmatpush1.bf16.msra.mxu1 %v1427_v8  ;;  %1008 = vmatprep.subr.bf16.mxu0 %v1428_v9  ;;  %v1445_v20 = vld [vmem:[%s1816_s13 + $0x140] ss:$8 sps:$4 sm:$0xff]   ;;  %v1448_v22 = vld [vmem:[%s1816_s13 + $0x154] ss:$8 sps:$4 sm:$0xff]   ;;  %v1451_v24 = vld [vmem:[%s1816_s13 + $0x150] ss:$8 sps:$4 sm:$0xff]  }
  0x56   : > { %1049 = vmatprep.subr.bf16.mxu1 %v1430_v10  ;;  %v1452_v25 = vld [vmem:[%s1816_s13 + $0x64] ss:$8 sps:$4 sm:$0xff]   ;;  %v1456_v27 = vld [vmem:[%s1816_s13 + $0x60] ss:$8 sps:$4 sm:$0xff]   ;;  %v1458_v29 = vld [vmem:[%s1816_s13 + $0x74] ss:$8 sps:$4 sm:$0xff]  }
  0x57   : > { %v1454_v26 = vld [vmem:[%s1816_s13 + $0x164] ss:$8 sps:$4 sm:$0xff]   ;;  %v1457_v28 = vld [vmem:[%s1816_s13 + $0x160] ss:$8 sps:$4 sm:$0xff]   ;;  %v1460_v30 = vld [vmem:[%s1816_s13 + $0x174] ss:$8 sps:$4 sm:$0xff]  }
  0x58   : > { %1009 = vmatpush1.bf16.msra.mxu0 %v1432_v11  ;;  %v1462_v31 = vld [vmem:[%s1816_s13 + $0x70] ss:$8 sps:$4 sm:$0xff]   ;;  %v1464_v33 = vld [vmem:[%s1816_s13 + $0x84] ss:$8 sps:$4 sm:$0xff]   ;;  %v1468_v35 = vld [vmem:[%s1816_s13 + $0x80] ss:$8 sps:$4 sm:$0xff]  }
  0x59   : > { %1050 = vmatpush1.bf16.msra.mxu1 %v1433_v12  ;;  %1010 = vmatprep.subr.bf16.mxu0 %v1434_v13  ;;  %v1463_v32 = vld [vmem:[%s1816_s13 + $0x170] ss:$8 sps:$4 sm:$0xff]   ;;  %v1466_v34 = vld [vmem:[%s1816_s13 + $0x184] ss:$8 sps:$4 sm:$0xff]   ;;  %v1469_v36 = vld [vmem:[%s1816_s13 + $0x180] ss:$8 sps:$4 sm:$0xff]  }
  0x5a   : > { %1051 = vmatprep.subr.bf16.mxu1 %v1436_v14  ;;  %v1470_v37 = vld [vmem:[%s1816_s13 + $0x94] ss:$8 sps:$4 sm:$0xff]   ;;  %v1474_v39 = vld [vmem:[%s1816_s13 + $0x90] ss:$8 sps:$4 sm:$0xff]   ;;  %v1476_v41 = vld [vmem:[%s1816_s13 + $0xa4] ss:$8 sps:$4 sm:$0xff]  }
  0x5b   : > { %v1472_v38 = vld [vmem:[%s1816_s13 + $0x194] ss:$8 sps:$4 sm:$0xff]   ;;  %v1475_v40 = vld [vmem:[%s1816_s13 + $0x190] ss:$8 sps:$4 sm:$0xff]   ;;  %v1478_v42 = vld [vmem:[%s1816_s13 + $0x1a4] ss:$8 sps:$4 sm:$0xff]  }
  0x5c   : > { %1011 = vmatpush1.bf16.msra.mxu0 %v1438_v15  ;;  %v1480_v43 = vld [vmem:[%s1816_s13 + $0xa0] ss:$8 sps:$4 sm:$0xff]   ;;  %v1482_v45 = vld [vmem:[%s1816_s13 + $0xb4] ss:$8 sps:$4 sm:$0xff]   ;;  %v1486_v50 = vld [vmem:[%s1816_s13 + $0xb0] ss:$8 sps:$4 sm:$0xff]  }
  0x5d   : > { %1052 = vmatpush1.bf16.msra.mxu1 %v1439_v16  ;;  %1012 = vmatprep.subr.bf16.mxu0 %v1440_v17  ;;  %v1481_v44 = vld [vmem:[%s1816_s13 + $0x1a0] ss:$8 sps:$4 sm:$0xff]   ;;  %v1484_v46 = vld [vmem:[%s1816_s13 + $0x1b4] ss:$8 sps:$4 sm:$0xff]   ;;  %v1487_v51 = vld [vmem:[%s1816_s13 + $0x1b0] ss:$8 sps:$4 sm:$0xff]  }
  0x5e   : > { %1053 = vmatprep.subr.bf16.mxu1 %v1442_v18  ;;  %v604_v47 = vld [vmem:[%s1798_s30] sm:$0xff]  ;;  %v605_v49 = vld [vmem:[%s1798_s30 + $0x8] sm:$0xff]  ;;  %v1488_v53 = vld [vmem:[%s1816_s13 + $0xc4] ss:$8 sps:$4 sm:$0xff]   ;;  %p1353_p13 = scmp.ne.s32.totalorder %s1554_s17, 8 }
  0x5f   : > { %v1286_v48 = vcombine.high %v604_v47, %v604_v47  ;;  %v1288_v52 = vcombine.high %v605_v49, %v605_v49  ;;  %v1490_v54 = vld [vmem:[%s1816_s13 + $0x1c4] ss:$8 sps:$4 sm:$0xff]   ;;  %v1492_v55 = vld [vmem:[%s1816_s13 + $0xc0] ss:$8 sps:$4 sm:$0xff]   ;;  %v1494_v57 = vld [vmem:[%s1816_s13 + $0xd4] ss:$8 sps:$4 sm:$0xff]   ;;  %v1285_v5 = vcombine.low %v604_v47, %v604_v47  ;;  %v1287_v6 = vcombine.low %v605_v49, %v605_v49 }
  0x60   : > { %1013 = vmatpush1.bf16.msra.mxu0 %v1444_v19  ;;  %v1493_v56 = vld [vmem:[%s1816_s13 + $0x1c0] ss:$8 sps:$4 sm:$0xff]   ;;  %v1496_v58 = vld [vmem:[%s1816_s13 + $0x1d4] ss:$8 sps:$4 sm:$0xff]   ;;  %v1498_v59 = vld [vmem:[%s1816_s13 + $0xd0] ss:$8 sps:$4 sm:$0xff]  }
  0x61   : > { %1054 = vmatpush1.bf16.msra.mxu1 %v1445_v20  ;;  %1014 = vmatprep.subr.bf16.mxu0 %v1446_v21  ;;  %v1499_v60 = vld [vmem:[%s1816_s13 + $0x1d0] ss:$8 sps:$4 sm:$0xff]   ;;  %v1500_v61 = vld [vmem:[%s1816_s13 + $0xe4] ss:$8 sps:$4 sm:$0xff]   ;;  %v1504_v63 = vld [vmem:[%s1816_s13 + $0xe0] ss:$8 sps:$4 sm:$0xff]   ;;  %v1098_v21 = vlaneseq (!%p1353_p13) }
  0x62   : > { %1055 = vmatprep.subr.bf16.mxu1 %v1448_v22  ;;  %1036 = vmatprep.mubr.bf16.mxu0 %v1286_v48  ;;  %v1502_v62 = vld [vmem:[%s1816_s13 + $0x1e4] ss:$8 sps:$4 sm:$0xff]   ;;  %v1505_v0 = vld [vmem:[%s1816_s13 + $0x1e0] ss:$8 sps:$4 sm:$0xff]   ;;  %v1506_v1 = vld [vmem:[%s1816_s13 + $0xf4] ss:$8 sps:$4 sm:$0xff]  }
  0x63   : > { %1077 = vmatprep.mubr.bf16.mxu1 %v1288_v52  ;;  %v1508_v2 = vld [vmem:[%s1816_s13 + $0x1f4] ss:$8 sps:$4 sm:$0xff]   ;;  %v1510_v3 = vld [vmem:[%s1816_s13 + $0xf0] ss:$8 sps:$4 sm:$0xff]   ;;  %v1099_v22 = vshrl.u32 (!%p1353_p13), %v1098_v21, 7 }
  0x64   : > { %1015 = vmatpush1.bf16.msra.mxu0 %v1450_v23  ;;  %v1511_v4 = vld [vmem:[%s1816_s13 + $0x1f0] ss:$8 sps:$4 sm:$0xff]  }
  0x65   : > { %1056 = vmatpush1.bf16.msra.mxu1 %v1451_v24  ;;  %1016 = vmatprep.subr.bf16.mxu0 %v1452_v25  ;;  %v602_v8 = vld [vmem:[#allocation2] sm:$0xff]  ;;  %v603_v12 = vld [vmem:[#allocation2 + $0x8] sm:$0xff]  ;;  %v1100_v25 = vsub.s32 (!%p1353_p13), 0, %v1099_v22 }
  0x66   : > { %1057 = vmatprep.subr.bf16.mxu1 %v1454_v26  ;;  %v1096_v23 = vld [vmem:[%s579_s15] sm:$0x3] (!%p1353_p13)  ;;  %v1104_v26 = vsub.s32 (!%p1353_p13), 1, %v1099_v22 }
  0x67   : > { %v1110_v24 = vld [vmem:[%s584_s18] sm:$0x3] (!%p1353_p13) }
  0x68   : > { %1017 = vmatpush1.bf16.msra.mxu0 %v1456_v27 }
  0x69   : > { %1058 = vmatpush1.bf16.msra.mxu1 %v1457_v28  ;;  %1018 = vmatprep.subr.bf16.mxu0 %v1458_v29  ;;  %v1101_v29 = vrot.slane (!%p1353_p13), %v1096_v23, %v1100_v25 }
  0x6a   : > { %1059 = vmatprep.subr.bf16.mxu1 %v1460_v30  ;;  %v1105_v30 = vrot.slane (!%p1353_p13), %v1096_v23, %v1104_v26 }
  0x6c   : > { %1019 = vmatpush1.bf16.msra.mxu0 %v1462_v31  ;;  %v1115_v31 = vrot.slane (!%p1353_p13), %v1110_v24, %v1100_v25 }
  0x6d   : > { %1060 = vmatpush1.bf16.msra.mxu1 %v1463_v32  ;;  %1020 = vmatprep.subr.bf16.mxu0 %v1464_v33  ;;  %v1119_v32 = vrot.slane (!%p1353_p13), %v1110_v24, %v1104_v26 }
  0x6e   : > { %1061 = vmatprep.subr.bf16.mxu1 %v1466_v34 }
  0x70   : > { %1021 = vmatpush1.bf16.msra.mxu0 %v1468_v35 }
  0x71   : > { %1062 = vmatpush1.bf16.msra.mxu1 %v1469_v36  ;;  %1022 = vmatprep.subr.bf16.mxu0 %v1470_v37 }
  0x72   : > { %1063 = vmatprep.subr.bf16.mxu1 %v1472_v38 }
  0x74   : > { %1023 = vmatpush1.bf16.msra.mxu0 %v1474_v39 }
  0x75   : > { %1064 = vmatpush1.bf16.msra.mxu1 %v1475_v40  ;;  %1024 = vmatprep.subr.bf16.mxu0 %v1476_v41 }
  0x76   : > { %1065 = vmatprep.subr.bf16.mxu1 %v1478_v42 }
  0x78   : > { %1025 = vmatpush1.bf16.msra.mxu0 %v1480_v43 }
  0x79   : > { %1066 = vmatpush1.bf16.msra.mxu1 %v1481_v44  ;;  %1026 = vmatprep.subr.bf16.mxu0 %v1482_v45 }
  0x7a   : > { %1067 = vmatprep.subr.bf16.mxu1 %v1484_v46 }
  0x7c   : > { %1027 = vmatpush1.bf16.msra.mxu0 %v1486_v50 }
  0x7d   : > { %1068 = vmatpush1.bf16.msra.mxu1 %v1487_v51  ;;  %1028 = vmatprep.subr.bf16.mxu0 %v1488_v53 }
  0x7e   : > { %1069 = vmatprep.subr.bf16.mxu1 %v1490_v54 }
  0x80   : > { %1029 = vmatpush1.bf16.msra.mxu0 %v1492_v55 }
  0x81   : > { %1070 = vmatpush1.bf16.msra.mxu1 %v1493_v56  ;;  %1030 = vmatprep.subr.bf16.mxu0 %v1494_v57 }
  0x82   : > { %1071 = vmatprep.subr.bf16.mxu1 %v1496_v58 }
  0x84   : > { %1031 = vmatpush1.bf16.msra.mxu0 %v1498_v59 }
  0x85   : > { %1072 = vmatpush1.bf16.msra.mxu1 %v1499_v60  ;;  %1032 = vmatprep.subr.bf16.mxu0 %v1500_v61 }
  0x86   : > { %1073 = vmatprep.subr.bf16.mxu1 %v1502_v62 }
  0x88   : > { %1033 = vmatpush1.bf16.msra.mxu0 %v1504_v63 }
  0x89   : > { %1074 = vmatpush1.bf16.msra.mxu1 %v1505_v0  ;;  %1034 = vmatprep.subr.bf16.mxu0 %v1506_v1 }
  0x8a   : > { %1075 = vmatprep.subr.bf16.mxu1 %v1508_v2 }
  0x8c   : > { %1035 = vmatpush1.bf16.msra.mxu0 %v1510_v3 }
  0x8d   : > { %1076 = vmatpush1.bf16.msra.mxu1 %v1511_v4 }
  0x8f   : > { %1037 = vmatmul.mubr.bf16.vlgmr.msra.gmra.mrb[0].mxu0 %v1285_v5 }
  0x90   : > { %1078 = vmatmul.mubr.bf16.vlgmr.msra.gmra.mrb[0].mxu1 %v1287_v6 }
 0x162   : > { %v1038_v7 = vpop.f32.mrb[0].mxu0 }
 0x163   : > { %v1079_v9 = vpop.f32.mrb[0].mxu1  ;;  %v1040_v11 = vpop.f32.mrb[1].mxu0  ;;  %1093 = sbr.rel (%p1353_p13) target bundleno = 378 (0x17a), region = 82 }
 0x164   : > { %v1080_v10 = vadd.f32 %v1079_v9, %v1038_v7  ;;  %v1081_v13 = vpop.f32.mrb[1].mxu1  ;;  %v1042_v15 = vpop.f32.mrb[2].mxu0 }
 0x165   : > { %v1082_v14 = vadd.f32 %v1081_v13, %v1040_v11  ;;  %v1083_v16 = vpop.f32.mrb[2].mxu1  ;;  %v1043_v18 = vpop.f32.mrb[3].mxu0 }
 0x166   : > { %v1086_v17 = vadd.f32 %v1080_v10, %v602_v8  ;;  %v1084_v19 = vpop.f32.mrb[3].mxu1 }
 0x167   : > { %v1087_v20 = vadd.f32 %v1082_v14, %v603_v12 }
 0x168   : > { %1088 = vst [vmem:[#allocation2] sm:$0xff] %v1086_v17 }
 0x169   : > { %1089 = vst [vmem:[#allocation2 + $0x8] sm:$0xff] %v1087_v20 }
 0x16f   : > { %v1094_v27 = vld [vmem:[#allocation2] sm:$0xff] }
 0x170   : > { %v1095_v28 = vld [vmem:[#allocation2 + $0x8] sm:$0xff]  ;;  %v1108_v33 = vmul.f32 %v1101_v29, %v1094_v27 }
 0x171   : > { %v1109_v34 = vmul.f32 %v1105_v30, %v1095_v28 }
 0x172   : > { %v1122_v35 = vadd.f32 %v1115_v31, %v1108_v33 }
 0x173   : > { %v1123_v36 = vadd.f32 %v1119_v32, %v1109_v34 }
 0x174   : > { %v1124_v37 = vmax.f32 %v1122_v35, 0.0 }
 0x175   : > { %v1125_v38 = vmax.f32 %v1123_v36, 0.0 }
 0x177   : > { %v1358_v39 = vpack.c.bf16 %v1125_v38, %v1124_v37 }
 0x179   : > { %1134 = vst [vmem:[%s1814_s12] sm:$0xff] %v1358_v39 }
 0x17a PF: > { %s14_s21 = sadd.s32 1, %s1570_s21   ;;  %s1923_s15 = smov %s1550_s16 }
 0x17b   : > { %p11_p0 = scmp.ge.s32.totalorder %s14_s21, 20   ;;  %s1924_s16 = smov %s1649_s28 }
 0x17c   : > { %s1925_s17 = smov %s1562_s19  ;;  %s1926_s18 = smov %s1566_s20 }
 0x17d   : > { %s1927_s19 = smov %s1930_s22  ;;  %s1928_s20 = smov %s1934_s23 }
 0x17e   :  { %13 = sbr.rel (!%p11_p0) target bundleno = 4 (0x4), region = 126 }

// kernel: _lambda_.42
= control target key start
LH: loop header
LB: loop body
LE: loop exit
PB: predicated region body
PF: predicated region fallthrough
CT: control target
= control target key end

     0   :  { %s1691_s18 = smov 0   ;;  %s1693_s19 = smov 0   ;;  %s2017_s0 = inlined_call_operand.vmem [shape: bf16[8,4608], index: 0, kind: input, shape index: {}]   ;;  %s2018_s1 = inlined_call_operand.vmem [shape: bf16[4608,512], index: 1, kind: input, shape index: {}]   ;;  %s2019_s2 = inlined_call_operand.vmem [shape: f32[1,512], index: 2, kind: input, shape index: {}]   ;;  %s2020_s3 = inlined_call_operand.vmem [shape: f32[1,512], index: 3, kind: input, shape index: {}]   ;;  %s2021_s4 = inlined_call_operand.vmem [shape: bf16[8,512], index: 4, kind: input, shape index: {}]   ;;  %s2022_s5 = inlined_call_operand.vmem [shape: bf16[8,512], index: 5, kind: output, shape index: {}]  }
   0x1   :  { %s1695_s20 = smov 0   ;;  %s1697_s21 = smov 0  }
   0x2   :  { %s1699_s22 = smov 0   ;;  %s1701_s23 = smov 0  }
   0x3   :  { %s1703_s24 = smov 0  }
   0x4 LB: > { %s27_s25 = sadd.s32 1, %s1650_s22  ;;  %s30_s26 = sadd.s32 1, %s1654_s23  ;;  %s1658_s24 = sphi %s1703_s24, %s15_s24   ;;  %s1654_s23 = sphi %s1701_s23, %s2028_s23   ;;  %s1650_s22 = sphi %s1699_s22, %s2027_s22   ;;  %s1646_s21 = sphi %s1697_s21, %s2026_s21   ;;  %s1642_s20 = sphi %s1695_s20, %s2025_s20   ;;  %s1638_s19 = sphi %s1693_s19, %s2024_s19   ;;  %s1634_s18 = sphi %s1691_s18, %s2023_s18  }
   0x5   : > { %p28_p0 = scmp.ge.s32.totalorder %s27_s25, 9  ;;  %p78_p1 = scmp.ne.s32.totalorder %s1638_s19, %s1634_s18 }
   0x6   : > { %p79_p2 = scmp.eq.s32.totalorder %s1658_s24, 0  ;;  %s71_s30 = sadd.s32 1, %s1638_s19 }
   0x7   : > { %s2030_s25 = smov (%p28_p0, %s27_s25), 0  ;;  %s2032_s26 = smov (!%p28_p0, %s30_s26), %s1654_s23 }
   0x8   : > { %p80_p3 = por %p79_p2, %p78_p1  ;;  %p32_p4 = scmp.ge.s32.totalorder %s2032_s26, 2 }
   0x9   : > { %s66_s27 = ssub.s32 %s1650_s22, %s2030_s25  ;;  %p1356_p6 = scmp.ge.s32.totalorder %s1658_s24, 18 }
   0xa   : > { %s2034_s26 = smov (%p32_p4, %s2032_s26), 0 }
   0xb   : > { %s67_s28 = ssub.s32 %s1654_s23, %s2034_s26  ;;  %212 = sbr.rel (%p1356_p6) target bundleno = 57 (0x39), region = 16 }
   0xc   : > { %s68_s29 = sor.u32 %s67_s28, %s66_s27 }
   0xd   : > { %p69_p5 = scmp.eq.s32.totalorder %s68_s29, 0 }
   0xf   : > { %s1742_s6 = scalar_select %p69_p5, %s1638_s19, %s71_s30  }
  0x12   : > { %228 = sbr.rel (!%p80_p3) target bundleno = 57 (0x39), region = 24  ;;  %s230_s7 = sand.u32 (%p80_p3), 1, %s1638_s19  }
  0x13   : > { %s1359_s8 = sshll.u32 (%p80_p3), %s1654_s23, 1  ;;  %s1357_s9 = sshll.u32 (%p80_p3), %s230_s7, 9 }
  0x14   : > { %s1445_s10 = sshll.u32 (%p80_p3), %s1650_s22, 8  ;;  %s1756_s16 = scalar_lea.vmem (%p80_p3), [#allocation3], %s1357_s9 }
  0x15   : > { %s236_s11 = sadd.s32 (%p80_p3), %s1445_s10, %s1359_s8 }
  0x16   : > { %s1361_s12 = sshll.u32 (%p80_p3), %s236_s11, 2 }
  0x17   : > { %s1751_s15 = scalar_lea.vmem (%p80_p3), %s2018_s1, %s1361_s12 }
  0x18   : > { %v392_v0 = vld [vmem:[%s1751_s15] sm:$0xff] (%p80_p3)  ;;  %v394_v1 = vld [vmem:[%s1751_s15 + $0x10] sm:$0xff] (%p80_p3) }
  0x19   : > { %v396_v2 = vld [vmem:[%s1751_s15 + $0x20] sm:$0xff]  ;;  %393 = vst [vmem:[%s1756_s16] sm:$0xff] %v392_v0  ;;  %395 = vst [vmem:[%s1756_s16 + $0x8] sm:$0xff] %v394_v1  ;;  %v398_v3 = vld [vmem:[%s1751_s15 + $0x30] sm:$0xff] }
  0x1a   : > { %397 = vst [vmem:[%s1756_s16 + $0x10] sm:$0xff] %v396_v2  ;;  %v400_v4 = vld [vmem:[%s1751_s15 + $0x40] sm:$0xff]  ;;  %v402_v5 = vld [vmem:[%s1751_s15 + $0x50] sm:$0xff]  ;;  %399 = vst [vmem:[%s1756_s16 + $0x18] sm:$0xff] %v398_v3 }
  0x1b   : > { %401 = vst [vmem:[%s1756_s16 + $0x20] sm:$0xff] %v400_v4  ;;  %403 = vst [vmem:[%s1756_s16 + $0x28] sm:$0xff] %v402_v5  ;;  %v404_v6 = vld [vmem:[%s1751_s15 + $0x60] sm:$0xff]  ;;  %v406_v7 = vld [vmem:[%s1751_s15 + $0x70] sm:$0xff] }
  0x1c   : > { %v408_v8 = vld [vmem:[%s1751_s15 + $0x80] sm:$0xff]  ;;  %405 = vst [vmem:[%s1756_s16 + $0x30] sm:$0xff] %v404_v6  ;;  %407 = vst [vmem:[%s1756_s16 + $0x38] sm:$0xff] %v406_v7  ;;  %v410_v9 = vld [vmem:[%s1751_s15 + $0x90] sm:$0xff] }
  0x1d   : > { %409 = vst [vmem:[%s1756_s16 + $0x40] sm:$0xff] %v408_v8  ;;  %v412_v10 = vld [vmem:[%s1751_s15 + $0xa0] sm:$0xff]  ;;  %v414_v11 = vld [vmem:[%s1751_s15 + $0xb0] sm:$0xff]  ;;  %411 = vst [vmem:[%s1756_s16 + $0x48] sm:$0xff] %v410_v9 }
  0x1e   : > { %413 = vst [vmem:[%s1756_s16 + $0x50] sm:$0xff] %v412_v10  ;;  %415 = vst [vmem:[%s1756_s16 + $0x58] sm:$0xff] %v414_v11  ;;  %v416_v12 = vld [vmem:[%s1751_s15 + $0xc0] sm:$0xff]  ;;  %v418_v13 = vld [vmem:[%s1751_s15 + $0xd0] sm:$0xff] }
  0x1f   : > { %v420_v14 = vld [vmem:[%s1751_s15 + $0xe0] sm:$0xff]  ;;  %417 = vst [vmem:[%s1756_s16 + $0x60] sm:$0xff] %v416_v12  ;;  %419 = vst [vmem:[%s1756_s16 + $0x68] sm:$0xff] %v418_v13  ;;  %v422_v15 = vld [vmem:[%s1751_s15 + $0xf0] sm:$0xff] }
  0x20   : > { %421 = vst [vmem:[%s1756_s16 + $0x70] sm:$0xff] %v420_v14  ;;  %v424_v16 = vld [vmem:[%s1751_s15 + $0x100] sm:$0xff]  ;;  %v426_v17 = vld [vmem:[%s1751_s15 + $0x110] sm:$0xff]  ;;  %423 = vst [vmem:[%s1756_s16 + $0x78] sm:$0xff] %v422_v15 }
  0x21   : > { %425 = vst [vmem:[%s1756_s16 + $0x80] sm:$0xff] %v424_v16  ;;  %427 = vst [vmem:[%s1756_s16 + $0x88] sm:$0xff] %v426_v17  ;;  %v428_v18 = vld [vmem:[%s1751_s15 + $0x120] sm:$0xff]  ;;  %v430_v19 = vld [vmem:[%s1751_s15 + $0x130] sm:$0xff] }
  0x22   : > { %v432_v20 = vld [vmem:[%s1751_s15 + $0x140] sm:$0xff]  ;;  %429 = vst [vmem:[%s1756_s16 + $0x90] sm:$0xff] %v428_v18  ;;  %431 = vst [vmem:[%s1756_s16 + $0x98] sm:$0xff] %v430_v19  ;;  %v434_v21 = vld [vmem:[%s1751_s15 + $0x150] sm:$0xff] }
  0x23   : > { %433 = vst [vmem:[%s1756_s16 + $0xa0] sm:$0xff] %v432_v20  ;;  %v436_v22 = vld [vmem:[%s1751_s15 + $0x160] sm:$0xff]  ;;  %v438_v23 = vld [vmem:[%s1751_s15 + $0x170] sm:$0xff]  ;;  %435 = vst [vmem:[%s1756_s16 + $0xa8] sm:$0xff] %v434_v21 }
  0x24   : > { %437 = vst [vmem:[%s1756_s16 + $0xb0] sm:$0xff] %v436_v22  ;;  %439 = vst [vmem:[%s1756_s16 + $0xb8] sm:$0xff] %v438_v23  ;;  %v440_v24 = vld [vmem:[%s1751_s15 + $0x180] sm:$0xff]  ;;  %v442_v25 = vld [vmem:[%s1751_s15 + $0x190] sm:$0xff] }
  0x25   : > { %v444_v26 = vld [vmem:[%s1751_s15 + $0x1a0] sm:$0xff]  ;;  %441 = vst [vmem:[%s1756_s16 + $0xc0] sm:$0xff] %v440_v24  ;;  %443 = vst [vmem:[%s1756_s16 + $0xc8] sm:$0xff] %v442_v25  ;;  %v446_v27 = vld [vmem:[%s1751_s15 + $0x1b0] sm:$0xff] }
  0x26   : > { %445 = vst [vmem:[%s1756_s16 + $0xd0] sm:$0xff] %v444_v26  ;;  %v448_v28 = vld [vmem:[%s1751_s15 + $0x1c0] sm:$0xff]  ;;  %v450_v29 = vld [vmem:[%s1751_s15 + $0x1d0] sm:$0xff]  ;;  %447 = vst [vmem:[%s1756_s16 + $0xd8] sm:$0xff] %v446_v27 }
  0x27   : > { %449 = vst [vmem:[%s1756_s16 + $0xe0] sm:$0xff] %v448_v28  ;;  %451 = vst [vmem:[%s1756_s16 + $0xe8] sm:$0xff] %v450_v29  ;;  %v452_v30 = vld [vmem:[%s1751_s15 + $0x1e0] sm:$0xff]  ;;  %v454_v31 = vld [vmem:[%s1751_s15 + $0x1f0] sm:$0xff] }
  0x28   : > { %v456_v32 = vld [vmem:[%s1751_s15 + $0x200] sm:$0xff]  ;;  %453 = vst [vmem:[%s1756_s16 + $0xf0] sm:$0xff] %v452_v30  ;;  %455 = vst [vmem:[%s1756_s16 + $0xf8] sm:$0xff] %v454_v31  ;;  %v458_v33 = vld [vmem:[%s1751_s15 + $0x210] sm:$0xff] }
  0x29   : > { %457 = vst [vmem:[%s1756_s16 + $0x100] sm:$0xff] %v456_v32  ;;  %v460_v34 = vld [vmem:[%s1751_s15 + $0x220] sm:$0xff]  ;;  %v462_v35 = vld [vmem:[%s1751_s15 + $0x230] sm:$0xff]  ;;  %459 = vst [vmem:[%s1756_s16 + $0x108] sm:$0xff] %v458_v33 }
  0x2a   : > { %461 = vst [vmem:[%s1756_s16 + $0x110] sm:$0xff] %v460_v34  ;;  %463 = vst [vmem:[%s1756_s16 + $0x118] sm:$0xff] %v462_v35  ;;  %v464_v36 = vld [vmem:[%s1751_s15 + $0x240] sm:$0xff]  ;;  %v466_v37 = vld [vmem:[%s1751_s15 + $0x250] sm:$0xff] }
  0x2b   : > { %v468_v38 = vld [vmem:[%s1751_s15 + $0x260] sm:$0xff]  ;;  %465 = vst [vmem:[%s1756_s16 + $0x120] sm:$0xff] %v464_v36  ;;  %467 = vst [vmem:[%s1756_s16 + $0x128] sm:$0xff] %v466_v37  ;;  %v470_v39 = vld [vmem:[%s1751_s15 + $0x270] sm:$0xff] }
  0x2c   : > { %469 = vst [vmem:[%s1756_s16 + $0x130] sm:$0xff] %v468_v38  ;;  %v472_v40 = vld [vmem:[%s1751_s15 + $0x280] sm:$0xff]  ;;  %v474_v41 = vld [vmem:[%s1751_s15 + $0x290] sm:$0xff]  ;;  %471 = vst [vmem:[%s1756_s16 + $0x138] sm:$0xff] %v470_v39 }
  0x2d   : > { %473 = vst [vmem:[%s1756_s16 + $0x140] sm:$0xff] %v472_v40  ;;  %475 = vst [vmem:[%s1756_s16 + $0x148] sm:$0xff] %v474_v41  ;;  %v476_v42 = vld [vmem:[%s1751_s15 + $0x2a0] sm:$0xff]  ;;  %v478_v43 = vld [vmem:[%s1751_s15 + $0x2b0] sm:$0xff] }
  0x2e   : > { %v480_v44 = vld [vmem:[%s1751_s15 + $0x2c0] sm:$0xff]  ;;  %477 = vst [vmem:[%s1756_s16 + $0x150] sm:$0xff] %v476_v42  ;;  %479 = vst [vmem:[%s1756_s16 + $0x158] sm:$0xff] %v478_v43  ;;  %v482_v45 = vld [vmem:[%s1751_s15 + $0x2d0] sm:$0xff] }
  0x2f   : > { %481 = vst [vmem:[%s1756_s16 + $0x160] sm:$0xff] %v480_v44  ;;  %v484_v46 = vld [vmem:[%s1751_s15 + $0x2e0] sm:$0xff]  ;;  %v486_v47 = vld [vmem:[%s1751_s15 + $0x2f0] sm:$0xff]  ;;  %483 = vst [vmem:[%s1756_s16 + $0x168] sm:$0xff] %v482_v45 }
  0x30   : > { %485 = vst [vmem:[%s1756_s16 + $0x170] sm:$0xff] %v484_v46  ;;  %487 = vst [vmem:[%s1756_s16 + $0x178] sm:$0xff] %v486_v47  ;;  %v488_v48 = vld [vmem:[%s1751_s15 + $0x300] sm:$0xff]  ;;  %v490_v49 = vld [vmem:[%s1751_s15 + $0x310] sm:$0xff] }
  0x31   : > { %v492_v50 = vld [vmem:[%s1751_s15 + $0x320] sm:$0xff]  ;;  %489 = vst [vmem:[%s1756_s16 + $0x180] sm:$0xff] %v488_v48  ;;  %491 = vst [vmem:[%s1756_s16 + $0x188] sm:$0xff] %v490_v49  ;;  %v494_v51 = vld [vmem:[%s1751_s15 + $0x330] sm:$0xff] }
  0x32   : > { %493 = vst [vmem:[%s1756_s16 + $0x190] sm:$0xff] %v492_v50  ;;  %v496_v52 = vld [vmem:[%s1751_s15 + $0x340] sm:$0xff]  ;;  %v498_v53 = vld [vmem:[%s1751_s15 + $0x350] sm:$0xff]  ;;  %495 = vst [vmem:[%s1756_s16 + $0x198] sm:$0xff] %v494_v51 }
  0x33   : > { %497 = vst [vmem:[%s1756_s16 + $0x1a0] sm:$0xff] %v496_v52  ;;  %499 = vst [vmem:[%s1756_s16 + $0x1a8] sm:$0xff] %v498_v53  ;;  %v500_v54 = vld [vmem:[%s1751_s15 + $0x360] sm:$0xff]  ;;  %v502_v55 = vld [vmem:[%s1751_s15 + $0x370] sm:$0xff] }
  0x34   : > { %v504_v56 = vld [vmem:[%s1751_s15 + $0x380] sm:$0xff]  ;;  %501 = vst [vmem:[%s1756_s16 + $0x1b0] sm:$0xff] %v500_v54  ;;  %503 = vst [vmem:[%s1756_s16 + $0x1b8] sm:$0xff] %v502_v55  ;;  %v506_v57 = vld [vmem:[%s1751_s15 + $0x390] sm:$0xff] }
  0x35   : > { %505 = vst [vmem:[%s1756_s16 + $0x1c0] sm:$0xff] %v504_v56  ;;  %v508_v58 = vld [vmem:[%s1751_s15 + $0x3a0] sm:$0xff]  ;;  %v510_v59 = vld [vmem:[%s1751_s15 + $0x3b0] sm:$0xff]  ;;  %507 = vst [vmem:[%s1756_s16 + $0x1c8] sm:$0xff] %v506_v57 }
  0x36   : > { %509 = vst [vmem:[%s1756_s16 + $0x1d0] sm:$0xff] %v508_v58  ;;  %511 = vst [vmem:[%s1756_s16 + $0x1d8] sm:$0xff] %v510_v59  ;;  %v512_v60 = vld [vmem:[%s1751_s15 + $0x3c0] sm:$0xff]  ;;  %v514_v61 = vld [vmem:[%s1751_s15 + $0x3d0] sm:$0xff] }
  0x37   : > { %v516_v62 = vld [vmem:[%s1751_s15 + $0x3e0] sm:$0xff]  ;;  %513 = vst [vmem:[%s1756_s16 + $0x1e0] sm:$0xff] %v512_v60  ;;  %515 = vst [vmem:[%s1756_s16 + $0x1e8] sm:$0xff] %v514_v61  ;;  %v518_v63 = vld [vmem:[%s1751_s15 + $0x3f0] sm:$0xff] }
  0x38   : > { %517 = vst [vmem:[%s1756_s16 + $0x1f0] sm:$0xff] %v516_v62  ;;  %519 = vst [vmem:[%s1756_s16 + $0x1f8] sm:$0xff] %v518_v63 }
  0x39 PF: > { %p1362_p7 = scmp.ge.s32.totalorder %s1658_s24, 1  ;;  %p553_p8 = scmp.lt.s32.totalorder %s1658_s24, 19 }
  0x3b   : > { %p554_p9 = pnand %p1362_p7, %p553_p8 }
  0x3c   : > { %s560_s17 = sand.u32 (!%p554_p9), 1, %s1634_s18   ;;  %s1364_s27 = sshll.u32 (!%p554_p9), %s1642_s20, 2 }
  0x3d   : > { %557 = sbr.rel (%p554_p9) target bundleno = 380 (0x17c), region = 74  ;;  %s1363_s28 = sshll.u32 (!%p554_p9), %s560_s17, 9 }
  0x3e   : > { %p620_p10 = scmp.lt.s32.totalorder (!%p554_p9), %s1364_s27, 35  ;;  %s1366_s29 = sshll.u32 (!%p554_p9), %s1646_s21, 1 }
  0x3f   : > { %p630_p11 = scmp.lt.s32.totalorder (!%p554_p9), %s1366_s29, 3  ;;  %s1914_s8 = scalar_lea.vmem (!%p554_p9), [#allocation3], %s1363_s28 }
  0x40   : > { %p1372_p12 = scmp.ne.s32.totalorder (!%p554_p9), %s1642_s20, 0 }
  0x44   : > { %s2036_s27 = smov (!%p620_p10, %s1364_s27), 35  ;;  %s2038_s29 = smov (!%p630_p11, %s1366_s29), 3 }
  0x45   : > { %s1365_s30 = sshll.u32 %s2036_s27, 2  ;;  %s632_s18 = scalar_lea.vmem %s2019_s2, %s2038_s29  ;;  %v1660_v0 = vmov (!%p1372_p12), 0.0  }
  0x46   : > { %s1891_s9 = scalar_lea.vmem %s2017_s0, %s1365_s30  ;;  %s637_s21 = scalar_lea.vmem %s2020_s3, %s2038_s29  ;;  %663 = vst [vmem:[#allocation2] sm:$0xff] (!%p1372_p12), %v1660_v0  ;;  %664 = vst [vmem:[#allocation2 + $0x8] sm:$0xff] (!%p1372_p12), %v1660_v0 }
  0x47   : > { %s1369_s14 = sshll.u32 %s2038_s29, 2  ;;  %662 = sbr.rel (%p1372_p12) target bundleno = 78 (0x4e), region = 82 }
  0x48   : > { %s1907_s17 = scalar_lea.vmem %s2021_s4, %s1369_s14  ;;  %s1912_s7 = scalar_lea.vmem %s2022_s5, %s1369_s14 }
  0x4e PF: > { %v1504_v1 = vld [vmem:[%s1914_s8 + $0x4] ss:$8 sps:$4 sm:$0xff]   ;;  %v1508_v3 = vld [vmem:[%s1914_s8] ss:$8 sps:$4 sm:$0xff]   ;;  %v1510_v5 = vld [vmem:[%s1914_s8 + $0x14] ss:$8 sps:$4 sm:$0xff]  }
  0x4f   : > { %v1506_v2 = vld [vmem:[%s1914_s8 + $0x104] ss:$8 sps:$4 sm:$0xff]   ;;  %1067 = vmatprep.subr.bf16.mxu0 %v1504_v1  ;;  %v1509_v4 = vld [vmem:[%s1914_s8 + $0x100] ss:$8 sps:$4 sm:$0xff]   ;;  %v1512_v6 = vld [vmem:[%s1914_s8 + $0x114] ss:$8 sps:$4 sm:$0xff]  }
  0x50   : > { %1108 = vmatprep.subr.bf16.mxu1 %v1506_v2  ;;  %1068 = vmatpush1.bf16.msra.mxu0 %v1508_v3  ;;  %v1514_v7 = vld [vmem:[%s1914_s8 + $0x10] ss:$8 sps:$4 sm:$0xff]   ;;  %v1516_v9 = vld [vmem:[%s1914_s8 + $0x24] ss:$8 sps:$4 sm:$0xff]   ;;  %v1520_v11 = vld [vmem:[%s1914_s8 + $0x20] ss:$8 sps:$4 sm:$0xff]  }
  0x51   : > { %1109 = vmatpush1.bf16.msra.mxu1 %v1509_v4  ;;  %1069 = vmatprep.subr.bf16.mxu0 %v1510_v5  ;;  %v1515_v8 = vld [vmem:[%s1914_s8 + $0x110] ss:$8 sps:$4 sm:$0xff]   ;;  %v1518_v10 = vld [vmem:[%s1914_s8 + $0x124] ss:$8 sps:$4 sm:$0xff]   ;;  %v1521_v12 = vld [vmem:[%s1914_s8 + $0x120] ss:$8 sps:$4 sm:$0xff]  }
  0x52   : > { %1110 = vmatprep.subr.bf16.mxu1 %v1512_v6  ;;  %v1522_v13 = vld [vmem:[%s1914_s8 + $0x34] ss:$8 sps:$4 sm:$0xff]   ;;  %v1526_v15 = vld [vmem:[%s1914_s8 + $0x30] ss:$8 sps:$4 sm:$0xff]   ;;  %v1528_v17 = vld [vmem:[%s1914_s8 + $0x44] ss:$8 sps:$4 sm:$0xff]  }
  0x53   : > { %v1524_v14 = vld [vmem:[%s1914_s8 + $0x134] ss:$8 sps:$4 sm:$0xff]   ;;  %v1527_v16 = vld [vmem:[%s1914_s8 + $0x130] ss:$8 sps:$4 sm:$0xff]   ;;  %v1530_v18 = vld [vmem:[%s1914_s8 + $0x144] ss:$8 sps:$4 sm:$0xff]  }
  0x54   : > { %1070 = vmatpush1.bf16.msra.mxu0 %v1514_v7  ;;  %v1532_v19 = vld [vmem:[%s1914_s8 + $0x40] ss:$8 sps:$4 sm:$0xff]   ;;  %v1534_v21 = vld [vmem:[%s1914_s8 + $0x54] ss:$8 sps:$4 sm:$0xff]   ;;  %v1538_v23 = vld [vmem:[%s1914_s8 + $0x50] ss:$8 sps:$4 sm:$0xff]  }
  0x55   : > { %1111 = vmatpush1.bf16.msra.mxu1 %v1515_v8  ;;  %1071 = vmatprep.subr.bf16.mxu0 %v1516_v9  ;;  %v1533_v20 = vld [vmem:[%s1914_s8 + $0x140] ss:$8 sps:$4 sm:$0xff]   ;;  %v1536_v22 = vld [vmem:[%s1914_s8 + $0x154] ss:$8 sps:$4 sm:$0xff]   ;;  %v1539_v24 = vld [vmem:[%s1914_s8 + $0x150] ss:$8 sps:$4 sm:$0xff]  }
  0x56   : > { %1112 = vmatprep.subr.bf16.mxu1 %v1518_v10  ;;  %v1540_v25 = vld [vmem:[%s1914_s8 + $0x64] ss:$8 sps:$4 sm:$0xff]   ;;  %v1544_v27 = vld [vmem:[%s1914_s8 + $0x60] ss:$8 sps:$4 sm:$0xff]   ;;  %v1546_v29 = vld [vmem:[%s1914_s8 + $0x74] ss:$8 sps:$4 sm:$0xff]  }
  0x57   : > { %v1542_v26 = vld [vmem:[%s1914_s8 + $0x164] ss:$8 sps:$4 sm:$0xff]   ;;  %v1545_v28 = vld [vmem:[%s1914_s8 + $0x160] ss:$8 sps:$4 sm:$0xff]   ;;  %v1548_v30 = vld [vmem:[%s1914_s8 + $0x174] ss:$8 sps:$4 sm:$0xff]  }
  0x58   : > { %1072 = vmatpush1.bf16.msra.mxu0 %v1520_v11  ;;  %v1550_v31 = vld [vmem:[%s1914_s8 + $0x70] ss:$8 sps:$4 sm:$0xff]   ;;  %v1552_v33 = vld [vmem:[%s1914_s8 + $0x84] ss:$8 sps:$4 sm:$0xff]   ;;  %v1556_v35 = vld [vmem:[%s1914_s8 + $0x80] ss:$8 sps:$4 sm:$0xff]  }
  0x59   : > { %1113 = vmatpush1.bf16.msra.mxu1 %v1521_v12  ;;  %1073 = vmatprep.subr.bf16.mxu0 %v1522_v13  ;;  %v1551_v32 = vld [vmem:[%s1914_s8 + $0x170] ss:$8 sps:$4 sm:$0xff]   ;;  %v1554_v34 = vld [vmem:[%s1914_s8 + $0x184] ss:$8 sps:$4 sm:$0xff]   ;;  %v1557_v36 = vld [vmem:[%s1914_s8 + $0x180] ss:$8 sps:$4 sm:$0xff]  }
  0x5a   : > { %1114 = vmatprep.subr.bf16.mxu1 %v1524_v14  ;;  %v1558_v37 = vld [vmem:[%s1914_s8 + $0x94] ss:$8 sps:$4 sm:$0xff]   ;;  %v1562_v39 = vld [vmem:[%s1914_s8 + $0x90] ss:$8 sps:$4 sm:$0xff]   ;;  %v1564_v41 = vld [vmem:[%s1914_s8 + $0xa4] ss:$8 sps:$4 sm:$0xff]  }
  0x5b   : > { %v1560_v38 = vld [vmem:[%s1914_s8 + $0x194] ss:$8 sps:$4 sm:$0xff]   ;;  %v1563_v40 = vld [vmem:[%s1914_s8 + $0x190] ss:$8 sps:$4 sm:$0xff]   ;;  %v1566_v42 = vld [vmem:[%s1914_s8 + $0x1a4] ss:$8 sps:$4 sm:$0xff]  }
  0x5c   : > { %1074 = vmatpush1.bf16.msra.mxu0 %v1526_v15  ;;  %v1568_v43 = vld [vmem:[%s1914_s8 + $0xa0] ss:$8 sps:$4 sm:$0xff]   ;;  %v1570_v45 = vld [vmem:[%s1914_s8 + $0xb4] ss:$8 sps:$4 sm:$0xff]   ;;  %v1574_v50 = vld [vmem:[%s1914_s8 + $0xb0] ss:$8 sps:$4 sm:$0xff]  }
  0x5d   : > { %1115 = vmatpush1.bf16.msra.mxu1 %v1527_v16  ;;  %1075 = vmatprep.subr.bf16.mxu0 %v1528_v17  ;;  %v1569_v44 = vld [vmem:[%s1914_s8 + $0x1a0] ss:$8 sps:$4 sm:$0xff]   ;;  %v1572_v46 = vld [vmem:[%s1914_s8 + $0x1b4] ss:$8 sps:$4 sm:$0xff]   ;;  %v1575_v51 = vld [vmem:[%s1914_s8 + $0x1b0] ss:$8 sps:$4 sm:$0xff]  }
  0x5e   : > { %1116 = vmatprep.subr.bf16.mxu1 %v1530_v18  ;;  %v667_v47 = vld [vmem:[%s1891_s9] sm:$0xff]  ;;  %v668_v49 = vld [vmem:[%s1891_s9 + $0x8] sm:$0xff]  ;;  %v1576_v53 = vld [vmem:[%s1914_s8 + $0xc4] ss:$8 sps:$4 sm:$0xff]   ;;  %p1441_p13 = scmp.ne.s32.totalorder %s1642_s20, 8 }
  0x5f   : > { %v1374_v48 = vcombine.high %v667_v47, %v667_v47  ;;  %v1376_v52 = vcombine.high %v668_v49, %v668_v49  ;;  %v1578_v54 = vld [vmem:[%s1914_s8 + $0x1c4] ss:$8 sps:$4 sm:$0xff]   ;;  %v1580_v55 = vld [vmem:[%s1914_s8 + $0xc0] ss:$8 sps:$4 sm:$0xff]   ;;  %v1582_v57 = vld [vmem:[%s1914_s8 + $0xd4] ss:$8 sps:$4 sm:$0xff]   ;;  %v1373_v5 = vcombine.low %v667_v47, %v667_v47  ;;  %v1375_v6 = vcombine.low %v668_v49, %v668_v49 }
  0x60   : > { %1076 = vmatpush1.bf16.msra.mxu0 %v1532_v19  ;;  %v1581_v56 = vld [vmem:[%s1914_s8 + $0x1c0] ss:$8 sps:$4 sm:$0xff]   ;;  %v1584_v58 = vld [vmem:[%s1914_s8 + $0x1d4] ss:$8 sps:$4 sm:$0xff]   ;;  %v1586_v59 = vld [vmem:[%s1914_s8 + $0xd0] ss:$8 sps:$4 sm:$0xff]  }
  0x61   : > { %1117 = vmatpush1.bf16.msra.mxu1 %v1533_v20  ;;  %1077 = vmatprep.subr.bf16.mxu0 %v1534_v21  ;;  %v1587_v60 = vld [vmem:[%s1914_s8 + $0x1d0] ss:$8 sps:$4 sm:$0xff]   ;;  %v1588_v61 = vld [vmem:[%s1914_s8 + $0xe4] ss:$8 sps:$4 sm:$0xff]   ;;  %v1592_v63 = vld [vmem:[%s1914_s8 + $0xe0] ss:$8 sps:$4 sm:$0xff]   ;;  %v1161_v21 = vlaneseq (!%p1441_p13) }
  0x62   : > { %1118 = vmatprep.subr.bf16.mxu1 %v1536_v22  ;;  %1099 = vmatprep.mubr.bf16.mxu0 %v1374_v48  ;;  %v1590_v62 = vld [vmem:[%s1914_s8 + $0x1e4] ss:$8 sps:$4 sm:$0xff]   ;;  %v1593_v0 = vld [vmem:[%s1914_s8 + $0x1e0] ss:$8 sps:$4 sm:$0xff]   ;;  %v1594_v1 = vld [vmem:[%s1914_s8 + $0xf4] ss:$8 sps:$4 sm:$0xff]  }
  0x63   : > { %1140 = vmatprep.mubr.bf16.mxu1 %v1376_v52  ;;  %v1596_v2 = vld [vmem:[%s1914_s8 + $0x1f4] ss:$8 sps:$4 sm:$0xff]   ;;  %v1598_v3 = vld [vmem:[%s1914_s8 + $0xf0] ss:$8 sps:$4 sm:$0xff]   ;;  %v1162_v22 = vshrl.u32 (!%p1441_p13), %v1161_v21, 7 }
  0x64   : > { %1078 = vmatpush1.bf16.msra.mxu0 %v1538_v23  ;;  %v1599_v4 = vld [vmem:[%s1914_s8 + $0x1f0] ss:$8 sps:$4 sm:$0xff]  }
  0x65   : > { %1119 = vmatpush1.bf16.msra.mxu1 %v1539_v24  ;;  %1079 = vmatprep.subr.bf16.mxu0 %v1540_v25  ;;  %v665_v8 = vld [vmem:[#allocation2] sm:$0xff]  ;;  %v666_v12 = vld [vmem:[#allocation2 + $0x8] sm:$0xff]  ;;  %v1163_v25 = vsub.s32 (!%p1441_p13), 0, %v1162_v22 }
  0x66   : > { %1120 = vmatprep.subr.bf16.mxu1 %v1542_v26  ;;  %v1159_v23 = vld [vmem:[%s632_s18] sm:$0x3] (!%p1441_p13)  ;;  %v1167_v26 = vsub.s32 (!%p1441_p13), 1, %v1162_v22 }
  0x67   : > { %v1173_v24 = vld [vmem:[%s637_s21] sm:$0x3] (!%p1441_p13) }
  0x68   : > { %1080 = vmatpush1.bf16.msra.mxu0 %v1544_v27 }
  0x69   : > { %1121 = vmatpush1.bf16.msra.mxu1 %v1545_v28  ;;  %1081 = vmatprep.subr.bf16.mxu0 %v1546_v29  ;;  %v1187_v29 = vld [vmem:[%s1907_s17] sm:$0xff] (!%p1441_p13) }
  0x6a   : > { %1122 = vmatprep.subr.bf16.mxu1 %v1548_v30  ;;  %v1164_v30 = vrot.slane (!%p1441_p13), %v1159_v23, %v1163_v25 }
  0x6c   : > { %1082 = vmatpush1.bf16.msra.mxu0 %v1550_v31  ;;  %v1168_v31 = vrot.slane (!%p1441_p13), %v1159_v23, %v1167_v26 }
  0x6d   : > { %1123 = vmatpush1.bf16.msra.mxu1 %v1551_v32  ;;  %1083 = vmatprep.subr.bf16.mxu0 %v1552_v33  ;;  %v1178_v32 = vrot.slane (!%p1441_p13), %v1173_v24, %v1163_v25  ;;  %v1182_v33 = vrot.slane (!%p1441_p13), %v1173_v24, %v1167_v26 }
  0x6e   : > { %1124 = vmatprep.subr.bf16.mxu1 %v1554_v34 }
  0x70   : > { %1084 = vmatpush1.bf16.msra.mxu0 %v1556_v35 }
  0x71   : > { %1125 = vmatpush1.bf16.msra.mxu1 %v1557_v36  ;;  %1085 = vmatprep.subr.bf16.mxu0 %v1558_v37  ;;  %v1188_v36 = vunpack.c.l.bf16 (!%p1441_p13), %v1187_v29  ;;  %v1189_v37 = vunpack.c.h.bf16 (!%p1441_p13), %v1187_v29 }
  0x72   : > { %1126 = vmatprep.subr.bf16.mxu1 %v1560_v38 }
  0x74   : > { %1086 = vmatpush1.bf16.msra.mxu0 %v1562_v39 }
  0x75   : > { %1127 = vmatpush1.bf16.msra.mxu1 %v1563_v40  ;;  %1087 = vmatprep.subr.bf16.mxu0 %v1564_v41 }
  0x76   : > { %1128 = vmatprep.subr.bf16.mxu1 %v1566_v42 }
  0x78   : > { %1088 = vmatpush1.bf16.msra.mxu0 %v1568_v43 }
  0x79   : > { %1129 = vmatpush1.bf16.msra.mxu1 %v1569_v44  ;;  %1089 = vmatprep.subr.bf16.mxu0 %v1570_v45 }
  0x7a   : > { %1130 = vmatprep.subr.bf16.mxu1 %v1572_v46 }
  0x7c   : > { %1090 = vmatpush1.bf16.msra.mxu0 %v1574_v50 }
  0x7d   : > { %1131 = vmatpush1.bf16.msra.mxu1 %v1575_v51  ;;  %1091 = vmatprep.subr.bf16.mxu0 %v1576_v53 }
  0x7e   : > { %1132 = vmatprep.subr.bf16.mxu1 %v1578_v54 }
  0x80   : > { %1092 = vmatpush1.bf16.msra.mxu0 %v1580_v55 }
  0x81   : > { %1133 = vmatpush1.bf16.msra.mxu1 %v1581_v56  ;;  %1093 = vmatprep.subr.bf16.mxu0 %v1582_v57 }
  0x82   : > { %1134 = vmatprep.subr.bf16.mxu1 %v1584_v58 }
  0x84   : > { %1094 = vmatpush1.bf16.msra.mxu0 %v1586_v59 }
  0x85   : > { %1135 = vmatpush1.bf16.msra.mxu1 %v1587_v60  ;;  %1095 = vmatprep.subr.bf16.mxu0 %v1588_v61 }
  0x86   : > { %1136 = vmatprep.subr.bf16.mxu1 %v1590_v62 }
  0x88   : > { %1096 = vmatpush1.bf16.msra.mxu0 %v1592_v63 }
  0x89   : > { %1137 = vmatpush1.bf16.msra.mxu1 %v1593_v0  ;;  %1097 = vmatprep.subr.bf16.mxu0 %v1594_v1 }
  0x8a   : > { %1138 = vmatprep.subr.bf16.mxu1 %v1596_v2 }
  0x8c   : > { %1098 = vmatpush1.bf16.msra.mxu0 %v1598_v3 }
  0x8d   : > { %1139 = vmatpush1.bf16.msra.mxu1 %v1599_v4 }
  0x8f   : > { %1100 = vmatmul.mubr.bf16.vlgmr.msra.gmra.mrb[0].mxu0 %v1373_v5 }
  0x90   : > { %1141 = vmatmul.mubr.bf16.vlgmr.msra.gmra.mrb[0].mxu1 %v1375_v6 }
 0x162   : > { %v1101_v7 = vpop.f32.mrb[0].mxu0 }
 0x163   : > { %v1142_v9 = vpop.f32.mrb[0].mxu1  ;;  %v1103_v11 = vpop.f32.mrb[1].mxu0  ;;  %1156 = sbr.rel (%p1441_p13) target bundleno = 380 (0x17c), region = 86 }
 0x164   : > { %v1143_v10 = vadd.f32 %v1142_v9, %v1101_v7  ;;  %v1144_v13 = vpop.f32.mrb[1].mxu1  ;;  %v1105_v15 = vpop.f32.mrb[2].mxu0 }
 0x165   : > { %v1145_v14 = vadd.f32 %v1144_v13, %v1103_v11  ;;  %v1146_v16 = vpop.f32.mrb[2].mxu1  ;;  %v1106_v18 = vpop.f32.mrb[3].mxu0 }
 0x166   : > { %v1149_v17 = vadd.f32 %v1143_v10, %v665_v8  ;;  %v1147_v19 = vpop.f32.mrb[3].mxu1 }
 0x167   : > { %v1150_v20 = vadd.f32 %v1145_v14, %v666_v12 }
 0x168   : > { %1151 = vst [vmem:[#allocation2] sm:$0xff] %v1149_v17 }
 0x169   : > { %1152 = vst [vmem:[#allocation2 + $0x8] sm:$0xff] %v1150_v20 }
 0x16f   : > { %v1157_v27 = vld [vmem:[#allocation2] sm:$0xff] }
 0x170   : > { %v1158_v28 = vld [vmem:[#allocation2 + $0x8] sm:$0xff]  ;;  %v1171_v34 = vmul.f32 %v1164_v30, %v1157_v27 }
 0x171   : > { %v1172_v35 = vmul.f32 %v1168_v31, %v1158_v28 }
 0x172   : > { %v1185_v38 = vadd.f32 %v1178_v32, %v1171_v34 }
 0x173   : > { %v1186_v39 = vadd.f32 %v1182_v33, %v1172_v35 }
 0x174   : > { %v1190_v40 = vadd.f32 %v1188_v36, %v1185_v38 }
 0x175   : > { %v1191_v41 = vadd.f32 %v1189_v37, %v1186_v39 }
 0x176   : > { %v1192_v42 = vmax.f32 %v1190_v40, 0.0 }
 0x177   : > { %v1193_v43 = vmax.f32 %v1191_v41, 0.0 }
 0x179   : > { %v1446_v44 = vpack.c.bf16 %v1193_v43, %v1192_v42 }
 0x17b   : > { %1202 = vst [vmem:[%s1912_s7] sm:$0xff] %v1446_v44 }
 0x17c PF: > { %s15_s24 = sadd.s32 1, %s1658_s24   ;;  %s2023_s18 = smov %s1638_s19 }
 0x17d   : > { %p12_p0 = scmp.ge.s32.totalorder %s15_s24, 20   ;;  %s2024_s19 = smov %s1742_s6 }
 0x17e   : > { %s2025_s20 = smov %s1650_s22  ;;  %s2026_s21 = smov %s1654_s23 }
 0x17f   : > { %s2027_s22 = smov %s2030_s25  ;;  %s2028_s23 = smov %s2034_s26 }
 0x180   :  { %14 = sbr.rel (!%p12_p0) target bundleno = 4 (0x4), region = 133 }

// kernel: _lambda_.45
= control target key start
LH: loop header
LB: loop body
LE: loop exit
PB: predicated region body
PF: predicated region fallthrough
CT: control target
= control target key end

     0   :  { %s1010_s15 = smov 0   ;;  %s1012_s16 = smov 0   ;;  %s1096_s0 = inlined_call_operand.vmem [shape: bf16[8,1024], index: 0, kind: input, shape index: {}]   ;;  %s1097_s1 = inlined_call_operand.vmem [shape: bf16[1024,32], index: 1, kind: input, shape index: {}]   ;;  %s1098_s2 = inlined_call_operand.vmem [shape: f32[1,32], index: 2, kind: input, shape index: {}]   ;;  %s1099_s3 = inlined_call_operand.vmem [shape: f32[1,32], index: 3, kind: input, shape index: {}]   ;;  %s1100_s4 = inlined_call_operand.vmem [shape: f32[8,32], index: 4, kind: output, shape index: {}]  }
   0x1   :  { %s1014_s17 = smov 0  }
   0x2 LB: > { %s26_s18 = sadd.s32 1, %s978_s16  ;;  %p807_p0 = scmp.ge.s32.totalorder %s982_s17, 1  ;;  %s982_s17 = sphi %s1014_s17, %s14_s17   ;;  %s978_s16 = sphi %s1012_s16, %s1102_s16   ;;  %s974_s15 = sphi %s1010_s15, %s1101_s15  }
   0x3   : > { %p27_p1 = scmp.ge.s32.totalorder %s26_s18, 2  ;;  %p222_p2 = scmp.lt.s32.totalorder %s982_s17, 3 }
   0x5   : > { %s1104_s18 = smov (%p27_p1, %s26_s18), 0  ;;  %p223_p3 = pnand %p807_p0, %p222_p2 }
   0x6   : > { %s808_s19 = sshll.u32 (!%p223_p3), %s974_s15, 2  ;;  %s810_s20 = sshll.u32 (!%p223_p3), %s974_s15, 6 }
   0x7   : > { %226 = sbr.rel (%p223_p3) target bundleno = 291 (0x123), region = 36  ;;  %p271_p4 = scmp.lt.s32.totalorder (!%p223_p3), %s808_s19, 7 }
   0x8   : > { %p279_p5 = scmp.lt.s32.totalorder (!%p223_p3), %s810_s20, 127  ;;  %p812_p6 = scmp.ne.s32.totalorder (!%p223_p3), %s974_s15, 0 }
   0xe   : > { %s1106_s19 = smov (!%p271_p4, %s808_s19), 7  ;;  %s1108_s20 = smov (!%p279_p5, %s810_s20), 127 }
   0xf   : > { %s809_s21 = sshll.u32 %s1106_s19, 2  ;;  %s811_s25 = sshll.u32 %s1108_s20, 2  ;;  %vm305_vm0 = vcmask (!%p812_p6), 261120   ;;  %v984_v0 = vmov (!%p812_p6), 0.0  }
  0x10   : > { %s1035_s24 = scalar_lea.vmem %s1096_s0, %s809_s21  ;;  %s1040_s28 = scalar_lea.vmem %s1097_s1, %s811_s25  ;;  %306 = vst.msk [vmem:[#allocation2] sm:$0xff] (!%p812_p6), %vm305_vm0, %v984_v0 }
  0x11   : > { %304 = sbr.rel (%p812_p6) target bundleno = 24 (0x18), region = 40 }
  0x18 PF: > { %v924_v1 = vld [vmem:[%s1040_s28 + $0x40] sm:$0xff]   ;;  %v928_v5 = vld [vmem:[%s1040_s28 + $0x48] sm:$0xff]   ;;  %v932_v9 = vld [vmem:[%s1040_s28 + $0x50] sm:$0xff]   ;;  %vm661_vm1 = vcmask 261120   ;;  %p849_p7 = scmp.ne.s32.totalorder %s974_s15, 1 }
  0x19   : > { %v925_v2 = vld [vmem:[%s1040_s28 + $0xc0] sm:$0xff]   ;;  %855 = vmatprep.subr.bf16.mxu0 %v924_v1  ;;  %v929_v6 = vld [vmem:[%s1040_s28 + $0xc8] sm:$0xff]   ;;  %v933_v10 = vld [vmem:[%s1040_s28 + $0xd0] sm:$0xff]  }
  0x1a   : > { %v926_v3 = vld [vmem:[%s1040_s28] sm:$0xff]   ;;  %877 = vmatprep.subr.bf16.mxu1 %v925_v2  ;;  %v930_v7 = vld [vmem:[%s1040_s28 + $0x8] sm:$0xff]   ;;  %v934_v11 = vld [vmem:[%s1040_s28 + $0x10] sm:$0xff]  }
  0x1b   : > { %v927_v4 = vld [vmem:[%s1040_s28 + $0x80] sm:$0xff]   ;;  %856 = vmatpush3.bf16.msra.mxu0 %v926_v3  ;;  %v931_v8 = vld [vmem:[%s1040_s28 + $0x88] sm:$0xff]   ;;  %v935_v12 = vld [vmem:[%s1040_s28 + $0x90] sm:$0xff]  }
  0x1c   : > { %878 = vmatpush3.bf16.msra.mxu1 %v927_v4  ;;  %857 = vmatprep.subr.bf16.mxu0 %v928_v5  ;;  %v936_v13 = vld [vmem:[%s1040_s28 + $0x58] sm:$0xff]   ;;  %v940_v17 = vld [vmem:[%s1040_s28 + $0x60] sm:$0xff]   ;;  %v944_v21 = vld [vmem:[%s1040_s28 + $0x68] sm:$0xff]  }
  0x1d   : > { %879 = vmatprep.subr.bf16.mxu1 %v929_v6  ;;  %v937_v14 = vld [vmem:[%s1040_s28 + $0xd8] sm:$0xff]   ;;  %v941_v18 = vld [vmem:[%s1040_s28 + $0xe0] sm:$0xff]   ;;  %v945_v22 = vld [vmem:[%s1040_s28 + $0xe8] sm:$0xff]  }
  0x1e   : > { %v938_v15 = vld [vmem:[%s1040_s28 + $0x18] sm:$0xff]   ;;  %v942_v19 = vld [vmem:[%s1040_s28 + $0x20] sm:$0xff]   ;;  %v946_v23 = vld [vmem:[%s1040_s28 + $0x28] sm:$0xff]  }
  0x1f   : > { %858 = vmatpush3.bf16.msra.mxu0 %v930_v7  ;;  %v939_v16 = vld [vmem:[%s1040_s28 + $0x98] sm:$0xff]   ;;  %v943_v20 = vld [vmem:[%s1040_s28 + $0xa0] sm:$0xff]   ;;  %v947_v24 = vld [vmem:[%s1040_s28 + $0xa8] sm:$0xff]  }
  0x20   : > { %880 = vmatpush3.bf16.msra.mxu1 %v931_v8  ;;  %859 = vmatprep.subr.bf16.mxu0 %v932_v9  ;;  %v948_v25 = vld [vmem:[%s1040_s28 + $0x70] sm:$0xff]   ;;  %v952_v29 = vld [vmem:[%s1040_s28 + $0x78] sm:$0xff]   ;;  %v308_v33 = vld [vmem:[%s1035_s24] sm:$0xff] }
  0x21   : > { %881 = vmatprep.subr.bf16.mxu1 %v933_v10  ;;  %v949_v26 = vld [vmem:[%s1040_s28 + $0xf0] sm:$0xff]   ;;  %v953_v30 = vld [vmem:[%s1040_s28 + $0xf8] sm:$0xff]   ;;  %v309_v34 = vld [vmem:[%s1035_s24 + $0x8] sm:$0xff]  ;;  %v813_v35 = vcombine.low %v308_v33, %v308_v33  ;;  %v814_v36 = vcombine.high %v308_v33, %v308_v33 }
  0x22   : > { %v950_v27 = vld [vmem:[%s1040_s28 + $0x30] sm:$0xff]   ;;  %v954_v31 = vld [vmem:[%s1040_s28 + $0x38] sm:$0xff]   ;;  %v815_v37 = vcombine.low %v309_v34, %v309_v34  ;;  %v816_v38 = vcombine.high %v309_v34, %v309_v34  ;;  %v307_v47 = vld [vmem:[#allocation2] sm:$0xff] }
  0x23   : > { %860 = vmatpush3.bf16.msra.mxu0 %v934_v11  ;;  %v951_v28 = vld [vmem:[%s1040_s28 + $0xb0] sm:$0xff]   ;;  %v955_v32 = vld [vmem:[%s1040_s28 + $0xb8] sm:$0xff]   ;;  %612 = vmatprep.mubr.bf16.mxu0 %v814_v36  ;;  %v850_v53 = vld [vmem:[%s1098_s2] ss:$0 sm:$0xff] (!%p849_p7) }
  0x24   : > { %882 = vmatpush3.bf16.msra.mxu1 %v935_v12  ;;  %861 = vmatprep.subr.bf16.mxu0 %v936_v13  ;;  %v851_v54 = vld [vmem:[%s1099_s3] ss:$0 sm:$0xff] (!%p849_p7) }
  0x25   : > { %883 = vmatprep.subr.bf16.mxu1 %v937_v14  ;;  %652 = vmatprep.mubr.bf16.mxu1 %v816_v38 }
  0x27   : > { %862 = vmatpush3.bf16.msra.mxu0 %v938_v15 }
  0x28   : > { %884 = vmatpush3.bf16.msra.mxu1 %v939_v16  ;;  %863 = vmatprep.subr.bf16.mxu0 %v940_v17 }
  0x29   : > { %885 = vmatprep.subr.bf16.mxu1 %v941_v18 }
  0x2b   : > { %864 = vmatpush3.bf16.msra.mxu0 %v942_v19 }
  0x2c   : > { %886 = vmatpush3.bf16.msra.mxu1 %v943_v20  ;;  %865 = vmatprep.subr.bf16.mxu0 %v944_v21 }
  0x2d   : > { %887 = vmatprep.subr.bf16.mxu1 %v945_v22 }
  0x2f   : > { %866 = vmatpush3.bf16.msra.mxu0 %v946_v23 }
  0x30   : > { %888 = vmatpush3.bf16.msra.mxu1 %v947_v24  ;;  %867 = vmatprep.subr.bf16.mxu0 %v948_v25 }
  0x31   : > { %889 = vmatprep.subr.bf16.mxu1 %v949_v26 }
  0x33   : > { %868 = vmatpush3.bf16.msra.mxu0 %v950_v27 }
  0x34   : > { %890 = vmatpush3.bf16.msra.mxu1 %v951_v28  ;;  %869 = vmatprep.subr.bf16.mxu0 %v952_v29 }
  0x35   : > { %891 = vmatprep.subr.bf16.mxu1 %v953_v30 }
  0x37   : > { %870 = vmatpush3.bf16.msra.mxu0 %v954_v31 }
  0x38   : > { %892 = vmatpush3.bf16.msra.mxu1 %v955_v32 }
  0x3a   : > { %613 = vmatmul.mubr.bf16.vlgmr.msra.gmra.mrb[0].mxu0 %v813_v35 }
  0x3b   : > { %653 = vmatmul.mubr.bf16.vlgmr.msra.gmra.mrb[0].mxu1 %v815_v37 }
 0x10d   : > { %v871_v39 = vpop.f32.mrb[0].mxu0 }
 0x10e   : > { %v893_v40 = vpop.f32.mrb[0].mxu1  ;;  %v872_v41 = vpop.f32.mrb[1].mxu0 }
 0x10f   : > { %v894_v42 = vpop.f32.mrb[1].mxu1  ;;  %v873_v43 = vadd.f32 %v872_v41, %v871_v39  ;;  %v874_v45 = vpop.f32.mrb[2].mxu0 }
 0x110   : > { %v895_v44 = vadd.f32 %v894_v42, %v893_v40  ;;  %v896_v46 = vpop.f32.mrb[2].mxu1  ;;  %v875_v48 = vpop.f32.mrb[3].mxu0  ;;  %666 = sbr.rel (%p849_p7) target bundleno = 291 (0x123), region = 44 }
 0x111   : > { %v897_v49 = vpop.f32.mrb[3].mxu1 }
 0x112   : > { %v655_v50 = vadd.f32 %v895_v44, %v873_v43 }
 0x114   : > { %v660_v51 = vadd.f32 %v655_v50, %v307_v47 }
 0x116   : > { %662 = vst.msk [vmem:[#allocation2] sm:$0xff] %vm661_vm1, %v660_v51 }
 0x11d   : > { %v667_v52 = vld [vmem:[#allocation2] sm:$0xff] }
 0x11e   : > { %v675_v55 = vmul.f32 %v850_v53, %v667_v52 }
 0x120   : > { %v683_v56 = vadd.f32 %v851_v54, %v675_v55 }
 0x122   : > { %684 = vst.msk [vmem:[%s1100_s4] sm:$0xff] %vm661_vm1, %v683_v56 }
 0x123 PF: > { %s14_s17 = sadd.s32 1, %s982_s17   ;;  %s1101_s15 = smov %s978_s16 }
 0x124   : > { %p11_p8 = scmp.ge.s32.totalorder %s14_s17, 4   ;;  %s1102_s16 = smov %s1104_s18 }
 0x126   :  { %13 = sbr.rel (!%p11_p8) target bundleno = 2 (0x2), region = 83 }

</bundles_post_ra>
